<compile_context>
chip_gen: v5e
topology: v5e:2x2
jax: 0.10.0
libtpu: 0.0.40
codegen_flags: <defaults>
</compile_context>

<pallas_src>
import functools

import jax
import jax.numpy as jnp
from jax.experimental import pallas as pl
from jax.experimental.pallas import tpu as pltpu


def _round_up(n, m):
    return ((n + m - 1) // m) * m


def _aae_kernel(x_ref, wg_ref, bg_ref, wh_ref, bh_ref, wi_ref, bi_ref, out_ref):
    """One batch tile: 3 chained Linear layers with sigmoid activations."""
    x = x_ref[...]

    # Layer g: [tb, Q] @ [Q, Kp] + [1, Kp]
    h1 = jnp.dot(x, wg_ref[...], preferred_element_type=jnp.float32) + bg_ref[...]
    h1 = jax.nn.sigmoid(h1)

    # Layer h: [tb, Kp] @ [Kp, Lp] + [1, Lp]
    h2 = jnp.dot(h1, wh_ref[...], preferred_element_type=jnp.float32) + bh_ref[...]
    h2 = jax.nn.sigmoid(h2)

    # Layer i: [tb, Lp] @ [Lp, Q] + [1, Q], then final sigmoid
    y = jnp.dot(h2, wi_ref[...], preferred_element_type=jnp.float32) + bi_ref[...]
    out_ref[...] = jax.nn.sigmoid(y).astype(out_ref.dtype)


def pad_params_for_tpu(params):
    """Zero-pad hidden dims K, L up to multiples of 128 (lane-dense tiles).

    Padded rows of Wh/Wi are zero, so the sigmoid(0)=0.5 values that appear in
    the padded lanes of h1/h2 contribute nothing downstream -> identical math.
    """
    wg, bg = params["wg"], params["bg"]   # [Q, K], [1, K]
    wh, bh = params["wh"], params["bh"]   # [K, L], [1, L]
    wi, bi = params["wi"], params["bi"]   # [L, Q], [1, Q]
    K = wg.shape[1]
    L = wh.shape[1]
    Kp = _round_up(K, 128)
    Lp = _round_up(L, 128)

    wg_p = jnp.pad(wg, ((0, 0), (0, Kp - K)))
    bg_p = jnp.pad(bg, ((0, 0), (0, Kp - K)))
    wh_p = jnp.pad(wh, ((0, Kp - K), (0, Lp - L)))   # padded K rows MUST be zero
    bh_p = jnp.pad(bh, ((0, 0), (0, Lp - L)))
    wi_p = jnp.pad(wi, ((0, Lp - L), (0, 0)))        # padded L rows MUST be zero
    return {"wg": wg_p, "bg": bg_p, "wh": wh_p, "bh": bh_p, "wi": wi_p, "bi": bi}


@functools.partial(jax.jit, static_argnames=("tb",))
def augmented_autoencoder_forward(x, params, *, tb=512):
    """x: [B, num_question] float32.  params: dict of transposed, padded weights."""
    B, Q = x.shape
    wg, bg = params["wg"], params["bg"]   # [Q, Kp], [1, Kp]
    wh, bh = params["wh"], params["bh"]   # [Kp, Lp], [1, Lp]
    wi, bi = params["wi"], params["bi"]   # [Lp, Q], [1, Q]
    Kp = wg.shape[1]
    Lp = wh.shape[1]

    # Keep the batch tile a multiple of 8 (f32 sublane) and avoid allocating
    # an oversized block when B is small.
    tb_eff = _round_up(max(8, min(tb, _round_up(B, 128))), 8)
    grid = (pl.cdiv(B, tb_eff),)

    return pl.pallas_call(
        _aae_kernel,
        out_shape=jax.ShapeDtypeStruct((B, Q), x.dtype),
        grid_spec=pltpu.PrefetchScalarGridSpec(
            num_scalar_prefetch=0,
            grid=grid,
            in_specs=[
                pl.BlockSpec((tb_eff, Q), lambda i: (i, 0)),   # x tile (pipelined)
                pl.BlockSpec((Q, Kp), lambda i: (0, 0)),       # Wg (VMEM-resident)
                pl.BlockSpec((1, Kp), lambda i: (0, 0)),       # bg
                pl.BlockSpec((Kp, Lp), lambda i: (0, 0)),      # Wh
                pl.BlockSpec((1, Lp), lambda i: (0, 0)),       # bh
                pl.BlockSpec((Lp, Q), lambda i: (0, 0)),       # Wi
                pl.BlockSpec((1, Q), lambda i: (0, 0)),        # bi
            ],
            out_specs=pl.BlockSpec((tb_eff, Q), lambda i: (i, 0)),
        ),
        compiler_params=pltpu.CompilerParams(
            dimension_semantics=("parallel",),
        ),
    )(x, wg, bg, wh, bh, wi, bi)


def init_params(key, num_question, k=200, l=50, dtype=jnp.float32):
    """Deterministic init mimicking nn.Linear (uniform +-1/sqrt(fan_in)).

    Weights are stored already transposed to [in, out]; biases as [1, out].
    """
    keys = jax.random.split(key, 6)

    def lin(wk, bk, fan_in, fan_out):
        bound = 1.0 / jnp.sqrt(jnp.asarray(fan_in, dtype))
        w = jax.random.uniform(wk, (fan_in, fan_out), dtype, -bound, bound)
        b = jax.random.uniform(bk, (1, fan_out), dtype, -bound, bound)
        return w, b

    wg, bg = lin(keys[0], keys[1], num_question, k)
    wh, bh = lin(keys[2], keys[3], k, l)
    wi, bi = lin(keys[4], keys[5], l, num_question)
    return {"wg": wg, "bg": bg, "wh": wh, "bh": bh, "wi": wi, "bi": bi}


def reference_forward(x, p):
    """Pure-JAX reference matching the PyTorch forward exactly (unpadded params)."""
    h1 = jax.nn.sigmoid(x @ p["wg"] + p["bg"])
    h2 = jax.nn.sigmoid(h1 @ p["wh"] + p["bh"])
    return jax.nn.sigmoid(h2 @ p["wi"] + p["bi"])


if __name__ == "__main__":
    # batch=1024 with tb=512 -> 2 grid steps (both v7x TensorCores active),
    # num_question=256, hidden k=200, l=50 (padded internally to 256/128).
    B, Q, K, L = 1024, 256, 200, 50

    key = jax.random.PRNGKey(0)
    k_x, k_p = jax.random.split(key)
    # Binary-ish "response" inputs like the autoencoder expects.
    x = jax.random.bernoulli(k_x, 0.5, (B, Q)).astype(jnp.float32)

    params = init_params(k_p, Q, k=K, l=L)
    params_padded = pad_params_for_tpu(params)

    out = augmented_autoencoder_forward(x, params_padded, tb=512)
    out = jax.block_until_ready(out)

    ref = reference_forward(x, params)
    assert out.shape == (B, Q)
    assert jnp.allclose(out, ref, atol=1e-5, rtol=1e-5)

    print("KERNEL_OK")
</pallas_src>

<mosaic_0001>
module attributes {stable_mosaic.version = 11 : i64} {
  func.func @_aae_kernel(%arg0: i32, %arg1: memref<512x256xf32, #tpu.memory_space<vmem>>, %arg2: memref<256x256xf32, #tpu.memory_space<vmem>>, %arg3: memref<1x256xf32, #tpu.memory_space<vmem>>, %arg4: memref<256x128xf32, #tpu.memory_space<vmem>>, %arg5: memref<1x128xf32, #tpu.memory_space<vmem>>, %arg6: memref<128x256xf32, #tpu.memory_space<vmem>>, %arg7: memref<1x256xf32, #tpu.memory_space<vmem>>, %arg8: memref<512x256xf32, #tpu.memory_space<vmem>>) attributes {dimension_semantics = [#tpu.dimension_semantics<parallel>], iteration_bounds = array<i64: 2>, scalar_prefetch = 0 : i64, scratch_operands = 0 : i64, tpu.core_type = #tpu.core_type<tc>, window_params = [{transform_indices = @transform_0, window_bounds = array<i64: 512, 256>}, {pipeline_mode = #tpu.pipeline_mode<synchronous>, transform_indices = @transform_1, window_bounds = array<i64: 256, 256>}, {pipeline_mode = #tpu.pipeline_mode<synchronous>, transform_indices = @transform_2, window_bounds = array<i64: 1, 256>}, {pipeline_mode = #tpu.pipeline_mode<synchronous>, transform_indices = @transform_3, window_bounds = array<i64: 256, 128>}, {pipeline_mode = #tpu.pipeline_mode<synchronous>, transform_indices = @transform_4, window_bounds = array<i64: 1, 128>}, {pipeline_mode = #tpu.pipeline_mode<synchronous>, transform_indices = @transform_5, window_bounds = array<i64: 128, 256>}, {pipeline_mode = #tpu.pipeline_mode<synchronous>, transform_indices = @transform_6, window_bounds = array<i64: 1, 256>}, {transform_indices = @transform_7, window_bounds = array<i64: 512, 256>}]} {
    %c0 = arith.constant 0 : index
    %c0_0 = arith.constant 0 : index
    %0 = vector.load %arg1[%c0, %c0_0] : memref<512x256xf32, #tpu.memory_space<vmem>>, vector<512x256xf32>
    %c0_1 = arith.constant 0 : index
    %c0_2 = arith.constant 0 : index
    %1 = vector.load %arg2[%c0_1, %c0_2] : memref<256x256xf32, #tpu.memory_space<vmem>>, vector<256x256xf32>
    %cst = arith.constant dense<0.000000e+00> : vector<512x256xf32>
    %2 = tpu.matmul %0, %1, %cst {dimension_numbers = #tpu.dot_dimension_numbers<[1], [0], [0], [1], [0, 0, 1, 1], [], []>} : vector<512x256xf32>, vector<256x256xf32>, vector<512x256xf32> -> vector<512x256xf32>
    %c0_3 = arith.constant 0 : index
    %c0_4 = arith.constant 0 : index
    %3 = vector.load %arg3[%c0_3, %c0_4] : memref<1x256xf32, #tpu.memory_space<vmem>>, vector<1x256xf32>
    %4 = vector.broadcast %3 : vector<1x256xf32> to vector<512x256xf32>
    %5 = arith.addf %2, %4 : vector<512x256xf32>
    %6 = arith.negf %5 : vector<512x256xf32>
    %7 = math.exp %6 : vector<512x256xf32>
    %cst_5 = arith.constant 1.000000e+00 : f32
    %8 = vector.broadcast %cst_5 : f32 to vector<512x256xf32>
    %9 = arith.addf %8, %7 : vector<512x256xf32>
    %10 = arith.divf %8, %9 : vector<512x256xf32>
    %c0_6 = arith.constant 0 : index
    %c0_7 = arith.constant 0 : index
    %11 = vector.load %arg4[%c0_6, %c0_7] : memref<256x128xf32, #tpu.memory_space<vmem>>, vector<256x128xf32>
    %cst_8 = arith.constant dense<0.000000e+00> : vector<512x128xf32>
    %12 = tpu.matmul %10, %11, %cst_8 {dimension_numbers = #tpu.dot_dimension_numbers<[1], [0], [0], [1], [0, 0, 1, 1], [], []>} : vector<512x256xf32>, vector<256x128xf32>, vector<512x128xf32> -> vector<512x128xf32>
    %c0_9 = arith.constant 0 : index
    %c0_10 = arith.constant 0 : index
    %13 = vector.load %arg5[%c0_9, %c0_10] : memref<1x128xf32, #tpu.memory_space<vmem>>, vector<1x128xf32>
    %14 = vector.broadcast %13 : vector<1x128xf32> to vector<512x128xf32>
    %15 = arith.addf %12, %14 : vector<512x128xf32>
    %16 = arith.negf %15 : vector<512x128xf32>
    %17 = math.exp %16 : vector<512x128xf32>
    %cst_11 = arith.constant 1.000000e+00 : f32
    %18 = vector.broadcast %cst_11 : f32 to vector<512x128xf32>
    %19 = arith.addf %18, %17 : vector<512x128xf32>
    %20 = arith.divf %18, %19 : vector<512x128xf32>
    %c0_12 = arith.constant 0 : index
    %c0_13 = arith.constant 0 : index
    %21 = vector.load %arg6[%c0_12, %c0_13] : memref<128x256xf32, #tpu.memory_space<vmem>>, vector<128x256xf32>
    %cst_14 = arith.constant dense<0.000000e+00> : vector<512x256xf32>
    %22 = tpu.matmul %20, %21, %cst_14 {dimension_numbers = #tpu.dot_dimension_numbers<[1], [0], [0], [1], [0, 0, 1, 1], [], []>} : vector<512x128xf32>, vector<128x256xf32>, vector<512x256xf32> -> vector<512x256xf32>
    %c0_15 = arith.constant 0 : index
    %c0_16 = arith.constant 0 : index
    %23 = vector.load %arg7[%c0_15, %c0_16] : memref<1x256xf32, #tpu.memory_space<vmem>>, vector<1x256xf32>
    %24 = vector.broadcast %23 : vector<1x256xf32> to vector<512x256xf32>
    %25 = arith.addf %22, %24 : vector<512x256xf32>
    %26 = arith.negf %25 : vector<512x256xf32>
    %27 = math.exp %26 : vector<512x256xf32>
    %cst_17 = arith.constant 1.000000e+00 : f32
    %28 = vector.broadcast %cst_17 : f32 to vector<512x256xf32>
    %29 = arith.addf %28, %27 : vector<512x256xf32>
    %30 = arith.divf %28, %29 : vector<512x256xf32>
    %c0_18 = arith.constant 0 : index
    %c0_19 = arith.constant 0 : index
    %31 = vector.load %arg8[%c0_18, %c0_19] : memref<512x256xf32, #tpu.memory_space<vmem>>, vector<512x256xf32>
    tpu.vector_store %arg8[%c0_18, %c0_19], %30 {strides = array<i32>} : memref<512x256xf32, #tpu.memory_space<vmem>>, vector<512x256xf32>,
    return
  }
  func.func @transform_0(%arg0: i32) -> (i32, i32) {
    %c0_i32 = arith.constant 0 : i32
    %c0_i32_0 = arith.constant 0 : i32
    return %arg0, %c0_i32 : i32, i32
  }
  func.func @transform_1(%arg0: i32) -> (i32, i32) {
    %c0_i32 = arith.constant 0 : i32
    %c0_i32_0 = arith.constant 0 : i32
    %c0_i32_1 = arith.constant 0 : i32
    return %c0_i32, %c0_i32_0 : i32, i32
  }
  func.func @transform_2(%arg0: i32) -> (i32, i32) {
    %c0_i32 = arith.constant 0 : i32
    %c0_i32_0 = arith.constant 0 : i32
    %c0_i32_1 = arith.constant 0 : i32
    return %c0_i32, %c0_i32_0 : i32, i32
  }
  func.func @transform_3(%arg0: i32) -> (i32, i32) {
    %c0_i32 = arith.constant 0 : i32
    %c0_i32_0 = arith.constant 0 : i32
    %c0_i32_1 = arith.constant 0 : i32
    return %c0_i32, %c0_i32_0 : i32, i32
  }
  func.func @transform_4(%arg0: i32) -> (i32, i32) {
    %c0_i32 = arith.constant 0 : i32
    %c0_i32_0 = arith.constant 0 : i32
    %c0_i32_1 = arith.constant 0 : i32
    return %c0_i32, %c0_i32_0 : i32, i32
  }
  func.func @transform_5(%arg0: i32) -> (i32, i32) {
    %c0_i32 = arith.constant 0 : i32
    %c0_i32_0 = arith.constant 0 : i32
    %c0_i32_1 = arith.constant 0 : i32
    return %c0_i32, %c0_i32_0 : i32, i32
  }
  func.func @transform_6(%arg0: i32) -> (i32, i32) {
    %c0_i32 = arith.constant 0 : i32
    %c0_i32_0 = arith.constant 0 : i32
    %c0_i32_1 = arith.constant 0 : i32
    return %c0_i32, %c0_i32_0 : i32, i32
  }
  func.func @transform_7(%arg0: i32) -> (i32, i32) {
    %c0_i32 = arith.constant 0 : i32
    %c0_i32_0 = arith.constant 0 : i32
    return %arg0, %c0_i32 : i32, i32
  }
}

</mosaic_0001>

<bundles_post_ra>
// kernel: augmented_autoencoder_forward.1
= control target key start
LH: loop header
LB: loop body
LE: loop exit
PB: predicated region body
PF: predicated region fallthrough
CT: control target
= control target key end

     0   :  { %s19673_s0 = inlined_call_operand.hbm [shape: f32[1024,256], index: 0, kind: input, shape index: {}]   ;;  %s19674_s1 = inlined_call_operand.hbm [shape: f32[256,256], index: 1, kind: input, shape index: {}]   ;;  %s19675_s2 = inlined_call_operand.hbm [shape: f32[1,256], index: 2, kind: input, shape index: {}]   ;;  %s19676_s3 = inlined_call_operand.hbm [shape: f32[256,128], index: 3, kind: input, shape index: {}]   ;;  %s19677_s4 = inlined_call_operand.hbm [shape: f32[1,128], index: 4, kind: input, shape index: {}]   ;;  %s19678_s5 = inlined_call_operand.hbm [shape: f32[128,256], index: 5, kind: input, shape index: {}]   ;;  %s19679_s6 = inlined_call_operand.vmem [shape: f32[1,256], index: 6, kind: input, shape index: {}]   ;;  %s19680_s7 = inlined_call_operand.hbm [shape: f32[1024,256], index: 7, kind: output, shape index: {}]  }
   0x1   :  { %19741 = sst [smem:[#allocation81_spill]] %s19674_s1 }
   0x2   :  { %12 = vsyncpa [#allocation3], 0 }
   0x3   :  { %14 = vsyncpa [#allocation3 + $0x1], 0 }
   0x4   :  { %15 = vsyncpa [#allocation6], 0 }
   0x5   :  { %16 = vsyncpa [#allocation9], 0 }
   0x6   :  { %17 = vsyncpa [#allocation12], 0 }
   0x7   :  { %18 = vsyncpa [#allocation4], 0 }
   0x8   :  { %20 = vsyncpa [#allocation4 + $0x1], 0  ;;  %s10806_s24 = smov 0   ;;  %s10808_s25 = smov 0  }
   0x9   :  { %s10810_s26 = smov 0   ;;  %s10812_s27 = smov 0  }
   0xa LB: > { %s19742_s1 = sld [smem:[#allocation81_spill]]  ;;  %s10830_s8 = sadd.s32 4294967295, %s10753_s27   ;;  %s10753_s27 = sphi %s10812_s27, %s20748_s27   ;;  %s10749_s26 = sphi %s10810_s26, %s20747_s26   ;;  %s10745_s25 = sphi %s10808_s25, %s20746_s25   ;;  %s10741_s24 = sphi %s10806_s24, %s20745_s24  }
   0xb   : > { %p8672_p0 = scmp.ge.s32.totalorder %s10753_s27, 1  ;;  %p47_p1 = scmp.eq.s32.totalorder %s10830_s8, 0 }
   0xc   : > { %p209_p2 = scmp.lt.s32.totalorder %s10753_s27, 3  ;;  %s10755_s10 = smov [#allocation5]  }
   0xd   : > { %s222_s11 = sshll.u32 %s10755_s10, 4  ;;  %s246_s14 = sshll.u32 %s19676_s3, 4  ;;  %s223_s11 = int_to_ptr.vmem [resolvable:$true] %s222_s11  ;;  %s247_s14 = int_to_ptr.hbm [resolvable:$true] %s246_s14 }
   0xe   : > { %p10835_p3 = pnand %p8672_p0, %p209_p2  ;;  %s10756_s16 = smov [#allocation8]  }
   0xf   : > { %s248_s17 = sshll.u32 %s10756_s16, 4  ;;  %s19681_s18 = smov 256   ;;  %s249_s17 = int_to_ptr.vmem [resolvable:$true] %s248_s17 }
  0x10   : > { %s220_s30 = sshll.u32 %s19742_s1, 4  ;;  %p9045_p4 = pneg %p10835_p3  ;;  %s221_s30 = int_to_ptr.hbm [resolvable:$true] %s220_s30 }
  0x11   : > { %s19682_s19 = smov 16   ;;  %s10759_s20 = smov 128  }
  0x12   : > { %p10847_p6 = pnand %p9045_p4, %p47_p1  ;;  %s10760_s21 = smov 8  }
  0x13   : > { %s235_s28 = sshll.u32 %s19675_s2, 4  ;;  %s10761_s29 = smov [#allocation7]   ;;  %s236_s28 = int_to_ptr.hbm [resolvable:$true] %s235_s28 }
  0x14   : > { %9048 = dma.hbm_to_vmem [thread:$0]  (!%p10847_p6), %s221_s30, 8192, %s223_s11, [#allocation6], %s19681_s18, %s19681_s18, %s19682_s19  }
  0x15   : > { %9054 = dma.hbm_to_vmem [thread:$0]  (!%p10847_p6), %s247_s14, 4096, %s249_s17, [#allocation9], %s10759_s20, %s10759_s20, %s10760_s21  }
  0x16   : > { %s237_s10 = sshll.u32 %s10761_s29, 4  ;;  %s261_s30 = sshll.u32 %s19677_s4, 4  ;;  %s238_s10 = int_to_ptr.vmem [resolvable:$true] %s237_s10  ;;  %s262_s30 = int_to_ptr.hbm [resolvable:$true] %s261_s30 }
  0x17   : > { %9051 = dma.hbm_to_vmem [thread:$0]  (!%p10847_p6), %s236_s28, 32, %s238_s10, [#allocation6]  }
  0x18   : > { %s10762_s11 = smov [#allocation10]   ;;  %s272_s20 = sshll.u32 %s19678_s5, 4  ;;  %s273_s20 = int_to_ptr.hbm [resolvable:$true] %s272_s20 }
  0x19   : > { %s263_s14 = sshll.u32 %s10762_s11, 4  ;;  %s10763_s21 = smov [#allocation11]   ;;  %s264_s14 = int_to_ptr.vmem [resolvable:$true] %s263_s14 }
  0x1a   : > { %9057 = dma.hbm_to_vmem [thread:$0]  (!%p10847_p6), %s262_s30, 16, %s264_s14, [#allocation9]  }
  0x1b   : > { %s274_s22 = sshll.u32 %s10763_s21, 4  ;;  %s8671_s23 = sadd.s32 4294967294, %s10753_s27   ;;  %s275_s22 = int_to_ptr.vmem [resolvable:$true] %s274_s22 }
  0x1c   : > { %9060 = dma.hbm_to_vmem [thread:$0]  (!%p10847_p6), %s273_s20, 4096, %s275_s22, [#allocation12], %s19681_s18, %s19681_s18, %s19682_s19  }
  0x1d   : > { %s10878_s28 = sadd.s32 1, %s10753_s27   ;;  %s33_s29 = sadd.s32 1, %s10749_s26 }
  0x1e   : > { %s30_s10 = ssub.s32 %s10753_s27, %s10878_s28  ;;  %p40_p7 = scmp.ne.s32.totalorder %s10749_s26, %s10745_s25 }
  0x1f   : > { %p31_p8 = scmp.eq.s32.totalorder %s30_s10, 0  ;;  %p41_p9 = scmp.eq.s32.totalorder %s10753_s27, 0 }
  0x20   : > { %p46_p10 = scmp.ne.s32.totalorder %s10745_s25, %s10741_s24  ;;  %p196_p11 = scmp.eq.s32.totalorder %s10830_s8, 1 }
  0x21   : > { %s10890_s12 = scalar_select %p31_p8, %s10749_s26, %s33_s29  }
  0x22   : > { %p10894_p12 = por %p47_p1, %p46_p10  ;;  %p10898_p13 = por %p196_p11, %p40_p7 }
  0x23   : > { %p202_p0 = scmp.eq.s32.totalorder %s8671_s23, 1  ;;  %p42_p2 = por %p41_p9, %p40_p7 }
  0x24   : > { %s291_s30 = sand.u32 1, %s10749_s26   ;;  %p9074_p6 = scmp.lt.s32.totalorder %s10753_s27, 2 }
  0x25   : > { %p10903_p4 = por %p202_p0, %p46_p10  ;;  %s8679_s14 = sshll.u32 %s291_s30, 10 }
  0x26   : > { %s9018_s16 = sshll.u32 %s10753_s27, 10  ;;  %s295_s29 = scalar_lea.vmem [#allocation2], %s8679_s14 }
  0x27   : > { %s301_s21 = scalar_lea.hbm %s19673_s0, %s9018_s16  ;;  %s304_s10 = sshll.u32 %s295_s29, 4  ;;  %s305_s10 = int_to_ptr.vmem [resolvable:$true] %s304_s10 }
  0x28   : > { %s302_s22 = sshll.u32 %s301_s21, 4  ;;  %p10912_p8 = pnand %p9074_p6, %p42_p2  ;;  %s303_s22 = int_to_ptr.hbm [resolvable:$true] %s302_s22 }
  0x29   : > { %s292_s18 = scalar_lea.sflag [#allocation3], %s291_s30  ;;  %s10645_s19 = sshra.s32 %s303_s22, 4  ;;  %s10646_s19 = int_to_ptr.hbm [resolvable:$true] %s10645_s19 }
  0x2a   : > { %s10647_s1 = scalar_lea.hbm %s10646_s19, 1024  ;;  %p10649_p9 = pneg %p10912_p8 }
  0x2b   : > { %p10648_p7 = scmp.ne.s32.totalorder %s10646_s19, %s10647_s1  ;;  %s10652_s14 = scalar_lea.hbm %s19673_s0, 2048 }
  0x2c   : > { %p10653_p0 = scmp.lt.s32.totalorder %s10646_s19, %s19673_s0  ;;  %p10654_p2 = scmp.lt.s32.totalorder %s10652_s14, %s10647_s1 }
  0x2d   : > { %p10650_p10 = pnand %p10649_p9, %p10648_p7 }
  0x2e   : > { %p10655_p6 = por %p10654_p2, %p10653_p0 }
  0x2f   : > { %p10651_p11 = pneg %p10650_p10 }
  0x31   : > { %p10656_p5 = pnand %p10655_p6, %p10651_p11 }
  0x33   : > { %10659 = shalt.err (!%p10656_p5)
}
  0x34   : > { %s19749_s30 = smov 16   ;;  %s19750_s29 = smov 256  }
  0x35   : > { %9064 = dma.hbm_to_vmem [thread:$0]  (!%p10912_p8), %s303_s22, 16384, %s305_s10, %s292_s18, %s19750_s29, %s19750_s29, %s19749_s30  }
  0x36   : > { %316 = sbr.rel (%p10835_p3) target bundleno = 1738 (0x6ca), region = 48 }
  0x3b   : > { %s10932_s16 = sand.u32 1, %s10745_s25  }
  0x3c   : > { %s8684_s1 = sshll.u32 %s10932_s16, 10  ;;  %s319_s19 = scalar_lea.sflag [#allocation3], %s10932_s16 }
  0x3d   : > { %s10938_s17 = scalar_lea.vmem [#allocation2], %s8684_s1 }
  0x3e   : > { %10720 = dma.done.wait (%p10894_p12), %s319_s19, 16384  }
  0x3f   : > { %10722 = vsyncadd (%p10894_p12), %s319_s19, 4294950912 }
  0x40   : > { %10724 = dma.done.wait (%p47_p1), [#allocation6], 8224  }
  0x41   : > { %10726 = vsyncadd (%p47_p1), [#allocation6], 4294959072 }
  0x42   : > { %10728 = dma.done.wait (%p47_p1), [#allocation9], 4112  }
  0x43   : > { %10730 = vsyncadd (%p47_p1), [#allocation9], 4294963184 }
  0x44   : > { %10732 = dma.done.wait (%p47_p1), [#allocation12], 4096  }
  0x45   : > { %10734 = vsyncadd (%p47_p1), [#allocation12], 4294963200  ;;  %v539_v0 = vld [vmem:[#allocation5 + $0xf0] sm:$0xff]  ;;  %v537_v2 = vld [vmem:[#allocation5 + $0xe0] sm:$0xff]  ;;  %s16097_s15 = scalar_lea.vmem [#allocation13], %s8684_s1  ;;  %s9020_s22 = sshll.u32 %s10830_s8, 10 }
  0x46   : > { %v571_v1 = vld [vmem:[#allocation5 + $0x1f0] sm:$0xff]  ;;  %579 = vmatpush.msra.mxu0 %v539_v0  ;;  %v569_v3 = vld [vmem:[#allocation5 + $0x1e0] sm:$0xff]  ;;  %v10960_v33 = vld [vmem:[%s10938_s17 + $0x8] sm:$0xff]  ;;  %s8546_s14 = scalar_lea.hbm %s19680_s7, %s9020_s22  ;;  %s8547_s8 = sshll.u32 %s16097_s15, 4  ;;  %s8548_s8 = int_to_ptr.vmem [resolvable:$true] %s8547_s8 }
  0x47   : > { %788 = vmatpush.msra.mxu1 %v571_v1  ;;  %v535_v4 = vld [vmem:[#allocation5 + $0xd0] sm:$0xff]  ;;  %v533_v6 = vld [vmem:[#allocation5 + $0xc0] sm:$0xff]  ;;  %v10968_v39 = vld [vmem:[%s10938_s17 + $0x18] sm:$0xff]  ;;  %s8549_s20 = sshll.u32 %s8546_s14, 4  ;;  %s8534_s21 = scalar_lea.sflag [#allocation4], %s10932_s16  ;;  %s8550_s20 = int_to_ptr.hbm [resolvable:$true] %s8549_s20 }
  0x48   : > { %v567_v5 = vld [vmem:[#allocation5 + $0x1d0] sm:$0xff]  ;;  %580 = vmatpush.msra.mxu0 %v537_v2  ;;  %v565_v7 = vld [vmem:[#allocation5 + $0x1c0] sm:$0xff]  ;;  %v10976_v41 = vld [vmem:[%s10938_s17 + $0x28] sm:$0xff]  ;;  %s10689_s30 = sshra.s32 %s8550_s20, 4  ;;  %s10690_s30 = int_to_ptr.hbm [resolvable:$true] %s10689_s30 }
  0x49   : > { %789 = vmatpush.msra.mxu1 %v569_v3  ;;  %v531_v8 = vld [vmem:[#allocation5 + $0xb0] sm:$0xff]  ;;  %v529_v10 = vld [vmem:[#allocation5 + $0xa0] sm:$0xff]  ;;  %v10984_v43 = vld [vmem:[%s10938_s17 + $0x38] sm:$0xff]  ;;  %s10691_s29 = scalar_lea.hbm %s10690_s30, 1024  ;;  %p10696_p12 = scmp.lt.s32.totalorder %s10690_s30, %s19680_s7 }
  0x4a   : > { %581 = vmatpush.msra.mxu0 %v535_v4  ;;  %v563_v9 = vld [vmem:[#allocation5 + $0x1b0] sm:$0xff]  ;;  %v561_v11 = vld [vmem:[#allocation5 + $0x1a0] sm:$0xff]  ;;  %v10992_v45 = vld [vmem:[%s10938_s17 + $0x48] sm:$0xff]  ;;  %p10692_p1 = scmp.ne.s32.totalorder %s10690_s30, %s10691_s29 }
  0x4b   : > { %790 = vmatpush.msra.mxu1 %v567_v5  ;;  %v527_v12 = vld [vmem:[#allocation5 + $0x90] sm:$0xff]  ;;  %v525_v14 = vld [vmem:[#allocation5 + $0x80] sm:$0xff]  ;;  %v11000_v49 = vld [vmem:[%s10938_s17 + $0x58] sm:$0xff] }
  0x4c   : > { %582 = vmatpush.msra.mxu0 %v533_v6  ;;  %v559_v13 = vld [vmem:[#allocation5 + $0x190] sm:$0xff]  ;;  %v557_v15 = vld [vmem:[#allocation5 + $0x180] sm:$0xff]  ;;  %v11008_v51 = vld [vmem:[%s10938_s17 + $0x68] sm:$0xff]  ;;  %p10693_p3 = pnand %p10692_p1, %p10898_p13 }
  0x4d   : > { %791 = vmatpush.msra.mxu1 %v565_v7  ;;  %v523_v16 = vld [vmem:[#allocation5 + $0x70] sm:$0xff]  ;;  %v521_v18 = vld [vmem:[#allocation5 + $0x60] sm:$0xff]  ;;  %v11016_v53 = vld [vmem:[%s10938_s17 + $0x78] sm:$0xff] }
  0x4e   : > { %583 = vmatpush.msra.mxu0 %v531_v8  ;;  %v555_v17 = vld [vmem:[#allocation5 + $0x170] sm:$0xff]  ;;  %v553_v19 = vld [vmem:[#allocation5 + $0x160] sm:$0xff]  ;;  %v11024_v55 = vld [vmem:[%s10938_s17 + $0x88] sm:$0xff]  ;;  %p10694_p5 = pneg %p10693_p3 }
  0x4f   : > { %792 = vmatpush.msra.mxu1 %v563_v9  ;;  %v519_v20 = vld [vmem:[#allocation5 + $0x50] sm:$0xff]  ;;  %v517_v22 = vld [vmem:[#allocation5 + $0x40] sm:$0xff]  ;;  %v11032_v59 = vld [vmem:[%s10938_s17 + $0x98] sm:$0xff] }
  0x50   : > { %584 = vmatpush.msra.mxu0 %v529_v10  ;;  %v551_v21 = vld [vmem:[#allocation5 + $0x150] sm:$0xff]  ;;  %v549_v23 = vld [vmem:[#allocation5 + $0x140] sm:$0xff]  ;;  %v11040_v61 = vld [vmem:[%s10938_s17 + $0xa8] sm:$0xff] }
  0x51   : > { %793 = vmatpush.msra.mxu1 %v561_v11  ;;  %v515_v24 = vld [vmem:[#allocation5 + $0x30] sm:$0xff]  ;;  %v513_v26 = vld [vmem:[#allocation5 + $0x20] sm:$0xff]  ;;  %v540_v62 = vld [vmem:[#allocation5 + $0xf8] sm:$0xff] }
  0x52   : > { %585 = vmatpush.msra.mxu0 %v527_v12  ;;  %v547_v25 = vld [vmem:[#allocation5 + $0x130] sm:$0xff]  ;;  %v545_v27 = vld [vmem:[#allocation5 + $0x120] sm:$0xff]  ;;  %v538_v63 = vld [vmem:[#allocation5 + $0xe8] sm:$0xff]  ;;  %997 = vmatpush.msra.mxu2 %v540_v62 }
  0x53   : > { %794 = vmatpush.msra.mxu1 %v559_v13  ;;  %v511_v28 = vld [vmem:[#allocation5 + $0x10] sm:$0xff]  ;;  %v509_v30 = vld [vmem:[#allocation5] sm:$0xff]  ;;  %v572_v0 = vld [vmem:[#allocation5 + $0x1f8] sm:$0xff] }
  0x54   : > { %586 = vmatpush.msra.mxu0 %v525_v14  ;;  %v543_v29 = vld [vmem:[#allocation5 + $0x110] sm:$0xff]  ;;  %v541_v31 = vld [vmem:[#allocation5 + $0x100] sm:$0xff]  ;;  %1206 = vmatpush.msra.mxu3 %v572_v0  ;;  %v570_v1 = vld [vmem:[#allocation5 + $0x1e8] sm:$0xff] }
  0x55   : > { %795 = vmatpush.msra.mxu1 %v557_v15  ;;  %v10957_v32 = vld [vmem:[%s10938_s17] sm:$0xff]  ;;  %v3861_v36 = vld [vmem:[#allocation8 + $0x70] sm:$0xff]  ;;  %v3860_v46 = vld [vmem:[#allocation8 + $0x68] sm:$0xff]  ;;  %998 = vmatpush.msra.mxu2 %v538_v63 }
  0x56   : > { %587 = vmatpush.msra.mxu0 %v523_v16  ;;  %v3862_v34 = vld [vmem:[#allocation8 + $0x78] sm:$0xff]  ;;  %v3877_v37 = vld [vmem:[#allocation8 + $0xf0] sm:$0xff]  ;;  %v3876_v47 = vld [vmem:[#allocation8 + $0xe8] sm:$0xff]  ;;  %1207 = vmatpush.msra.mxu3 %v570_v1 }
  0x57   : > { %796 = vmatpush.msra.mxu1 %v555_v17  ;;  %v3878_v35 = vld [vmem:[#allocation8 + $0xf8] sm:$0xff]  ;;  %v10965_v38 = vld [vmem:[%s10938_s17 + $0x10] sm:$0xff]  ;;  %v3859_v56 = vld [vmem:[#allocation8 + $0x60] sm:$0xff] }
  0x58   : > { %588 = vmatpush.msra.mxu0 %v521_v18  ;;  %v10973_v40 = vld [vmem:[%s10938_s17 + $0x20] sm:$0xff]  ;;  %v10981_v42 = vld [vmem:[%s10938_s17 + $0x30] sm:$0xff]  ;;  %v536_v2 = vld [vmem:[#allocation5 + $0xd8] sm:$0xff] }
  0x59   : > { %797 = vmatpush.msra.mxu1 %v553_v19  ;;  %v10989_v44 = vld [vmem:[%s10938_s17 + $0x40] sm:$0xff]  ;;  %v10997_v48 = vld [vmem:[%s10938_s17 + $0x50] sm:$0xff]  ;;  %v568_v3 = vld [vmem:[#allocation5 + $0x1d8] sm:$0xff]  ;;  %999 = vmatpush.msra.mxu2 %v536_v2 }
  0x5a   : > { %589 = vmatpush.msra.mxu0 %v519_v20  ;;  %v11005_v50 = vld [vmem:[%s10938_s17 + $0x60] sm:$0xff]  ;;  %v11013_v52 = vld [vmem:[%s10938_s17 + $0x70] sm:$0xff]  ;;  %v534_v4 = vld [vmem:[#allocation5 + $0xc8] sm:$0xff]  ;;  %1208 = vmatpush.msra.mxu3 %v568_v3 }
  0x5b   : > { %798 = vmatpush.msra.mxu1 %v551_v21  ;;  %v11021_v54 = vld [vmem:[%s10938_s17 + $0x80] sm:$0xff]  ;;  %v11029_v58 = vld [vmem:[%s10938_s17 + $0x90] sm:$0xff]  ;;  %v11048_v6 = vld [vmem:[%s10938_s17 + $0xb8] sm:$0xff]  ;;  %1000 = vmatpush.msra.mxu2 %v534_v4 }
  0x5c   : > { %590 = vmatpush.msra.mxu0 %v517_v22  ;;  %v3875_v57 = vld [vmem:[#allocation8 + $0xe0] sm:$0xff]  ;;  %v11045_v5 = vld [vmem:[%s10938_s17 + $0xb0] sm:$0xff]  ;;  %v532_v7 = vld [vmem:[#allocation5 + $0xb8] sm:$0xff] }
  0x5d   : > { %799 = vmatpush.msra.mxu1 %v549_v23  ;;  %v11037_v60 = vld [vmem:[%s10938_s17 + $0xa0] sm:$0xff]  ;;  %v566_v8 = vld [vmem:[#allocation5 + $0x1c8] sm:$0xff]  ;;  %v564_v10 = vld [vmem:[#allocation5 + $0x1b8] sm:$0xff]  ;;  %1001 = vmatpush.msra.mxu2 %v532_v7 }
  0x5e   : > { %591 = vmatpush.msra.mxu0 %v515_v24  ;;  %v530_v9 = vld [vmem:[#allocation5 + $0xa8] sm:$0xff]  ;;  %1209 = vmatpush.msra.mxu3 %v566_v8  ;;  %v528_v11 = vld [vmem:[#allocation5 + $0x98] sm:$0xff]  ;;  %v11053_v13 = vld [vmem:[%s10938_s17 + $0xc0] sm:$0xff] }
  0x5f   : > { %800 = vmatpush.msra.mxu1 %v547_v25  ;;  %v562_v12 = vld [vmem:[#allocation5 + $0x1a8] sm:$0xff]  ;;  %1002 = vmatpush.msra.mxu2 %v530_v9  ;;  %v560_v16 = vld [vmem:[#allocation5 + $0x198] sm:$0xff]  ;;  %v11061_v23 = vld [vmem:[%s10938_s17 + $0xd0] sm:$0xff] }
  0x60   : > { %592 = vmatpush.msra.mxu0 %v513_v26  ;;  %1210 = vmatpush.msra.mxu3 %v564_v10  ;;  %v11056_v14 = vld [vmem:[%s10938_s17 + $0xc8] sm:$0xff]  ;;  %v524_v17 = vld [vmem:[#allocation5 + $0x78] sm:$0xff]  ;;  %v11079_v62 = vld [vmem:[%s10938_s17 + $0xf0] sm:$0xff] }
  0x61   : > { %801 = vmatpush.msra.mxu1 %v545_v27  ;;  %1003 = vmatpush.msra.mxu2 %v528_v11  ;;  %v526_v15 = vld [vmem:[#allocation5 + $0x88] sm:$0xff]  ;;  %v556_v20 = vld [vmem:[#allocation5 + $0x178] sm:$0xff]  ;;  %v11107_v2 = vld [vmem:[%s10938_s17 + $0x110] sm:$0xff] }
  0x62   : > { %593 = vmatpush.msra.mxu0 %v511_v28  ;;  %1211 = vmatpush.msra.mxu3 %v562_v12  ;;  %v558_v18 = vld [vmem:[#allocation5 + $0x188] sm:$0xff]  ;;  %v520_v21 = vld [vmem:[#allocation5 + $0x58] sm:$0xff]  ;;  %v11117_v4 = vld [vmem:[%s10938_s17 + $0x120] sm:$0xff] }
  0x63   : > { %802 = vmatpush.msra.mxu1 %v543_v29  ;;  %1004 = vmatpush.msra.mxu2 %v526_v15  ;;  %v522_v19 = vld [vmem:[#allocation5 + $0x68] sm:$0xff]  ;;  %v11064_v24 = vld [vmem:[%s10938_s17 + $0xd8] sm:$0xff]  ;;  %v11135_v12 = vld [vmem:[%s10938_s17 + $0x130] sm:$0xff] }
  0x64   : > { %594 = vmatpush.msra.mxu0 %v509_v30  ;;  %1212 = vmatpush.msra.mxu3 %v560_v16  ;;  %v554_v22 = vld [vmem:[#allocation5 + $0x168] sm:$0xff]  ;;  %v552_v26 = vld [vmem:[#allocation5 + $0x158] sm:$0xff]  ;;  %v11149_v16 = vld [vmem:[%s10938_s17 + $0x140] sm:$0xff] }
  0x65   : > { %803 = vmatpush.msra.mxu1 %v541_v31  ;;  %595 = vmatmul.f32.vlgmr.msra.gmra.mxu0 %v10957_v32  ;;  %v518_v25 = vld [vmem:[#allocation5 + $0x48] sm:$0xff]  ;;  %v516_v27 = vld [vmem:[#allocation5 + $0x38] sm:$0xff] }
  0x66   : > { %804 = vmatmul.f32.vlgmr.msra.gmra.mxu1 %v10960_v33  ;;  %3883 = vmatpush.msrb.mxu0 %v3862_v34  ;;  %v550_v28 = vld [vmem:[#allocation5 + $0x148] sm:$0xff]  ;;  %v548_v30 = vld [vmem:[#allocation5 + $0x138] sm:$0xff] }
  0x67   : > { %4092 = vmatpush.msrb.mxu1 %v3878_v35  ;;  %1005 = vmatpush.msra.mxu2 %v524_v17  ;;  %v514_v29 = vld [vmem:[#allocation5 + $0x28] sm:$0xff]  ;;  %v512_v31 = vld [vmem:[#allocation5 + $0x18] sm:$0xff]  ;;  %v11069_v35 = vld [vmem:[%s10938_s17 + $0xe0] sm:$0xff] }
  0x68   : > { %3884 = vmatpush.msrb.mxu0 %v3861_v36  ;;  %1213 = vmatpush.msra.mxu3 %v558_v18  ;;  %v546_v34 = vld [vmem:[#allocation5 + $0x128] sm:$0xff]  ;;  %v11082_v63 = vld [vmem:[%s10938_s17 + $0xf8] sm:$0xff]  ;;  %v11163_v18 = vld [vmem:[%s10938_s17 + $0x150] sm:$0xff] }
  0x69   : > { %4093 = vmatpush.msrb.mxu1 %v3877_v37  ;;  %1006 = vmatpush.msra.mxu2 %v522_v19  ;;  %v11072_v36 = vld [vmem:[%s10938_s17 + $0xe8] sm:$0xff]  ;;  %v3858_v37 = vld [vmem:[#allocation8 + $0x58] sm:$0xff]  ;;  %v3857_v10 = vld [vmem:[#allocation8 + $0x50] sm:$0xff] }
  0x6a   : > { %3885 = vmatpush.msrb.mxu0 %v3860_v46  ;;  %1214 = vmatpush.msra.mxu3 %v556_v20  ;;  %v3874_v46 = vld [vmem:[#allocation8 + $0xd8] sm:$0xff]  ;;  %v11096_v1 = vld [vmem:[%s10938_s17 + $0x108] sm:$0xff]  ;;  %v3873_v11 = vld [vmem:[#allocation8 + $0xd0] sm:$0xff] }
  0x6b   : > { %4094 = vmatpush.msrb.mxu1 %v3876_v47  ;;  %1007 = vmatpush.msra.mxu2 %v520_v21  ;;  %v510_v47 = vld [vmem:[#allocation5 + $0x8] sm:$0xff]  ;;  %v11110_v3 = vld [vmem:[%s10938_s17 + $0x118] sm:$0xff]  ;;  %v11173_v20 = vld [vmem:[%s10938_s17 + $0x160] sm:$0xff] }
  0x6c   : > { %3886 = vmatpush.msrb.mxu0 %v3859_v56  ;;  %1215 = vmatpush.msra.mxu3 %v554_v22  ;;  %v544_v56 = vld [vmem:[#allocation5 + $0x118] sm:$0xff]  ;;  %v11152_v17 = vld [vmem:[%s10938_s17 + $0x148] sm:$0xff] }
  0x6d   : > { %598 = vmatmul.f32.gmra.mxu0 %v10965_v38  ;;  %4095 = vmatpush.msrb.mxu1 %v3875_v57  ;;  %v542_v57 = vld [vmem:[#allocation5 + $0x108] sm:$0xff]  ;;  %v5547_v8 = vld [vmem:[#allocation11 + $0xf0] sm:$0xff]  ;;  %v5548_v9 = vld [vmem:[#allocation11 + $0xf8] sm:$0xff] }
  0x6e   : > { %807 = vmatmul.f32.gmra.mxu1 %v10968_v39  ;;  %1008 = vmatpush.msra.mxu2 %v518_v25  ;;  %v11138_v15 = vld [vmem:[%s10938_s17 + $0x138] sm:$0xff]  ;;  %v5545_v22 = vld [vmem:[#allocation11 + $0xe0] sm:$0xff]  ;;  %v5546_v25 = vld [vmem:[#allocation11 + $0xe8] sm:$0xff] }
  0x6f   : > { %1216 = vmatpush.msra.mxu3 %v552_v26  ;;  %3887 = vmatpush.msrb.mxu0 %v3858_v37  ;;  %v11166_v19 = vld [vmem:[%s10938_s17 + $0x158] sm:$0xff]  ;;  %v3856_v26 = vld [vmem:[#allocation8 + $0x48] sm:$0xff] }
  0x70   : > { %1009 = vmatpush.msra.mxu2 %v516_v27  ;;  %4096 = vmatpush.msrb.mxu1 %v3874_v46  ;;  %v3872_v27 = vld [vmem:[#allocation8 + $0xc8] sm:$0xff] }
  0x71   : > { %1217 = vmatpush.msra.mxu3 %v550_v28  ;;  %3888 = vmatpush.msrb.mxu0 %v3857_v10 }
  0x72   : > { %1010 = vmatpush.msra.mxu2 %v514_v29  ;;  %4097 = vmatpush.msrb.mxu1 %v3873_v11 }
  0x73   : > { %1218 = vmatpush.msra.mxu3 %v548_v30  ;;  %3889 = vmatpush.msrb.mxu0 %v3856_v26  ;;  %v427_v30 = vld [vmem:[%s10938_s17 + $0x170] sm:$0xff] }
  0x74   : > { %1011 = vmatpush.msra.mxu2 %v512_v31  ;;  %4098 = vmatpush.msrb.mxu1 %v3872_v27  ;;  %v428_v31 = vld [vmem:[%s10938_s17 + $0x178] sm:$0xff] }
  0x75   : > { %601 = vmatmul.f32.gmra.mxu0 %v10973_v40  ;;  %1219 = vmatpush.msra.mxu3 %v546_v34  ;;  %v5544_v27 = vld [vmem:[#allocation11 + $0xd8] sm:$0xff] }
  0x76   : > { %810 = vmatmul.f32.gmra.mxu1 %v10976_v41  ;;  %1012 = vmatpush.msra.mxu2 %v510_v47  ;;  %v429_v47 = vld [vmem:[%s10938_s17 + $0x180] sm:$0xff] }
  0x77   : > { %1220 = vmatpush.msra.mxu3 %v544_v56  ;;  %1013 = vmatmul.f32.vlgmr.msra.gmra.mxu2 %v10957_v32  ;;  %v430_v56 = vld [vmem:[%s10938_s17 + $0x188] sm:$0xff] }
  0x78   : > { %5555 = vmatpush.msrb.mxu2 %v5547_v8 }
  0x79   : > { %1221 = vmatpush.msra.mxu3 %v542_v57 }
  0x7a   : > { %1222 = vmatmul.f32.vlgmr.msra.gmra.mxu3 %v10960_v33  ;;  %v11093_v33 = vld [vmem:[%s10938_s17 + $0x100] sm:$0xff]  ;;  %5556 = vmatpush.msrb.mxu2 %v5545_v22  ;;  %v434_v22 = vld [vmem:[%s10938_s17 + $0x1a8] sm:$0xff] }
  0x7b   : > { %5764 = vmatpush.msrb.mxu3 %v5548_v9  ;;  %v432_v9 = vld [vmem:[%s10938_s17 + $0x198] sm:$0xff] }
  0x7d   : > { %604 = vmatmul.f32.gmra.mxu0 %v10981_v42  ;;  %5765 = vmatpush.msrb.mxu3 %v5546_v25 }
  0x7e   : > { %813 = vmatmul.f32.gmra.mxu1 %v10984_v43 }
  0x7f   : > { %1016 = vmatmul.f32.gmra.mxu2 %v10965_v38  ;;  %5766 = vmatpush.msrb.mxu3 %v5544_v27 }
  0x82   : > { %1225 = vmatmul.f32.gmra.mxu3 %v10968_v39 }
  0x85   : > { %607 = vmatmul.f32.gmra.mxu0 %v10989_v44 }
  0x86   : > { %816 = vmatmul.f32.gmra.mxu1 %v10992_v45 }
  0x87   : > { %1019 = vmatmul.f32.gmra.mxu2 %v10973_v40  ;;  %v11120_v40 = vld [vmem:[%s10938_s17 + $0x128] sm:$0xff] }
  0x8a   : > { %1228 = vmatmul.f32.gmra.mxu3 %v10976_v41 }
  0x8d   : > { %610 = vmatmul.f32.gmra.mxu0 %v10997_v48 }
  0x8e   : > { %819 = vmatmul.f32.gmra.mxu1 %v11000_v49 }
  0x8f   : > { %1022 = vmatmul.f32.gmra.mxu2 %v10981_v42 }
  0x92   : > { %1231 = vmatmul.f32.gmra.mxu3 %v10984_v43 }
  0x95   : > { %613 = vmatmul.f32.gmra.mxu0 %v11005_v50 }
  0x96   : > { %822 = vmatmul.f32.gmra.mxu1 %v11008_v51 }
  0x97   : > { %1025 = vmatmul.f32.gmra.mxu2 %v10989_v44 }
  0x9a   : > { %1234 = vmatmul.f32.gmra.mxu3 %v10992_v45 }
  0x9d   : > { %616 = vmatmul.f32.gmra.mxu0 %v11013_v52 }
  0x9e   : > { %825 = vmatmul.f32.gmra.mxu1 %v11016_v53 }
  0x9f   : > { %1028 = vmatmul.f32.gmra.mxu2 %v10997_v48 }
  0xa2   : > { %1237 = vmatmul.f32.gmra.mxu3 %v11000_v49 }
  0xa5   : > { %619 = vmatmul.f32.gmra.mxu0 %v11021_v54 }
  0xa6   : > { %828 = vmatmul.f32.gmra.mxu1 %v11024_v55 }
  0xa7   : > { %1031 = vmatmul.f32.gmra.mxu2 %v11005_v50  ;;  %v426_v50 = vld [vmem:[%s10938_s17 + $0x168] sm:$0xff] }
  0xaa   : > { %1240 = vmatmul.f32.gmra.mxu3 %v11008_v51 }
  0xad   : > { %622 = vmatmul.f32.gmra.mxu0 %v11029_v58 }
  0xae   : > { %831 = vmatmul.f32.gmra.mxu1 %v11032_v59 }
  0xaf   : > { %1034 = vmatmul.f32.gmra.mxu2 %v11013_v52  ;;  %v11182_v52 = vld [vmem:[#allocation7] sm:$0x3] }
  0xb2   : > { %1243 = vmatmul.f32.gmra.mxu3 %v11016_v53  ;;  %v11186_v53 = vperm.slane %v11182_v52, 0 }
  0xb5   : > { %625 = vmatmul.f32.gmra.mxu0 %v11037_v60 }
  0xb6   : > { %834 = vmatmul.f32.gmra.mxu1 %v11040_v61 }
  0xb7   : > { %1037 = vmatmul.f32.gmra.mxu2 %v11021_v54 }
  0xba   : > { %1246 = vmatmul.f32.gmra.mxu3 %v11024_v55 }
  0xbd   : > { %628 = vmatmul.f32.gmra.mxu0 %v11045_v5 }
  0xbe   : > { %837 = vmatmul.f32.gmra.mxu1 %v11048_v6 }
  0xbf   : > { %1040 = vmatmul.f32.gmra.mxu2 %v11029_v58 }
  0xc2   : > { %1249 = vmatmul.f32.gmra.mxu3 %v11032_v59 }
  0xc5   : > { %631 = vmatmul.f32.gmra.mxu0 %v11053_v13 }
  0xc6   : > { %840 = vmatmul.f32.gmra.mxu1 %v11056_v14 }
  0xc7   : > { %1043 = vmatmul.f32.gmra.mxu2 %v11037_v60 }
  0xca   : > { %1252 = vmatmul.f32.gmra.mxu3 %v11040_v61 }
  0xcd   : > { %634 = vmatmul.f32.gmra.mxu0 %v11061_v23 }
  0xce   : > { %843 = vmatmul.f32.gmra.mxu1 %v11064_v24 }
  0xcf   : > { %1046 = vmatmul.f32.gmra.mxu2 %v11045_v5 }
  0xd2   : > { %1255 = vmatmul.f32.gmra.mxu3 %v11048_v6 }
  0xd5   : > { %637 = vmatmul.f32.gmra.mxu0 %v11069_v35 }
  0xd6   : > { %846 = vmatmul.f32.gmra.mxu1 %v11072_v36 }
  0xd7   : > { %1049 = vmatmul.f32.gmra.mxu2 %v11053_v13  ;;  %v435_v13 = vld [vmem:[%s10938_s17 + $0x1b0] sm:$0xff] }
  0xda   : > { %1258 = vmatmul.f32.gmra.mxu3 %v11056_v14 }
  0xdd   : > { %640 = vmatmul.f32.gmra.mxu0 %v11079_v62 }
  0xde   : > { %849 = vmatmul.f32.gmra.mxu1 %v11082_v63 }
  0xdf   : > { %1052 = vmatmul.f32.gmra.mxu2 %v11061_v23  ;;  %v437_v23 = vld [vmem:[%s10938_s17 + $0x1c0] sm:$0xff] }
  0xe2   : > { %v11088_v0 = vpop.f32.mrf.mxu0  ;;  %1261 = vmatmul.f32.gmra.mxu3 %v11064_v24 }
  0xe3   : > { %v11090_v32 = vpop.f32.mrf.mxu1  ;;  %v597_v54 = vadd.f32 %v11088_v0, %v11186_v53 }
  0xe5   : > { %643 = vmatmul.f32.gmra.mxu0 %v11093_v33  ;;  %v806_v34 = vadd.f32 %v11090_v32, %v597_v54 }
  0xe6   : > { %852 = vmatmul.f32.gmra.mxu1 %v11096_v1 }
  0xe7   : > { %v8691_v0 = vmul.f32 -1.442695, %v806_v34  ;;  %1055 = vmatmul.f32.gmra.mxu2 %v11069_v35 }
  0xe9   : > { %9125 = vpow2.f32 %v8691_v0 }
  0xea   : > { %v11102_v38 = vpop.f32.mrf.mxu0  ;;  %1264 = vmatmul.f32.gmra.mxu3 %v11072_v36 }
  0xeb   : > { %v11104_v39 = vpop.f32.mrf.mxu1  ;;  %v600_v55 = vadd.f32 %v11102_v38, %v11186_v53 }
  0xed   : > { %646 = vmatmul.f32.gmra.mxu0 %v11107_v2  ;;  %v809_v57 = vadd.f32 %v11104_v39, %v600_v55  ;;  %v431_v39 = vld [vmem:[%s10938_s17 + $0x190] sm:$0xff] }
  0xee   : > { %855 = vmatmul.f32.gmra.mxu1 %v11110_v3 }
  0xef   : > { %v8693_v59 = vmul.f32 -1.442695, %v809_v57  ;;  %v9126_v61 = vpop.eup %9125  ;;  %1058 = vmatmul.f32.gmra.mxu2 %v11079_v62 }
  0xf0   : > { %v11232_v5 = vadd.f32 1.0, %v9126_v61 }
  0xf1   : > { %9127 = vpow2.f32 %v8693_v59 }
  0xf2   : > { %v11122_v41 = vpop.f32.mrf.mxu0  ;;  %vm1932_vm1 = vweird.f32 %v11232_v5  ;;  %1267 = vmatmul.f32.gmra.mxu3 %v11082_v63 }
  0xf3   : > { %v11124_v7 = vpop.f32.mrf.mxu1  ;;  %v603_v58 = vadd.f32 %v11122_v41, %v11186_v53 }
  0xf5   : > { %649 = vmatmul.f32.gmra.mxu0 %v11117_v4  ;;  %v812_v32 = vadd.f32 %v11124_v7, %v603_v58  ;;  %v436_v58 = vld [vmem:[%s10938_s17 + $0x1b8] sm:$0xff] }
  0xf6   : > { %858 = vmatmul.f32.gmra.mxu1 %v11120_v40 }
  0xf7   : > { %v8695_v41 = vmul.f32 -1.442695, %v812_v32  ;;  %v9128_v7 = vpop.eup %9127  ;;  %1061 = vmatmul.f32.gmra.mxu2 %v11093_v33 }
  0xf9   : > { %9129 = vpow2.f32 %v8695_v41 }
  0xfa   : > { %v11130_v42 = vpop.f32.mrf.mxu0  ;;  %9131 = vrcp.f32 %v11232_v5  ;;  %1270 = vmatmul.f32.gmra.mxu3 %v11096_v1  ;;  %v1014_v63 = vpop.f32.mrf.mxu2 }
  0xfb   : > { %v11132_v43 = vpop.f32.mrf.mxu1  ;;  %v606_v10 = vadd.f32 %v11130_v42, %v11186_v53  ;;  %v5543_v42 = vld [vmem:[#allocation11 + $0xd0] sm:$0xff] }
  0xfc   : > { %5557 = vmatpush.msrb.mxu2 %v5543_v42 }
  0xfd   : > { %652 = vmatmul.f32.gmra.mxu0 %v11135_v12  ;;  %v815_v11 = vadd.f32 %v11132_v43, %v606_v10  ;;  %v11237_v43 = vadd.f32 1.0, %v9128_v7  ;;  %v438_v7 = vld [vmem:[%s10938_s17 + $0x1c8] sm:$0xff] }
  0xfe   : > { %861 = vmatmul.f32.gmra.mxu1 %v11138_v15 }
  0xff   : > { %v8697_v54 = vmul.f32 -1.442695, %v815_v11  ;;  %v9130_v55 = vpop.eup %9129  ;;  %9133 = vrcp.f32 %v11237_v43  ;;  %vm1962_vm5 = vweird.f32 %v11237_v43  ;;  %1064 = vmatmul.f32.gmra.mxu2 %v11107_v2 }
 0x100   : > { %v11255_v59 = vpop.eup %9131 }
 0x101   : > { %9135 = vpow2.f32 %v8697_v54  ;;  %vm1933_vm0 = vweird.f32 %v11255_v59 }
 0x102   : > { %v11144_v44 = vpop.f32.mrf.mxu0  ;;  %vm11328_vm3 = vmor %vm1932_vm1, %vm1933_vm0  ;;  %1273 = vmatmul.f32.gmra.mxu3 %v11110_v3 }
 0x103   : > { %v11146_v45 = vpop.f32.mrf.mxu1  ;;  %v609_v60 = vadd.f32 %v11144_v44, %v11186_v53 }
 0x105   : > { %655 = vmatmul.f32.gmra.mxu0 %v11149_v16  ;;  %v818_v44 = vadd.f32 %v11146_v45, %v609_v60  ;;  %v11257_v14 = vpop.eup %9133 }
 0x106   : > { %864 = vmatmul.f32.gmra.mxu1 %v11152_v17  ;;  %v1958_v24 = vmul.f32 %v11257_v14, %v11237_v43  ;;  %vm1963_vm2 = vweird.f32 %v11257_v14 }
 0x107   : > { %v8699_v45 = vmul.f32 -1.442695, %v818_v44  ;;  %v9136_v32 = vpop.eup %9135  ;;  %vm11352_vm7 = vmor %vm1962_vm5, %vm1963_vm2  ;;  %1067 = vmatmul.f32.gmra.mxu2 %v11117_v4 }
 0x108   : > { %v11268_v10 = vadd.f32 1.0, %v9136_v32  ;;  %v1968_v32 = vand.u32 2147483648, %v11237_v43 }
 0x109   : > { %9137 = vpow2.f32 %v8699_v45  ;;  %v439_v45 = vld [vmem:[%s10938_s17 + $0x1d0] sm:$0xff] }
 0x10a   : > { %v11158_v48 = vpop.f32.mrf.mxu0  ;;  %vm2022_vm12 = vweird.f32 %v11268_v10  ;;  %1276 = vmatmul.f32.gmra.mxu3 %v11120_v40 }
 0x10b   : > { %v11160_v49 = vpop.f32.mrf.mxu1  ;;  %v612_v6 = vadd.f32 %v11158_v48, %v11186_v53 }
 0x10d   : > { %658 = vmatmul.f32.gmra.mxu0 %v11163_v18  ;;  %v821_v48 = vadd.f32 %v11160_v49, %v612_v6 }
 0x10e   : > { %867 = vmatmul.f32.gmra.mxu1 %v11166_v19 }
 0x10f   : > { %v8701_v0 = vmul.f32 -1.442695, %v821_v48  ;;  %v440_v48 = vld [vmem:[%s10938_s17 + $0x1d8] sm:$0xff]  ;;  %1070 = vmatmul.f32.gmra.mxu2 %v11135_v12 }
 0x112   : > { %v11176_v51 = vpop.f32.mrf.mxu0  ;;  %1279 = vmatmul.f32.gmra.mxu3 %v11138_v15 }
 0x113   : > { %v11178_v21 = vpop.f32.mrf.mxu1  ;;  %v615_v34 = vadd.f32 %v11176_v51, %v11186_v53 }
 0x115   : > { %661 = vmatmul.f32.gmra.mxu0 %v11173_v20  ;;  %v824_v49 = vadd.f32 %v11178_v21, %v615_v34 }
 0x116   : > { %870 = vmatmul.f32.gmra.mxu1 %v426_v50  ;;  %v433_v50 = vld [vmem:[%s10938_s17 + $0x1a0] sm:$0xff] }
 0x117   : > { %v8703_v21 = vmul.f32 -1.442695, %v824_v49  ;;  %1073 = vmatmul.f32.gmra.mxu2 %v11149_v16 }
 0x11a   : > { %v11188_v28 = vpop.f32.mrf.mxu0  ;;  %1282 = vmatmul.f32.gmra.mxu3 %v11152_v17 }
 0x11b   : > { %v11190_v29 = vpop.f32.mrf.mxu1  ;;  %v618_v51 = vadd.f32 %v11188_v28, %v11186_v53 }
 0x11d   : > { %664 = vmatmul.f32.gmra.mxu0 %v427_v30  ;;  %v3855_v30 = vld [vmem:[#allocation8 + $0x40] sm:$0xff]  ;;  %v827_v60 = vadd.f32 %v11190_v29, %v618_v51 }
 0x11e   : > { %873 = vmatmul.f32.gmra.mxu1 %v428_v31  ;;  %v3871_v31 = vld [vmem:[#allocation8 + $0xc0] sm:$0xff]  ;;  %3890 = vmatpush.msrb.mxu0 %v3855_v30  ;;  %v1959_v30 = vsub.f32 1.0, %v1958_v24 }
 0x11f   : > { %4099 = vmatpush.msrb.mxu1 %v3871_v31  ;;  %v8705_v29 = vmul.f32 -1.442695, %v827_v60  ;;  %1076 = vmatmul.f32.gmra.mxu2 %v11163_v18 }
 0x120   : > { %v1960_v34 = vmul.f32 %v11257_v14, %v1959_v30 }
 0x122   : > { %v11201_v37 = vpop.f32.mrf.mxu0  ;;  %1285 = vmatmul.f32.gmra.mxu3 %v11166_v19 }
 0x123   : > { %v11203_v46 = vpop.f32.mrf.mxu1  ;;  %v621_v41 = vadd.f32 %v11201_v37, %v11186_v53 }
 0x125   : > { %667 = vmatmul.f32.gmra.mxu0 %v429_v47  ;;  %v11246_v47 = vadd.f32 1.0, %v9130_v55  ;;  %v830_v42 = vadd.f32 %v11203_v46, %v621_v41  ;;  %v1961_v41 = vadd.f32 %v11257_v14, %v1960_v34 }
 0x126   : > { %876 = vmatmul.f32.gmra.mxu1 %v430_v56 }
 0x127   : > { %9139 = vrcp.f32 %v11246_v47  ;;  %v8707_v31 = vmul.f32 -1.442695, %v830_v42  ;;  %vm1992_vm8 = vweird.f32 %v11246_v47  ;;  %v444_v42 = vld [vmem:[%s10938_s17 + $0x1f8] sm:$0xff]  ;;  %1079 = vmatmul.f32.gmra.mxu2 %v11173_v20 }
 0x128   : > { %9141 = vpow2.f32 %v8701_v0 }
 0x129   : > { %9143 = vpow2.f32 %v8703_v21 }
 0x12a   : > { %v11213_v38 = vpop.f32.mrf.mxu0  ;;  %9145 = vrcp.f32 %v11268_v10 }
 0x12b   : > { %v11215_v8 = vpop.f32.mrf.mxu1  ;;  %v624_v27 = vadd.f32 %v11213_v38, %v11186_v53 }
 0x12d   : > { %670 = vmatmul.f32.gmra.mxu0 %v431_v39  ;;  %v1928_v39 = vmul.f32 %v11255_v59, %v11232_v5  ;;  %v833_v38 = vadd.f32 %v11215_v8, %v624_v27 }
 0x12e   : > { %879 = vmatmul.f32.gmra.mxu1 %v432_v9  ;;  %v9138_v9 = vpop.eup %9137 }
 0x12f   : > { %v11279_v11 = vpop.eup %9139 }
 0x130   : > { %v9142_v37 = vpop.eup %9141  ;;  %v1988_v6 = vmul.f32 %v11279_v11, %v11246_v47  ;;  %vm1993_vm9 = vweird.f32 %v11279_v11 }
 0x131   : > { %v11290_v44 = vadd.f32 1.0, %v9142_v37  ;;  %v9144_v54 = vpop.eup %9143  ;;  %v442_v37 = vld [vmem:[%s10938_s17 + $0x1e8] sm:$0xff]  ;;  %vm11405_vm11 = vmor %vm1992_vm8, %vm1993_vm9 }
 0x132   : > { %v11228_v25 = vpop.f32.mrf.mxu0  ;;  %v11308_v0 = vpop.eup %9145  ;;  %v1989_v49 = vsub.f32 1.0, %v1988_v6  ;;  %v11313_v51 = vadd.f32 1.0, %v9144_v54  ;;  %v5542_v54 = vld [vmem:[#allocation11 + $0xc8] sm:$0xff] }
 0x133   : > { %v11230_v26 = vpop.f32.mrf.mxu1  ;;  %v627_v35 = vadd.f32 %v11228_v25, %v11186_v53  ;;  %v1966_v25 = vand.u32 2147483647, %v11237_v43  ;;  %v1998_v43 = vand.u32 2147483648, %v11246_v47  ;;  %5767 = vmatpush.msrb.mxu3 %v5542_v54  ;;  %vm2023_vm13 = vweird.f32 %v11308_v0 }
 0x134   : > { %v1990_v24 = vmul.f32 %v11279_v11, %v1989_v49  ;;  %vm11456_vm0 = vmor %vm2022_vm12, %vm2023_vm13  ;;  %vm2112_vm8 = vweird.f32 %v11313_v51 }
 0x135   : > { %673 = vmatmul.f32.gmra.mxu0 %v433_v50  ;;  %v11281_v50 = vadd.f32 1.0, %v9138_v9  ;;  %v836_v9 = vadd.f32 %v11230_v26, %v627_v35  ;;  %vm11342_vm6 = vcmp.eq.f32.partialorder %v1966_v25, 8.507059e+37  ;;  %v1965_v35 = vsel %vm11352_vm7, %v11257_v14, %v1961_v41 }
 0x136   : > { %882 = vmatmul.f32.gmra.mxu1 %v434_v22  ;;  %v1929_v22 = vsub.f32 1.0, %v1928_v39  ;;  %v8709_v39 = vmul.f32 -1.442695, %v833_v38  ;;  %v3854_v38 = vld [vmem:[#allocation8 + $0x38] sm:$0xff]  ;;  %v1991_v14 = vadd.f32 %v11279_v11, %v1990_v24  ;;  %v11393_v41 = vperm.slane %v11182_v52, 1 }
 0x137   : > { %9147 = vrcp.f32 %v11281_v50  ;;  %v8711_v30 = vmul.f32 -1.442695, %v836_v9  ;;  %3891 = vmatpush.msrb.mxu0 %v3854_v38  ;;  %vm2052_vm1 = vweird.f32 %v11281_v50 }
 0x138   : > { %v1930_v46 = vmul.f32 %v11255_v59, %v1929_v22  ;;  %9149 = vpow2.f32 %v8705_v29  ;;  %v441_v22 = vld [vmem:[%s10938_s17 + $0x1e0] sm:$0xff]  ;;  %v1995_v1 = vsel %vm11405_vm11, %v11279_v11, %v1991_v14  ;;  %v443_v11 = vld [vmem:[%s10938_s17 + $0x1f0] sm:$0xff] }
 0x139   : > { %9151 = vrcp.f32 %v11290_v44 }
 0x13a   : > { %v11248_v56 = vpop.f32.mrf.mxu0  ;;  %v1931_v8 = vadd.f32 %v11255_v59, %v1930_v46  ;;  %9153 = vpow2.f32 %v8707_v31  ;;  %v5541_v31 = vld [vmem:[#allocation11 + $0xc0] sm:$0xff] }
 0x13b   : > { %v11250_v57 = vpop.f32.mrf.mxu1  ;;  %v630_v60 = vadd.f32 %v11248_v56, %v11186_v53  ;;  %9155 = vrcp.f32 %v11313_v51  ;;  %5558 = vmatpush.msrb.mxu2 %v5541_v31 }
 0x13c   : > { %v1935_v56 = vsel %vm11328_vm3, %v11255_v59, %v1931_v8  ;;  %v1996_v59 = vand.u32 2147483647, %v11246_v47  ;;  %9157 = vpow2.f32 %v8709_v39  ;;  %v1999_v39 = vor.u32 1.1754944e-38, %v1998_v43 }
 0x13d   : > { %676 = vmatmul.f32.gmra.mxu0 %v435_v13  ;;  %v1936_v13 = vand.u32 2147483647, %v11232_v5  ;;  %v11317_v21 = vpop.eup %9147  ;;  %9159 = vpow2.f32 %v8711_v30  ;;  %v2028_v47 = vand.u32 2147483648, %v11268_v10  ;;  %v2058_v43 = vand.u32 2147483648, %v11281_v50  ;;  %v1223_v30 = vpop.f32.mrf.mxu3 }
 0x13e   : > { %885 = vmatmul.f32.gmra.mxu1 %v436_v58  ;;  %v1938_v58 = vand.u32 2147483648, %v11232_v5  ;;  %v2048_v29 = vmul.f32 %v11317_v21, %v11281_v50  ;;  %vm11385_vm10 = vcmp.eq.f32.partialorder %v1996_v59, 8.507059e+37  ;;  %v1015_v59 = vadd.f32 %v1014_v63, %v11393_v41  ;;  %v445_v63 = vld [vmem:[%s10938_s17 + $0x200] sm:$0xff] }
 0x13f   : > { %vm11332_vm4 = vcmp.eq.f32.partialorder %v1936_v13, 8.507059e+37  ;;  %v839_v13 = vadd.f32 %v11250_v57, %v630_v60  ;;  %vm2053_vm15 = vweird.f32 %v11317_v21 }
 0x140   : > { %v1939_v62 = vor.u32 1.1754944e-38, %v1938_v58  ;;  %v3870_v58 = vld [vmem:[#allocation8 + $0xb8] sm:$0xff]  ;;  %vm11475_vm3 = vmor %vm2052_vm1, %vm2053_vm15 }
 0x141   : > { %4100 = vmatpush.msrb.mxu1 %v3870_v58  ;;  %v8713_v26 = vmul.f32 -1.442695, %v839_v13  ;;  %v2029_v58 = vor.u32 1.1754944e-38, %v2028_v47 }
 0x142   : > { %v11271_v61 = vpop.f32.mrf.mxu0  ;;  %v11374_v8 = vsel %vm11332_vm4, %v1939_v62, %v1935_v56  ;;  %vm2082_vm4 = vweird.f32 %v11290_v44  ;;  %v2086_v62 = vand.u32 2147483647, %v11290_v44 }
 0x143   : > { %v11273_v28 = vpop.f32.mrf.mxu1  ;;  %v633_v49 = vadd.f32 %v11271_v61, %v11186_v53  ;;  %v2049_v61 = vsub.f32 1.0, %v2048_v29 }
 0x144   : > { %vm11522_vm7 = vcmp.eq.f32.partialorder %v2086_v62, 8.507059e+37 }
 0x145   : > { %679 = vmatmul.f32.gmra.mxu0 %v437_v23  ;;  %v2018_v23 = vmul.f32 %v11308_v0, %v11268_v10  ;;  %v2050_v24 = vmul.f32 %v11317_v21, %v2049_v61 }
 0x146   : > { %888 = vmatmul.f32.gmra.mxu1 %v438_v7  ;;  %v9150_v7 = vpop.eup %9149 }
 0x147   : > { %v11360_v27 = vpop.eup %9151  ;;  %v11369_v34 = vadd.f32 1.0, %v9150_v7  ;;  %v2019_v25 = vsub.f32 1.0, %v2018_v23  ;;  %v842_v23 = vadd.f32 %v11273_v28, %v633_v49  ;;  %v2026_v7 = vand.u32 2147483647, %v11268_v10 }
 0x148   : > { %v2078_v60 = vmul.f32 %v11360_v27, %v11290_v44  ;;  %v2051_v61 = vadd.f32 %v11317_v21, %v2050_v24  ;;  %v446_v24 = vld [vmem:[%s10938_s17 + $0x208] sm:$0xff]  ;;  %vm2083_vm5 = vweird.f32 %v11360_v27 }
 0x149   : > { %9161 = vrcp.f32 %v11369_v34  ;;  %v2020_v33 = vmul.f32 %v11308_v0, %v2019_v25  ;;  %vm11440_vm14 = vcmp.eq.f32.partialorder %v2026_v7, 8.507059e+37  ;;  %v2088_v7 = vand.u32 2147483648, %v11290_v44 }
 0x14a   : > { %v11298_v55 = vpop.f32.mrf.mxu0  ;;  %v2079_v29 = vsub.f32 1.0, %v2078_v60  ;;  %vm2142_vm12 = vweird.f32 %v11369_v34 }
 0x14b   : > { %v11300_v36 = vpop.f32.mrf.mxu1  ;;  %v636_v56 = vadd.f32 %v11298_v55, %v11186_v53  ;;  %v2021_v31 = vadd.f32 %v11308_v0, %v2020_v33  ;;  %v2089_v44 = vor.u32 1.1754944e-38, %v2088_v7  ;;  %v2148_v7 = vand.u32 2147483648, %v11369_v34 }
 0x14d   : > { %682 = vmatmul.f32.gmra.mxu0 %v439_v45  ;;  %v1969_v45 = vor.u32 1.1754944e-38, %v1968_v32  ;;  %v845_v49 = vadd.f32 %v11300_v36, %v636_v56  ;;  %v2025_v10 = vsel %vm11456_vm0, %v11308_v0, %v2021_v31  ;;  %v2118_v31 = vand.u32 2147483648, %v11313_v51 }
 0x14e   : > { %891 = vmatmul.f32.gmra.mxu1 %v440_v48  ;;  %v9154_v48 = vpop.eup %9153 }
 0x14f   : > { %v11383_v57 = vsel %vm11342_vm6, %v1969_v45, %v1965_v35  ;;  %v11389_v9 = vadd.f32 1.0, %v9154_v48  ;;  %v11397_v5 = vpop.eup %9155  ;;  %v8715_v35 = vmul.f32 -1.442695, %v842_v23  ;;  %v11434_v45 = vadd.f32 %v1223_v30, %v1015_v59  ;;  %v1017_v23 = vpop.f32.mrf.mxu2  ;;  %vm11518_vm6 = vmor %vm2082_vm4, %vm2083_vm5 }
 0x150   : > { %v9158_v52 = vpop.eup %9157  ;;  %v2108_v54 = vmul.f32 %v11397_v5, %v11313_v51  ;;  %v11438_v48 = vsel %vm11385_vm10, %v1999_v39, %v1995_v1  ;;  %v2080_v39 = vmul.f32 %v11360_v27, %v2079_v29  ;;  %v2055_v1 = vsel %vm11475_vm3, %v11317_v21, %v2051_v61 }
 0x151   : > { %9163 = vrcp.f32 %v11389_v9  ;;  %v11429_v55 = vadd.f32 1.0, %v9158_v52  ;;  %v9160_v38 = vpop.eup %9159  ;;  %19763 = vst [vmem:[#allocation19_spill] sm:$0xff] %v11438_v48  ;;  %v8717_v52 = vmul.f32 -1.442695, %v845_v49  ;;  %vm2113_vm9 = vweird.f32 %v11397_v5 }
 0x152   : > { %v11362_v46 = vpop.f32.mrf.mxu0  ;;  %9165 = vpow2.f32 %v8713_v26  ;;  %v11444_v25 = vpop.eup %9161  ;;  %v11467_v2 = vadd.f32 1.0, %v9160_v38  ;;  %v2109_v60 = vsub.f32 1.0, %v2108_v54  ;;  %vm11567_vm11 = vmor %vm2112_vm8, %vm2113_vm9  ;;  %v2149_v49 = vor.u32 1.1754944e-38, %v2148_v7 }
 0x153   : > { %v11364_v6 = vpop.f32.mrf.mxu1  ;;  %v639_v14 = vadd.f32 %v11362_v46, %v11186_v53  ;;  %v2059_v46 = vor.u32 1.1754944e-38, %v2058_v43  ;;  %9167 = vrcp.f32 %v11429_v55  ;;  %v2138_v3 = vmul.f32 %v11444_v25, %v11369_v34 }
 0x154   : > { %9169 = vpow2.f32 %v8715_v35  ;;  %v2110_v59 = vmul.f32 %v11397_v5, %v2109_v60  ;;  %v2146_v60 = vand.u32 2147483647, %v11369_v34  ;;  %vm2143_vm13 = vweird.f32 %v11444_v25 }
 0x155   : > { %685 = vmatmul.f32.gmra.mxu0 %v441_v22  ;;  %v2056_v22 = vand.u32 2147483647, %v11281_v50  ;;  %v848_v0 = vadd.f32 %v11364_v6, %v639_v14  ;;  %v2116_v6 = vand.u32 2147483647, %v11313_v51  ;;  %9171 = vrcp.f32 %v11467_v2  ;;  %vm11607_vm0 = vmor %vm2142_vm12, %vm2143_vm13 }
 0x156   : > { %894 = vmatmul.f32.gmra.mxu1 %v442_v37  ;;  %v2139_v54 = vsub.f32 1.0, %v2138_v3  ;;  %9173 = vpow2.f32 %v8717_v52  ;;  %v448_v52 = vld [vmem:[%s10938_s17 + $0x218] sm:$0xff]  ;;  %v8692_v51 = vmul.f32 -1.442695, %v11434_v45  ;;  %vm2172_vm1 = vweird.f32 %v11389_v9 }
 0x157   : > { %vm11461_vm2 = vcmp.eq.f32.partialorder %v2056_v22, 8.507059e+37  ;;  %v11473_v50 = vpop.eup %9163  ;;  %v1018_v22 = vadd.f32 %v1017_v23, %v11393_v41  ;;  %v8719_v35 = vmul.f32 -1.442695, %v848_v0  ;;  %vm11540_vm10 = vcmp.eq.f32.partialorder %v2116_v6, 8.507059e+37  ;;  %v1020_v40 = vpop.f32.mrf.mxu2 }
 0x158   : > { %v9166_v33 = vpop.eup %9165  ;;  %v2168_v43 = vmul.f32 %v11473_v50, %v11389_v9  ;;  %v11529_v13 = vsel %vm11461_vm2, %v2059_v46, %v2055_v1  ;;  %v2140_v46 = vmul.f32 %v11444_v25, %v2139_v54  ;;  %v1021_v0 = vadd.f32 %v1020_v40, %v11393_v41 }
 0x159   : > { %v11503_v29 = vadd.f32 1.0, %v9166_v33  ;;  %v11508_v38 = vpop.eup %9167  ;;  %19777 = vst [vmem:[#allocation21_spill] sm:$0xff] %v11529_v13  ;;  %v447_v33 = vld [vmem:[%s10938_s17 + $0x210] sm:$0xff]  ;;  %vm2173_vm15 = vweird.f32 %v11473_v50  ;;  %v2208_v1 = vand.u32 2147483648, %v11429_v55  ;;  %vm2202_vm4 = vweird.f32 %v11429_v55 }
 0x15a   : > { %v641_v28 = vpop.f32.mrf.mxu0  ;;  %v9170_v61 = vpop.eup %9169  ;;  %v2169_v4 = vsub.f32 1.0, %v2168_v43  ;;  %v2198_v26 = vmul.f32 %v11508_v38, %v11429_v55  ;;  %vm11621_vm2 = vmor %vm2172_vm1, %vm2173_vm15  ;;  %vm2203_vm5 = vweird.f32 %v11508_v38 }
 0x15b   : > { %v11423_v37 = vpop.f32.mrf.mxu1  ;;  %v642_v21 = vadd.f32 %v641_v28, %v11186_v53  ;;  %v11512_v28 = vsel %vm11440_vm14, %v2029_v58, %v2025_v10  ;;  %9175 = vrcp.f32 %v11503_v29  ;;  %v11545_v10 = vpop.eup %9171  ;;  %vm11585_vm14 = vcmp.eq.f32.partialorder %v2146_v60, 8.507059e+37  ;;  %vm11686_vm8 = vmor %vm2202_vm4, %vm2203_vm5 }
 0x15c   : > { %19772 = vst [vmem:[#allocation20_spill] sm:$0xff] %v11512_v28  ;;  %9177 = vpow2.f32 %v8719_v35  ;;  %v2170_v6 = vmul.f32 %v11473_v50, %v2169_v4  ;;  %vm2233_vm9 = vweird.f32 %v11545_v10  ;;  %vm2262_vm13 = vweird.f32 %v11503_v29 }
 0x15d   : > { %688 = vmatmul.f32.gmra.mxu0 %v443_v11  ;;  %v2081_v11 = vadd.f32 %v11360_v27, %v2080_v39  ;;  %v851_v32 = vadd.f32 %v11423_v37, %v642_v21  ;;  %v2111_v39 = vadd.f32 %v11397_v5, %v2110_v59  ;;  %v11547_v37 = vadd.f32 1.0, %v9170_v61 }
 0x15e   : > { %897 = vmatmul.f32.gmra.mxu1 %v444_v42  ;;  %v1226_v42 = vpop.f32.mrf.mxu3  ;;  %v2228_v59 = vmul.f32 %v11545_v10, %v11467_v2 }
 0x15f   : > { %v11505_v30 = vadd.f32 %v1226_v42, %v1018_v22  ;;  %v2085_v58 = vsel %vm11518_vm6, %v11360_v27, %v2081_v11  ;;  %v2119_v27 = vor.u32 1.1754944e-38, %v2118_v31  ;;  %v2115_v11 = vsel %vm11567_vm11, %v11397_v5, %v2111_v39  ;;  %v450_v39 = vld [vmem:[%s10938_s17 + $0x228] sm:$0xff]  ;;  %v1023_v4 = vpop.f32.mrf.mxu2 }
 0x160   : > { %v11561_v23 = vsel %vm11522_vm7, %v2089_v44, %v2085_v58  ;;  %v2141_v42 = vadd.f32 %v11444_v25, %v2140_v46  ;;  %9179 = vrcp.f32 %v11547_v37  ;;  %v2176_v5 = vand.u32 2147483647, %v11389_v9 }
 0x161   : > { %19780 = vst [vmem:[#allocation22_spill] sm:$0xff] %v11561_v23  ;;  %v2199_v31 = vsub.f32 1.0, %v2198_v26  ;;  %v11597_v35 = vsel %vm11540_vm10, %v2119_v27, %v2115_v11  ;;  %v2171_v58 = vadd.f32 %v11473_v50, %v2170_v6  ;;  %v2178_v44 = vand.u32 2147483648, %v11389_v9  ;;  %v5539_v26 = vld [vmem:[#allocation11 + $0xb0] sm:$0xff] }
 0x162   : > { %v11488_v47 = vpop.f32.mrf.mxu0  ;;  %19785 = vst [vmem:[#allocation23_spill] sm:$0xff] %v11597_v35  ;;  %v2229_v15 = vsub.f32 1.0, %v2228_v59  ;;  %vm11625_vm3 = vcmp.eq.f32.partialorder %v2176_v5, 8.507059e+37  ;;  %5559 = vmatpush.msrb.mxu2 %v5539_v26  ;;  %vm2232_vm7 = vweird.f32 %v11467_v2 }
 0x163   : > { %v11490_v56 = vpop.f32.mrf.mxu1  ;;  %v645_v61 = vadd.f32 %v11488_v47, %v11186_v53  ;;  %v449_v47 = vld [vmem:[%s10938_s17 + $0x220] sm:$0xff]  ;;  %v2200_v27 = vmul.f32 %v11508_v38, %v2199_v31  ;;  %v2175_v6 = vsel %vm11621_vm2, %v11473_v50, %v2171_v58  ;;  %vm11715_vm11 = vmor %vm2232_vm7, %vm2233_vm9 }
 0x165   : > { %691 = vmatmul.f32.gmra.mxu0 %v445_v63  ;;  %v9174_v63 = vpop.eup %9173  ;;  %v2201_v43 = vadd.f32 %v11508_v38, %v2200_v27 }
 0x166   : > { %900 = vmatmul.f32.gmra.mxu1 %v446_v24  ;;  %v8721_v24 = vmul.f32 -1.442695, %v851_v32  ;;  %v1229_v22 = vpop.f32.mrf.mxu3  ;;  %v11590_v54 = vpop.eup %9175  ;;  %v11592_v45 = vadd.f32 1.0, %v9174_v63  ;;  %v2145_v32 = vsel %vm11607_vm0, %v11444_v25, %v2141_v42  ;;  %v2206_v25 = vand.u32 2147483647, %v11429_v55 }
 0x167   : > { %v11579_v21 = vadd.f32 %v1229_v22, %v1021_v0  ;;  %v9178_v14 = vpop.eup %9177  ;;  %v2258_v9 = vmul.f32 %v11590_v54, %v11503_v29  ;;  %v1024_v0 = vadd.f32 %v1023_v4, %v11393_v41  ;;  %v854_v63 = vadd.f32 %v11490_v56, %v645_v61  ;;  %v1026_v4 = vpop.f32.mrf.mxu2 }
 0x168   : > { %9181 = vpow2.f32 %v8721_v24  ;;  %v11634_v46 = vadd.f32 1.0, %v9178_v14  ;;  %v11642_v7 = vpop.eup %9179  ;;  %v3869_v24 = vld [vmem:[#allocation8 + $0xb0] sm:$0xff]  ;;  %v11647_v11 = vsel %vm11585_vm14, %v2149_v49, %v2145_v32  ;;  %v2230_v56 = vmul.f32 %v11545_v10, %v2229_v15 }
 0x169   : > { %9183 = vpow2.f32 %v8692_v51  ;;  %19792 = vst [vmem:[#allocation24_spill] sm:$0xff] %v11647_v11  ;;  %v2179_v51 = vor.u32 1.1754944e-38, %v2178_v44  ;;  %4101 = vmatpush.msrb.mxu1 %v3869_v24  ;;  %vm11660_vm6 = vcmp.eq.f32.partialorder %v2206_v25, 8.507059e+37  ;;  %v2259_v31 = vsub.f32 1.0, %v2258_v9  ;;  %v451_v25 = vld [vmem:[%s10938_s17 + $0x230] sm:$0xff]  ;;  %v452_v9 = vld [vmem:[%s10938_s17 + $0x238] sm:$0xff] }
 0x16a   : > { %v11552_v62 = vpop.f32.mrf.mxu0  ;;  %9185 = vrcp.f32 %v11592_v45  ;;  %v8694_v14 = vmul.f32 -1.442695, %v11505_v30  ;;  %v2209_v61 = vor.u32 1.1754944e-38, %v2208_v1  ;;  %v2288_v12 = vmul.f32 %v11642_v7, %v11547_v37 }
 0x16b   : > { %v11554_v3 = vpop.f32.mrf.mxu1  ;;  %v648_v42 = vadd.f32 %v11552_v62, %v11186_v53  ;;  %v2236_v62 = vand.u32 2147483647, %v11467_v2  ;;  %9187 = vrcp.f32 %v11634_v46  ;;  %v8723_v58 = vmul.f32 -1.442695, %v854_v63 }
 0x16c   : > { %v11673_v44 = vsel %vm11625_vm3, %v2179_v51, %v2175_v6  ;;  %v2238_v32 = vand.u32 2147483648, %v11467_v2  ;;  %v2205_v34 = vsel %vm11686_vm8, %v11508_v38, %v2201_v43  ;;  %v2260_v55 = vmul.f32 %v11590_v54, %v2259_v31 }
 0x16d   : > { %694 = vmatmul.f32.gmra.mxu0 %v447_v33  ;;  %v5540_v33 = vld [vmem:[#allocation11 + $0xb8] sm:$0xff]  ;;  %19795 = vst [vmem:[#allocation25_spill] sm:$0xff] %v11673_v44  ;;  %v857_v15 = vadd.f32 %v11554_v3, %v648_v42  ;;  %vm11697_vm10 = vcmp.eq.f32.partialorder %v2236_v62, 8.507059e+37  ;;  %9189 = vpow2.f32 %v8694_v14  ;;  %v1027_v26 = vadd.f32 %v1026_v4, %v11393_v41  ;;  %v454_v4 = vld [vmem:[%s10938_s17 + $0x248] sm:$0xff] }
 0x16e   : > { %903 = vmatmul.f32.gmra.mxu1 %v448_v52  ;;  %v3853_v52 = vld [vmem:[#allocation8 + $0x30] sm:$0xff]  ;;  %5768 = vmatpush.msrb.mxu3 %v5540_v33  ;;  %v1232_v22 = vpop.f32.mrf.mxu3  ;;  %v9182_v5 = vpop.eup %9181  ;;  %v2266_v33 = vand.u32 2147483647, %v11503_v29  ;;  %9191 = vpow2.f32 %v8723_v58  ;;  %v8696_v38 = vmul.f32 -1.442695, %v11579_v21  ;;  %v2268_v63 = vand.u32 2147483648, %v11503_v29 }
 0x16f   : > { %3892 = vmatpush.msrb.mxu0 %v3853_v52  ;;  %v11654_v59 = vadd.f32 %v1232_v22, %v1024_v0  ;;  %v9184_v49 = vpop.eup %9183  ;;  %v11679_v16 = vadd.f32 1.0, %v9182_v5  ;;  %v2289_v52 = vsub.f32 1.0, %v2288_v12  ;;  %v8725_v6 = vmul.f32 -1.442695, %v857_v15  ;;  %v1029_v14 = vpop.f32.mrf.mxu2 }
 0x170   : > { %v11677_v30 = vpop.eup %9185  ;;  %v2261_v51 = vadd.f32 %v11590_v54, %v2260_v55  ;;  %vm2263_vm12 = vweird.f32 %v11590_v54  ;;  %v2296_v42 = vand.u32 2147483647, %v11547_v37  ;;  %v2239_v5 = vor.u32 1.1754944e-38, %v2238_v32 }
 0x171   : > { %v2318_v24 = vmul.f32 %v11677_v30, %v11592_v45  ;;  %v11722_v22 = vpop.eup %9187  ;;  %9193 = vrcp.f32 %v11679_v16  ;;  %vm11752_vm14 = vmor %vm2262_vm13, %vm2263_vm12  ;;  %vm11756_vm15 = vcmp.eq.f32.partialorder %v2266_v33, 8.507059e+37  ;;  %vm2292_vm0 = vweird.f32 %v11547_v37 }
 0x172   : > { %v11636_v40 = vpop.f32.mrf.mxu0  ;;  %v2348_v31 = vmul.f32 %v11722_v22, %v11634_v46  ;;  %vm11764_vm1 = vcmp.eq.f32.partialorder %v2296_v42, 8.507059e+37  ;;  %v2298_v58 = vand.u32 2147483648, %v11547_v37  ;;  %vm2293_vm2 = vweird.f32 %v11642_v7 }
 0x173   : > { %v11638_v60 = vpop.f32.mrf.mxu1  ;;  %v651_v43 = vadd.f32 %v11636_v40, %v11186_v53  ;;  %v2319_v62 = vsub.f32 1.0, %v2318_v24  ;;  %v9190_v18 = vpop.eup %9189  ;;  %v2269_v40 = vor.u32 1.1754944e-38, %v2268_v63  ;;  %v2328_v1 = vand.u32 2147483648, %v11592_v45  ;;  %vm11801_vm3 = vmor %vm2292_vm0, %vm2293_vm2  ;;  %v10406_v24 = vld [vmem:[%s10938_s17 + $0x170] sm:$0xff] }
 0x174   : > { %vm2322_vm4 = vweird.f32 %v11592_v45  ;;  %vm2323_vm5 = vweird.f32 %v11677_v30  ;;  %v2356_v19 = vand.u32 2147483647, %v11634_v46  ;;  %vm2353_vm8 = vweird.f32 %v11722_v22  ;;  %1082 = vmatmul.f32.gmra.mxu2 %v10406_v24 }
 0x175   : > { %697 = vmatmul.f32.gmra.mxu0 %v449_v47  ;;  %v2231_v47 = vadd.f32 %v11545_v10, %v2230_v56  ;;  %v11737_v56 = vsel %vm11660_vm6, %v2209_v61, %v2205_v34  ;;  %v2265_v61 = vsel %vm11752_vm14, %v11590_v54, %v2261_v51  ;;  %v8698_v34 = vmul.f32 -1.442695, %v11654_v59  ;;  %vm11846_vm7 = vmor %vm2322_vm4, %vm2323_vm5 }
 0x176   : > { %906 = vmatmul.f32.gmra.mxu1 %v450_v39  ;;  %v11692_v39 = vadd.f32 1.0, %v9184_v49  ;;  %v1235_v0 = vpop.f32.mrf.mxu3  ;;  %19802 = vst [vmem:[#allocation26_spill] sm:$0xff] %v11737_v56  ;;  %v9192_v49 = vpop.eup %9191  ;;  %v1030_v54 = vadd.f32 %v1029_v14, %v11393_v41  ;;  %v2320_v33 = vmul.f32 %v11677_v30, %v2319_v62  ;;  %v2326_v59 = vand.u32 2147483647, %v11592_v45 }
 0x177   : > { %v11725_v21 = vadd.f32 %v1235_v0, %v1027_v26  ;;  %v2235_v2 = vsel %vm11715_vm11, %v11545_v10, %v2231_v47  ;;  %v2290_v10 = vmul.f32 %v11642_v7, %v2289_v52  ;;  %v11769_v32 = vpop.eup %9193  ;;  %v453_v47 = vld [vmem:[%s10938_s17 + $0x240] sm:$0xff]  ;;  %v2349_v52 = vsub.f32 1.0, %v2348_v31  ;;  %v1032_v29 = vpop.f32.mrf.mxu2 }
 0x178   : > { %9195 = vrcp.f32 %v11692_v39  ;;  %v11748_v50 = vsel %vm11697_vm10, %v2239_v5, %v2235_v2  ;;  %v2378_v2 = vmul.f32 %v11769_v32, %v11679_v16  ;;  %vm11822_vm6 = vcmp.eq.f32.partialorder %v2326_v59, 8.507059e+37 }
 0x179   : > { %9197 = vpow2.f32 %v8696_v38  ;;  %19803 = vst [vmem:[#allocation27_spill] sm:$0xff] %v11748_v50  ;;  %v2291_v3 = vadd.f32 %v11642_v7, %v2290_v10  ;;  %v11787_v38 = vadd.f32 1.0, %v9192_v49  ;;  %v10405_v10 = vld [vmem:[%s10938_s17 + $0x168] sm:$0xff]  ;;  %v2350_v20 = vmul.f32 %v11722_v22, %v2349_v52 }
 0x17a   : > { %v11702_v36 = vpop.f32.mrf.mxu0  ;;  %9199 = vpow2.f32 %v8725_v6  ;;  %v2299_v6 = vor.u32 1.1754944e-38, %v2298_v58  ;;  %1288 = vmatmul.f32.gmra.mxu3 %v10405_v10  ;;  %v2379_v49 = vsub.f32 1.0, %v2378_v2  ;;  %v455_v58 = vld [vmem:[%s10938_s17 + $0x250] sm:$0xff]  ;;  %vm2352_vm9 = vweird.f32 %v11634_v46 }
 0x17b   : > { %v11704_v27 = vpop.f32.mrf.mxu1  ;;  %9201 = vpow2.f32 %v8698_v34  ;;  %v2295_v37 = vsel %vm11801_vm3, %v11642_v7, %v2291_v3  ;;  %v2329_v7 = vor.u32 1.1754944e-38, %v2328_v1  ;;  %v1033_v34 = vadd.f32 %v1032_v29, %v11393_v41  ;;  %vm11879_vm11 = vmor %vm2352_vm9, %vm2353_vm8  ;;  %v458_v29 = vld [vmem:[%s10938_s17 + $0x268] sm:$0xff] }
 0x17c   : > { %v11840_v3 = vsel %vm11764_vm1, %v2299_v6, %v2295_v37  ;;  %v654_v52 = vadd.f32 %v11702_v36, %v11186_v53  ;;  %vm11864_vm10 = vcmp.eq.f32.partialorder %v2356_v19, 8.507059e+37  ;;  %v2380_v36 = vmul.f32 %v11769_v32, %v2379_v49  ;;  %v10407_v37 = vld [vmem:[%s10938_s17 + $0x178] sm:$0xff] }
 0x17d   : > { %700 = vmatmul.f32.gmra.mxu0 %v451_v25  ;;  %v860_v25 = vadd.f32 %v11638_v60, %v651_v43  ;;  %v11795_v60 = vsel %vm11756_vm15, %v2269_v40, %v2265_v61  ;;  %v2321_v43 = vadd.f32 %v11677_v30, %v2320_v33  ;;  %v2358_v40 = vand.u32 2147483648, %v11634_v46  ;;  %19815 = vst [vmem:[#allocation29_spill] sm:$0xff] %v11840_v3 }
 0x17e   : > { %909 = vmatmul.f32.gmra.mxu1 %v452_v9  ;;  %v11781_v55 = vpop.eup %9195  ;;  %v11784_v9 = vadd.f32 1.0, %v9190_v18  ;;  %v1238_v26 = vpop.f32.mrf.mxu3  ;;  %19810 = vst [vmem:[#allocation28_spill] sm:$0xff] %v11795_v60  ;;  %v2351_v33 = vadd.f32 %v11722_v22, %v2350_v20  ;;  %vm2382_vm12 = vweird.f32 %v11679_v16  ;;  %vm1947_vm13 = vweird.f32 %v11692_v39 }
 0x17f   : > { %v11789_v0 = vadd.f32 %v1238_v26, %v1030_v54  ;;  %v9198_v63 = vpop.eup %9197  ;;  %v1943_v42 = vmul.f32 %v11781_v55, %v11692_v39  ;;  %v8727_v5 = vmul.f32 -1.442695, %v860_v25  ;;  %v2359_v1 = vor.u32 1.1754944e-38, %v2358_v40  ;;  %v1035_v19 = vpop.f32.mrf.mxu2 }
 0x180   : > { %v9200_v51 = vpop.eup %9199  ;;  %9203 = vrcp.f32 %v11784_v9  ;;  %v11820_v62 = vadd.f32 1.0, %v9198_v63  ;;  %v2355_v10 = vsel %vm11879_vm11, %v11722_v22, %v2351_v33  ;;  %vm1948_vm14 = vweird.f32 %v11781_v55 }
 0x181   : > { %9205 = vrcp.f32 %v11787_v38  ;;  %v11826_v18 = vadd.f32 1.0, %v9200_v51  ;;  %v1944_v54 = vsub.f32 1.0, %v1943_v42  ;;  %v9202_v12 = vpop.eup %9201  ;;  %v2388_v51 = vand.u32 2147483648, %v11679_v16  ;;  %vm11925_vm0 = vmor %vm1947_vm13, %vm1948_vm14 }
 0x182   : > { %v11771_v15 = vpop.f32.mrf.mxu0  ;;  %9207 = vpow2.f32 %v8727_v5  ;;  %v11884_v42 = vadd.f32 1.0, %v9202_v12  ;;  %1291 = vmatmul.f32.gmra.mxu3 %v10407_v37  ;;  %v1953_v5 = vand.u32 2147483648, %v11692_v39  ;;  %v1951_v40 = vand.u32 2147483647, %v11692_v39 }
 0x183   : > { %v11773_v17 = vpop.f32.mrf.mxu1  ;;  %9209 = vrcp.f32 %v11820_v62  ;;  %v1945_v46 = vmul.f32 %v11781_v55, %v1944_v54  ;;  %v11901_v49 = vadd.f32 %v11769_v32, %v2380_v36  ;;  %vm2383_vm15 = vweird.f32 %v11769_v32  ;;  %v3852_v54 = vld [vmem:[#allocation8 + $0x28] sm:$0xff] }
 0x184   : > { %9211 = vrcp.f32 %v11826_v18  ;;  %v1036_v25 = vadd.f32 %v1035_v19, %v11393_v41  ;;  %v11915_v33 = vor.u32 1.1754944e-38, %v2388_v51  ;;  %v3868_v36 = vld [vmem:[#allocation8 + $0xa8] sm:$0xff]  ;;  %v1954_v2 = vor.u32 1.1754944e-38, %v1953_v5  ;;  %3893 = vmatpush.msrb.mxu0 %v3852_v54  ;;  %vm11939_vm1 = vmor %vm2382_vm12, %vm2383_vm15 }
 0x185   : > { %703 = vmatmul.f32.gmra.mxu0 %v453_v47  ;;  %v456_v47 = vld [vmem:[%s10938_s17 + $0x258] sm:$0xff]  ;;  %v11931_v51 = vsel %vm11864_vm10, %v2359_v1, %v2355_v10  ;;  %4102 = vmatpush.msrb.mxu1 %v3868_v36  ;;  %vm11944_vm2 = vcmp.eq.f32.partialorder %v1951_v40, 8.507059e+37  ;;  %v10409_v54 = vld [vmem:[%s10938_s17 + $0x188] sm:$0xff]  ;;  %vm2412_vm4 = vweird.f32 %v11787_v38  ;;  %vm1977_vm5 = vweird.f32 %v11784_v9 }
 0x186   : > { %912 = vmatmul.f32.gmra.mxu1 %v454_v4  ;;  %v8700_v4 = vmul.f32 -1.442695, %v11725_v21  ;;  %v1241_v26 = vpop.f32.mrf.mxu3  ;;  %v2325_v21 = vsel %vm11846_vm7, %v11677_v30, %v2321_v43  ;;  %v11861_v59 = vpop.eup %9203  ;;  %v863_v43 = vadd.f32 %v11704_v27, %v654_v52  ;;  %v8702_v52 = vmul.f32 -1.442695, %v11789_v0  ;;  %19825 = vst [vmem:[#allocation31_spill] sm:$0xff] %v11931_v51  ;;  %v10415_v1 = vld [vmem:[%s10938_s17 + $0x1b8] sm:$0xff] }
 0x187   : > { %v11858_v45 = vadd.f32 %v1241_v26, %v1033_v34  ;;  %v11869_v63 = vpop.eup %9205  ;;  %v11875_v6 = vsel %vm11822_vm6, %v2329_v7, %v2325_v21  ;;  %v1973_v20 = vmul.f32 %v11861_v59, %v11784_v9  ;;  %v457_v7 = vld [vmem:[%s10938_s17 + $0x260] sm:$0xff]  ;;  %v5538_v34 = vld [vmem:[#allocation11 + $0xa8] sm:$0xff]  ;;  %v1946_v26 = vadd.f32 %v11781_v55, %v1945_v46 }
 0x188   : > { %9213 = vpow2.f32 %v8700_v4  ;;  %19820 = vst [vmem:[#allocation30_spill] sm:$0xff] %v11875_v6  ;;  %v9208_v31 = vpop.eup %9207  ;;  %v2408_v27 = vmul.f32 %v11869_v63, %v11787_v38  ;;  %v5537_v4 = vld [vmem:[#allocation11 + $0xa0] sm:$0xff]  ;;  %5769 = vmatpush.msrb.mxu3 %v5538_v34  ;;  %v8729_v0 = vmul.f32 -1.442695, %v863_v43  ;;  %v657_v34 = vadd.f32 %v11771_v15, %v11186_v53 }
 0x189   : > { %v11906_v22 = vpop.eup %9209  ;;  %9215 = vrcp.f32 %v11884_v42  ;;  %5560 = vmatpush.msrb.mxu2 %v5537_v4  ;;  %v1974_v4 = vsub.f32 1.0, %v1973_v20  ;;  %v11954_v20 = vadd.f32 1.0, %v9208_v31  ;;  %vm2413_vm3 = vweird.f32 %v11869_v63 }
 0x18a   : > { %v11830_v14 = vpop.f32.mrf.mxu0  ;;  %v11917_v12 = vpop.eup %9211  ;;  %v2003_v5 = vmul.f32 %v11906_v22, %v11820_v62  ;;  %v2409_v43 = vsub.f32 1.0, %v2408_v27  ;;  %9217 = vpow2.f32 %v8702_v52  ;;  %1294 = vmatmul.f32.gmra.mxu3 %v10409_v54  ;;  %v1983_v27 = vand.u32 2147483648, %v11784_v9  ;;  %vm12055_vm15 = vmor %vm2412_vm4, %vm2413_vm3 }
 0x18b   : > { %v11832_v61 = vpop.f32.mrf.mxu1  ;;  %v2438_v15 = vmul.f32 %v11917_v12, %v11826_v18  ;;  %9219 = vpow2.f32 %v8729_v0  ;;  %v1975_v31 = vmul.f32 %v11861_v59, %v1974_v4  ;;  %vm1978_vm6 = vweird.f32 %v11861_v59  ;;  %v459_v4 = vld [vmem:[%s10938_s17 + $0x270] sm:$0xff] }
 0x18c   : > { %v2004_v52 = vsub.f32 1.0, %v2003_v5  ;;  %v2410_v36 = vmul.f32 %v11869_v63, %v2409_v43  ;;  %9221 = vrcp.f32 %v11954_v20  ;;  %v866_v46 = vadd.f32 %v11773_v17, %v657_v34  ;;  %vm12007_vm7 = vmor %vm1977_vm5, %vm1978_vm6 }
 0x18d   : > { %706 = vmatmul.f32.gmra.mxu0 %v455_v58  ;;  %v8704_v54 = vmul.f32 -1.442695, %v11858_v45  ;;  %v11993_v30 = vor.u32 1.1754944e-38, %v1983_v27  ;;  %v2439_v17 = vsub.f32 1.0, %v2438_v15  ;;  %v11998_v21 = vadd.f32 %v11861_v59, %v1975_v31 }
 0x18e   : > { %915 = vmatmul.f32.gmra.mxu1 %v456_v47  ;;  %v1244_v24 = vpop.f32.mrf.mxu3  ;;  %v9214_v37 = vpop.eup %9213  ;;  %v2013_v45 = vand.u32 2147483648, %v11820_v62  ;;  %v12018_v27 = vadd.f32 %v11869_v63, %v2410_v36  ;;  %v8731_v31 = vmul.f32 -1.442695, %v866_v46  ;;  %vm2442_vm10 = vweird.f32 %v11826_v18  ;;  %v10411_v36 = vld [vmem:[%s10938_s17 + $0x198] sm:$0xff] }
 0x18f   : > { %v11933_v19 = vadd.f32 %v1244_v24, %v1036_v25  ;;  %v11963_v40 = vadd.f32 1.0, %v9214_v37  ;;  %v1038_v25 = vpop.f32.mrf.mxu2  ;;  %v2418_v24 = vand.u32 2147483648, %v11787_v38  ;;  %vm2007_vm11 = vweird.f32 %v11820_v62 }
 0x190   : > { %v1039_v10 = vadd.f32 %v1038_v25, %v11393_v41  ;;  %vm2008_vm12 = vweird.f32 %v11906_v22  ;;  %vm2443_vm14 = vweird.f32 %v11917_v12  ;;  %vm2037_vm3 = vweird.f32 %v11884_v42 }
 0x191   : > { %9223 = vrcp.f32 %v11963_v40  ;;  %v2043_v60 = vand.u32 2147483648, %v11884_v42  ;;  %vm12133_vm5 = vmor %vm2442_vm10, %vm2443_vm14 }
 0x192   : > { %v11908_v58 = vpop.f32.mrf.mxu0  ;;  %9225 = vpow2.f32 %v8704_v54  ;;  %1297 = vmatmul.f32.gmra.mxu3 %v10411_v36 }
 0x193   : > { %v11910_v47 = vpop.f32.mrf.mxu1  ;;  %9227 = vpow2.f32 %v8731_v31  ;;  %v2448_v31 = vand.u32 2147483648, %v11826_v18 }
 0x195   : > { %709 = vmatmul.f32.gmra.mxu0 %v457_v7  ;;  %v10408_v7 = vld [vmem:[%s10938_s17 + $0x180] sm:$0xff] }
 0x196   : > { %918 = vmatmul.f32.gmra.mxu1 %v458_v29  ;;  %1085 = vmatmul.f32.gmra.mxu2 %v10408_v7  ;;  %v1950_v29 = vsel %vm11925_vm0, %v11781_v55, %v1946_v26  ;;  %v11973_v55 = vpop.eup %9215  ;;  %v1981_v26 = vand.u32 2147483647, %v11784_v9  ;;  %v460_v7 = vld [vmem:[%s10938_s17 + $0x278] sm:$0xff]  ;;  %v1247_v5 = vpop.f32.mrf.mxu3  ;;  %v660_v9 = vadd.f32 %v11830_v14, %v11186_v53  ;;  %v19837_v14 = vand.u32 2147483647, %v11787_v38 }
 0x197   : > { %v11991_v43 = vsel %vm11944_vm2, %v1954_v2, %v1950_v29  ;;  %v11995_v34 = vadd.f32 %v1247_v5, %v1039_v10  ;;  %v2033_v25 = vmul.f32 %v11973_v55, %v11884_v42  ;;  %v9218_v51 = vpop.eup %9217  ;;  %v2005_v10 = vmul.f32 %v11906_v22, %v2004_v52  ;;  %vm12085_vm2 = vmor %vm2007_vm11, %vm2008_vm12 }
 0x198   : > { %vm12011_vm8 = vcmp.eq.f32.partialorder %v1981_v26, 8.507059e+37  ;;  %v2011_v29 = vand.u32 2147483647, %v11820_v62  ;;  %v9220_v15 = vpop.eup %9219  ;;  %v19834_v26 = vand.u32 2147483647, %v11679_v16  ;;  %v12029_v52 = vor.u32 1.1754944e-38, %v2418_v24 }
 0x199   : > { %vm12037_vm13 = vcmp.eq.f32.partialorder %v19837_v14, 8.507059e+37  ;;  %v2440_v16 = vmul.f32 %v11917_v12, %v2439_v17  ;;  %v12043_v24 = vpop.eup %9221  ;;  %v12045_v54 = vadd.f32 1.0, %v9218_v51  ;;  %v1980_v5 = vsel %vm12007_vm7, %v11861_v59, %v11998_v21  ;;  %v1041_v14 = vpop.f32.mrf.mxu2 }
 0x19a   : > { %v11980_v37 = vpop.f32.mrf.mxu0  ;;  %vm12025_vm9 = vcmp.eq.f32.partialorder %v19834_v26, 8.507059e+37  ;;  %v2034_v26 = vsub.f32 1.0, %v2033_v25  ;;  %v12059_v36 = vpop.eup %9223  ;;  %v12061_v51 = vadd.f32 1.0, %v9220_v15  ;;  %v2006_v6 = vadd.f32 %v11906_v22, %v2005_v10  ;;  %v461_v25 = vld [vmem:[%s10938_s17 + $0x280] sm:$0xff]  ;;  %v462_v15 = vld [vmem:[%s10938_s17 + $0x288] sm:$0xff] }
 0x19b   : > { %v11982_v0 = vpop.f32.mrf.mxu1  ;;  %vm12064_vm0 = vcmp.eq.f32.partialorder %v2011_v29, 8.507059e+37  ;;  %v2415_v38 = vsel %vm12055_vm15, %v11869_v63, %v12018_v27  ;;  %v869_v59 = vadd.f32 %v11832_v61, %v660_v9  ;;  %v8706_v10 = vmul.f32 -1.442695, %v11933_v19  ;;  %v9226_v9 = vpop.eup %9225 }
 0x19c   : > { %v1042_v29 = vadd.f32 %v1041_v14, %v11393_v41  ;;  %v2441_v61 = vadd.f32 %v11917_v12, %v2440_v16  ;;  %v2446_v27 = vand.u32 2147483647, %v11826_v18  ;;  %v2468_v19 = vmul.f32 %v12043_v24, %v11954_v20 }
 0x19d   : > { %712 = vmatmul.f32.gmra.mxu0 %v459_v4  ;;  %v10410_v4 = vld [vmem:[%s10938_s17 + $0x190] sm:$0xff]  ;;  %9229 = vrcp.f32 %v12045_v54  ;;  %v2035_v62 = vmul.f32 %v11973_v55, %v2034_v26  ;;  %v2063_v3 = vmul.f32 %v12059_v36, %v11963_v40  ;;  %v2010_v16 = vsel %vm12085_vm2, %v11906_v22, %v2006_v6  ;;  %v10412_v26 = vld [vmem:[%s10938_s17 + $0x1a0] sm:$0xff] }
 0x19e   : > { %921 = vmatmul.f32.gmra.mxu1 %v460_v7  ;;  %1088 = vmatmul.f32.gmra.mxu2 %v10410_v4  ;;  %v2014_v4 = vor.u32 1.1754944e-38, %v2013_v45  ;;  %v1250_v63 = vpop.f32.mrf.mxu3  ;;  %9231 = vrcp.f32 %v12061_v51  ;;  %vm2038_vm4 = vweird.f32 %v11973_v55  ;;  %v12110_v50 = vadd.f32 1.0, %v9226_v9  ;;  %v465_v7 = vld [vmem:[%s10938_s17 + $0x2a0] sm:$0xff] }
 0x19f   : > { %v12095_v14 = vadd.f32 %v1250_v63, %v1042_v29  ;;  %v8733_v29 = vmul.f32 -1.442695, %v869_v59  ;;  %v663_v63 = vadd.f32 %v11908_v58, %v11186_v53  ;;  %9233 = vpow2.f32 %v8706_v10 }
 0x1a0   : > { %v12116_v6 = vsel %vm12011_vm8, %v11993_v30, %v1980_v5  ;;  %v2041_v22 = vand.u32 2147483647, %v11884_v42  ;;  %v19846_v58 = vsel %vm11939_vm1, %v11769_v32, %v11901_v49  ;;  %v9228_v30 = vpop.eup %9227  ;;  %v2036_v39 = vadd.f32 %v11973_v55, %v2035_v62  ;;  %vm12154_vm1 = vmor %vm2037_vm3, %vm2038_vm4  ;;  %v463_v42 = vld [vmem:[%s10938_s17 + $0x290] sm:$0xff] }
 0x1a1   : > { %v12127_v59 = vsel %vm12025_vm9, %v11915_v33, %v19846_v58  ;;  %v2064_v5 = vsub.f32 1.0, %v2063_v3  ;;  %v12141_v32 = vsel %vm12037_vm13, %v12029_v52, %v2415_v38  ;;  %v2445_v49 = vsel %vm12133_vm5, %v11917_v12, %v2441_v61  ;;  %v1044_v18 = vpop.f32.mrf.mxu2  ;;  %v10414_v58 = vld [vmem:[%s10938_s17 + $0x1b0] sm:$0xff] }
 0x1a2   : > { %v12073_v21 = vpop.f32.mrf.mxu0  ;;  %19847 = vst [vmem:[#allocation32_spill] sm:$0xff] %v12127_v59  ;;  %v12148_v33 = vsel %vm12064_vm0, %v2014_v4, %v2010_v16  ;;  %vm12158_vm6 = vcmp.eq.f32.partialorder %v2446_v27, 8.507059e+37  ;;  %v2449_v52 = vor.u32 1.1754944e-38, %v2448_v31  ;;  %v2469_v46 = vsub.f32 1.0, %v2468_v19 }
 0x1a3   : > { %v12075_v45 = vpop.f32.mrf.mxu1  ;;  %19850 = vst [vmem:[#allocation33_spill] sm:$0xff] %v12141_v32  ;;  %v12162_v12 = vpop.eup %9229  ;;  %9235 = vpow2.f32 %v8733_v29  ;;  %v872_v4 = vadd.f32 %v11910_v47, %v663_v63  ;;  %v1045_v10 = vadd.f32 %v1044_v18, %v11393_v41  ;;  %v2044_v17 = vor.u32 1.1754944e-38, %v2043_v60 }
 0x1a4   : > { %19851 = vst [vmem:[#allocation34_spill] sm:$0xff] %v12148_v33  ;;  %v12172_v61 = vpop.eup %9231  ;;  %v12174_v27 = vadd.f32 1.0, %v9228_v30  ;;  %9237 = vrcp.f32 %v12110_v50  ;;  %vm12177_vm7 = vcmp.eq.f32.partialorder %v2041_v22, 8.507059e+37  ;;  %v12183_v47 = vsel %vm12158_vm6, %v2449_v52, %v2445_v49  ;;  %v466_v52 = vld [vmem:[%s10938_s17 + $0x2a8] sm:$0xff] }
 0x1a5   : > { %715 = vmatmul.f32.gmra.mxu0 %v461_v25  ;;  %v10413_v25 = vld [vmem:[%s10938_s17 + $0x1a8] sm:$0xff]  ;;  %19858 = vst [vmem:[#allocation35_spill] sm:$0xff] %v12183_v47  ;;  %v9234_v9 = vpop.eup %9233  ;;  %v2040_v60 = vsel %vm12154_vm1, %v11973_v55, %v2036_v39  ;;  %v2065_v16 = vmul.f32 %v12059_v36, %v2064_v5  ;;  %vm2472_vm8 = vweird.f32 %v11954_v20  ;;  %v8708_v29 = vmul.f32 -1.442695, %v11995_v34 }
 0x1a6   : > { %924 = vmatmul.f32.gmra.mxu1 %v462_v15  ;;  %1091 = vmatmul.f32.gmra.mxu2 %v10412_v26  ;;  %v464_v15 = vld [vmem:[%s10938_s17 + $0x298] sm:$0xff]  ;;  %v1253_v31 = vpop.f32.mrf.mxu3  ;;  %v2073_v63 = vand.u32 2147483648, %v11963_v40  ;;  %v2093_v26 = vmul.f32 %v12162_v12, %v12045_v54  ;;  %v8735_v22 = vmul.f32 -1.442695, %v872_v4  ;;  %v666_v55 = vadd.f32 %v11980_v37, %v11186_v53 }
 0x1a7   : > { %1300 = vmatmul.f32.gmra.mxu3 %v10413_v25  ;;  %v12185_v62 = vadd.f32 %v1253_v31, %v1045_v10  ;;  %v2470_v25 = vmul.f32 %v12043_v24, %v2469_v46  ;;  %vm2067_vm9 = vweird.f32 %v11963_v40  ;;  %vm2068_vm10 = vweird.f32 %v12059_v36 }
 0x1a8   : > { %v12202_v34 = vadd.f32 1.0, %v9234_v9  ;;  %v2071_v30 = vand.u32 2147483647, %v11963_v40  ;;  %vm2473_vm11 = vweird.f32 %v12043_v24  ;;  %v2498_v39 = vmul.f32 %v12172_v61, %v12061_v51  ;;  %vm12225_vm12 = vmor %vm2067_vm9, %vm2068_vm10  ;;  %v5535_v9 = vld [vmem:[#allocation11 + $0x90] sm:$0xff] }
 0x1a9   : > { %v9236_v37 = vpop.eup %9235  ;;  %9239 = vrcp.f32 %v12174_v27  ;;  %v12212_v5 = vsel %vm12177_vm7, %v2044_v17, %v2040_v60  ;;  %v2066_v49 = vadd.f32 %v12059_v36, %v2065_v16  ;;  %v2476_v18 = vand.u32 2147483647, %v11954_v20  ;;  %v1047_v4 = vpop.f32.mrf.mxu2  ;;  %v3851_v60 = vld [vmem:[#allocation8 + $0x20] sm:$0xff]  ;;  %5561 = vmatpush.msrb.mxu2 %v5535_v9  ;;  %vm12259_vm14 = vmor %vm2472_vm8, %vm2473_vm11 }
 0x1aa   : > { %v12165_v2 = vpop.f32.mrf.mxu0  ;;  %19859 = vst [vmem:[#allocation36_spill] sm:$0xff] %v12212_v5  ;;  %v12216_v3 = vpop.eup %9237  ;;  %9241 = vpow2.f32 %v8708_v29  ;;  %v8710_v46 = vmul.f32 -1.442695, %v12095_v14  ;;  %v2094_v10 = vsub.f32 1.0, %v2093_v26  ;;  %v875_v17 = vadd.f32 %v11982_v0, %v666_v55  ;;  %v5536_v14 = vld [vmem:[#allocation11 + $0x98] sm:$0xff]  ;;  %3894 = vmatpush.msrb.mxu0 %v3851_v60 }
 0x1ab   : > { %v12167_v38 = vpop.f32.mrf.mxu1  ;;  %9243 = vpow2.f32 %v8735_v22  ;;  %v1048_v16 = vadd.f32 %v1047_v4, %v11393_v41  ;;  %v2471_v40 = vadd.f32 %v12043_v24, %v2470_v25  ;;  %5770 = vmatpush.msrb.mxu3 %v5536_v14  ;;  %v3867_v29 = vld [vmem:[#allocation8 + $0xa0] sm:$0xff]  ;;  %vm12237_vm13 = vcmp.eq.f32.partialorder %v2071_v30, 8.507059e+37 }
 0x1ac   : > { %9245 = vrcp.f32 %v12202_v34  ;;  %v2478_v0 = vand.u32 2147483648, %v11954_v20  ;;  %v2499_v22 = vsub.f32 1.0, %v2498_v39  ;;  %v12242_v55 = vadd.f32 1.0, %v9236_v37  ;;  %4103 = vmatpush.msrb.mxu1 %v3867_v29 }
 0x1ad   : > { %718 = vmatmul.f32.gmra.mxu0 %v463_v42  ;;  %v2070_v25 = vsel %vm12225_vm12, %v12059_v36, %v2066_v49  ;;  %v669_v30 = vadd.f32 %v12073_v21, %v11186_v53  ;;  %9247 = vpow2.f32 %v8710_v46  ;;  %v2095_v39 = vmul.f32 %v12162_v12, %v2094_v10  ;;  %v10416_v42 = vld [vmem:[%s10938_s17 + $0x1c0] sm:$0xff]  ;;  %v10417_v46 = vld [vmem:[%s10938_s17 + $0x1c8] sm:$0xff] }
 0x1ae   : > { %927 = vmatmul.f32.gmra.mxu1 %v464_v15  ;;  %1094 = vmatmul.f32.gmra.mxu2 %v10414_v58  ;;  %v2074_v15 = vor.u32 1.1754944e-38, %v2073_v63  ;;  %v1256_v63 = vpop.f32.mrf.mxu3  ;;  %v2103_v37 = vand.u32 2147483648, %v12045_v54  ;;  %v8737_v4 = vmul.f32 -1.442695, %v875_v17  ;;  %v2101_v21 = vand.u32 2147483647, %v12045_v54 }
 0x1af   : > { %1303 = vmatmul.f32.gmra.mxu3 %v10415_v1  ;;  %v12244_v58 = vadd.f32 %v1256_v63, %v1048_v16  ;;  %v2123_v1 = vmul.f32 %v12216_v3, %v12110_v50  ;;  %v12263_v49 = vpop.eup %9239  ;;  %vm12270_vm15 = vcmp.eq.f32.partialorder %v2476_v18, 8.507059e+37  ;;  %vm2097_vm0 = vweird.f32 %v12045_v54 }
 0x1b0   : > { %v9242_v20 = vpop.eup %9241  ;;  %vm2098_vm2 = vweird.f32 %v12162_v12  ;;  %v2479_v10 = vor.u32 1.1754944e-38, %v2478_v0  ;;  %v2500_v17 = vmul.f32 %v12172_v61, %v2499_v22  ;;  %9249 = vrcp.f32 %v12242_v55  ;;  %v467_v22 = vld [vmem:[%s10938_s17 + $0x2b0] sm:$0xff] }
 0x1b1   : > { %v9244_v9 = vpop.eup %9243  ;;  %v2124_v18 = vsub.f32 1.0, %v2123_v1  ;;  %vm2502_vm3 = vweird.f32 %v12061_v51  ;;  %v878_v60 = vadd.f32 %v12075_v45, %v669_v30  ;;  %v1050_v16 = vpop.f32.mrf.mxu2  ;;  %v2104_v29 = vor.u32 1.1754944e-38, %v2103_v37  ;;  %vm12305_vm4 = vmor %vm2097_vm0, %vm2098_vm2 }
 0x1b2   : > { %v12230_v31 = vpop.f32.mrf.mxu0  ;;  %v12284_v14 = vpop.eup %9245  ;;  %9251 = vpow2.f32 %v8737_v4  ;;  %v12292_v0 = vadd.f32 1.0, %v9242_v20  ;;  %v1051_v1 = vadd.f32 %v1050_v16, %v11393_v41  ;;  %vm12309_vm5 = vcmp.eq.f32.partialorder %v2101_v21, 8.507059e+37 }
 0x1b3   : > { %v12232_v19 = vpop.f32.mrf.mxu1  ;;  %v12313_v37 = vadd.f32 1.0, %v9244_v9  ;;  %v8712_v36 = vmul.f32 -1.442695, %v12185_v62  ;;  %vm2503_vm1 = vweird.f32 %v12172_v61  ;;  %v2153_v21 = vmul.f32 %v12284_v14, %v12202_v34 }
 0x1b4   : > { %v8739_v20 = vmul.f32 -1.442695, %v878_v60  ;;  %vm2127_vm6 = vweird.f32 %v12110_v50  ;;  %9253 = vrcp.f32 %v12292_v0  ;;  %vm2128_vm7 = vweird.f32 %v12216_v3  ;;  %vm12353_vm8 = vmor %vm2502_vm3, %vm2503_vm1 }
 0x1b5   : > { %721 = vmatmul.f32.gmra.mxu0 %v465_v7  ;;  %v2475_v7 = vsel %vm12259_vm14, %v12043_v24, %v2471_v40  ;;  %v12281_v24 = vsel %vm12237_vm13, %v2074_v15, %v2070_v25  ;;  %v2096_v40 = vadd.f32 %v12162_v12, %v2095_v39  ;;  %v468_v25 = vld [vmem:[%s10938_s17 + $0x2b8] sm:$0xff]  ;;  %v9248_v39 = vpop.eup %9247  ;;  %9255 = vpow2.f32 %v8712_v36  ;;  %vm12362_vm9 = vmor %vm2127_vm6, %vm2128_vm7 }
 0x1b6   : > { %930 = vmatmul.f32.gmra.mxu1 %v466_v52  ;;  %1097 = vmatmul.f32.gmra.mxu2 %v10416_v42  ;;  %19868 = vst [vmem:[#allocation37_spill] sm:$0xff] %v12281_v24  ;;  %v12290_v63 = vsel %vm12270_vm15, %v2479_v10, %v2475_v7  ;;  %v1259_v4 = vpop.f32.mrf.mxu3  ;;  %v2501_v42 = vadd.f32 %v12172_v61, %v2500_v17  ;;  %v2508_v52 = vand.u32 2147483648, %v12061_v51  ;;  %v12330_v10 = vpop.eup %9249  ;;  %v12335_v9 = vadd.f32 1.0, %v9248_v39 }
 0x1b7   : > { %1306 = vmatmul.f32.gmra.mxu3 %v10417_v46  ;;  %19869 = vst [vmem:[#allocation38_spill] sm:$0xff] %v12290_v63  ;;  %v12318_v54 = vadd.f32 %v1259_v4, %v1051_v1  ;;  %v2125_v7 = vmul.f32 %v12216_v3, %v2124_v18  ;;  %v2100_v62 = vsel %vm12305_vm4, %v12162_v12, %v2096_v40  ;;  %v10418_v18 = vld [vmem:[%s10938_s17 + $0x1d0] sm:$0xff]  ;;  %v10419_v12 = vld [vmem:[%s10938_s17 + $0x1d8] sm:$0xff]  ;;  %v2131_v60 = vand.u32 2147483647, %v12110_v50 }
 0x1b8   : > { %v2528_v46 = vmul.f32 %v12263_v49, %v12174_v27  ;;  %v672_v17 = vadd.f32 %v12165_v2, %v11186_v53  ;;  %v2133_v16 = vand.u32 2147483648, %v12110_v50  ;;  %v2506_v40 = vand.u32 2147483647, %v12061_v51 }
 0x1b9   : > { %9257 = vrcp.f32 %v12313_v37  ;;  %v12346_v2 = vsel %vm12309_vm5, %v2104_v29, %v2100_v62  ;;  %v2154_v1 = vsub.f32 1.0, %v2153_v21  ;;  %v8714_v39 = vmul.f32 -1.442695, %v12244_v58  ;;  %v1053_v36 = vpop.f32.mrf.mxu2  ;;  %v469_v21 = vld [vmem:[%s10938_s17 + $0x2c0] sm:$0xff] }
 0x1ba   : > { %v12294_v15 = vpop.f32.mrf.mxu0  ;;  %19874 = vst [vmem:[#allocation39_spill] sm:$0xff] %v12346_v2  ;;  %9259 = vpow2.f32 %v8739_v20  ;;  %v2505_v51 = vsel %vm12353_vm8, %v12172_v61, %v2501_v42  ;;  %v2529_v30 = vsub.f32 1.0, %v2528_v46  ;;  %v881_v4 = vadd.f32 %v12167_v38, %v672_v17  ;;  %v470_v20 = vld [vmem:[%s10938_s17 + $0x2c8] sm:$0xff] }
 0x1bb   : > { %v12296_v26 = vpop.f32.mrf.mxu1  ;;  %9261 = vrcp.f32 %v12335_v9  ;;  %v1054_v50 = vadd.f32 %v1053_v36, %v11393_v41  ;;  %v2509_v62 = vor.u32 1.1754944e-38, %v2508_v52  ;;  %vm12380_vm10 = vcmp.eq.f32.partialorder %v2131_v60, 8.507059e+37 }
 0x1bc   : > { %v2134_v61 = vor.u32 1.1754944e-38, %v2133_v16  ;;  %vm2507_vm11 = vcmp.eq.f32.partialorder %v2506_v40, 8.507059e+37  ;;  %v2155_v52 = vmul.f32 %v12284_v14, %v2154_v1  ;;  %v675_v60 = vadd.f32 %v12230_v31, %v11186_v53  ;;  %v10421_v31 = vld [vmem:[%s10938_s17 + $0x1e8] sm:$0xff] }
 0x1bd   : > { %724 = vmatmul.f32.gmra.mxu0 %v467_v22  ;;  %v9252_v22 = vpop.eup %9251  ;;  %v12392_v17 = vsel %vm2507_vm11, %v2509_v62, %v2505_v51  ;;  %9263 = vpow2.f32 %v8714_v39  ;;  %v2163_v16 = vand.u32 2147483648, %v12202_v34  ;;  %v2530_v40 = vmul.f32 %v12263_v49, %v2529_v30 }
 0x1be   : > { %933 = vmatmul.f32.gmra.mxu1 %v468_v25  ;;  %1100 = vmatmul.f32.gmra.mxu2 %v10418_v18  ;;  %v2126_v25 = vadd.f32 %v12216_v3, %v2125_v7  ;;  %v12378_v18 = vadd.f32 1.0, %v9252_v22  ;;  %v12384_v38 = vpop.eup %9253  ;;  %19881 = vst [vmem:[#allocation40_spill] sm:$0xff] %v12392_v17  ;;  %v8741_v29 = vmul.f32 -1.442695, %v881_v4  ;;  %vm2157_vm12 = vweird.f32 %v12202_v34 }
 0x1bf   : > { %1309 = vmatmul.f32.gmra.mxu3 %v10419_v12  ;;  %v1262_v12 = vpop.f32.mrf.mxu3  ;;  %v9256_v22 = vpop.eup %9255  ;;  %vm2158_vm13 = vweird.f32 %v12284_v14  ;;  %v2183_v39 = vmul.f32 %v12384_v38, %v12292_v0  ;;  %vm2532_vm14 = vweird.f32 %v12174_v27  ;;  %vm2533_vm15 = vweird.f32 %v12263_v49 }
 0x1c0   : > { %v12386_v42 = vadd.f32 %v1262_v12, %v1054_v50  ;;  %v2130_v46 = vsel %vm12362_vm9, %v12216_v3, %v2126_v25  ;;  %v12398_v36 = vpop.eup %9257  ;;  %v10420_v3 = vld [vmem:[%s10938_s17 + $0x1e0] sm:$0xff]  ;;  %v2161_v25 = vand.u32 2147483647, %v12202_v34  ;;  %9265 = vrcp.f32 %v12378_v18  ;;  %vm12427_vm0 = vmor %vm2157_vm12, %vm2158_vm13 }
 0x1c1   : > { %v9260_v1 = vpop.eup %9259  ;;  %v12412_v30 = vadd.f32 1.0, %v9256_v22  ;;  %v12416_v4 = vsel %vm12380_vm10, %v2134_v61, %v2130_v46  ;;  %v884_v50 = vadd.f32 %v12232_v19, %v675_v60  ;;  %v8716_v62 = vmul.f32 -1.442695, %v12318_v54  ;;  %v1056_v12 = vpop.f32.mrf.mxu2  ;;  %v471_v19 = vld [vmem:[%s10938_s17 + $0x2d0] sm:$0xff]  ;;  %v472_v60 = vld [vmem:[%s10938_s17 + $0x2d8] sm:$0xff]  ;;  %vm12464_vm3 = vmor %vm2532_vm14, %vm2533_vm15 }
 0x1c2   : > { %v12371_v7 = vpop.f32.mrf.mxu0  ;;  %v12410_v51 = vpop.eup %9261  ;;  %19882 = vst [vmem:[#allocation41_spill] sm:$0xff] %v12416_v4  ;;  %v2164_v45 = vor.u32 1.1754944e-38, %v2163_v16  ;;  %v2536_v61 = vand.u32 2147483647, %v12174_v27  ;;  %9267 = vpow2.f32 %v8741_v29  ;;  %v1057_v54 = vadd.f32 %v1056_v12, %v11393_v41 }
 0x1c3   : > { %v12373_v58 = vpop.f32.mrf.mxu1  ;;  %vm12439_vm2 = vcmp.eq.f32.partialorder %v2161_v25, 8.507059e+37  ;;  %v2531_v34 = vadd.f32 %v12263_v49, %v2530_v40  ;;  %v12444_v17 = vadd.f32 1.0, %v9260_v1  ;;  %v2184_v63 = vsub.f32 1.0, %v2183_v39 }
 0x1c4   : > { %v2213_v29 = vmul.f32 %v12410_v51, %v12335_v9  ;;  %v2538_v47 = vand.u32 2147483648, %v12174_v27  ;;  %9269 = vrcp.f32 %v12412_v30  ;;  %v8743_v32 = vmul.f32 -1.442695, %v884_v50  ;;  %v10423_v27 = vld [vmem:[%s10938_s17 + $0x1f8] sm:$0xff] }
 0x1c5   : > { %727 = vmatmul.f32.gmra.mxu0 %v469_v21  ;;  %v2156_v21 = vadd.f32 %v12284_v14, %v2155_v52  ;;  %v678_v39 = vadd.f32 %v12294_v15, %v11186_v53  ;;  %9271 = vpow2.f32 %v8716_v62  ;;  %v2193_v59 = vand.u32 2147483648, %v12292_v0 }
 0x1c6   : > { %936 = vmatmul.f32.gmra.mxu1 %v470_v20  ;;  %1103 = vmatmul.f32.gmra.mxu2 %v10420_v3  ;;  %v2558_v20 = vmul.f32 %v12330_v10, %v12242_v55  ;;  %v2535_v15 = vsel %vm12464_vm3, %v12263_v49, %v2531_v34  ;;  %vm12474_vm4 = vcmp.eq.f32.partialorder %v2536_v61, 8.507059e+37  ;;  %vm2562_vm5 = vweird.f32 %v12242_v55  ;;  %v473_v34 = vld [vmem:[%s10938_s17 + $0x2e0] sm:$0xff] }
 0x1c7   : > { %1312 = vmatmul.f32.gmra.mxu3 %v10421_v31  ;;  %v9264_v31 = vpop.eup %9263  ;;  %v1265_v16 = vpop.f32.mrf.mxu3  ;;  %v2160_v25 = vsel %vm12427_vm0, %v12284_v14, %v2156_v21  ;;  %v10422_v21 = vld [vmem:[%s10938_s17 + $0x1f0] sm:$0xff]  ;;  %9273 = vrcp.f32 %v12444_v17  ;;  %v2185_v62 = vmul.f32 %v12384_v38, %v2184_v63  ;;  %vm2187_vm1 = vweird.f32 %v12292_v0 }
 0x1c8   : > { %v12450_v12 = vadd.f32 %v1265_v16, %v1057_v54  ;;  %v2559_v40 = vsub.f32 1.0, %v2558_v20  ;;  %v12455_v1 = vpop.eup %9265  ;;  %v12468_v14 = vadd.f32 1.0, %v9264_v31  ;;  %v12483_v50 = vsel %vm12439_vm2, %v2164_v45, %v2160_v25  ;;  %v474_v31 = vld [vmem:[%s10938_s17 + $0x2e8] sm:$0xff] }
 0x1c9   : > { %19891 = vst [vmem:[#allocation42_spill] sm:$0xff] %v12483_v50  ;;  %v9268_v49 = vpop.eup %9267  ;;  %vm2188_vm6 = vweird.f32 %v12384_v38  ;;  %v2539_v61 = vor.u32 1.1754944e-38, %v2538_v47  ;;  %9275 = vpow2.f32 %v8743_v32  ;;  %v887_v54 = vadd.f32 %v12296_v26, %v678_v39  ;;  %v1059_v16 = vpop.f32.mrf.mxu2  ;;  %v5533_v32 = vld [vmem:[#allocation11 + $0x80] sm:$0xff]  ;;  %v3850_v26 = vld [vmem:[#allocation8 + $0x18] sm:$0xff] }
 0x1ca   : > { %v12432_v46 = vpop.f32.mrf.mxu0  ;;  %v2191_v45 = vand.u32 2147483647, %v12292_v0  ;;  %v12493_v3 = vor.u32 1.1754944e-38, %v2193_v59  ;;  %v12495_v63 = vpop.eup %9269  ;;  %9277 = vrcp.f32 %v12468_v14  ;;  %v8718_v47 = vmul.f32 -1.442695, %v12386_v42  ;;  %5562 = vmatpush.msrb.mxu2 %v5533_v32  ;;  %3895 = vmatpush.msrb.mxu0 %v3850_v26  ;;  %vm12528_vm9 = vmor %vm2187_vm1, %vm2188_vm6  ;;  %v476_v50 = vld [vmem:[%s10938_s17 + $0x2f8] sm:$0xff] }
 0x1cb   : > { %v12434_v52 = vpop.f32.mrf.mxu1  ;;  %v1060_v39 = vadd.f32 %v1059_v16, %v11393_v41  ;;  %v12506_v22 = vsel %vm12474_vm4, %v2539_v61, %v2535_v15  ;;  %v9272_v59 = vpop.eup %9271  ;;  %v12511_v44 = vadd.f32 %v12384_v38, %v2185_v62  ;;  %vm2563_vm7 = vweird.f32 %v12330_v10 }
 0x1cc   : > { %19892 = vst [vmem:[#allocation43_spill] sm:$0xff] %v12506_v22  ;;  %vm2217_vm8 = vweird.f32 %v12335_v9  ;;  %v2223_v15 = vand.u32 2147483648, %v12335_v9  ;;  %v8745_v62 = vmul.f32 -1.442695, %v887_v54  ;;  %vm2218_vm10 = vweird.f32 %v12410_v51  ;;  %v10424_v54 = vld [vmem:[%s10938_s17 + $0x200] sm:$0xff]  ;;  %vm12551_vm12 = vmor %vm2562_vm5, %vm2563_vm7 }
 0x1cd   : > { %730 = vmatmul.f32.gmra.mxu0 %v471_v19  ;;  %v2214_v19 = vsub.f32 1.0, %v2213_v29  ;;  %v12520_v61 = vpop.eup %9273  ;;  %v12535_v16 = vadd.f32 1.0, %v9272_v59  ;;  %9279 = vpow2.f32 %v8718_v47  ;;  %vm12538_vm11 = vcmp.eq.f32.partialorder %v2191_v45, 8.507059e+37  ;;  %vm12569_vm13 = vmor %vm2217_vm8, %vm2218_vm10 }
 0x1ce   : > { %939 = vmatmul.f32.gmra.mxu1 %v472_v60  ;;  %1106 = vmatmul.f32.gmra.mxu2 %v10422_v21  ;;  %v2560_v60 = vmul.f32 %v12330_v10, %v2559_v40  ;;  %v5534_v40 = vld [vmem:[#allocation11 + $0x88] sm:$0xff]  ;;  %v12508_v21 = vadd.f32 1.0, %v9268_v49  ;;  %v2243_v0 = vmul.f32 %v12495_v63, %v12412_v30  ;;  %v2566_v45 = vand.u32 2147483647, %v12242_v55 }
 0x1cf   : > { %1315 = vmatmul.f32.gmra.mxu3 %v10423_v27  ;;  %v3866_v27 = vld [vmem:[#allocation8 + $0x98] sm:$0xff]  ;;  %v1268_v56 = vpop.f32.mrf.mxu3  ;;  %v2215_v42 = vmul.f32 %v12410_v51, %v2214_v19  ;;  %v681_v19 = vadd.f32 %v12371_v7, %v11186_v53  ;;  %v2568_v26 = vand.u32 2147483648, %v12242_v55  ;;  %v8720_v59 = vmul.f32 -1.442695, %v12450_v12 }
 0x1d0   : > { %5771 = vmatpush.msrb.mxu3 %v5534_v40  ;;  %4104 = vmatpush.msrb.mxu1 %v3866_v27  ;;  %v12515_v20 = vadd.f32 %v1268_v56, %v1060_v39  ;;  %v2561_v49 = vadd.f32 %v12330_v10, %v2560_v60  ;;  %v2588_v60 = vmul.f32 %v12398_v36, %v12313_v37  ;;  %v2221_v40 = vand.u32 2147483647, %v12335_v9 }
 0x1d1   : > { %v2216_v32 = vadd.f32 %v12410_v51, %v2215_v42  ;;  %9281 = vrcp.f32 %v12508_v21  ;;  %v2190_v27 = vsel %vm12528_vm9, %v12384_v38, %v12511_v44  ;;  %v890_v12 = vadd.f32 %v12373_v58, %v681_v19  ;;  %v475_v38 = vld [vmem:[%s10938_s17 + $0x2f0] sm:$0xff] }
 0x1d2   : > { %v12498_v29 = vpop.f32.mrf.mxu0  ;;  %v2565_v55 = vsel %vm12551_vm12, %v12330_v10, %v2561_v49  ;;  %9283 = vpow2.f32 %v8745_v62  ;;  %v2589_v22 = vsub.f32 1.0, %v2588_v60  ;;  %v2244_v47 = vsub.f32 1.0, %v2243_v0 }
 0x1d3   : > { %v12500_v25 = vpop.f32.mrf.mxu1  ;;  %9285 = vrcp.f32 %v12535_v16  ;;  %v2220_v58 = vsel %vm12569_vm13, %v12410_v51, %v2216_v32  ;;  %vm12590_vm14 = vcmp.eq.f32.partialorder %v2221_v40, 8.507059e+37  ;;  %v2569_v62 = vor.u32 1.1754944e-38, %v2568_v26 }
 0x1d4   : > { %v684_v60 = vadd.f32 %v12432_v46, %v11186_v53  ;;  %9287 = vpow2.f32 %v8720_v59  ;;  %vm2567_vm15 = vcmp.eq.f32.partialorder %v2566_v45, 8.507059e+37  ;;  %v12603_v51 = vsel %vm12538_vm11, %v12493_v3, %v2190_v27 }
 0x1d5   : > { %733 = vmatmul.f32.gmra.mxu0 %v473_v34  ;;  %v9276_v34 = vpop.eup %9275  ;;  %19903 = vst [vmem:[#allocation44_spill] sm:$0xff] %v12603_v51  ;;  %v12605_v32 = vsel %vm2567_vm15, %v2569_v62, %v2565_v55  ;;  %v2590_v40 = vmul.f32 %v12398_v36, %v2589_v22  ;;  %vm2592_vm0 = vweird.f32 %v12313_v37  ;;  %vm2593_vm2 = vweird.f32 %v12398_v36  ;;  %v10427_v22 = vld [vmem:[%s10938_s17 + $0x218] sm:$0xff] }
 0x1d6   : > { %942 = vmatmul.f32.gmra.mxu1 %v474_v31  ;;  %1109 = vmatmul.f32.gmra.mxu2 %v10424_v54  ;;  %v10425_v31 = vld [vmem:[%s10938_s17 + $0x208] sm:$0xff]  ;;  %v12557_v39 = vpop.eup %9277  ;;  %v1062_v54 = vpop.f32.mrf.mxu2  ;;  %v12577_v56 = vadd.f32 1.0, %v9276_v34  ;;  %v8747_v34 = vmul.f32 -1.442695, %v890_v12  ;;  %19904 = vst [vmem:[#allocation45_spill] sm:$0xff] %v12605_v32  ;;  %v2253_v45 = vand.u32 2147483648, %v12412_v30  ;;  %v2618_v27 = vmul.f32 %v12455_v1, %v12378_v18  ;;  %vm12689_vm9 = vmor %vm2592_vm0, %vm2593_vm2 }
 0x1d7   : > { %1318 = vmatmul.f32.gmra.mxu3 %v10425_v31  ;;  %v2224_v31 = vor.u32 1.1754944e-38, %v2223_v15  ;;  %v1063_v11 = vadd.f32 %v1062_v54, %v11393_v41  ;;  %v1271_v10 = vpop.f32.mrf.mxu3  ;;  %v2273_v49 = vmul.f32 %v12557_v39, %v12468_v14  ;;  %v9280_v19 = vpop.eup %9279  ;;  %v893_v55 = vadd.f32 %v12434_v52, %v684_v60 }
 0x1d8   : > { %v12608_v26 = vpop.eup %9281  ;;  %9289 = vrcp.f32 %v12577_v56  ;;  %v12619_v7 = vadd.f32 1.0, %v9280_v19  ;;  %v8722_v12 = vmul.f32 -1.442695, %v12515_v20  ;;  %vm2247_vm3 = vweird.f32 %v12412_v30  ;;  %v477_v20 = vld [vmem:[%s10938_s17 + $0x300] sm:$0xff] }
 0x1d9   : > { %v12598_v0 = vadd.f32 %v1271_v10, %v1063_v11  ;;  %v10426_v11 = vld [vmem:[%s10938_s17 + $0x210] sm:$0xff]  ;;  %v12614_v46 = vsel %vm12590_vm14, %v2224_v31, %v2220_v58  ;;  %v9284_v3 = vpop.eup %9283  ;;  %v2274_v59 = vsub.f32 1.0, %v2273_v49  ;;  %v2596_v54 = vand.u32 2147483647, %v12313_v37  ;;  %v478_v49 = vld [vmem:[%s10938_s17 + $0x308] sm:$0xff] }
 0x1da   : > { %v12580_v44 = vpop.f32.mrf.mxu0  ;;  %19905 = vst [vmem:[#allocation46_spill] sm:$0xff] %v12614_v46  ;;  %v12625_v42 = vpop.eup %9285  ;;  %9291 = vpow2.f32 %v8747_v34  ;;  %vm2248_vm4 = vweird.f32 %v12495_v63  ;;  %v12636_v58 = vadd.f32 1.0, %v9284_v3  ;;  %v2598_v60 = vand.u32 2147483648, %v12313_v37 }
 0x1db   : > { %v12582_v9 = vpop.f32.mrf.mxu1  ;;  %v9288_v10 = vpop.eup %9287  ;;  %9293 = vrcp.f32 %v12619_v7  ;;  %v2619_v3 = vsub.f32 1.0, %v2618_v27  ;;  %v8749_v32 = vmul.f32 -1.442695, %v893_v55  ;;  %vm2277_vm5 = vweird.f32 %v12468_v14  ;;  %v10428_v27 = vld [vmem:[%s10938_s17 + $0x220] sm:$0xff]  ;;  %vm12669_vm6 = vmor %vm2247_vm3, %vm2248_vm4 }
 0x1dc   : > { %9295 = vpow2.f32 %v8722_v12  ;;  %v12659_v46 = vadd.f32 1.0, %v9288_v10  ;;  %vm2278_vm1 = vweird.f32 %v12557_v39  ;;  %v2254_v12 = vor.u32 1.1754944e-38, %v2253_v45  ;;  %v480_v45 = vld [vmem:[%s10938_s17 + $0x318] sm:$0xff] }
 0x1dd   : > { %736 = vmatmul.f32.gmra.mxu0 %v475_v38  ;;  %v2251_v38 = vand.u32 2147483647, %v12412_v30  ;;  %v2281_v10 = vand.u32 2147483647, %v12468_v14  ;;  %vm12678_vm8 = vcmp.eq.f32.partialorder %v2596_v54, 8.507059e+37  ;;  %9297 = vrcp.f32 %v12636_v58  ;;  %vm12699_vm10 = vmor %vm2277_vm5, %vm2278_vm1 }
 0x1de   : > { %945 = vmatmul.f32.gmra.mxu1 %v476_v50  ;;  %1112 = vmatmul.f32.gmra.mxu2 %v10426_v11  ;;  %v2245_v50 = vmul.f32 %v12495_v63, %v2244_v47  ;;  %v1065_v31 = vpop.f32.mrf.mxu2  ;;  %v12634_v47 = vadd.f32 %v12398_v36, %v2590_v40  ;;  %v2275_v40 = vmul.f32 %v12557_v39, %v2274_v59  ;;  %v2283_v59 = vand.u32 2147483648, %v12468_v14 }
 0x1df   : > { %1321 = vmatmul.f32.gmra.mxu3 %v10427_v22  ;;  %v1066_v62 = vadd.f32 %v1065_v31, %v11393_v41  ;;  %v1274_v34 = vpop.f32.mrf.mxu3  ;;  %v2303_v11 = vmul.f32 %v12625_v42, %v12535_v16  ;;  %v12653_v22 = vpop.eup %9289  ;;  %v687_v31 = vadd.f32 %v12498_v29, %v11186_v53  ;;  %vm12673_vm7 = vcmp.eq.f32.partialorder %v2251_v38, 8.507059e+37 }
 0x1e0   : > { %v12646_v19 = vadd.f32 %v12495_v63, %v2245_v50  ;;  %v2276_v30 = vadd.f32 %v12557_v39, %v2275_v40  ;;  %v2620_v54 = vmul.f32 %v12455_v1, %v2619_v3  ;;  %9299 = vpow2.f32 %v8749_v32 }
 0x1e1   : > { %v12657_v50 = vadd.f32 %v1274_v34, %v1066_v62  ;;  %v10429_v62 = vld [vmem:[%s10938_s17 + $0x228] sm:$0xff]  ;;  %v2304_v34 = vsub.f32 1.0, %v2303_v11  ;;  %v896_v38 = vadd.f32 %v12500_v25, %v687_v31  ;;  %v2595_v37 = vsel %vm12689_vm9, %v12398_v36, %v12634_v47  ;;  %v479_v47 = vld [vmem:[%s10938_s17 + $0x310] sm:$0xff] }
 0x1e2   : > { %v12638_v15 = vpop.f32.mrf.mxu0  ;;  %vm2622_vm11 = vweird.f32 %v12378_v18  ;;  %9301 = vrcp.f32 %v12659_v46  ;;  %v2250_v14 = vsel %vm12669_vm6, %v12495_v63, %v12646_v19  ;;  %v2284_v32 = vor.u32 1.1754944e-38, %v2283_v59 }
 0x1e3   : > { %v12640_v52 = vpop.f32.mrf.mxu1  ;;  %v2599_v3 = vor.u32 1.1754944e-38, %v2598_v60  ;;  %vm12724_vm12 = vcmp.eq.f32.partialorder %v2281_v10, 8.507059e+37  ;;  %vm2623_vm13 = vweird.f32 %v12455_v1  ;;  %v2280_v19 = vsel %vm12699_vm10, %v12557_v39, %v2276_v30 }
 0x1e4   : > { %v2305_v60 = vmul.f32 %v12625_v42, %v2304_v34  ;;  %v2621_v59 = vadd.f32 %v12455_v1, %v2620_v54  ;;  %v2628_v29 = vand.u32 2147483648, %v12378_v18  ;;  %v690_v10 = vadd.f32 %v12580_v44, %v11186_v53  ;;  %vm12774_vm0 = vmor %vm2622_vm11, %vm2623_vm13 }
 0x1e5   : > { %739 = vmatmul.f32.gmra.mxu0 %v477_v20  ;;  %vm2307_vm14 = vweird.f32 %v12535_v16  ;;  %vm2308_vm15 = vweird.f32 %v12625_v42  ;;  %v2648_v34 = vmul.f32 %v12520_v61, %v12444_v17  ;;  %v12753_v54 = vsel %vm12673_vm7, %v2254_v12, %v2250_v14 }
 0x1e6   : > { %948 = vmatmul.f32.gmra.mxu1 %v478_v49  ;;  %1115 = vmatmul.f32.gmra.mxu2 %v10428_v27  ;;  %v9292_v49 = vpop.eup %9291  ;;  %v1068_v25 = vpop.f32.mrf.mxu2  ;;  %19918 = vst [vmem:[#allocation47_spill] sm:$0xff] %v12753_v54  ;;  %v2626_v40 = vand.u32 2147483647, %v12378_v18  ;;  %v2306_v55 = vadd.f32 %v12625_v42, %v2305_v60  ;;  %v2311_v12 = vand.u32 2147483647, %v12535_v16  ;;  %v2313_v20 = vand.u32 2147483648, %v12535_v16  ;;  %vm12783_vm2 = vmor %vm2307_vm14, %vm2308_vm15 }
 0x1e7   : > { %1324 = vmatmul.f32.gmra.mxu3 %v10429_v62  ;;  %v12708_v11 = vpop.eup %9293  ;;  %v12715_v27 = vadd.f32 1.0, %v9292_v49  ;;  %v1069_v51 = vadd.f32 %v1068_v25, %v11393_v41  ;;  %v1277_v63 = vpop.f32.mrf.mxu3  ;;  %v8751_v49 = vmul.f32 -1.442695, %v896_v38  ;;  %v12757_v38 = vsel %vm12678_vm8, %v2599_v3, %v2595_v37  ;;  %v3849_v37 = vld [vmem:[#allocation8 + $0x10] sm:$0xff] }
 0x1e8   : > { %v9296_v31 = vpop.eup %9295  ;;  %v2333_v30 = vmul.f32 %v12708_v11, %v12619_v7  ;;  %19919 = vst [vmem:[#allocation48_spill] sm:$0xff] %v12757_v38  ;;  %v899_v14 = vadd.f32 %v12582_v9, %v690_v10  ;;  %v2629_v18 = vor.u32 1.1754944e-38, %v2628_v29  ;;  %v5532_v38 = vld [vmem:[#allocation11 + $0x78] sm:$0xff]  ;;  %vm2627_vm3 = vcmp.eq.f32.partialorder %v2626_v40, 8.507059e+37  ;;  %v3865_v29 = vld [vmem:[#allocation8 + $0x90] sm:$0xff]  ;;  %3896 = vmatpush.msrb.mxu0 %v3849_v37 }
 0x1e9   : > { %v12737_v25 = vadd.f32 %v1277_v63, %v1069_v51  ;;  %v12740_v35 = vpop.eup %9297  ;;  %v12742_v39 = vadd.f32 1.0, %v9296_v31  ;;  %9303 = vrcp.f32 %v12715_v27  ;;  %v10430_v51 = vld [vmem:[%s10938_s17 + $0x230] sm:$0xff]  ;;  %v481_v63 = vld [vmem:[%s10938_s17 + $0x320] sm:$0xff]  ;;  %5772 = vmatpush.msrb.mxu3 %v5532_v38  ;;  %vm12806_vm4 = vcmp.eq.f32.partialorder %v2311_v12, 8.507059e+37  ;;  %4105 = vmatpush.msrb.mxu1 %v3865_v29 }
 0x1ea   : > { %v12717_v62 = vpop.f32.mrf.mxu0  ;;  %v9300_v44 = vpop.eup %9299  ;;  %9305 = vpow2.f32 %v8751_v49  ;;  %v2334_v60 = vsub.f32 1.0, %v2333_v30  ;;  %v2649_v49 = vsub.f32 1.0, %v2648_v34  ;;  %v2310_v34 = vsel %vm12783_vm2, %v12625_v42, %v2306_v55 }
 0x1eb   : > { %v12719_v36 = vpop.f32.mrf.mxu1  ;;  %v12760_v31 = vpop.eup %9301  ;;  %v12790_v3 = vadd.f32 1.0, %v9300_v44  ;;  %9307 = vrcp.f32 %v12742_v39  ;;  %v8753_v54 = vmul.f32 -1.442695, %v899_v14  ;;  %v693_v38 = vadd.f32 %v12638_v15, %v11186_v53  ;;  %v10432_v15 = vld [vmem:[%s10938_s17 + $0x240] sm:$0xff] }
 0x1ec   : > { %v2343_v42 = vand.u32 2147483648, %v12619_v7  ;;  %v2335_v55 = vmul.f32 %v12708_v11, %v2334_v60  ;;  %v2650_v12 = vmul.f32 %v12520_v61, %v2649_v49  ;;  %vm2652_vm5 = vweird.f32 %v12444_v17 }
 0x1ed   : > { %742 = vmatmul.f32.gmra.mxu0 %v479_v47  ;;  %v10431_v47 = vld [vmem:[%s10938_s17 + $0x238] sm:$0xff]  ;;  %9309 = vrcp.f32 %v12790_v3  ;;  %vm2653_vm1 = vweird.f32 %v12520_v61  ;;  %vm2337_vm6 = vweird.f32 %v12619_v7  ;;  %vm2338_vm7 = vweird.f32 %v12708_v11 }
 0x1ee   : > { %951 = vmatmul.f32.gmra.mxu1 %v480_v45  ;;  %1118 = vmatmul.f32.gmra.mxu2 %v10430_v51  ;;  %v12765_v45 = vsel %vm12724_vm12, %v2284_v32, %v2280_v19  ;;  %v2625_v32 = vsel %vm12774_vm0, %v12455_v1, %v2621_v59  ;;  %v482_v19 = vld [vmem:[%s10938_s17 + $0x328] sm:$0xff]  ;;  %v1071_v9 = vpop.f32.mrf.mxu2  ;;  %v8724_v51 = vmul.f32 -1.442695, %v12598_v0  ;;  %v2363_v59 = vmul.f32 %v12760_v31, %v12659_v46  ;;  %vm12869_vm8 = vmor %vm2337_vm6, %vm2338_vm7 }
 0x1ef   : > { %1327 = vmatmul.f32.gmra.mxu3 %v10431_v47  ;;  %19920 = vst [vmem:[#allocation49_spill] sm:$0xff] %v12765_v45  ;;  %v5531_v47 = vld [vmem:[#allocation11 + $0x70] sm:$0xff]  ;;  %v1072_v1 = vadd.f32 %v1071_v9, %v11393_v41  ;;  %v1280_v30 = vpop.f32.mrf.mxu3  ;;  %v2314_v0 = vor.u32 1.1754944e-38, %v2313_v20  ;;  %v12810_v45 = vsel %vm2627_vm3, %v2629_v18, %v2625_v32  ;;  %v12812_v9 = vpop.eup %9303  ;;  %v2678_v20 = vmul.f32 %v12608_v26, %v12508_v21  ;;  %v10433_v18 = vld [vmem:[%s10938_s17 + $0x248] sm:$0xff]  ;;  %vm12883_vm11 = vmor %vm2652_vm5, %vm2653_vm1 }
 0x1f0   : > { %5563 = vmatpush.msrb.mxu2 %v5531_v47  ;;  %19927 = vst [vmem:[#allocation50_spill] sm:$0xff] %v12810_v45  ;;  %v9306_v14 = vpop.eup %9305  ;;  %9311 = vpow2.f32 %v8724_v51  ;;  %v2364_v4 = vsub.f32 1.0, %v2363_v59  ;;  %v902_v60 = vadd.f32 %v12640_v52, %v693_v38  ;;  %v2341_v49 = vand.u32 2147483647, %v12619_v7  ;;  %v484_v52 = vld [vmem:[%s10938_s17 + $0x338] sm:$0xff] }
 0x1f1   : > { %v12816_v40 = vadd.f32 %v1280_v30, %v1072_v1  ;;  %v12827_v32 = vpop.eup %9307  ;;  %9313 = vpow2.f32 %v8753_v54  ;;  %v12839_v51 = vor.u32 1.1754944e-38, %v2343_v42  ;;  %v12841_v47 = vadd.f32 1.0, %v9306_v14  ;;  %v483_v54 = vld [vmem:[%s10938_s17 + $0x330] sm:$0xff] }
 0x1f2   : > { %v12795_v10 = vpop.f32.mrf.mxu0  ;;  %v12844_v1 = vadd.f32 %v12708_v11, %v2335_v55  ;;  %v12847_v59 = vadd.f32 %v12520_v61, %v2650_v12  ;;  %v2679_v29 = vsub.f32 1.0, %v2678_v20  ;;  %v2393_v38 = vmul.f32 %v12827_v32, %v12742_v39 }
 0x1f3   : > { %v12797_v16 = vpop.f32.mrf.mxu1  ;;  %v2658_v42 = vand.u32 2147483648, %v12444_v17  ;;  %v12860_v55 = vpop.eup %9309  ;;  %v696_v12 = vadd.f32 %v12717_v62, %v11186_v53  ;;  %v8726_v20 = vmul.f32 -1.442695, %v12657_v50  ;;  %vm2367_vm9 = vweird.f32 %v12659_v46 }
 0x1f4   : > { %vm2368_vm10 = vweird.f32 %v12760_v31  ;;  %v2371_v50 = vand.u32 2147483647, %v12659_v46  ;;  %vm12887_vm12 = vcmp.eq.f32.partialorder %v2341_v49, 8.507059e+37  ;;  %9315 = vrcp.f32 %v12841_v47 }
 0x1f5   : > { %745 = vmatmul.f32.gmra.mxu0 %v481_v63  ;;  %v12832_v63 = vsel %vm12806_vm4, %v2314_v0, %v2310_v34  ;;  %v2365_v0 = vmul.f32 %v12760_v31, %v2364_v4  ;;  %v2373_v4 = vand.u32 2147483648, %v12659_v46  ;;  %v2340_v49 = vsel %vm12869_vm8, %v12708_v11, %v12844_v1  ;;  %vm12915_vm14 = vmor %vm2367_vm9, %vm2368_vm10 }
 0x1f6   : > { %954 = vmatmul.f32.gmra.mxu1 %v482_v19  ;;  %1121 = vmatmul.f32.gmra.mxu2 %v10432_v15  ;;  %19928 = vst [vmem:[#allocation51_spill] sm:$0xff] %v12832_v63  ;;  %v2656_v19 = vand.u32 2147483647, %v12444_v17  ;;  %v1074_v37 = vpop.f32.mrf.mxu2  ;;  %v2680_v17 = vmul.f32 %v12608_v26, %v2679_v29  ;;  %v2394_v7 = vsub.f32 1.0, %v2393_v38  ;;  %9317 = vpow2.f32 %v8726_v20 }
 0x1f7   : > { %1330 = vmatmul.f32.gmra.mxu3 %v10433_v18  ;;  %v1075_v44 = vadd.f32 %v1074_v37, %v11393_v41  ;;  %v1283_v14 = vpop.f32.mrf.mxu3  ;;  %v9312_v18 = vpop.eup %9311  ;;  %v8755_v37 = vmul.f32 -1.442695, %v902_v60  ;;  %v2655_v60 = vsel %vm12883_vm11, %v12520_v61, %v12847_v59  ;;  %v905_v61 = vadd.f32 %v12719_v36, %v696_v12  ;;  %v10435_v59 = vld [vmem:[%s10938_s17 + $0x258] sm:$0xff] }
 0x1f8   : > { %vm12895_vm13 = vcmp.eq.f32.partialorder %v2656_v19, 8.507059e+37  ;;  %v12908_v19 = vadd.f32 1.0, %v9312_v18  ;;  %v2708_v11 = vmul.f32 %v12653_v22, %v12577_v56  ;;  %vm12921_vm15 = vcmp.eq.f32.partialorder %v2371_v50, 8.507059e+37  ;;  %v486_v50 = vld [vmem:[%s10938_s17 + $0x348] sm:$0xff] }
 0x1f9   : > { %v12875_v45 = vadd.f32 %v1283_v14, %v1075_v44  ;;  %v9314_v14 = vpop.eup %9313  ;;  %9319 = vpow2.f32 %v8755_v37  ;;  %v2374_v1 = vor.u32 1.1754944e-38, %v2373_v4  ;;  %v12928_v20 = vadd.f32 %v12608_v26, %v2680_v17  ;;  %v485_v37 = vld [vmem:[%s10938_s17 + $0x340] sm:$0xff]  ;;  %v10438_v44 = vld [vmem:[%s10938_s17 + $0x270] sm:$0xff] }
 0x1fa   : > { %v12849_v30 = vpop.f32.mrf.mxu0  ;;  %v12925_v38 = vadd.f32 1.0, %v9314_v14  ;;  %vm2683_vm0 = vweird.f32 %v12608_v26  ;;  %v2686_v46 = vand.u32 2147483647, %v12508_v21  ;;  %v2395_v4 = vmul.f32 %v12827_v32, %v2394_v7  ;;  %v12947_v23 = vpop.eup %9315 }
 0x1fb   : > { %v12851_v34 = vpop.f32.mrf.mxu1  ;;  %v2688_v17 = vand.u32 2147483648, %v12508_v21  ;;  %v8757_v14 = vmul.f32 -1.442695, %v905_v61  ;;  %9321 = vrcp.f32 %v12908_v19  ;;  %v2709_v2 = vsub.f32 1.0, %v2708_v11 }
 0x1fc   : > { %vm2397_vm2 = vweird.f32 %v12742_v39  ;;  %vm2398_vm3 = vweird.f32 %v12827_v32  ;;  %9323 = vrcp.f32 %v12925_v38  ;;  %vm2682_vm4 = vweird.f32 %v12508_v21 }
 0x1fd   : > { %748 = vmatmul.f32.gmra.mxu0 %v483_v54  ;;  %v10434_v54 = vld [vmem:[%s10938_s17 + $0x250] sm:$0xff]  ;;  %v2396_v61 = vadd.f32 %v12827_v32, %v2395_v4  ;;  %v2403_v29 = vand.u32 2147483648, %v12742_v39  ;;  %vm12974_vm5 = vmor %vm2682_vm4, %vm2683_vm0  ;;  %v2738_v21 = vmul.f32 %v12740_v35, %v12636_v58  ;;  %9325 = vpow2.f32 %v8757_v14 }
 0x1fe   : > { %957 = vmatmul.f32.gmra.mxu1 %v484_v52  ;;  %1124 = vmatmul.f32.gmra.mxu2 %v10434_v54  ;;  %v2366_v52 = vadd.f32 %v12760_v31, %v2365_v0  ;;  %v2659_v0 = vor.u32 1.1754944e-38, %v2658_v42  ;;  %v1077_v12 = vpop.f32.mrf.mxu2  ;;  %vm12986_vm1 = vmor %vm2397_vm2, %vm2398_vm3  ;;  %v2710_v11 = vmul.f32 %v12653_v22, %v2709_v2  ;;  %vm12996_vm6 = vcmp.eq.f32.partialorder %v2686_v46, 8.507059e+37 }
 0x1ff   : > { %1333 = vmatmul.f32.gmra.mxu3 %v10435_v59  ;;  %v1078_v54 = vadd.f32 %v1077_v12, %v11393_v41  ;;  %v699_v59 = vadd.f32 %v12795_v10, %v11186_v53  ;;  %v1286_v63 = vpop.f32.mrf.mxu3  ;;  %v8728_v12 = vmul.f32 -1.442695, %v12737_v25  ;;  %v12958_v10 = vsel %vm12887_vm12, %v12839_v51, %v2340_v49 }
 0x200   : > { %v2370_v42 = vsel %vm12915_vm14, %v12760_v31, %v2366_v52  ;;  %v9318_v31 = vpop.eup %9317  ;;  %19941 = vst [vmem:[#allocation52_spill] sm:$0xff] %v12958_v10  ;;  %v12962_v25 = vsel %vm12895_vm13, %v2659_v0, %v2655_v60  ;;  %v10436_v52 = vld [vmem:[%s10938_s17 + $0x260] sm:$0xff]  ;;  %v10437_v60 = vld [vmem:[%s10938_s17 + $0x268] sm:$0xff]  ;;  %v2401_v49 = vand.u32 2147483647, %v12742_v39  ;;  %vm2712_vm7 = vweird.f32 %v12577_v56 }
 0x201   : > { %v12950_v24 = vadd.f32 %v1286_v63, %v1078_v54  ;;  %19942 = vst [vmem:[#allocation53_spill] sm:$0xff] %v12962_v25  ;;  %v9320_v63 = vpop.eup %9319  ;;  %v12968_v7 = vsel %vm12921_vm15, %v2374_v1, %v2370_v42  ;;  %v908_v62 = vadd.f32 %v12797_v16, %v699_v59  ;;  %9327 = vpow2.f32 %v8728_v12 }
 0x202   : > { %v12932_v15 = vpop.f32.mrf.mxu0  ;;  %19943 = vst [vmem:[#allocation54_spill] sm:$0xff] %v12968_v7  ;;  %v2685_v16 = vsel %vm12974_vm5, %v12608_v26, %v12928_v20  ;;  %v2689_v1 = vor.u32 1.1754944e-38, %v2688_v17  ;;  %v13000_v0 = vpop.eup %9321  ;;  %vm2713_vm8 = vweird.f32 %v12653_v22  ;;  %v487_v26 = vld [vmem:[%s10938_s17 + $0x350] sm:$0xff]  ;;  %v488_v20 = vld [vmem:[%s10938_s17 + $0x358] sm:$0xff]  ;;  %v2400_v42 = vsel %vm12986_vm1, %v12827_v32, %v2396_v61 }
 0x203   : > { %v12934_v18 = vpop.f32.mrf.mxu1  ;;  %v2404_v4 = vor.u32 1.1754944e-38, %v2403_v29  ;;  %v2739_v17 = vsub.f32 1.0, %v2738_v21  ;;  %v13018_v14 = vpop.eup %9323  ;;  %v8759_v59 = vmul.f32 -1.442695, %v908_v62  ;;  %v702_v12 = vadd.f32 %v12849_v30, %v11186_v53  ;;  %vm13051_vm10 = vmor %vm2712_vm7, %vm2713_vm8 }
 0x204   : > { %vm13022_vm9 = vcmp.eq.f32.partialorder %v2401_v49, 8.507059e+37  ;;  %v8730_v51 = vmul.f32 -1.442695, %v12816_v40  ;;  %v2716_v32 = vand.u32 2147483647, %v12577_v56  ;;  %v2718_v61 = vand.u32 2147483648, %v12577_v56  ;;  %v9326_v29 = vpop.eup %9325 }
 0x205   : > { %751 = vmatmul.f32.gmra.mxu0 %v485_v37  ;;  %v13002_v37 = vadd.f32 1.0, %v9320_v63  ;;  %v2423_v30 = vmul.f32 %v13000_v0, %v12908_v19  ;;  %v13037_v21 = vsel %vm12996_vm6, %v2689_v1, %v2685_v16  ;;  %v2768_v40 = vmul.f32 %v12812_v9, %v12715_v27 }
 0x206   : > { %960 = vmatmul.f32.gmra.mxu1 %v486_v50  ;;  %1127 = vmatmul.f32.gmra.mxu2 %v10436_v52  ;;  %v13004_v50 = vadd.f32 1.0, %v9318_v31  ;;  %v1080_v39 = vpop.f32.mrf.mxu2  ;;  %v2711_v52 = vadd.f32 %v12653_v22, %v2710_v11  ;;  %19952 = vst [vmem:[#allocation55_spill] sm:$0xff] %v13037_v21  ;;  %v13045_v49 = vsel %vm13022_vm9, %v2404_v4, %v2400_v42  ;;  %v2746_v36 = vand.u32 2147483647, %v12636_v58  ;;  %v489_v4 = vld [vmem:[%s10938_s17 + $0x360] sm:$0xff] }
 0x207   : > { %1336 = vmatmul.f32.gmra.mxu3 %v10437_v60  ;;  %v1081_v46 = vadd.f32 %v1080_v39, %v11393_v41  ;;  %v1289_v31 = vpop.f32.mrf.mxu3  ;;  %9329 = vrcp.f32 %v13002_v37  ;;  %v9328_v62 = vpop.eup %9327  ;;  %19953 = vst [vmem:[#allocation56_spill] sm:$0xff] %v13045_v49  ;;  %v2740_v16 = vmul.f32 %v12740_v35, %v2739_v17  ;;  %v911_v1 = vadd.f32 %v12851_v34, %v702_v12  ;;  %v10439_v39 = vld [vmem:[%s10938_s17 + $0x278] sm:$0xff]  ;;  %v490_v17 = vld [vmem:[%s10938_s17 + $0x368] sm:$0xff] }
 0x208   : > { %9331 = vrcp.f32 %v13004_v50  ;;  %v2748_v56 = vand.u32 2147483648, %v12636_v58  ;;  %vm2717_vm11 = vcmp.eq.f32.partialorder %v2716_v32, 8.507059e+37  ;;  %v13065_v42 = vadd.f32 1.0, %v9328_v62 }
 0x209   : > { %v13028_v60 = vadd.f32 %v1289_v31, %v1081_v46  ;;  %9333 = vpow2.f32 %v8759_v59  ;;  %v2719_v46 = vor.u32 1.1754944e-38, %v2718_v61  ;;  %v2424_v31 = vsub.f32 1.0, %v2423_v30 }
 0x20a   : > { %v13008_v2 = vpop.f32.mrf.mxu0  ;;  %9335 = vpow2.f32 %v8730_v51  ;;  %vm2742_vm12 = vweird.f32 %v12636_v58  ;;  %v2769_v34 = vsub.f32 1.0, %v2768_v40  ;;  %v13078_v61 = vadd.f32 %v12740_v35, %v2740_v16 }
 0x20b   : > { %v13010_v54 = vpop.f32.mrf.mxu1  ;;  %vm2743_vm13 = vweird.f32 %v12740_v35  ;;  %v8761_v62 = vmul.f32 -1.442695, %v911_v1  ;;  %v705_v40 = vadd.f32 %v12932_v15, %v11186_v53  ;;  %vm13085_vm14 = vcmp.eq.f32.partialorder %v2746_v36, 8.507059e+37 }
 0x20c   : > { %v8732_v16 = vmul.f32 -1.442695, %v12875_v45  ;;  %v2798_v15 = vmul.f32 %v12860_v55, %v12790_v3  ;;  %v2425_v36 = vmul.f32 %v13000_v0, %v2424_v31  ;;  %vm13103_vm15 = vmor %vm2742_vm12, %vm2743_vm13  ;;  %vm2772_vm0 = vweird.f32 %v12715_v27 }
 0x20d   : > { %754 = vmatmul.f32.gmra.mxu0 %v487_v26  ;;  %v2715_v26 = vsel %vm13051_vm10, %v12653_v22, %v2711_v52  ;;  %v5529_v22 = vld [vmem:[#allocation11 + $0x60] sm:$0xff]  ;;  %v5530_v52 = vld [vmem:[#allocation11 + $0x68] sm:$0xff]  ;;  %v13081_v30 = vpop.eup %9329  ;;  %vm2773_vm2 = vweird.f32 %v12812_v9  ;;  %v2776_v58 = vand.u32 2147483647, %v12715_v27  ;;  %v914_v31 = vadd.f32 %v12934_v18, %v705_v40 }
 0x20e   : > { %963 = vmatmul.f32.gmra.mxu1 %v488_v20  ;;  %1130 = vmatmul.f32.gmra.mxu2 %v10438_v44  ;;  %v13063_v20 = vadd.f32 1.0, %v9326_v29  ;;  %v1083_v59 = vpop.f32.mrf.mxu2  ;;  %v3848_v29 = vld [vmem:[#allocation8 + $0x8] sm:$0xff]  ;;  %v13075_v32 = vsel %vm2717_vm11, %v2719_v46, %v2715_v26  ;;  %v2749_v26 = vor.u32 1.1754944e-38, %v2748_v56  ;;  %v13089_v46 = vpop.eup %9331  ;;  %v2770_v56 = vmul.f32 %v12812_v9, %v2769_v34  ;;  %vm13166_vm1 = vmor %vm2772_vm0, %vm2773_vm2 }
 0x20f   : > { %1339 = vmatmul.f32.gmra.mxu3 %v10439_v39  ;;  %v1084_v51 = vadd.f32 %v1083_v59, %v11393_v41  ;;  %19956 = vst [vmem:[#allocation57_spill] sm:$0xff] %v13075_v32  ;;  %5564 = vmatpush.msrb.mxu2 %v5529_v22  ;;  %v3864_v44 = vld [vmem:[#allocation8 + $0x88] sm:$0xff]  ;;  %v1292_v11 = vpop.f32.mrf.mxu3  ;;  %v9334_v59 = vpop.eup %9333  ;;  %vm2427_vm3 = vweird.f32 %v12908_v19  ;;  %vm2428_vm4 = vweird.f32 %v13000_v0  ;;  %v2453_v18 = vmul.f32 %v13089_v46, %v13004_v50 }
 0x210   : > { %5773 = vmatpush.msrb.mxu3 %v5530_v52  ;;  %9337 = vrcp.f32 %v13063_v20  ;;  %3897 = vmatpush.msrb.mxu0 %v3848_v29  ;;  %v9336_v22 = vpop.eup %9335  ;;  %v10440_v52 = vld [vmem:[%s10938_s17 + $0x280] sm:$0xff]  ;;  %v10441_v34 = vld [vmem:[%s10938_s17 + $0x288] sm:$0xff]  ;;  %v13121_v29 = vadd.f32 1.0, %v9334_v59  ;;  %v2771_v40 = vadd.f32 %v12812_v9, %v2770_v56  ;;  %v708_v59 = vadd.f32 %v13008_v2, %v11186_v53  ;;  %vm13146_vm5 = vmor %vm2427_vm3, %vm2428_vm4 }
 0x211   : > { %4106 = vmatpush.msrb.mxu1 %v3864_v44  ;;  %v13093_v1 = vadd.f32 %v1292_v11, %v1084_v51  ;;  %9339 = vrcp.f32 %v13065_v42  ;;  %v2799_v51 = vsub.f32 1.0, %v2798_v15  ;;  %v491_v15 = vld [vmem:[%s10938_s17 + $0x370] sm:$0xff]  ;;  %v2431_v2 = vand.u32 2147483647, %v12908_v19 }
 0x212   : > { %v13070_v12 = vpop.f32.mrf.mxu0  ;;  %9341 = vpow2.f32 %v8761_v62  ;;  %v2426_v62 = vadd.f32 %v13000_v0, %v2425_v36  ;;  %v8763_v32 = vmul.f32 -1.442695, %v914_v31  ;;  %v917_v31 = vadd.f32 %v13010_v54, %v708_v59 }
 0x213   : > { %v13072_v63 = vpop.f32.mrf.mxu1  ;;  %9343 = vpow2.f32 %v8732_v16  ;;  %v2800_v39 = vmul.f32 %v12860_v55, %v2799_v51  ;;  %vm2432_vm6 = vcmp.eq.f32.partialorder %v2431_v2, 8.507059e+37  ;;  %v2806_v51 = vand.u32 2147483647, %v12790_v3  ;;  %v493_v2 = vld [vmem:[%s10938_s17 + $0x380] sm:$0xff] }
 0x214   : > { %9345 = vrcp.f32 %v13121_v29  ;;  %vm2777_vm7 = vcmp.eq.f32.partialorder %v2776_v58, 8.507059e+37  ;;  %vm2803_vm8 = vweird.f32 %v12860_v55  ;;  %vm2802_vm9 = vweird.f32 %v12790_v3 }
 0x215   : > { %757 = vmatmul.f32.gmra.mxu0 %v489_v4  ;;  %v2745_v4 = vsel %vm13103_vm15, %v12740_v35, %v13078_v61  ;;  %v2433_v35 = vand.u32 2147483648, %v12908_v19  ;;  %v13124_v61 = vadd.f32 1.0, %v9336_v22  ;;  %v492_v22 = vld [vmem:[%s10938_s17 + $0x378] sm:$0xff]  ;;  %v2801_v54 = vadd.f32 %v12860_v55, %v2800_v39 }
 0x216   : > { %966 = vmatmul.f32.gmra.mxu1 %v490_v17  ;;  %1133 = vmatmul.f32.gmra.mxu2 %v10440_v52  ;;  %v2778_v17 = vand.u32 2147483648, %v12715_v27  ;;  %v13130_v11 = vpop.eup %9337  ;;  %v8734_v52 = vmul.f32 -1.442695, %v12950_v24  ;;  %v13155_v25 = vsel %vm13085_vm14, %v2749_v26, %v2745_v4  ;;  %v2454_v4 = vsub.f32 1.0, %v2453_v18  ;;  %vm13215_vm14 = vmor %vm2802_vm9, %vm2803_vm8 }
 0x217   : > { %1342 = vmatmul.f32.gmra.mxu3 %v10441_v34  ;;  %v13151_v34 = vpop.eup %9339  ;;  %v1295_v21 = vpop.f32.mrf.mxu3  ;;  %19963 = vst [vmem:[#allocation58_spill] sm:$0xff] %v13155_v25  ;;  %v2434_v7 = vor.u32 1.1754944e-38, %v2433_v35  ;;  %9347 = vrcp.f32 %v13124_v61  ;;  %v2775_v27 = vsel %vm13166_vm1, %v12812_v9, %v2771_v40  ;;  %v10442_v35 = vld [vmem:[%s10938_s17 + $0x290] sm:$0xff]  ;;  %vm13204_vm10 = vcmp.eq.f32.partialorder %v2806_v51, 8.507059e+37 }
 0x218   : > { %v2779_v24 = vor.u32 1.1754944e-38, %v2778_v17  ;;  %v9342_v26 = vpop.eup %9341  ;;  %9349 = vpow2.f32 %v8734_v52  ;;  %v2455_v58 = vmul.f32 %v13089_v46, %v2454_v4  ;;  %v8765_v52 = vmul.f32 -1.442695, %v917_v31 }
 0x219   : > { %v1086_v44 = vpop.f32.mrf.mxu2  ;;  %v9344_v17 = vpop.eup %9343  ;;  %9351 = vpow2.f32 %v8763_v32  ;;  %v13183_v18 = vadd.f32 1.0, %v9342_v26  ;;  %vm2832_vm11 = vweird.f32 %v12841_v47  ;;  %vm2457_vm12 = vweird.f32 %v13004_v50 }
 0x21a   : > { %v13134_v45 = vpop.f32.mrf.mxu0  ;;  %v1087_v36 = vadd.f32 %v1086_v44, %v11393_v41  ;;  %v2828_v44 = vmul.f32 %v12947_v23, %v12841_v47  ;;  %v13185_v9 = vsel %vm2777_vm7, %v2779_v24, %v2775_v27  ;;  %v13189_v40 = vadd.f32 1.0, %v9344_v17  ;;  %v494_v24 = vld [vmem:[%s10938_s17 + $0x388] sm:$0xff] }
 0x21b   : > { %v13136_v16 = vpop.f32.mrf.mxu1  ;;  %19966 = vst [vmem:[#allocation59_spill] sm:$0xff] %v13185_v9  ;;  %vm2458_vm13 = vweird.f32 %v13089_v46  ;;  %9353 = vrcp.f32 %v13183_v18  ;;  %v2805_v17 = vsel %vm13215_vm14, %v12860_v55, %v2801_v54  ;;  %v2858_v31 = vmul.f32 %v13018_v14, %v12925_v38  ;;  %v10445_v54 = vld [vmem:[%s10938_s17 + $0x2a8] sm:$0xff] }
 0x21c   : > { %v13160_v49 = vadd.f32 %v1295_v21, %v1087_v36  ;;  %v2430_v21 = vsel %vm13146_vm5, %v13000_v0, %v2426_v62  ;;  %v2808_v0 = vand.u32 2147483648, %v12790_v3  ;;  %v2829_v62 = vsub.f32 1.0, %v2828_v44  ;;  %vm13238_vm15 = vmor %vm2457_vm12, %vm2458_vm13 }
 0x21d   : > { %760 = vmatmul.f32.gmra.mxu0 %v491_v15  ;;  %v10443_v15 = vld [vmem:[%s10938_s17 + $0x298] sm:$0xff]  ;;  %v13191_v32 = vsel %vm2432_vm6, %v2434_v7, %v2430_v21  ;;  %v711_v51 = vadd.f32 %v13070_v12, %v11186_v53  ;;  %9355 = vpow2.f32 %v8765_v52  ;;  %v2461_v12 = vand.u32 2147483647, %v13004_v50 }
 0x21e   : > { %969 = vmatmul.f32.gmra.mxu1 %v492_v22  ;;  %1136 = vmatmul.f32.gmra.mxu2 %v10442_v35  ;;  %19967 = vst [vmem:[#allocation60_spill] sm:$0xff] %v13191_v32  ;;  %v13195_v22 = vpop.eup %9345  ;;  %v2809_v26 = vor.u32 1.1754944e-38, %v2808_v0  ;;  %v2830_v21 = vmul.f32 %v12947_v23, %v2829_v62  ;;  %v2456_v0 = vadd.f32 %v13089_v46, %v2455_v58  ;;  %v2463_v62 = vand.u32 2147483648, %v13004_v50 }
 0x21f   : > { %1345 = vmatmul.f32.gmra.mxu3 %v10443_v15  ;;  %v13209_v7 = vpop.eup %9347  ;;  %v1298_v3 = vpop.f32.mrf.mxu3  ;;  %v8736_v15 = vmul.f32 -1.442695, %v13028_v60  ;;  %v2483_v60 = vmul.f32 %v13151_v34, %v13065_v42  ;;  %vm2833_vm0 = vweird.f32 %v12947_v23  ;;  %9357 = vrcp.f32 %v13189_v40 }
 0x220   : > { %v9350_v4 = vpop.eup %9349  ;;  %v13250_v58 = vsel %vm13204_vm10, %v2809_v26, %v2805_v17  ;;  %v2831_v52 = vadd.f32 %v12947_v23, %v2830_v21  ;;  %v920_v39 = vadd.f32 %v13072_v63, %v711_v51  ;;  %v2460_v19 = vsel %vm13238_vm15, %v13089_v46, %v2456_v0  ;;  %vm13280_vm3 = vmor %vm2832_vm11, %vm2833_vm0 }
 0x221   : > { %v1089_v59 = vpop.f32.mrf.mxu2  ;;  %v9352_v35 = vpop.eup %9351  ;;  %19974 = vst [vmem:[#allocation61_spill] sm:$0xff] %v13250_v58  ;;  %9359 = vpow2.f32 %v8736_v15  ;;  %v2464_v26 = vor.u32 1.1754944e-38, %v2463_v62  ;;  %vm13272_vm2 = vcmp.eq.f32.partialorder %v2461_v12, 8.507059e+37  ;;  %v2484_v63 = vsub.f32 1.0, %v2483_v60 }
 0x222   : > { %v13197_v36 = vpop.f32.mrf.mxu0  ;;  %v1090_v44 = vadd.f32 %v1089_v59, %v11393_v41  ;;  %v10444_v59 = vld [vmem:[%s10938_s17 + $0x2a0] sm:$0xff]  ;;  %v13254_v50 = vadd.f32 1.0, %v9352_v35  ;;  %v13263_v17 = vpop.eup %9353  ;;  %v2888_v51 = vmul.f32 %v13081_v30, %v13002_v37  ;;  %v714_v15 = vadd.f32 %v13134_v45, %v11186_v53 }
 0x223   : > { %v13199_v56 = vpop.f32.mrf.mxu1  ;;  %v2835_v62 = vsel %vm13280_vm3, %v12947_v23, %v2831_v52  ;;  %vm2862_vm4 = vweird.f32 %v12925_v38  ;;  %v8738_v12 = vmul.f32 -1.442695, %v13093_v1  ;;  %v8767_v45 = vmul.f32 -1.442695, %v920_v39  ;;  %v10446_v52 = vld [vmem:[%s10938_s17 + $0x2b0] sm:$0xff] }
 0x224   : > { %v13221_v27 = vadd.f32 %v1298_v3, %v1090_v44  ;;  %v2836_v44 = vand.u32 2147483647, %v12841_v47  ;;  %v2859_v3 = vsub.f32 1.0, %v2858_v31  ;;  %9361 = vrcp.f32 %v13254_v50  ;;  %v497_v31 = vld [vmem:[%s10938_s17 + $0x3a0] sm:$0xff] }
 0x225   : > { %763 = vmatmul.f32.gmra.mxu0 %v493_v2  ;;  %v2838_v2 = vand.u32 2147483648, %v12841_v47  ;;  %v9356_v47 = vpop.eup %9355  ;;  %v13302_v23 = vsel %vm13272_vm2, %v2464_v26, %v2460_v19  ;;  %v2485_v1 = vmul.f32 %v13151_v34, %v2484_v63  ;;  %vm2863_vm1 = vweird.f32 %v13018_v14  ;;  %v498_v63 = vld [vmem:[%s10938_s17 + $0x3a8] sm:$0xff] }
 0x226   : > { %972 = vmatmul.f32.gmra.mxu1 %v494_v24  ;;  %1139 = vmatmul.f32.gmra.mxu2 %v10444_v59  ;;  %v13256_v24 = vadd.f32 1.0, %v9350_v4  ;;  %v495_v4 = vld [vmem:[%s10938_s17 + $0x390] sm:$0xff]  ;;  %v13297_v9 = vpop.eup %9357  ;;  %19979 = vst [vmem:[#allocation62_spill] sm:$0xff] %v13302_v23  ;;  %vm2837_vm5 = vcmp.eq.f32.partialorder %v2836_v44, 8.507059e+37  ;;  %v13309_v39 = vadd.f32 1.0, %v9356_v47  ;;  %v2868_v19 = vand.u32 2147483648, %v12925_v38  ;;  %vm13355_vm9 = vmor %vm2862_vm4, %vm2863_vm1 }
 0x227   : > { %1348 = vmatmul.f32.gmra.mxu3 %v10445_v54  ;;  %v496_v54 = vld [vmem:[%s10938_s17 + $0x398] sm:$0xff]  ;;  %v2839_v55 = vor.u32 1.1754944e-38, %v2838_v2  ;;  %v2889_v2 = vsub.f32 1.0, %v2888_v51  ;;  %v2866_v44 = vand.u32 2147483647, %v12925_v38  ;;  %vm2487_vm6 = vweird.f32 %v13065_v42 }
 0x228   : > { %9363 = vrcp.f32 %v13256_v24  ;;  %vm2488_vm7 = vweird.f32 %v13151_v34  ;;  %v2491_v51 = vand.u32 2147483647, %v13065_v42  ;;  %v8740_v47 = vmul.f32 -1.442695, %v13160_v49  ;;  %v3863_v49 = vld [vmem:[#allocation8 + $0x80] sm:$0xff] }
 0x229   : > { %v1092_v59 = vpop.f32.mrf.mxu2  ;;  %9365 = vpow2.f32 %v8738_v12  ;;  %v5527_v12 = vld [vmem:[#allocation11 + $0x50] sm:$0xff]  ;;  %v717_v32 = vadd.f32 %v13197_v36, %v11186_v53  ;;  %vm13344_vm8 = vmor %vm2487_vm6, %vm2488_vm7  ;;  %4107 = vmatpush.msrb.mxu1 %v3863_v49  ;;  %vm2893_vm10 = vweird.f32 %v13081_v30  ;;  %v2918_v38 = vmul.f32 %v13130_v11, %v13063_v20 }
 0x22a   : > { %v13265_v21 = vpop.f32.mrf.mxu0  ;;  %v1093_v58 = vadd.f32 %v1092_v59, %v11393_v41  ;;  %v1301_v0 = vpop.f32.mrf.mxu3  ;;  %v2860_v59 = vmul.f32 %v13018_v14, %v2859_v3  ;;  %9367 = vpow2.f32 %v8767_v45  ;;  %v3847_v45 = vld [vmem:[#allocation8] sm:$0xff]  ;;  %5565 = vmatpush.msrb.mxu2 %v5527_v12  ;;  %vm2492_vm11 = vcmp.eq.f32.partialorder %v2491_v51, 8.507059e+37  ;;  %v500_v49 = vld [vmem:[%s10938_s17 + $0x3b8] sm:$0xff] }
 0x22b   : > { %v13267_v35 = vpop.f32.mrf.mxu1  ;;  %v9360_v3 = vpop.eup %9359  ;;  %9369 = vrcp.f32 %v13309_v39  ;;  %3898 = vmatpush.msrb.mxu0 %v3847_v45  ;;  %v10448_v12 = vld [vmem:[%s10938_s17 + $0x2c0] sm:$0xff]  ;;  %vm2867_vm12 = vcmp.eq.f32.partialorder %v2866_v44, 8.507059e+37  ;;  %vm2892_vm13 = vweird.f32 %v13002_v37  ;;  %v2919_v51 = vsub.f32 1.0, %v2918_v38 }
 0x22c   : > { %v13294_v60 = vadd.f32 %v1301_v0, %v1093_v58  ;;  %v13306_v58 = vsel %vm2837_vm5, %v2839_v55, %v2835_v62  ;;  %v2861_v26 = vadd.f32 %v13018_v14, %v2860_v59  ;;  %v13324_v0 = vpop.eup %9361  ;;  %v5528_v59 = vld [vmem:[#allocation11 + $0x58] sm:$0xff]  ;;  %v13338_v10 = vadd.f32 1.0, %v9360_v3  ;;  %vm13389_vm15 = vmor %vm2892_vm13, %vm2893_vm10 }
 0x22d   : > { %766 = vmatmul.f32.gmra.mxu0 %v495_v4  ;;  %19980 = vst [vmem:[#allocation63_spill] sm:$0xff] %v13306_v58  ;;  %v923_v4 = vadd.f32 %v13136_v16, %v714_v15  ;;  %v2493_v16 = vand.u32 2147483648, %v13065_v42  ;;  %v2513_v15 = vmul.f32 %v13209_v7, %v13124_v61  ;;  %v2890_v58 = vmul.f32 %v13081_v30, %v2889_v2 }
 0x22e   : > { %975 = vmatmul.f32.gmra.mxu1 %v496_v54  ;;  %1142 = vmatmul.f32.gmra.mxu2 %v10446_v52  ;;  %v10447_v54 = vld [vmem:[%s10938_s17 + $0x2b8] sm:$0xff]  ;;  %v13334_v25 = vpop.eup %9363  ;;  %v2869_v2 = vor.u32 1.1754944e-38, %v2868_v19  ;;  %v2896_v42 = vand.u32 2147483647, %v13002_v37  ;;  %9371 = vpow2.f32 %v8740_v47  ;;  %v2948_v3 = vmul.f32 %v13195_v22, %v13121_v29 }
 0x22f   : > { %1351 = vmatmul.f32.gmra.mxu3 %v10447_v54  ;;  %v2486_v54 = vadd.f32 %v13151_v34, %v2485_v1  ;;  %v8769_v23 = vmul.f32 -1.442695, %v923_v4  ;;  %v2494_v4 = vor.u32 1.1754944e-38, %v2493_v16  ;;  %v2514_v19 = vsub.f32 1.0, %v2513_v15  ;;  %v10449_v15 = vld [vmem:[%s10938_s17 + $0x2c8] sm:$0xff] }
 0x230   : > { %5774 = vmatpush.msrb.mxu3 %v5528_v59  ;;  %v926_v16 = vadd.f32 %v13199_v56, %v717_v32  ;;  %vm13377_vm14 = vcmp.eq.f32.partialorder %v2896_v42, 8.507059e+37  ;;  %vm2517_vm0 = vweird.f32 %v13124_v61  ;;  %vm2518_vm2 = vweird.f32 %v13209_v7 }
 0x231   : > { %v1095_v46 = vpop.f32.mrf.mxu2  ;;  %v2490_v59 = vsel %vm13344_vm8, %v13151_v34, %v2486_v54  ;;  %9373 = vpow2.f32 %v8769_v23  ;;  %v2515_v44 = vmul.f32 %v13209_v7, %v2514_v19  ;;  %v499_v54 = vld [vmem:[%s10938_s17 + $0x3b0] sm:$0xff]  ;;  %vm2922_vm3 = vweird.f32 %v13063_v20  ;;  %vm13431_vm4 = vmor %vm2517_vm0, %vm2518_vm2 }
 0x232   : > { %v13326_v62 = vpop.f32.mrf.mxu0  ;;  %v1096_v52 = vadd.f32 %v1095_v46, %v11393_v41  ;;  %v1304_v13 = vpop.f32.mrf.mxu3  ;;  %9375 = vrcp.f32 %v13338_v10  ;;  %v13384_v56 = vsel %vm2492_vm11, %v2494_v4, %v2490_v59  ;;  %v8771_v42 = vmul.f32 -1.442695, %v926_v16 }
 0x233   : > { %v13328_v55 = vpop.f32.mrf.mxu1  ;;  %v9366_v46 = vpop.eup %9365  ;;  %19988 = vst [vmem:[#allocation65_spill] sm:$0xff] %v13384_v56  ;;  %v720_v4 = vadd.f32 %v13265_v21, %v11186_v53  ;;  %v2516_v21 = vadd.f32 %v13209_v7, %v2515_v44  ;;  %v2521_v59 = vand.u32 2147483647, %v13124_v61  ;;  %vm2923_vm5 = vweird.f32 %v13130_v11 }
 0x234   : > { %v13349_v36 = vadd.f32 %v1304_v13, %v1096_v52  ;;  %v2865_v13 = vsel %vm13355_vm9, %v13018_v14, %v2861_v26  ;;  %v13382_v23 = vadd.f32 1.0, %v9366_v46  ;;  %v2523_v46 = vand.u32 2147483648, %v13124_v61  ;;  %vm13487_vm6 = vmor %vm2922_vm3, %vm2923_vm5 }
 0x235   : > { %769 = vmatmul.f32.gmra.mxu0 %v497_v31  ;;  %v2891_v31 = vadd.f32 %v13081_v30, %v2890_v58  ;;  %v13375_v14 = vsel %vm2867_vm12, %v2869_v2, %v2865_v13  ;;  %v2898_v58 = vand.u32 2147483648, %v13002_v37  ;;  %v2949_v26 = vsub.f32 1.0, %v2948_v3 }
 0x236   : > { %978 = vmatmul.f32.gmra.mxu1 %v498_v63  ;;  %1145 = vmatmul.f32.gmra.mxu2 %v10448_v12  ;;  %v9368_v63 = vpop.eup %9367  ;;  %19985 = vst [vmem:[#allocation64_spill] sm:$0xff] %v13375_v14  ;;  %v2928_v61 = vand.u32 2147483648, %v13063_v20  ;;  %v2926_v34 = vand.u32 2147483647, %v13063_v20  ;;  %vm13451_vm1 = vcmp.eq.f32.partialorder %v2521_v59, 8.507059e+37  ;;  %v723_v59 = vadd.f32 %v13326_v62, %v11186_v53  ;;  %v10452_v20 = vld [vmem:[%s10938_s17 + $0x2e0] sm:$0xff] }
 0x237   : > { %1354 = vmatmul.f32.gmra.mxu3 %v10449_v15  ;;  %v13393_v47 = vpop.eup %9369  ;;  %v13395_v45 = vadd.f32 1.0, %v9368_v63  ;;  %v2895_v2 = vsel %vm13389_vm15, %v13081_v30, %v2891_v31  ;;  %v2899_v12 = vor.u32 1.1754944e-38, %v2898_v58  ;;  %v2543_v31 = vmul.f32 %v13297_v9, %v13189_v40  ;;  %v10450_v58 = vld [vmem:[%s10938_s17 + $0x2d0] sm:$0xff]  ;;  %v504_v14 = vld [vmem:[%s10938_s17 + $0x3d8] sm:$0xff] }
 0x238   : > { %v9372_v13 = vpop.eup %9371  ;;  %v2920_v63 = vmul.f32 %v13130_v11, %v2919_v51  ;;  %v8742_v15 = vmul.f32 -1.442695, %v13221_v27  ;;  %v929_v51 = vadd.f32 %v13267_v35, %v720_v4  ;;  %v2520_v35 = vsel %vm13431_vm4, %v13209_v7, %v2516_v21 }
 0x239   : > { %v1098_v32 = vpop.f32.mrf.mxu2  ;;  %v9374_v30 = vpop.eup %9373  ;;  %9377 = vrcp.f32 %v13395_v45  ;;  %v13437_v44 = vsel %vm13377_vm14, %v2899_v12, %v2895_v2  ;;  %v502_v12 = vld [vmem:[%s10938_s17 + $0x3c8] sm:$0xff]  ;;  %v2978_v7 = vmul.f32 %v13263_v17, %v13183_v18  ;;  %vm2952_vm7 = vweird.f32 %v13121_v29 }
 0x23a   : > { %v13397_v52 = vpop.f32.mrf.mxu0  ;;  %v1099_v1 = vadd.f32 %v1098_v32, %v11393_v41  ;;  %v1307_v19 = vpop.f32.mrf.mxu3  ;;  %19993 = vst [vmem:[#allocation66_spill] sm:$0xff] %v13437_v44  ;;  %9379 = vpow2.f32 %v8771_v42  ;;  %v13443_v27 = vadd.f32 1.0, %v9374_v30  ;;  %v2544_v42 = vsub.f32 1.0, %v2543_v31  ;;  %v503_v44 = vld [vmem:[%s10938_s17 + $0x3d0] sm:$0xff] }
 0x23b   : > { %v13399_v37 = vpop.f32.mrf.mxu1  ;;  %v13422_v16 = vpop.eup %9375  ;;  %v13456_v4 = vadd.f32 %v13130_v11, %v2920_v63  ;;  %9381 = vpow2.f32 %v8742_v15  ;;  %v8773_v21 = vmul.f32 -1.442695, %v929_v51  ;;  %v13471_v63 = vor.u32 1.1754944e-38, %v2928_v61 }
 0x23c   : > { %v13413_v38 = vadd.f32 %v1307_v19, %v1099_v1  ;;  %v2524_v1 = vor.u32 1.1754944e-38, %v2523_v46  ;;  %v501_v46 = vld [vmem:[%s10938_s17 + $0x3c0] sm:$0xff]  ;;  %9383 = vrcp.f32 %v13382_v23  ;;  %v8744_v32 = vmul.f32 -1.442695, %v13294_v60 }
 0x23d   : > { %772 = vmatmul.f32.gmra.mxu0 %v499_v54  ;;  %v10451_v54 = vld [vmem:[%s10938_s17 + $0x2d8] sm:$0xff]  ;;  %9385 = vrcp.f32 %v13443_v27  ;;  %v2545_v60 = vmul.f32 %v13297_v9, %v2544_v42  ;;  %vm13499_vm8 = vcmp.eq.f32.partialorder %v2926_v34, 8.507059e+37  ;;  %vm2953_vm9 = vweird.f32 %v13195_v22 }
 0x23e   : > { %981 = vmatmul.f32.gmra.mxu1 %v500_v49  ;;  %1148 = vmatmul.f32.gmra.mxu2 %v10450_v58  ;;  %v13445_v49 = vadd.f32 1.0, %v9372_v13  ;;  %v2950_v58 = vmul.f32 %v13195_v22, %v2949_v26  ;;  %v13481_v51 = vsel %vm13451_vm1, %v2524_v1, %v2520_v35  ;;  %v2958_v35 = vand.u32 2147483648, %v13121_v29  ;;  %vm13526_vm12 = vmor %vm2952_vm7, %vm2953_vm9 }
 0x23f   : > { %1357 = vmatmul.f32.gmra.mxu3 %v10451_v54  ;;  %v13473_v15 = vpop.eup %9377  ;;  %19997 = vst [vmem:[#allocation68_spill] sm:$0xff] %v13481_v51  ;;  %v2979_v3 = vsub.f32 1.0, %v2978_v7  ;;  %v932_v42 = vadd.f32 %v13328_v55, %v723_v59  ;;  %vm2547_vm10 = vweird.f32 %v13189_v40  ;;  %vm2548_vm11 = vweird.f32 %v13297_v9 }
 0x240   : > { %19994 = vst [vmem:[#allocation67_spill] sm:$0xff] %v13445_v49  ;;  %v9380_v54 = vpop.eup %9379  ;;  %9387 = vrcp.f32 %v13445_v49  ;;  %v2546_v55 = vadd.f32 %v13297_v9, %v2545_v60  ;;  %v2551_v59 = vand.u32 2147483647, %v13189_v40  ;;  %v726_v60 = vadd.f32 %v13397_v52, %v11186_v53  ;;  %vm13548_vm13 = vmor %vm2547_vm10, %vm2548_vm11 }
 0x241   : > { %v1101_v2 = vpop.f32.mrf.mxu2  ;;  %9389 = vpow2.f32 %v8773_v21  ;;  %v9382_v34 = vpop.eup %9381  ;;  %v2980_v52 = vmul.f32 %v13263_v17, %v2979_v3  ;;  %v8775_v28 = vmul.f32 -1.442695, %v932_v42  ;;  %vm2983_vm14 = vweird.f32 %v13263_v17 }
 0x242   : > { %v13458_v19 = vpop.f32.mrf.mxu0  ;;  %v1102_v30 = vadd.f32 %v1101_v2, %v11393_v41  ;;  %v1310_v31 = vpop.f32.mrf.mxu3  ;;  %v13504_v2 = vadd.f32 %v13195_v22, %v2950_v58  ;;  %9391 = vpow2.f32 %v8744_v32  ;;  %v2956_v58 = vand.u32 2147483647, %v13121_v29 }
 0x243   : > { %v13460_v13 = vpop.f32.mrf.mxu1  ;;  %v13516_v7 = vpop.eup %9383  ;;  %v8746_v29 = vmul.f32 -1.442695, %v13349_v36  ;;  %v13555_v33 = vadd.f32 1.0, %v9382_v34  ;;  %v2550_v42 = vsel %vm13548_vm13, %v13297_v9, %v2546_v55  ;;  %v935_v32 = vadd.f32 %v13399_v37, %v726_v60  ;;  %v5526_v60 = vld [vmem:[#allocation11 + $0x48] sm:$0xff] }
 0x244   : > { %v13477_v26 = vadd.f32 %v1310_v31, %v1102_v30  ;;  %v2553_v30 = vand.u32 2147483648, %v13189_v40  ;;  %v2573_v31 = vmul.f32 %v13334_v25, %v13256_v24  ;;  %v2955_v36 = vsel %vm13526_vm12, %v13195_v22, %v13504_v2  ;;  %5775 = vmatpush.msrb.mxu3 %v5526_v60 }
 0x245   : > { %775 = vmatmul.f32.gmra.mxu0 %v501_v46  ;;  %v10453_v46 = vld [vmem:[%s10938_s17 + $0x2e8] sm:$0xff]  ;;  %v2986_v22 = vand.u32 2147483647, %v13183_v18  ;;  %vm2552_vm15 = vcmp.eq.f32.partialorder %v2551_v59, 8.507059e+37  ;;  %v20006_v9 = vsel %vm13487_vm6, %v13130_v11, %v13456_v4  ;;  %vm2957_vm0 = vcmp.eq.f32.partialorder %v2956_v58, 8.507059e+37  ;;  %v505_v11 = vld [vmem:[%s10938_s17 + $0x3e0] sm:$0xff] }
 0x246   : > { %984 = vmatmul.f32.gmra.mxu1 %v502_v12  ;;  %1151 = vmatmul.f32.gmra.mxu2 %v10452_v20  ;;  %v13512_v12 = vadd.f32 1.0, %v9380_v54  ;;  %v3008_v54 = vmul.f32 %v13324_v0, %v13254_v50  ;;  %v13532_v20 = vpop.eup %9385  ;;  %v2554_v49 = vor.u32 1.1754944e-38, %v2553_v30  ;;  %v2574_v34 = vsub.f32 1.0, %v2573_v31 }
 0x247   : > { %1360 = vmatmul.f32.gmra.mxu3 %v10453_v46  ;;  %v13553_v5 = vpop.eup %9387  ;;  %v13583_v56 = vsel %vm13499_vm8, %v13471_v63, %v20006_v9  ;;  %v2988_v37 = vand.u32 2147483648, %v13183_v18  ;;  %vm2982_vm2 = vweird.f32 %v13183_v18  ;;  %v8777_v59 = vmul.f32 -1.442695, %v935_v32 }
 0x248   : > { %9393 = vrcp.f32 %v13512_v12  ;;  %v9390_v3 = vpop.eup %9389  ;;  %v3009_v2 = vsub.f32 1.0, %v3008_v54  ;;  %20007 = vst [vmem:[#allocation69_spill] sm:$0xff] %v13583_v56  ;;  %v13595_v30 = vsel %vm2552_vm15, %v2554_v49, %v2550_v42  ;;  %v2575_v63 = vmul.f32 %v13334_v25, %v2574_v34  ;;  %vm13600_vm3 = vmor %vm2982_vm2, %vm2983_vm14  ;;  %v506_v54 = vld [vmem:[%s10938_s17 + $0x3e8] sm:$0xff]  ;;  %v10468_v56 = vld [vmem:[%s10938_s17 + $0x360] sm:$0xff] }
 0x249   : > { %v1104_v21 = vpop.f32.mrf.mxu2  ;;  %9395 = vpow2.f32 %v8746_v29  ;;  %20009 = vst [vmem:[#allocation71_spill] sm:$0xff] %v13595_v30  ;;  %v5525_v49 = vld [vmem:[#allocation11 + $0x40] sm:$0xff]  ;;  %vm13617_vm4 = vcmp.eq.f32.partialorder %v2986_v22, 8.507059e+37  ;;  %vm2577_vm5 = vweird.f32 %v13256_v24  ;;  %vm2578_vm1 = vweird.f32 %v13334_v25 }
 0x24a   : > { %v13536_v46 = vpop.f32.mrf.mxu0  ;;  %v1105_v51 = vadd.f32 %v1104_v21, %v11393_v41  ;;  %v1313_v48 = vpop.f32.mrf.mxu3  ;;  %v2959_v21 = vor.u32 1.1754944e-38, %v2958_v35  ;;  %9397 = vpow2.f32 %v8775_v28  ;;  %v3010_v58 = vmul.f32 %v13324_v0, %v3009_v2  ;;  %5566 = vmatpush.msrb.mxu2 %v5525_v49  ;;  %vm13642_vm7 = vmor %vm2577_vm5, %vm2578_vm1  ;;  %v20129_v30 = vld [vmem:[#allocation27_spill] sm:$0xff] }
 0x24b   : > { %v13538_v61 = vpop.f32.mrf.mxu1  ;;  %v9392_v35 = vpop.eup %9391  ;;  %9399 = vrcp.f32 %v13555_v33  ;;  %v2989_v42 = vor.u32 1.1754944e-38, %v2988_v37  ;;  %vm3013_vm6 = vweird.f32 %v13324_v0  ;;  %v2581_v9 = vand.u32 2147483647, %v13256_v24 }
 0x24c   : > { %v13562_v40 = vadd.f32 %v1313_v48, %v1105_v51  ;;  %v10454_v48 = vld [vmem:[%s10938_s17 + $0x2f0] sm:$0xff]  ;;  %v13572_v51 = vadd.f32 %v13263_v17, %v2980_v52  ;;  %v13589_v28 = vsel %vm2957_vm0, %v2959_v21, %v2955_v36  ;;  %v13592_v62 = vadd.f32 1.0, %v9392_v35 }
 0x24d   : > { %778 = vmatmul.f32.gmra.mxu0 %v503_v44  ;;  %v13586_v44 = vadd.f32 1.0, %v9390_v3  ;;  %20008 = vst [vmem:[#allocation70_spill] sm:$0xff] %v13589_v28  ;;  %v729_v21 = vadd.f32 %v13458_v19, %v11186_v53  ;;  %v2576_v19 = vadd.f32 %v13334_v25, %v2575_v63  ;;  %v2583_v35 = vand.u32 2147483648, %v13256_v24  ;;  %v10457_v63 = vld [vmem:[%s10938_s17 + $0x308] sm:$0xff] }
 0x24e   : > { %987 = vmatmul.f32.gmra.mxu1 %v504_v14  ;;  %1154 = vmatmul.f32.gmra.mxu2 %v10454_v48  ;;  %v10455_v14 = vld [vmem:[%s10938_s17 + $0x2f8] sm:$0xff]  ;;  %v13605_v55 = vpop.eup %9393  ;;  %v2985_v52 = vsel %vm13600_vm3, %v13263_v17, %v13572_v51  ;;  %v8748_v17 = vmul.f32 -1.442695, %v13413_v38  ;;  %v3011_v32 = vadd.f32 %v13324_v0, %v3010_v58  ;;  %v3038_v48 = vmul.f32 %v13393_v47, %v13309_v39  ;;  %v10456_v38 = vld [vmem:[%s10938_s17 + $0x300] sm:$0xff] }
 0x24f   : > { %1363 = vmatmul.f32.gmra.mxu3 %v10455_v14  ;;  %v9396_v34 = vpop.eup %9395  ;;  %9401 = vrcp.f32 %v13586_v44  ;;  %v2603_v37 = vmul.f32 %v13422_v16, %v13338_v10  ;;  %vm3012_vm8 = vweird.f32 %v13254_v50  ;;  %v3018_v1 = vand.u32 2147483648, %v13254_v50 }
 0x250   : > { %v9398_v2 = vpop.eup %9397  ;;  %9403 = vpow2.f32 %v8777_v59  ;;  %v13657_v24 = vadd.f32 1.0, %v9396_v34  ;;  %v13661_v59 = vsel %vm13617_vm4, %v2989_v42, %v2985_v52  ;;  %vm13665_vm9 = vmor %vm3012_vm8, %vm3013_vm6  ;;  %v2584_v49 = vor.u32 1.1754944e-38, %v2583_v35  ;;  %v508_v42 = vld [vmem:[%s10938_s17 + $0x3f8] sm:$0xff] }
 0x251   : > { %v1107_v4 = vpop.f32.mrf.mxu2  ;;  %v13635_v51 = vpop.eup %9399  ;;  %9405 = vrcp.f32 %v13592_v62  ;;  %v13655_v58 = vadd.f32 1.0, %v9398_v2  ;;  %20016 = vst [vmem:[#allocation72_spill] sm:$0xff] %v13661_v59  ;;  %v3015_v60 = vsel %vm13665_vm9, %v13324_v0, %v3011_v32  ;;  %vm13684_vm10 = vcmp.eq.f32.partialorder %v2581_v9, 8.507059e+37 }
 0x252   : > { %v13607_v18 = vpop.f32.mrf.mxu0  ;;  %v1108_v29 = vadd.f32 %v1107_v4, %v11393_v41  ;;  %v1316_v3 = vpop.f32.mrf.mxu3  ;;  %v938_v4 = vadd.f32 %v13460_v13, %v729_v21  ;;  %9407 = vpow2.f32 %v8748_v17  ;;  %v3019_v32 = vor.u32 1.1754944e-38, %v3018_v1  ;;  %v10458_v1 = vld [vmem:[%s10938_s17 + $0x310] sm:$0xff] }
 0x253   : > { %v13609_v31 = vpop.f32.mrf.mxu1  ;;  %9409 = vrcp.f32 %v13655_v58  ;;  %v8750_v14 = vmul.f32 -1.442695, %v13477_v26  ;;  %vm3042_vm12 = vweird.f32 %v13309_v39  ;;  %vm3043_vm13 = vweird.f32 %v13393_v47 }
 0x254   : > { %v13627_v22 = vadd.f32 %v1316_v3, %v1108_v29  ;;  %v3039_v29 = vsub.f32 1.0, %v3038_v48  ;;  %v507_v3 = vld [vmem:[%s10938_s17 + $0x3f0] sm:$0xff]  ;;  %v8779_v0 = vmul.f32 -1.442695, %v938_v4  ;;  %v3046_v48 = vand.u32 2147483647, %v13309_v39  ;;  %vm13766_vm4 = vmor %vm3042_vm12, %vm3043_vm13 }
 0x255   : > { %781 = vmatmul.f32.gmra.mxu0 %v505_v11  ;;  %v3016_v11 = vand.u32 2147483647, %v13254_v50  ;;  %v2580_v50 = vsel %vm13642_vm7, %v13334_v25, %v2576_v19  ;;  %v13675_v36 = vpop.eup %9401  ;;  %v2604_v25 = vsub.f32 1.0, %v2603_v37  ;;  %v732_v19 = vadd.f32 %v13536_v46, %v11186_v53 }
 0x256   : > { %990 = vmatmul.f32.gmra.mxu1 %v506_v54  ;;  %1157 = vmatmul.f32.gmra.mxu2 %v10456_v38  ;;  %v9404_v38 = vpop.eup %9403  ;;  %v3068_v37 = vmul.f32 %v13473_v15, %v13395_v45  ;;  %9411 = vrcp.f32 %v13657_v24  ;;  %v13706_v46 = vsel %vm13684_vm10, %v2584_v49, %v2580_v50  ;;  %v3040_v26 = vmul.f32 %v13393_v47, %v3039_v29  ;;  %v10459_v49 = vld [vmem:[%s10938_s17 + $0x318] sm:$0xff] }
 0x257   : > { %1366 = vmatmul.f32.gmra.mxu3 %v10457_v63  ;;  %vm13688_vm11 = vcmp.eq.f32.partialorder %v3016_v11, 8.507059e+37  ;;  %v13701_v11 = vpop.eup %9405  ;;  %20023 = vst [vmem:[#allocation73_spill] sm:$0xff] %v13706_v46  ;;  %v2605_v13 = vmul.f32 %v13422_v16, %v2604_v25  ;;  %9413 = vpow2.f32 %v8779_v0  ;;  %v941_v50 = vadd.f32 %v13538_v61, %v732_v19 }
 0x258   : > { %v13710_v4 = vsel %vm13688_vm11, %v3019_v32, %v3015_v60  ;;  %v9408_v63 = vpop.eup %9407  ;;  %vm13722_vm14 = vcmp.eq.f32.partialorder %v3046_v48, 8.507059e+37  ;;  %9415 = vpow2.f32 %v8750_v14  ;;  %vm2607_vm15 = vweird.f32 %v13338_v10 }
 0x259   : > { %v1110_v54 = vpop.f32.mrf.mxu2  ;;  %20024 = vst [vmem:[#allocation74_spill] sm:$0xff] %v13710_v4  ;;  %vm2608_vm0 = vweird.f32 %v13422_v16  ;;  %v3069_v29 = vsub.f32 1.0, %v3068_v37  ;;  %v2613_v17 = vand.u32 2147483648, %v13338_v10  ;;  %v2633_v61 = vmul.f32 %v13516_v7, %v13382_v23  ;;  %v13734_v2 = vpop.eup %9409  ;;  %v10460_v4 = vld [vmem:[%s10938_s17 + $0x320] sm:$0xff] }
 0x25a   : > { %v13677_v52 = vpop.f32.mrf.mxu0  ;;  %v1111_v34 = vadd.f32 %v1110_v54, %v11393_v41  ;;  %v1319_v35 = vpop.f32.mrf.mxu3  ;;  %v3048_v54 = vand.u32 2147483648, %v13309_v39  ;;  %v3041_v25 = vadd.f32 %v13393_v47, %v3040_v26  ;;  %v2606_v48 = vadd.f32 %v13422_v16, %v2605_v13  ;;  %vm13753_vm3 = vmor %vm2607_vm15, %vm2608_vm0 }
 0x25b   : > { %v13679_v21 = vpop.f32.mrf.mxu1  ;;  %vm3072_vm2 = vweird.f32 %v13395_v45  ;;  %v8781_v37 = vmul.f32 -1.442695, %v941_v50  ;;  %v735_v26 = vadd.f32 %v13607_v18, %v11186_v53  ;;  %v3098_v13 = vmul.f32 %v13532_v20, %v13443_v27 }
 0x25c   : > { %v13697_v9 = vadd.f32 %v1319_v35, %v1111_v34  ;;  %v8752_v35 = vmul.f32 -1.442695, %v13562_v40  ;;  %v13745_v14 = vpop.eup %9411  ;;  %v3045_v39 = vsel %vm13766_vm4, %v13393_v47, %v3041_v25  ;;  %v3078_v59 = vand.u32 2147483648, %v13395_v45 }
 0x25d   : > { %784 = vmatmul.f32.gmra.mxu0 %v507_v3  ;;  %v13718_v3 = vadd.f32 1.0, %v9404_v38  ;;  %v2611_v38 = vand.u32 2147483647, %v13338_v10  ;;  %v3070_v10 = vmul.f32 %v13473_v15, %v3069_v29  ;;  %v2610_v29 = vsel %vm13753_vm3, %v13422_v16, %v2606_v48 }
 0x25e   : > { %993 = vmatmul.f32.gmra.mxu1 %v508_v42  ;;  %1160 = vmatmul.f32.gmra.mxu2 %v10458_v1  ;;  %v13728_v42 = vadd.f32 1.0, %v9408_v63  ;;  %v3049_v1 = vor.u32 1.1754944e-38, %v3048_v54  ;;  %v3076_v54 = vand.u32 2147483647, %v13395_v45  ;;  %vm3073_vm1 = vweird.f32 %v13473_v15 }
 0x25f   : > { %1369 = vmatmul.f32.gmra.mxu3 %v10459_v49  ;;  %9417 = vrcp.f32 %v13718_v3  ;;  %v9414_v49 = vpop.eup %9413  ;;  %vm2612_vm5 = vcmp.eq.f32.partialorder %v2611_v38, 8.507059e+37  ;;  %v3128_v38 = vmul.f32 %v13605_v55, %v13512_v12  ;;  %v738_v60 = vadd.f32 %v13677_v52, %v11186_v53  ;;  %vm13822_vm9 = vmor %vm3072_vm2, %vm3073_vm1 }
 0x260   : > { %9419 = vrcp.f32 %v13728_v42  ;;  %v13786_v47 = vadd.f32 1.0, %v9414_v49  ;;  %vm13793_vm6 = vcmp.eq.f32.partialorder %v3076_v54, 8.507059e+37  ;;  %v3079_v18 = vor.u32 1.1754944e-38, %v3078_v59 }
 0x261   : > { %v1113_v34 = vpop.f32.mrf.mxu2  ;;  %9421 = vpow2.f32 %v8752_v35  ;;  %vm2637_vm7 = vweird.f32 %v13382_v23  ;;  %vm2638_vm8 = vweird.f32 %v13516_v7  ;;  %vm3102_vm10 = vweird.f32 %v13443_v27 }
 0x262   : > { %v13736_v0 = vpop.f32.mrf.mxu0  ;;  %v1114_v32 = vadd.f32 %v1113_v34, %v11393_v41  ;;  %v1322_v63 = vpop.f32.mrf.mxu3  ;;  %v2614_v34 = vor.u32 1.1754944e-38, %v2613_v17  ;;  %9423 = vpow2.f32 %v8781_v37  ;;  %v3099_v17 = vsub.f32 1.0, %v3098_v13  ;;  %vm13845_vm11 = vmor %vm2637_vm7, %vm2638_vm8 }
 0x263   : > { %v13738_v19 = vpop.f32.mrf.mxu1  ;;  %9425 = vrcp.f32 %v13786_v47  ;;  %vm3103_vm12 = vweird.f32 %v13532_v20  ;;  %vm3133_vm0 = vweird.f32 %v13605_v55  ;;  %vm3132_vm2 = vweird.f32 %v13512_v12 }
 0x264   : > { %v13760_v50 = vadd.f32 %v1322_v63, %v1114_v32  ;;  %v2634_v32 = vsub.f32 1.0, %v2633_v61  ;;  %v9416_v63 = vpop.eup %9415  ;;  %v3071_v61 = vadd.f32 %v13473_v15, %v3070_v10  ;;  %v13799_v35 = vsel %vm2612_vm5, %v2614_v34, %v2610_v29  ;;  %vm13933_vm3 = vmor %vm3132_vm2, %vm3133_vm0 }
 0x265   : > { %3899 = vmatmul.f32.vlgmr.msrb.gmra.mxu0 %v11374_v8  ;;  %v944_v8 = vadd.f32 %v13609_v31, %v735_v26  ;;  %v13797_v25 = vadd.f32 1.0, %v9416_v63  ;;  %20034 = vst [vmem:[#allocation76_spill] sm:$0xff] %v13799_v35  ;;  %v13804_v37 = vpop.eup %9417  ;;  %v2641_v63 = vand.u32 2147483647, %v13382_v23  ;;  %v2643_v29 = vand.u32 2147483648, %v13382_v23  ;;  %v20108_v35 = vld [vmem:[#allocation44_spill] sm:$0xff] }
 0x266   : > { %4108 = vmatmul.f32.vlgmr.msrb.gmra.mxu1 %v11991_v43  ;;  %1163 = vmatmul.f32.gmra.mxu2 %v10460_v4  ;;  %v10461_v43 = vld [vmem:[%s10938_s17 + $0x328] sm:$0xff]  ;;  %v13790_v4 = vsel %vm13722_vm14, %v3049_v1, %v3045_v39  ;;  %v2635_v48 = vmul.f32 %v13516_v7, %v2634_v32  ;;  %v8754_v1 = vmul.f32 -1.442695, %v13627_v22  ;;  %v13814_v10 = vpop.eup %9419  ;;  %v3100_v22 = vmul.f32 %v13532_v20, %v3099_v17  ;;  %v10462_v17 = vld [vmem:[%s10938_s17 + $0x330] sm:$0xff]  ;;  %vm13884_vm14 = vmor %vm3102_vm10, %vm3103_vm12 }
 0x267   : > { %1372 = vmatmul.f32.gmra.mxu3 %v10461_v43  ;;  %20031 = vst [vmem:[#allocation75_spill] sm:$0xff] %v13790_v4  ;;  %v8783_v54 = vmul.f32 -1.442695, %v944_v8  ;;  %v9422_v59 = vpop.eup %9421  ;;  %v3075_v32 = vsel %vm13822_vm9, %v13473_v15, %v3071_v61  ;;  %v3129_v8 = vsub.f32 1.0, %v3128_v38  ;;  %v947_v43 = vadd.f32 %v13679_v21, %v738_v60  ;;  %v10463_v61 = vld [vmem:[%s10938_s17 + $0x338] sm:$0xff]  ;;  %v20040_v38 = vld [vmem:[#allocation67_spill] sm:$0xff] }
 0x268   : > { %v9424_v45 = vpop.eup %9423  ;;  %v2636_v39 = vadd.f32 %v13516_v7, %v2635_v48  ;;  %9427 = vpow2.f32 %v8754_v1  ;;  %v3108_v15 = vand.u32 2147483648, %v13443_v27  ;;  %v13854_v21 = vsel %vm13793_vm6, %v3079_v18, %v3075_v32  ;;  %v5523_v32 = vld [vmem:[#allocation11 + $0x30] sm:$0xff] }
 0x269   : > { %v1116_v31 = vpop.f32.mrf.mxu2  ;;  %9429 = vpow2.f32 %v8783_v54  ;;  %20039 = vst [vmem:[#allocation77_spill] sm:$0xff] %v13854_v21  ;;  %v13858_v23 = vadd.f32 1.0, %v9424_v45  ;;  %v13861_v48 = vadd.f32 1.0, %v9422_v59  ;;  %v2663_v60 = vmul.f32 %v13553_v5, %v20040_v38  ;;  %v5524_v45 = vld [vmem:[#allocation11 + $0x38] sm:$0xff]  ;;  %5567 = vmatpush.msrb.mxu2 %v5523_v32 }
 0x26a   : > { %v13808_v26 = vpop.f32.mrf.mxu0  ;;  %v1117_v13 = vadd.f32 %v1116_v31, %v11393_v41  ;;  %v1325_v49 = vpop.f32.mrf.mxu3  ;;  %v3101_v31 = vadd.f32 %v13532_v20, %v3100_v22  ;;  %9431 = vrcp.f32 %v13797_v25  ;;  %v2640_v16 = vsel %vm13845_vm11, %v13516_v7, %v2636_v39  ;;  %5776 = vmatpush.msrb.mxu3 %v5524_v45  ;;  %v20048_v32 = vld [vmem:[#allocation34_spill] sm:$0xff] }
 0x26b   : > { %v13810_v40 = vpop.f32.mrf.mxu1  ;;  %vm13868_vm13 = vcmp.eq.f32.partialorder %v2641_v63, 8.507059e+37  ;;  %v2644_v18 = vor.u32 1.1754944e-38, %v2643_v29  ;;  %v3130_v54 = vmul.f32 %v13605_v55, %v3129_v8  ;;  %v8785_v52 = vmul.f32 -1.442695, %v947_v43 }
 0x26c   : > { %v13828_v34 = vadd.f32 %v1325_v49, %v1117_v13  ;;  %v13873_v49 = vpop.eup %9425  ;;  %v3109_v63 = vor.u32 1.1754944e-38, %v3108_v15  ;;  %v741_v29 = vadd.f32 %v13736_v0, %v11186_v53  ;;  %v8756_v8 = vmul.f32 -1.442695, %v13697_v9 }
 0x26d   : > { %3902 = vmatmul.f32.gmra.mxu0 %v11383_v57  ;;  %v3158_v57 = vmul.f32 %v13675_v36, %v13586_v44  ;;  %9433 = vrcp.f32 %v13858_v23  ;;  %v3136_v0 = vand.u32 2147483647, %v13512_v12  ;;  %vm3162_vm5 = vweird.f32 %v13586_v44 }
 0x26e   : > { %4111 = vmatmul.f32.gmra.mxu1 %v12116_v6  ;;  %1166 = vmatmul.f32.gmra.mxu2 %v10462_v17  ;;  %v3106_v6 = vand.u32 2147483647, %v13443_v27  ;;  %v3105_v27 = vsel %vm13884_vm14, %v13532_v20, %v3101_v31  ;;  %9435 = vrcp.f32 %v13861_v48  ;;  %v3131_v20 = vadd.f32 %v13605_v55, %v3130_v54 }
 0x26f   : > { %1375 = vmatmul.f32.gmra.mxu3 %v10463_v61  ;;  %v2664_v61 = vsub.f32 1.0, %v2663_v60  ;;  %v3138_v31 = vand.u32 2147483648, %v13512_v12  ;;  %9437 = vpow2.f32 %v8785_v52  ;;  %v10464_v60 = vld [vmem:[%s10938_s17 + $0x340] sm:$0xff]  ;;  %v950_v54 = vadd.f32 %v13738_v19, %v741_v29 }
 0x270   : > { %vm13888_vm15 = vcmp.eq.f32.partialorder %v3106_v6, 8.507059e+37  ;;  %v9428_v6 = vpop.eup %9427  ;;  %9439 = vpow2.f32 %v8756_v8  ;;  %v2693_v52 = vmul.f32 %v13635_v51, %v13555_v33  ;;  %vm13937_vm4 = vcmp.eq.f32.partialorder %v3136_v0, 8.507059e+37 }
 0x271   : > { %v1119_v1 = vpop.f32.mrf.mxu2  ;;  %v9430_v9 = vpop.eup %9429  ;;  %v13919_v7 = vsel %vm13888_vm15, %v3109_v63, %v3105_v27  ;;  %v13928_v13 = vadd.f32 1.0, %v9428_v6  ;;  %v744_v19 = vadd.f32 %v13808_v26, %v11186_v53  ;;  %v2673_v63 = vand.u32 2147483648, %v20040_v38 }
 0x272   : > { %v13875_v22 = vpop.f32.mrf.mxu0  ;;  %v1120_v17 = vadd.f32 %v1119_v1, %v11393_v41  ;;  %v1328_v43 = vpop.f32.mrf.mxu3  ;;  %v20047_v1 = vld [vmem:[#allocation19_spill] sm:$0xff]  ;;  %v3135_v29 = vsel %vm13933_vm3, %v13605_v55, %v3131_v20  ;;  %v3139_v8 = vor.u32 1.1754944e-38, %v3138_v31  ;;  %vm2667_vm1 = vweird.f32 %v20040_v38 }
 0x273   : > { %v13877_v59 = vpop.f32.mrf.mxu1  ;;  %v13910_v45 = vpop.eup %9431  ;;  %20050 = vst [vmem:[#allocation19_spill] sm:$0xff] %v13919_v7  ;;  %vm2668_vm6 = vweird.f32 %v13553_v5  ;;  %v8787_v55 = vmul.f32 -1.442695, %v950_v54  ;;  %v2694_v20 = vsub.f32 1.0, %v2693_v52  ;;  %vm3163_vm7 = vweird.f32 %v13675_v36 }
 0x274   : > { %v13901_v15 = vadd.f32 %v1328_v43, %v1120_v17  ;;  %v13915_v17 = vsel %vm13868_vm13, %v2644_v18, %v2640_v16  ;;  %v10465_v43 = vld [vmem:[%s10938_s17 + $0x348] sm:$0xff]  ;;  %v2665_v16 = vmul.f32 %v13553_v5, %v2664_v61  ;;  %v13948_v27 = vpop.eup %9433  ;;  %v8758_v61 = vmul.f32 -1.442695, %v13760_v50  ;;  %vm13980_vm8 = vmor %vm2667_vm1, %vm2668_vm6 }
 0x275   : > { %3905 = vmatmul.f32.gmra.mxu0 %v20047_v1  ;;  %20049 = vst [vmem:[#allocation67_spill] sm:$0xff] %v13915_v17  ;;  %v3159_v1 = vsub.f32 1.0, %v3158_v57  ;;  %v13958_v0 = vpop.eup %9435  ;;  %v13970_v18 = vsel %vm13937_vm4, %v3139_v8, %v3135_v29  ;;  %v953_v52 = vadd.f32 %v13810_v40, %v744_v19  ;;  %v2671_v12 = vand.u32 2147483647, %v20040_v38  ;;  %v10466_v40 = vld [vmem:[%s10938_s17 + $0x350] sm:$0xff]  ;;  %vm14023_vm12 = vmor %vm3162_vm5, %vm3163_vm7 }
 0x276   : > { %4114 = vmatmul.f32.gmra.mxu1 %v20048_v32  ;;  %1169 = vmatmul.f32.gmra.mxu2 %v10464_v60  ;;  %v13926_v32 = vadd.f32 1.0, %v9430_v9  ;;  %v9438_v60 = vpop.eup %9437  ;;  %20055 = vst [vmem:[#allocation34_spill] sm:$0xff] %v13970_v18  ;;  %v3188_v29 = vmul.f32 %v13734_v2, %v13655_v58  ;;  %v2674_v19 = vor.u32 1.1754944e-38, %v2673_v63  ;;  %v3166_v8 = vand.u32 2147483647, %v13586_v44 }
 0x277   : > { %1378 = vmatmul.f32.gmra.mxu3 %v10465_v43  ;;  %v3160_v31 = vmul.f32 %v13675_v36, %v3159_v1  ;;  %v13966_v43 = vadd.f32 %v13553_v5, %v2665_v16  ;;  %v9440_v54 = vpop.eup %9439  ;;  %v20056_v1 = vld [vmem:[#allocation20_spill] sm:$0xff]  ;;  %vm2697_vm9 = vweird.f32 %v13555_v33  ;;  %vm2698_vm10 = vweird.f32 %v13635_v51 }
 0x278   : > { %9441 = vrcp.f32 %v13926_v32  ;;  %v13995_v18 = vadd.f32 1.0, %v9440_v54  ;;  %vm14015_vm11 = vcmp.eq.f32.partialorder %v2671_v12, 8.507059e+37  ;;  %vm14027_vm13 = vcmp.eq.f32.partialorder %v3166_v8, 8.507059e+37  ;;  %vm14046_vm14 = vmor %vm2697_vm9, %vm2698_vm10 }
 0x279   : > { %v1122_v39 = vpop.f32.mrf.mxu2  ;;  %9443 = vrcp.f32 %v13928_v13  ;;  %v3161_v38 = vadd.f32 %v13675_v36, %v3160_v31  ;;  %v2670_v63 = vsel %vm13980_vm8, %v13553_v5, %v13966_v43  ;;  %v3189_v31 = vsub.f32 1.0, %v3188_v29 }
 0x27a   : > { %v13950_v57 = vpop.f32.mrf.mxu0  ;;  %v1123_v26 = vadd.f32 %v1122_v39, %v11393_v41  ;;  %v1331_v9 = vpop.f32.mrf.mxu3  ;;  %v20057_v39 = vld [vmem:[#allocation36_spill] sm:$0xff]  ;;  %9445 = vpow2.f32 %v8758_v61  ;;  %v8789_v61 = vmul.f32 -1.442695, %v953_v52  ;;  %v8760_v5 = vmul.f32 -1.442695, %v13828_v34 }
 0x27b   : > { %v13952_v6 = vpop.f32.mrf.mxu1  ;;  %9447 = vpow2.f32 %v8787_v55  ;;  %v747_v55 = vadd.f32 %v13875_v22, %v11186_v53  ;;  %v3190_v28 = vmul.f32 %v13734_v2, %v3189_v31  ;;  %v14058_v17 = vsel %vm14015_vm11, %v2674_v19, %v2670_v63 }
 0x27c   : > { %v13963_v50 = vadd.f32 %v1331_v9, %v1123_v26  ;;  %v3168_v26 = vand.u32 2147483648, %v13586_v44  ;;  %v13990_v9 = vadd.f32 1.0, %v9438_v60  ;;  %v3165_v44 = vsel %vm14023_vm12, %v13675_v36, %v3161_v38  ;;  %v20068_v38 = vld [vmem:[#allocation21_spill] sm:$0xff]  ;;  %20070 = vst [vmem:[#allocation20_spill] sm:$0xff] %v14058_v17 }
 0x27d   : > { %3908 = vmatmul.f32.gmra.mxu0 %v20056_v1  ;;  %v10467_v1 = vld [vmem:[%s10938_s17 + $0x358] sm:$0xff]  ;;  %v956_v36 = vadd.f32 %v13877_v59, %v747_v55  ;;  %vm3192_vm15 = vweird.f32 %v13655_v58  ;;  %v10469_v59 = vld [vmem:[%s10938_s17 + $0x368] sm:$0xff]  ;;  %vm3193_vm0 = vweird.f32 %v13734_v2  ;;  %v3218_v63 = vmul.f32 %v13804_v37, %v13718_v3 }
 0x27e   : > { %4117 = vmatmul.f32.gmra.mxu1 %v20057_v39  ;;  %1172 = vmatmul.f32.gmra.mxu2 %v10466_v40  ;;  %v2695_v39 = vmul.f32 %v13635_v51, %v2694_v20  ;;  %v2723_v20 = vmul.f32 %v13701_v11, %v13592_v62  ;;  %v14007_v54 = vpop.eup %9441  ;;  %9449 = vrcp.f32 %v13990_v9  ;;  %v3169_v4 = vor.u32 1.1754944e-38, %v3168_v26  ;;  %vm14116_vm1 = vmor %vm3192_vm15, %vm3193_vm0 }
 0x27f   : > { %1381 = vmatmul.f32.gmra.mxu3 %v10467_v1  ;;  %v14031_v29 = vpop.eup %9443  ;;  %9451 = vrcp.f32 %v13995_v18  ;;  %v8791_v21 = vmul.f32 -1.442695, %v956_v36  ;;  %v3191_v52 = vadd.f32 %v13734_v2, %v3190_v28  ;;  %v750_v16 = vadd.f32 %v13950_v57, %v11186_v53 }
 0x280   : > { %v2696_v12 = vadd.f32 %v13635_v51, %v2695_v39  ;;  %v9446_v7 = vpop.eup %9445  ;;  %v2701_v39 = vand.u32 2147483647, %v13555_v33  ;;  %9453 = vpow2.f32 %v8789_v61  ;;  %vm2727_vm3 = vweird.f32 %v13592_v62 }
 0x281   : > { %v1125_v60 = vpop.f32.mrf.mxu2  ;;  %v9448_v22 = vpop.eup %9447  ;;  %9455 = vpow2.f32 %v8760_v5  ;;  %v14073_v19 = vadd.f32 1.0, %v9446_v7  ;;  %v2753_v5 = vmul.f32 %v13745_v14, %v13657_v24  ;;  %vm2728_vm4 = vweird.f32 %v13701_v11 }
 0x282   : > { %v14009_v40 = vpop.f32.mrf.mxu0  ;;  %v1126_v43 = vadd.f32 %v1125_v60, %v11393_v41  ;;  %v1334_v34 = vpop.f32.mrf.mxu3  ;;  %v2703_v60 = vand.u32 2147483648, %v13555_v33  ;;  %v14062_v33 = vsel %vm14027_vm13, %v3169_v4, %v3165_v44  ;;  %v2700_v26 = vsel %vm14046_vm14, %v13635_v51, %v2696_v12  ;;  %vm14136_vm6 = vmor %vm2727_vm3, %vm2728_vm4 }
 0x283   : > { %v14011_v1 = vpop.f32.mrf.mxu1  ;;  %20071 = vst [vmem:[#allocation36_spill] sm:$0xff] %v14062_v33  ;;  %v14071_v55 = vadd.f32 1.0, %v9448_v22  ;;  %vm14075_vm2 = vcmp.eq.f32.partialorder %v2701_v39, 8.507059e+37  ;;  %v8762_v44 = vmul.f32 -1.442695, %v13901_v15  ;;  %v3198_v22 = vand.u32 2147483648, %v13655_v58 }
 0x284   : > { %v14040_v8 = vadd.f32 %v1334_v34, %v1126_v43  ;;  %v20069_v43 = vld [vmem:[#allocation37_spill] sm:$0xff]  ;;  %v2724_v34 = vsub.f32 1.0, %v2723_v20  ;;  %v2704_v61 = vor.u32 1.1754944e-38, %v2703_v60  ;;  %v14081_v20 = vpop.eup %9449  ;;  %vm3222_vm7 = vweird.f32 %v13718_v3 }
 0x285   : > { %3911 = vmatmul.f32.gmra.mxu0 %v20068_v38  ;;  %v14087_v7 = vpop.eup %9451  ;;  %9457 = vrcp.f32 %v14071_v55  ;;  %vm3223_vm8 = vweird.f32 %v13804_v37  ;;  %v3248_v57 = vmul.f32 %v13873_v49, %v13786_v47  ;;  %vm2757_vm10 = vweird.f32 %v13657_v24 }
 0x286   : > { %4120 = vmatmul.f32.gmra.mxu1 %v20069_v43  ;;  %1175 = vmatmul.f32.gmra.mxu2 %v10468_v56  ;;  %v3196_v56 = vand.u32 2147483647, %v13655_v58  ;;  %v2725_v31 = vmul.f32 %v13701_v11, %v2724_v34  ;;  %v9454_v36 = vpop.eup %9453  ;;  %v14100_v28 = vsel %vm14075_vm2, %v2704_v61, %v2700_v26  ;;  %v2733_v34 = vand.u32 2147483648, %v13592_v62  ;;  %v20079_v61 = vld [vmem:[#allocation22_spill] sm:$0xff]  ;;  %vm14200_vm12 = vmor %vm3222_vm7, %vm3223_vm8 }
 0x287   : > { %1384 = vmatmul.f32.gmra.mxu3 %v10469_v59  ;;  %20074 = vst [vmem:[#allocation21_spill] sm:$0xff] %v14100_v28  ;;  %v9456_v15 = vpop.eup %9455  ;;  %v3219_v26 = vsub.f32 1.0, %v3218_v63  ;;  %9459 = vpow2.f32 %v8791_v21  ;;  %v14128_v58 = vadd.f32 1.0, %v9454_v36  ;;  %v10470_v63 = vld [vmem:[%s10938_s17 + $0x370] sm:$0xff]  ;;  %vm2758_vm11 = vweird.f32 %v13745_v14 }
 0x288   : > { %vm14104_vm5 = vcmp.eq.f32.partialorder %v3196_v56, 8.507059e+37  ;;  %v20080_v56 = vld [vmem:[#allocation39_spill] sm:$0xff]  ;;  %v14123_v4 = vadd.f32 %v13701_v11, %v2725_v31  ;;  %9461 = vpow2.f32 %v8762_v44  ;;  %v3199_v31 = vor.u32 1.1754944e-38, %v3198_v22  ;;  %vm14215_vm13 = vmor %vm2757_vm10, %vm2758_vm11 }
 0x289   : > { %v1128_v51 = vpop.f32.mrf.mxu2  ;;  %9463 = vrcp.f32 %v14073_v19  ;;  %v3220_v44 = vmul.f32 %v13804_v37, %v3219_v26  ;;  %v753_v26 = vadd.f32 %v14009_v40, %v11186_v53  ;;  %v3226_v40 = vand.u32 2147483647, %v13718_v3 }
 0x28a   : > { %v14091_v12 = vpop.f32.mrf.mxu0  ;;  %v1129_v39 = vadd.f32 %v1128_v51, %v11393_v41  ;;  %v1337_v38 = vpop.f32.mrf.mxu3  ;;  %v2754_v51 = vsub.f32 1.0, %v2753_v5  ;;  %v14141_v5 = vadd.f32 1.0, %v9456_v15  ;;  %v2730_v36 = vsel %vm14136_vm6, %v13701_v11, %v14123_v4  ;;  %v5521_v11 = vld [vmem:[#allocation11 + $0x20] sm:$0xff]  ;;  %v5522_v4 = vld [vmem:[#allocation11 + $0x28] sm:$0xff] }
 0x28b   : > { %v14093_v60 = vpop.f32.mrf.mxu1  ;;  %9465 = vrcp.f32 %v14128_v58  ;;  %5568 = vmatpush.msrb.mxu2 %v5521_v11  ;;  %5777 = vmatpush.msrb.mxu3 %v5522_v4  ;;  %v20086_v11 = vld [vmem:[#allocation23_spill] sm:$0xff]  ;;  %v962_v28 = vadd.f32 %v14011_v1, %v753_v26  ;;  %v2761_v17 = vand.u32 2147483647, %v13657_v24  ;;  %vm14230_vm14 = vcmp.eq.f32.partialorder %v3226_v40, 8.507059e+37 }
 0x28c   : > { %v14109_v43 = vadd.f32 %v1337_v38, %v1129_v39  ;;  %v3195_v39 = vsel %vm14116_vm1, %v13734_v2, %v3191_v52  ;;  %v959_v38 = vadd.f32 %v13952_v6, %v750_v16  ;;  %v10471_v2 = vld [vmem:[%s10938_s17 + $0x378] sm:$0xff]  ;;  %v2731_v6 = vand.u32 2147483647, %v13592_v62 }
 0x28d   : > { %3914 = vmatmul.f32.gmra.mxu0 %v20079_v61  ;;  %v2734_v52 = vor.u32 1.1754944e-38, %v2733_v34  ;;  %v14148_v16 = vsel %vm14104_vm5, %v3199_v31, %v3195_v39  ;;  %v2755_v15 = vmul.f32 %v13745_v14, %v2754_v51  ;;  %v2783_v62 = vmul.f32 %v13814_v10, %v13728_v42  ;;  %v14161_v34 = vpop.eup %9457 }
 0x28e   : > { %4123 = vmatmul.f32.gmra.mxu1 %v20080_v56  ;;  %1178 = vmatmul.f32.gmra.mxu2 %v10470_v63  ;;  %20083 = vst [vmem:[#allocation37_spill] sm:$0xff] %v14148_v16  ;;  %v8793_v59 = vmul.f32 -1.442695, %v959_v38  ;;  %v9460_v39 = vpop.eup %9459  ;;  %9467 = vrcp.f32 %v14141_v5  ;;  %v8764_v63 = vmul.f32 -1.442695, %v13963_v50  ;;  %vm14173_vm9 = vcmp.eq.f32.partialorder %v2731_v6, 8.507059e+37 }
 0x28f   : > { %1387 = vmatmul.f32.gmra.mxu3 %v10471_v2  ;;  %v9462_v31 = vpop.eup %9461  ;;  %v20087_v6 = vld [vmem:[#allocation41_spill] sm:$0xff]  ;;  %v2756_v4 = vadd.f32 %v13745_v14, %v2755_v15  ;;  %v2763_v16 = vand.u32 2147483648, %v13657_v24  ;;  %v14191_v33 = vadd.f32 1.0, %v9460_v39  ;;  %v14209_v1 = vsel %vm14173_vm9, %v2734_v52, %v2730_v36 }
 0x290   : > { %v14185_v50 = vpop.eup %9463  ;;  %9469 = vpow2.f32 %v8793_v59  ;;  %v14204_v15 = vadd.f32 1.0, %v9462_v31  ;;  %20090 = vst [vmem:[#allocation22_spill] sm:$0xff] %v14209_v1  ;;  %v3228_v59 = vand.u32 2147483648, %v13718_v3  ;;  %v756_v39 = vadd.f32 %v14091_v12, %v11186_v53 }
 0x291   : > { %v1131_v22 = vpop.f32.mrf.mxu2  ;;  %9471 = vpow2.f32 %v8764_v63  ;;  %v14220_v26 = vpop.eup %9465  ;;  %v2813_v63 = vmul.f32 %v13910_v45, %v13797_v25  ;;  %v8766_v3 = vmul.f32 -1.442695, %v14040_v8  ;;  %v2764_v31 = vor.u32 1.1754944e-38, %v2763_v16 }
 0x292   : > { %v14166_v61 = vpop.f32.mrf.mxu0  ;;  %v1132_v51 = vadd.f32 %v1131_v22, %v11393_v41  ;;  %v1340_v21 = vpop.f32.mrf.mxu3  ;;  %v14183_v22 = vadd.f32 %v13804_v37, %v3220_v44  ;;  %v10472_v44 = vld [vmem:[%s10938_s17 + $0x380] sm:$0xff]  ;;  %9473 = vrcp.f32 %v14191_v33  ;;  %v2760_v40 = vsel %vm14215_vm13, %v13745_v14, %v2756_v4  ;;  %v20097_v4 = vld [vmem:[#allocation24_spill] sm:$0xff] }
 0x293   : > { %v14168_v56 = vpop.f32.mrf.mxu1  ;;  %vm14249_vm15 = vcmp.eq.f32.partialorder %v2761_v17, 8.507059e+37  ;;  %9475 = vrcp.f32 %v14204_v15  ;;  %vm2787_vm0 = vweird.f32 %v13728_v42  ;;  %vm2788_vm2 = vweird.f32 %v13814_v10 }
 0x294   : > { %v14178_v2 = vadd.f32 %v1340_v21, %v1132_v51  ;;  %v2784_v51 = vsub.f32 1.0, %v2783_v62  ;;  %v3249_v21 = vsub.f32 1.0, %v3248_v57  ;;  %v10473_v62 = vld [vmem:[%s10938_s17 + $0x388] sm:$0xff]  ;;  %v3225_v52 = vsel %vm14200_vm12, %v13804_v37, %v14183_v22  ;;  %v14234_v36 = vpop.eup %9467  ;;  %vm14275_vm4 = vmor %vm2787_vm0, %vm2788_vm2 }
 0x295   : > { %3917 = vmatmul.f32.gmra.mxu0 %v20086_v11  ;;  %v2814_v14 = vsub.f32 1.0, %v2813_v63  ;;  %vm3253_vm3 = vweird.f32 %v13873_v49  ;;  %9477 = vpow2.f32 %v8766_v3  ;;  %v2791_v1 = vand.u32 2147483647, %v13728_v42 }
 0x296   : > { %4126 = vmatmul.f32.gmra.mxu1 %v20087_v6  ;;  %1181 = vmatmul.f32.gmra.mxu2 %v10472_v44  ;;  %v2785_v12 = vmul.f32 %v13814_v10, %v2784_v51  ;;  %v3250_v6 = vmul.f32 %v13873_v49, %v3249_v21  ;;  %v8795_v44 = vmul.f32 -1.442695, %v962_v28  ;;  %v3229_v28 = vor.u32 1.1754944e-38, %v3228_v59  ;;  %v9470_v22 = vpop.eup %9469 }
 0x297   : > { %1390 = vmatmul.f32.gmra.mxu3 %v10473_v62  ;;  %v965_v51 = vadd.f32 %v14093_v60, %v756_v39  ;;  %v2793_v21 = vand.u32 2147483648, %v13728_v42  ;;  %v9472_v17 = vpop.eup %9471  ;;  %v20098_v62 = vld [vmem:[#allocation42_spill] sm:$0xff]  ;;  %v10474_v60 = vld [vmem:[%s10938_s17 + $0x390] sm:$0xff]  ;;  %v14269_v39 = vsel %vm14249_vm15, %v2764_v31, %v2760_v40  ;;  %vm3252_vm5 = vweird.f32 %v13786_v47 }
 0x298   : > { %v2786_v57 = vadd.f32 %v13814_v10, %v2785_v12  ;;  %v3251_v59 = vadd.f32 %v13873_v49, %v3250_v6  ;;  %9479 = vpow2.f32 %v8795_v44  ;;  %20099 = vst [vmem:[#allocation39_spill] sm:$0xff] %v14269_v39  ;;  %v14281_v3 = vsel %vm14230_vm14, %v3229_v28, %v3225_v52  ;;  %v10475_v6 = vld [vmem:[%s10938_s17 + $0x398] sm:$0xff]  ;;  %v14291_v40 = vpop.eup %9473  ;;  %vm14300_vm1 = vmor %vm3252_vm5, %vm3253_vm3 }
 0x299   : > { %v14237_v38 = vpop.f32.mrf.mxu2  ;;  %20102 = vst [vmem:[#allocation23_spill] sm:$0xff] %v14281_v3  ;;  %v14284_v12 = vadd.f32 1.0, %v9470_v22  ;;  %v3256_v31 = vand.u32 2147483647, %v13786_v47  ;;  %v3258_v44 = vand.u32 2147483648, %v13786_v47  ;;  %v3278_v42 = vmul.f32 %v13948_v27, %v13858_v23  ;;  %v14304_v47 = vpop.eup %9475  ;;  %v20107_v28 = vld [vmem:[#allocation25_spill] sm:$0xff] }
 0x29a   : > { %v14242_v11 = vpop.f32.mrf.mxu0  ;;  %v14254_v16 = vpop.f32.mrf.mxu3  ;;  %v8797_v8 = vmul.f32 -1.442695, %v965_v51  ;;  %v2815_v52 = vmul.f32 %v13910_v45, %v2814_v14  ;;  %v2843_v24 = vmul.f32 %v13958_v0, %v13861_v48  ;;  %v2790_v51 = vsel %vm14275_vm4, %v13814_v10, %v2786_v57 }
 0x29b   : > { %v14244_v37 = vpop.f32.mrf.mxu1  ;;  %vm14311_vm6 = vcmp.eq.f32.partialorder %v2791_v1, 8.507059e+37  ;;  %v2794_v14 = vor.u32 1.1754944e-38, %v2793_v21  ;;  %v8768_v39 = vmul.f32 -1.442695, %v14109_v43  ;;  %vm2817_vm7 = vweird.f32 %v13797_v25  ;;  %v9478_v10 = vpop.eup %9477 }
 0x29c   : > { %vm2818_vm8 = vweird.f32 %v13910_v45  ;;  %9481 = vrcp.f32 %v14284_v12  ;;  %v3259_v21 = vor.u32 1.1754944e-38, %v3258_v44  ;;  %v2821_v43 = vand.u32 2147483647, %v13797_v25 }
 0x29d   : > { %3920 = vmatmul.f32.gmra.mxu0 %v20097_v4  ;;  %v14293_v4 = vadd.f32 1.0, %v9472_v17  ;;  %9483 = vpow2.f32 %v8797_v8  ;;  %v2844_v63 = vsub.f32 1.0, %v2843_v24  ;;  %v14338_v46 = vsel %vm14311_vm6, %v2794_v14, %v2790_v51  ;;  %vm14344_vm9 = vmor %vm2817_vm7, %vm2818_vm8  ;;  %v10476_v8 = vld [vmem:[%s10938_s17 + $0x3a0] sm:$0xff] }
 0x29e   : > { %4129 = vmatmul.f32.gmra.mxu1 %v20098_v62  ;;  %1184 = vmatmul.f32.gmra.mxu2 %v10474_v60  ;;  %v3255_v62 = vsel %vm14300_vm1, %v13873_v49, %v3251_v59  ;;  %v759_v60 = vadd.f32 %v14166_v61, %v11186_v53  ;;  %v2823_v49 = vand.u32 2147483648, %v13797_v25  ;;  %v3279_v61 = vsub.f32 1.0, %v3278_v42  ;;  %v9480_v57 = vpop.eup %9479  ;;  %20109 = vst [vmem:[#allocation41_spill] sm:$0xff] %v14338_v46  ;;  %v10477_v25 = vld [vmem:[%s10938_s17 + $0x3a8] sm:$0xff] }
 0x29f   : > { %1393 = vmatmul.f32.gmra.mxu3 %v10475_v6  ;;  %v2816_v59 = vadd.f32 %v13910_v45, %v2815_v52  ;;  %9485 = vrcp.f32 %v14293_v4  ;;  %vm3257_vm10 = vcmp.eq.f32.partialorder %v3256_v31, 8.507059e+37  ;;  %vm3282_vm11 = vweird.f32 %v13858_v23 }
 0x2a0   : > { %v968_v42 = vadd.f32 %v14168_v56, %v759_v60  ;;  %9487 = vpow2.f32 %v8768_v39  ;;  %vm3283_vm12 = vweird.f32 %v13948_v27  ;;  %v14354_v52 = vadd.f32 1.0, %v9480_v57  ;;  %v5519_v39 = vld [vmem:[#allocation11 + $0x10] sm:$0xff] }
 0x2a1   : > { %v14306_v22 = vpop.f32.mrf.mxu2  ;;  %v14356_v24 = vadd.f32 1.0, %v9478_v10  ;;  %v2824_v51 = vor.u32 1.1754944e-38, %v2823_v49  ;;  %v3280_v31 = vmul.f32 %v13948_v27, %v3279_v61  ;;  %v2820_v56 = vsel %vm14344_vm9, %v13910_v45, %v2816_v59  ;;  %vm14425_vm2 = vmor %vm3282_vm11, %vm3283_vm12  ;;  %5569 = vmatpush.msrb.mxu2 %v5519_v39 }
 0x2a2   : > { %v14320_v6 = vpop.f32.mrf.mxu0  ;;  %v14328_v1 = vpop.f32.mrf.mxu3  ;;  %20113 = vst [vmem:[#allocation42_spill] sm:$0xff] %v14354_v52  ;;  %vm14363_vm13 = vcmp.eq.f32.partialorder %v2821_v43, 8.507059e+37  ;;  %v2845_v17 = vmul.f32 %v13958_v0, %v2844_v63  ;;  %v2873_v14 = vmul.f32 %v14031_v29, %v13928_v13  ;;  %v8770_v60 = vmul.f32 -1.442695, %v14178_v2 }
 0x2a3   : > { %v14322_v3 = vpop.f32.mrf.mxu1  ;;  %v1135_v10 = vadd.f32 %v14237_v38, %v11393_v41  ;;  %v3286_v49 = vand.u32 2147483647, %v13858_v23  ;;  %v3308_v45 = vmul.f32 %v14007_v54, %v13926_v32  ;;  %v8799_v61 = vmul.f32 -1.442695, %v968_v42 }
 0x2a4   : > { %v762_v57 = vadd.f32 %v14242_v11, %v11186_v53  ;;  %vm2847_vm14 = vweird.f32 %v13861_v48  ;;  %vm2848_vm15 = vweird.f32 %v13958_v0  ;;  %9489 = vrcp.f32 %v14354_v52  ;;  %v10481_v52 = vld [vmem:[%s10938_s17 + $0x3c8] sm:$0xff] }
 0x2a5   : > { %3923 = vmatmul.f32.gmra.mxu0 %v20107_v28  ;;  %v14395_v28 = vsel %vm14363_vm13, %v2824_v51, %v2820_v56  ;;  %v2853_v11 = vand.u32 2147483648, %v13861_v48  ;;  %v14399_v44 = vadd.f32 %v13948_v27, %v3280_v31  ;;  %9491 = vrcp.f32 %v14356_v24  ;;  %v20118_v51 = vld [vmem:[#allocation26_spill] sm:$0xff]  ;;  %vm14415_vm0 = vmor %vm2847_vm14, %vm2848_vm15 }
 0x2a6   : > { %4132 = vmatmul.f32.gmra.mxu1 %v20108_v35  ;;  %1187 = vmatmul.f32.gmra.mxu2 %v10476_v8  ;;  %v14351_v35 = vsel %vm3257_vm10, %v3259_v21, %v3255_v62  ;;  %v14370_v62 = vpop.eup %9481  ;;  %20116 = vst [vmem:[#allocation25_spill] sm:$0xff] %v14395_v28  ;;  %v14403_v8 = vadd.f32 %v13958_v0, %v2845_v17  ;;  %v20119_v56 = vld [vmem:[#allocation46_spill] sm:$0xff]  ;;  %9493 = vpow2.f32 %v8770_v60  ;;  %v3309_v17 = vsub.f32 1.0, %v3308_v45 }
 0x2a7   : > { %20112 = vst [vmem:[#allocation24_spill] sm:$0xff] %v14351_v35  ;;  %1396 = vmatmul.f32.gmra.mxu3 %v10477_v25  ;;  %v9484_v21 = vpop.eup %9483  ;;  %v2851_v25 = vand.u32 2147483647, %v13861_v48  ;;  %v2874_v35 = vsub.f32 1.0, %v2873_v14  ;;  %v1344_v31 = vadd.f32 %v14254_v16, %v1135_v10  ;;  %9495 = vpow2.f32 %v8799_v61  ;;  %v10479_v45 = vld [vmem:[%s10938_s17 + $0x3b8] sm:$0xff] }
 0x2a8   : > { %v14386_v2 = vpop.eup %9485  ;;  %v14406_v46 = vadd.f32 1.0, %v9484_v21  ;;  %v971_v14 = vadd.f32 %v14244_v37, %v762_v57  ;;  %v10478_v21 = vld [vmem:[%s10938_s17 + $0x3b0] sm:$0xff]  ;;  %vm14429_vm3 = vcmp.eq.f32.partialorder %v3286_v49, 8.507059e+37  ;;  %v3288_v60 = vand.u32 2147483648, %v13858_v23 }
 0x2a9   : > { %v14389_v38 = vpop.f32.mrf.mxu2  ;;  %v9488_v42 = vpop.eup %9487  ;;  %v2854_v37 = vor.u32 1.1754944e-38, %v2853_v11  ;;  %v3285_v61 = vsel %vm14425_vm2, %v13948_v27, %v14399_v44  ;;  %vm3312_vm4 = vweird.f32 %v13926_v32  ;;  %v765_v49 = vadd.f32 %v14320_v6, %v11186_v53 }
 0x2aa   : > { %v14380_v59 = vpop.f32.mrf.mxu0  ;;  %v14391_v63 = vpop.f32.mrf.mxu3  ;;  %20117 = vst [vmem:[#allocation44_spill] sm:$0xff] %v14406_v46  ;;  %v14434_v10 = vadd.f32 1.0, %v9488_v42  ;;  %v2850_v23 = vsel %vm14415_vm0, %v13958_v0, %v14403_v8  ;;  %v2875_v57 = vmul.f32 %v14031_v29, %v2874_v35  ;;  %v2903_v11 = vmul.f32 %v14087_v7, %v13995_v18 }
 0x2ab   : > { %v14382_v43 = vpop.f32.mrf.mxu1  ;;  %v14451_v42 = vpop.eup %9489  ;;  %9497 = vrcp.f32 %v14406_v46  ;;  %v8772_v27 = vmul.f32 -1.442695, %v1344_v31  ;;  %vm14454_vm5 = vcmp.eq.f32.partialorder %v2851_v25, 8.507059e+37  ;;  %v3310_v6 = vmul.f32 %v14007_v54, %v3309_v17  ;;  %v20130_v46 = vld [vmem:[#allocation47_spill] sm:$0xff] }
 0x2ac   : > { %20126 = vst [vmem:[#allocation26_spill] sm:$0xff] %v14451_v42  ;;  %v1138_v8 = vadd.f32 %v14306_v22, %v11393_v41  ;;  %vm2877_vm1 = vweird.f32 %v13928_v13  ;;  %vm2878_vm6 = vweird.f32 %v14031_v29  ;;  %9499 = vrcp.f32 %v14434_v10 }
 0x2ad   : > { %3926 = vmatmul.f32.gmra.mxu0 %v20118_v51  ;;  %v14459_v51 = vpop.eup %9491  ;;  %v2883_v31 = vand.u32 2147483648, %v13928_v13  ;;  %v3289_v17 = vor.u32 1.1754944e-38, %v3288_v60  ;;  %vm3313_vm7 = vweird.f32 %v14007_v54  ;;  %v974_v22 = vadd.f32 %v14322_v3, %v765_v49  ;;  %vm14485_vm8 = vmor %vm2877_vm1, %vm2878_vm6 }
 0x2ae   : > { %4135 = vmatmul.f32.gmra.mxu1 %v20119_v56  ;;  %1190 = vmatmul.f32.gmra.mxu2 %v10478_v21  ;;  %v8801_v56 = vmul.f32 -1.442695, %v971_v14  ;;  %v5520_v21 = vld [vmem:[#allocation11 + $0x18] sm:$0xff]  ;;  %v9494_v25 = vpop.eup %9493  ;;  %v2876_v16 = vadd.f32 %v14031_v29, %v2875_v57  ;;  %v3316_v28 = vand.u32 2147483647, %v13926_v32  ;;  %9501 = vpow2.f32 %v8772_v27  ;;  %vm14521_vm9 = vmor %vm3312_vm4, %vm3313_vm7 }
 0x2af   : > { %1399 = vmatmul.f32.gmra.mxu3 %v10479_v45  ;;  %v9496_v14 = vpop.eup %9495  ;;  %v2904_v45 = vsub.f32 1.0, %v2903_v11  ;;  %v2881_v49 = vand.u32 2147483647, %v13928_v13  ;;  %v1347_v57 = vadd.f32 %v14328_v1, %v1138_v8  ;;  %v10480_v11 = vld [vmem:[%s10938_s17 + $0x3c0] sm:$0xff]  ;;  %v14497_v27 = vsel %vm14454_vm5, %v2854_v37, %v2850_v23 }
 0x2b0   : > { %5778 = vmatpush.msrb.mxu3 %v5520_v21  ;;  %9503 = vpow2.f32 %v8801_v56  ;;  %v14501_v21 = vsel %vm14429_vm3, %v3289_v17, %v3285_v61  ;;  %v14505_v13 = vadd.f32 1.0, %v9496_v14  ;;  %v2884_v56 = vor.u32 1.1754944e-38, %v2883_v31 }
 0x2b1   : > { %v14477_v39 = vpop.f32.mrf.mxu2  ;;  %20133 = vst [vmem:[#allocation46_spill] sm:$0xff] %v14501_v21  ;;  %v14503_v42 = vpop.eup %9497  ;;  %v3318_v1 = vand.u32 2147483648, %v13926_v32  ;;  %v8803_v8 = vmul.f32 -1.442695, %v974_v22  ;;  %v2880_v37 = vsel %vm14485_vm8, %v14031_v29, %v2876_v16  ;;  %v2905_v48 = vmul.f32 %v14087_v7, %v2904_v45 }
 0x2b2   : > { %v14461_v0 = vpop.f32.mrf.mxu0  ;;  %v14479_v60 = vpop.f32.mrf.mxu3  ;;  %v2933_v61 = vmul.f32 %v14185_v50, %v14073_v19  ;;  %vm14527_vm10 = vcmp.eq.f32.partialorder %v2881_v49, 8.507059e+37  ;;  %vm14534_vm11 = vcmp.eq.f32.partialorder %v3316_v28, 8.507059e+37  ;;  %v768_v32 = vadd.f32 %v14380_v59, %v11186_v53 }
 0x2b3   : > { %v14463_v35 = vpop.f32.mrf.mxu1  ;;  %v8774_v22 = vmul.f32 -1.442695, %v1347_v57  ;;  %vm2907_vm12 = vweird.f32 %v13995_v18  ;;  %vm2908_vm13 = vweird.f32 %v14087_v7  ;;  %9505 = vrcp.f32 %v14505_v13  ;;  %v20141_v57 = vld [vmem:[#allocation49_spill] sm:$0xff] }
 0x2b4   : > { %v2913_v28 = vand.u32 2147483648, %v13995_v18  ;;  %v3319_v45 = vor.u32 1.1754944e-38, %v3318_v1  ;;  %9507 = vpow2.f32 %v8803_v8  ;;  %v2906_v3 = vadd.f32 %v14087_v7, %v2905_v48  ;;  %vm14563_vm14 = vmor %vm2907_vm12, %vm2908_vm13  ;;  %v10482_v48 = vld [vmem:[%s10938_s17 + $0x3d0] sm:$0xff] }
 0x2b5   : > { %3929 = vmatmul.f32.gmra.mxu0 %v20129_v30  ;;  %v3311_v30 = vadd.f32 %v14007_v54, %v3310_v6  ;;  %v14507_v6 = vadd.f32 1.0, %v9494_v25  ;;  %v2911_v49 = vand.u32 2147483647, %v13995_v18  ;;  %vm3342_vm15 = vweird.f32 %v13990_v9 }
 0x2b6   : > { %4138 = vmatmul.f32.gmra.mxu1 %v20130_v46  ;;  %v3338_v46 = vmul.f32 %v14081_v20, %v13990_v9  ;;  %1193 = vmatmul.f32.gmra.mxu2 %v10480_v11  ;;  %v977_v8 = vadd.f32 %v14382_v43, %v768_v32  ;;  %vm3343_vm0 = vweird.f32 %v14081_v20  ;;  %v2914_v43 = vor.u32 1.1754944e-38, %v2913_v28 }
 0x2b7   : > { %1402 = vmatmul.f32.gmra.mxu3 %v10481_v52  ;;  %v14525_v52 = vpop.eup %9499  ;;  %v3315_v29 = vsel %vm14521_vm9, %v14007_v54, %v3311_v30  ;;  %v1141_v54 = vadd.f32 %v14389_v38, %v11393_v41  ;;  %v2934_v30 = vsub.f32 1.0, %v2933_v61  ;;  %9509 = vrcp.f32 %v14507_v6  ;;  %vm14626_vm5 = vmor %vm3342_vm15, %vm3343_vm0 }
 0x2b8   : > { %v3339_v31 = vsub.f32 1.0, %v3338_v46  ;;  %v9502_v16 = vpop.eup %9501  ;;  %v20140_v46 = vld [vmem:[#allocation28_spill] sm:$0xff]  ;;  %v14557_v38 = vsel %vm14527_vm10, %v2884_v56, %v2880_v37  ;;  %9511 = vpow2.f32 %v8774_v22  ;;  %v14573_v56 = vsel %vm14534_vm11, %v3319_v45, %v3315_v29  ;;  %v20152_v29 = vld [vmem:[#allocation51_spill] sm:$0xff] }
 0x2b9   : > { %v9504_v59 = vpop.eup %9503  ;;  %20144 = vst [vmem:[#allocation27_spill] sm:$0xff] %v14573_v56  ;;  %v14578_v37 = vadd.f32 1.0, %v9502_v16  ;;  %v1350_v61 = vadd.f32 %v14391_v63, %v1141_v54  ;;  %v1146_v23 = vpop.f32.mrf.mxu2  ;;  %v2910_v25 = vsel %vm14563_vm14, %v14087_v7, %v2906_v3  ;;  %vm14587_vm2 = vcmp.eq.f32.partialorder %v2911_v49, 8.507059e+37 }
 0x2ba   : > { %v14540_v17 = vpop.f32.mrf.mxu0  ;;  %v3340_v1 = vmul.f32 %v14081_v20, %v3339_v31  ;;  %v14576_v18 = vadd.f32 1.0, %v9504_v59  ;;  %v14581_v44 = vpop.f32.mrf.mxu3  ;;  %v10483_v31 = vld [vmem:[%s10938_s17 + $0x3d8] sm:$0xff]  ;;  %v2935_v32 = vmul.f32 %v14185_v50, %v2934_v30  ;;  %v2963_v22 = vmul.f32 %v14234_v36, %v14141_v5 }
 0x2bb   : > { %v14542_v14 = vpop.f32.mrf.mxu1  ;;  %v14594_v63 = vpop.eup %9505  ;;  %v1144_v16 = vadd.f32 %v14477_v39, %v11393_v41  ;;  %v3346_v28 = vand.u32 2147483647, %v13990_v9  ;;  %v3368_v7 = vmul.f32 %v14161_v34, %v14071_v55  ;;  %v8805_v59 = vmul.f32 -1.442695, %v977_v8 }
 0x2bc   : > { %20145 = vst [vmem:[#allocation47_spill] sm:$0xff] %v14576_v18  ;;  %v14599_v54 = vadd.f32 %v14081_v20, %v3340_v1  ;;  %v9508_v45 = vpop.eup %9507  ;;  %v771_v3 = vadd.f32 %v14461_v0, %v11186_v53  ;;  %vm2937_vm3 = vweird.f32 %v14073_v19  ;;  %vm2938_vm4 = vweird.f32 %v14185_v50 }
 0x2bd   : > { %3932 = vmatmul.f32.gmra.mxu0 %v20140_v46  ;;  %v14612_v39 = vpop.eup %9509  ;;  %9513 = vrcp.f32 %v14576_v18  ;;  %v8776_v46 = vmul.f32 -1.442695, %v1350_v61  ;;  %v2943_v11 = vand.u32 2147483648, %v14073_v19  ;;  %v2936_v1 = vadd.f32 %v14185_v50, %v2935_v32  ;;  %vm14641_vm1 = vmor %vm2937_vm3, %vm2938_vm4  ;;  %v10484_v18 = vld [vmem:[%s10938_s17 + $0x3e0] sm:$0xff] }
 0x2be   : > { %4141 = vmatmul.f32.gmra.mxu1 %v20141_v57  ;;  %1196 = vmatmul.f32.gmra.mxu2 %v10482_v48  ;;  %v14617_v57 = vsel %vm14587_vm2, %v2914_v43, %v2910_v25  ;;  %v9512_v0 = vpop.eup %9511  ;;  %v2941_v8 = vand.u32 2147483647, %v14073_v19  ;;  %v2964_v48 = vsub.f32 1.0, %v2963_v22  ;;  %v3348_v61 = vand.u32 2147483648, %v13990_v9  ;;  %v20151_v25 = vld [vmem:[#allocation29_spill] sm:$0xff] }
 0x2bf   : > { %1405 = vmatmul.f32.gmra.mxu3 %v10483_v31  ;;  %v14631_v43 = vadd.f32 1.0, %v9508_v45  ;;  %9515 = vrcp.f32 %v14578_v37  ;;  %v1353_v32 = vadd.f32 %v14479_v60, %v1144_v16  ;;  %v3369_v9 = vsub.f32 1.0, %v3368_v7  ;;  %v10485_v16 = vld [vmem:[%s10938_s17 + $0x3e8] sm:$0xff]  ;;  %v10486_v60 = vld [vmem:[%s10938_s17 + $0x3f0] sm:$0xff] }
 0x2c0   : > { %9517 = vpow2.f32 %v8805_v59  ;;  %v980_v45 = vadd.f32 %v14463_v35, %v771_v3  ;;  %vm14651_vm6 = vcmp.eq.f32.partialorder %v3346_v28, 8.507059e+37  ;;  %v14655_v19 = vadd.f32 1.0, %v9512_v0 }
 0x2c1   : > { %20150 = vst [vmem:[#allocation28_spill] sm:$0xff] %v14631_v43  ;;  %9519 = vpow2.f32 %v8776_v46  ;;  %v2944_v7 = vor.u32 1.1754944e-38, %v2943_v11  ;;  %v2993_v35 = vmul.f32 %v14304_v47, %v14204_v15  ;;  %vm14663_vm7 = vcmp.eq.f32.partialorder %v2941_v8, 8.507059e+37  ;;  %v14672_v11 = vpop.f32.mrf.mxu2 }
 0x2c2   : > { %v14606_v49 = vpop.f32.mrf.mxu0  ;;  %9521 = vrcp.f32 %v14631_v43  ;;  %v8778_v3 = vmul.f32 -1.442695, %v1353_v32  ;;  %v1147_v46 = vadd.f32 %v1146_v23, %v11393_v41  ;;  %v14674_v0 = vpop.f32.mrf.mxu3  ;;  %v774_v8 = vadd.f32 %v14540_v17, %v11186_v53  ;;  %v20161_v43 = vld [vmem:[#allocation30_spill] sm:$0xff] }
 0x2c3   : > { %v14608_v30 = vpop.f32.mrf.mxu1  ;;  %v14668_v28 = vpop.eup %9513  ;;  %vm2967_vm8 = vweird.f32 %v14141_v5  ;;  %vm2968_vm9 = vweird.f32 %v14234_v36  ;;  %9523 = vrcp.f32 %v14655_v19  ;;  %vm3372_vm10 = vweird.f32 %v14071_v55 }
 0x2c4   : > { %20159 = vst [vmem:[#allocation49_spill] sm:$0xff] %v14668_v28  ;;  %v2971_v22 = vand.u32 2147483647, %v14141_v5  ;;  %9525 = vpow2.f32 %v8778_v3  ;;  %vm14707_vm11 = vmor %vm2967_vm8, %vm2968_vm9  ;;  %vm3373_vm12 = vweird.f32 %v14161_v34  ;;  %vm2997_vm14 = vweird.f32 %v14204_v15 }
 0x2c5   : > { %3935 = vmatmul.f32.gmra.mxu0 %v20151_v25  ;;  %v3345_v25 = vsel %vm14626_vm5, %v14081_v20, %v14599_v54  ;;  %v2965_v20 = vmul.f32 %v14234_v36, %v2964_v48  ;;  %v3349_v54 = vor.u32 1.1754944e-38, %v3348_v61  ;;  %v14685_v61 = vpop.eup %9515  ;;  %vm2998_vm15 = vweird.f32 %v14304_v47  ;;  %vm14748_vm0 = vmor %vm3372_vm10, %vm3373_vm12 }
 0x2c6   : > { %4144 = vmatmul.f32.gmra.mxu1 %v20152_v29  ;;  %1199 = vmatmul.f32.gmra.mxu2 %v10484_v18  ;;  %v2940_v18 = vsel %vm14641_vm1, %v14185_v50, %v2936_v1  ;;  %v3370_v50 = vmul.f32 %v14161_v34, %v3369_v9  ;;  %v8807_v1 = vmul.f32 -1.442695, %v980_v45  ;;  %v2994_v29 = vsub.f32 1.0, %v2993_v35  ;;  %v9518_v17 = vpop.eup %9517  ;;  %vm14782_vm3 = vmor %vm2997_vm14, %vm2998_vm15 }
 0x2c7   : > { %1408 = vmatmul.f32.gmra.mxu3 %v10485_v16  ;;  %v14690_v23 = vsel %vm14663_vm7, %v2944_v7, %v2940_v18  ;;  %v2966_v32 = vadd.f32 %v14234_v36, %v2965_v20  ;;  %v2973_v9 = vand.u32 2147483648, %v14141_v5  ;;  %v14698_v45 = vsel %vm14651_vm6, %v3349_v54, %v3345_v25  ;;  %v9520_v16 = vpop.eup %9519  ;;  %v20162_v7 = vld [vmem:[#allocation52_spill] sm:$0xff]  ;;  %v10487_v54 = vld [vmem:[%s10938_s17 + $0x3f8] sm:$0xff]  ;;  %s10695_s17 = scalar_lea.hbm %s19680_s7, 2048 }
 0x2c8   : > { %20160 = vst [vmem:[#allocation29_spill] sm:$0xff] %v14698_v45  ;;  %v1356_v35 = vadd.f32 %v14581_v44, %v1147_v46  ;;  %v3376_v25 = vand.u32 2147483647, %v14071_v55  ;;  %9527 = vpow2.f32 %v8807_v1  ;;  %v14716_v59 = vadd.f32 %v14161_v34, %v3370_v50  ;;  %v14720_v5 = vpop.eup %9521  ;;  %v20188_v18 = vld [vmem:[#allocation56_spill] sm:$0xff]  ;;  %p10697_p8 = scmp.lt.s32.totalorder %s10695_s17, %s10691_s29 }
 0x2c9   : > { %v3398_v44 = vmul.f32 %v14220_v26, %v14128_v58  ;;  %20165 = vst [vmem:[#allocation51_spill] sm:$0xff] %v14720_v5  ;;  %v14722_v20 = vadd.f32 1.0, %v9518_v17  ;;  %v2995_v3 = vmul.f32 %v14304_v47, %v2994_v29  ;;  %v3023_v46 = vmul.f32 %v14386_v2, %v14293_v4 }
 0x2ca   : > { %v14679_v31 = vpop.f32.mrf.mxu0  ;;  %v14729_v1 = vadd.f32 1.0, %v9520_v16  ;;  %v2970_v50 = vsel %vm14707_vm11, %v14234_v36, %v2966_v32  ;;  %vm14734_vm13 = vcmp.eq.f32.partialorder %v2971_v22, 8.507059e+37  ;;  %v2974_v17 = vor.u32 1.1754944e-38, %v2973_v9  ;;  %v5517_v16 = vld [vmem:[#allocation11] sm:$0xff]  ;;  %v14767_v5 = vpop.f32.mrf.mxu3  ;;  %p10698_p7 = por %p10697_p8, %p10696_p12 }
 0x2cb   : > { %v14681_v48 = vpop.f32.mrf.mxu1  ;;  %20166 = vst [vmem:[#allocation30_spill] sm:$0xff] %v14722_v20  ;;  %v777_v29 = vadd.f32 %v14606_v49, %v11186_v53  ;;  %v5518_v49 = vld [vmem:[#allocation11 + $0x8] sm:$0xff]  ;;  %vm14760_vm2 = vcmp.eq.f32.partialorder %v3376_v25, 8.507059e+37  ;;  %9529 = vrcp.f32 %v14722_v20  ;;  %5570 = vmatpush.msrb.mxu2 %v5517_v16  ;;  %v2996_v28 = vadd.f32 %v14304_v47, %v2995_v3  ;;  %v20175_v16 = vld [vmem:[#allocation31_spill] sm:$0xff] }
 0x2cc   : > { %5779 = vmatpush.msrb.mxu3 %v5518_v49  ;;  %v3003_v45 = vand.u32 2147483648, %v14204_v15  ;;  %v3024_v36 = vsub.f32 1.0, %v3023_v46  ;;  %9531 = vrcp.f32 %v14729_v1  ;;  %v1150_v25 = vadd.f32 %v14672_v11, %v11393_v41  ;;  %v20176_v49 = vld [vmem:[#allocation54_spill] sm:$0xff]  ;;  %p10699_p9 = pnand %p10698_p7, %p10694_p5 }
 0x2cd   : > { %3938 = vmatmul.f32.gmra.mxu0 %v20161_v43  ;;  %v983_v43 = vadd.f32 %v14542_v14, %v774_v8  ;;  %v3378_v14 = vand.u32 2147483648, %v14071_v55  ;;  %v3399_v55 = vsub.f32 1.0, %v3398_v44  ;;  %v3001_v3 = vand.u32 2147483647, %v14204_v15 }
 0x2ce   : > { %4147 = vmatmul.f32.gmra.mxu1 %v20162_v7  ;;  %1202 = vmatmul.f32.gmra.mxu2 %v10486_v60  ;;  %v14738_v7 = vpop.eup %9523  ;;  %v8780_v60 = vmul.f32 -1.442695, %v1356_v35  ;;  %v3375_v35 = vsel %vm14748_vm0, %v14161_v34, %v14716_v59  ;;  %v14776_v59 = vsel %vm14734_vm13, %v2974_v17, %v2970_v50  ;;  %v986_v46 = vadd.f32 %v14608_v30, %v777_v29 }
 0x2cf   : > { %1411 = vmatmul.f32.gmra.mxu3 %v10487_v54  ;;  %v8809_v32 = vmul.f32 -1.442695, %v983_v43  ;;  %v9526_v54 = vpop.eup %9525  ;;  %v14765_v43 = vpop.f32.mrf.mxu2  ;;  %v3379_v11 = vor.u32 1.1754944e-38, %v3378_v14  ;;  %v3428_v50 = vmul.f32 %v14291_v40, %v14191_v33  ;;  %v3053_v17 = vmul.f32 %v14459_v51, %v14356_v24 }
 0x2d0   : > { %v9528_v34 = vpop.eup %9527  ;;  %9533 = vpow2.f32 %v8780_v60  ;;  %v14792_v8 = vadd.f32 1.0, %v9526_v54  ;;  %v3400_v20 = vmul.f32 %v14220_v26, %v3399_v55  ;;  %v3000_v30 = vsel %vm14782_vm3, %v14304_v47, %v2996_v28 }
 0x2d1   : > { %9535 = vpow2.f32 %v8809_v32  ;;  %v14797_v15 = vadd.f32 1.0, %v9528_v34  ;;  %v3004_v29 = vor.u32 1.1754944e-38, %v3003_v45  ;;  %v3025_v14 = vmul.f32 %v14386_v2, %v3024_v36  ;;  %v14810_v55 = vpop.eup %9529 }
 0x2d2   : > { %v14752_v22 = vpop.f32.mrf.mxu0  ;;  %v1359_v60 = vadd.f32 %v14674_v0, %v1150_v25  ;;  %vm14804_vm4 = vcmp.eq.f32.partialorder %v3001_v3, 8.507059e+37  ;;  %v3406_v54 = vand.u32 2147483647, %v14128_v58  ;;  %20180 = vst [vmem:[#allocation31_spill] sm:$0xff] %v14810_v55  ;;  %v8811_v34 = vmul.f32 -1.442695, %v986_v46  ;;  %v14814_v28 = vpop.eup %9531 }
 0x2d3   : > { %v14754_v9 = vpop.f32.mrf.mxu1  ;;  %20177 = vst [vmem:[#allocation52_spill] sm:$0xff] %v14797_v15  ;;  %vm3027_vm5 = vweird.f32 %v14293_v4  ;;  %vm3028_vm1 = vweird.f32 %v14386_v2  ;;  %v3429_v47 = vsub.f32 1.0, %v3428_v50  ;;  %v3054_v36 = vsub.f32 1.0, %v3053_v17  ;;  %v14876_v55 = vld [vmem:[#allocation10] ss:$0 sm:$0xff] }
 0x2d4   : > { %v3401_v25 = vadd.f32 %v14220_v26, %v3400_v20  ;;  %vm3402_vm6 = vweird.f32 %v14128_v58  ;;  %vm3403_vm7 = vweird.f32 %v14220_v26  ;;  %9537 = vrcp.f32 %v14797_v15  ;;  %vm14845_vm8 = vmor %vm3027_vm5, %vm3028_vm1 }
 0x2d5   : > { %3941 = vmatmul.f32.gmra.mxu0 %v20175_v16  ;;  %v3408_v16 = vand.u32 2147483648, %v14128_v58  ;;  %v14827_v46 = vadd.f32 %v14386_v2, %v3025_v14  ;;  %v14832_v50 = vsel %vm14760_vm2, %v3379_v11, %v3375_v35  ;;  %v780_v20 = vadd.f32 %v14679_v31, %v11186_v53  ;;  %v20187_v31 = vld [vmem:[#allocation32_spill] sm:$0xff]  ;;  %vm14861_vm10 = vmor %vm3402_vm6, %vm3403_vm7 }
 0x2d6   : > { %4150 = vmatmul.f32.gmra.mxu1 %v20176_v49  ;;  %v9534_v44 = vpop.eup %9533  ;;  %v3033_v49 = vand.u32 2147483648, %v14293_v4  ;;  %20181 = vst [vmem:[#allocation54_spill] sm:$0xff] %v14832_v50  ;;  %9539 = vrcp.f32 %v14792_v8  ;;  %v14839_v15 = vsel %vm14804_vm4, %v3004_v29, %v3000_v30  ;;  %vm14849_vm9 = vcmp.eq.f32.partialorder %v3406_v54, 8.507059e+37  ;;  %v14855_v30 = vpop.f32.mrf.mxu3 }
 0x2d7   : > { %v14824_v3 = vpop.f32.mrf.mxu2  ;;  %v9536_v17 = vpop.eup %9535  ;;  %20182 = vst [vmem:[#allocation78_spill] sm:$0xff] %v14839_v15  ;;  %9541 = vpow2.f32 %v8811_v34  ;;  %v8782_v11 = vmul.f32 -1.442695, %v1359_v60  ;;  %v3409_v32 = vor.u32 1.1754944e-38, %v3408_v16  ;;  %v3430_v54 = vmul.f32 %v14291_v40, %v3429_v47 }
 0x2d8   : > { %v3031_v34 = vand.u32 2147483647, %v14293_v4  ;;  %v3405_v60 = vsel %vm14861_vm10, %v14220_v26, %v3401_v25  ;;  %vm3432_vm11 = vweird.f32 %v14191_v33  ;;  %v14874_v58 = vadd.f32 1.0, %v9534_v44 }
 0x2d9   : > { %v3030_v16 = vsel %vm14845_vm8, %v14386_v2, %v14827_v46  ;;  %v3034_v4 = vor.u32 1.1754944e-38, %v3033_v49  ;;  %v989_v47 = vadd.f32 %v14681_v48, %v780_v20  ;;  %vm3057_vm12 = vweird.f32 %v14356_v24 }
 0x2da   : > { %v14816_v45 = vpop.f32.mrf.mxu0  ;;  %vm3058_vm13 = vweird.f32 %v14459_v51  ;;  %vm3433_vm14 = vweird.f32 %v14291_v40  ;;  %v14886_v26 = vpop.eup %9537  ;;  %9543 = vpow2.f32 %v8782_v11  ;;  %v3083_v25 = vmul.f32 %v14525_v52, %v14434_v10 }
 0x2db   : > { %v14818_v0 = vpop.f32.mrf.mxu1  ;;  %20192 = vst [vmem:[#allocation56_spill] sm:$0xff] %v14886_v26  ;;  %v3431_v44 = vadd.f32 %v14291_v40, %v3430_v54  ;;  %v783_v48 = vadd.f32 %v14752_v22, %v11186_v53  ;;  %vm14896_vm15 = vcmp.eq.f32.partialorder %v3031_v34, 8.507059e+37  ;;  %v3061_v14 = vand.u32 2147483647, %v14356_v24  ;;  %vm14909_vm0 = vmor %vm3057_vm12, %vm3058_vm13 }
 0x2dc   : > { %v14892_v2 = vpop.eup %9539  ;;  %v14915_v54 = vsel %vm14849_vm9, %v3409_v32, %v3405_v60  ;;  %v3438_v34 = vand.u32 2147483648, %v14191_v33  ;;  %v1153_v50 = vadd.f32 %v14765_v43, %v11393_v41  ;;  %vm14927_vm2 = vmor %vm3432_vm11, %vm3433_vm14  ;;  %v3436_v35 = vand.u32 2147483647, %v14191_v33  ;;  %v20200_v60 = vld [vmem:[#allocation33_spill] sm:$0xff] }
 0x2dd   : > { %3944 = vmatmul.f32.gmra.mxu0 %v20187_v31  ;;  %v3055_v31 = vmul.f32 %v14459_v51, %v3054_v36  ;;  %v3063_v36 = vand.u32 2147483648, %v14356_v24  ;;  %v9542_v11 = vpop.eup %9541  ;;  %20197 = vst [vmem:[#allocation79_spill] sm:$0xff] %v14915_v54  ;;  %v20201_v54 = vld [vmem:[#allocation60_spill] sm:$0xff]  ;;  %v3435_v43 = vsel %vm14927_vm2, %v14291_v40, %v3431_v44  ;;  %v992_v21 = vadd.f32 %v14754_v9, %v783_v48 }
 0x2de   : > { %4153 = vmatmul.f32.gmra.mxu1 %v20188_v18  ;;  %v14872_v18 = vadd.f32 1.0, %v9536_v17  ;;  %v14937_v56 = vadd.f32 1.0, %v9542_v11  ;;  %vm3062_vm3 = vcmp.eq.f32.partialorder %v3061_v14, 8.507059e+37  ;;  %v1362_v40 = vadd.f32 %v14767_v5, %v1153_v50 }
 0x2df   : > { %v3056_v20 = vadd.f32 %v14459_v51, %v3055_v31  ;;  %v14903_v26 = vpop.f32.mrf.mxu2  ;;  %v3458_v31 = vmul.f32 %v14370_v62, %v14284_v12  ;;  %v14949_v44 = vsel %vm14896_vm15, %v3034_v4, %v3030_v16  ;;  %vm3437_vm4 = vcmp.eq.f32.partialorder %v3436_v35, 8.507059e+37 }
 0x2e0   : > { %20191 = vst [vmem:[#allocation32_spill] sm:$0xff] %v14872_v18  ;;  %9545 = vrcp.f32 %v14872_v18  ;;  %v3064_v18 = vor.u32 1.1754944e-38, %v3063_v36  ;;  %v9544_v33 = vpop.eup %9543  ;;  %v3439_v36 = vor.u32 1.1754944e-38, %v3438_v34  ;;  %v8815_v14 = vmul.f32 -1.442695, %v992_v21  ;;  %v20206_v34 = vld [vmem:[#allocation62_spill] sm:$0xff] }
 0x2e1   : > { %20202 = vst [vmem:[#allocation33_spill] sm:$0xff] %v14937_v56  ;;  %v3060_v15 = vsel %vm14909_vm0, %v14459_v51, %v3056_v20  ;;  %9547 = vrcp.f32 %v14874_v58  ;;  %v14959_v11 = vadd.f32 1.0, %v9544_v33  ;;  %v3113_v16 = vmul.f32 %v14612_v39, %v14507_v6 }
 0x2e2   : > { %v3900_v46 = vpop.f32.mrf.mxu0  ;;  %v14951_v9 = vsel %vm3062_vm3, %v3064_v18, %v3060_v15  ;;  %v14954_v48 = vsel %vm3437_vm4, %v3439_v36, %v3435_v43  ;;  %vm3087_vm5 = vweird.f32 %v14434_v10  ;;  %vm3088_vm1 = vweird.f32 %v14525_v52  ;;  %v20210_v43 = vld [vmem:[#allocation26_spill] sm:$0xff] }
 0x2e3   : > { %v4109_v49 = vpop.f32.mrf.mxu1  ;;  %v3901_v29 = vadd.f32 %v14876_v55, %v3900_v46  ;;  %v8813_v46 = vmul.f32 -1.442695, %v989_v47  ;;  %v3084_v47 = vsub.f32 1.0, %v3083_v25  ;;  %v3459_v25 = vsub.f32 1.0, %v3458_v31  ;;  %20203 = vst [vmem:[#allocation60_spill] sm:$0xff] %v14954_v48  ;;  %vm14984_vm8 = vmor %vm3087_vm5, %vm3088_vm1 }
 0x2e4   : > { %v786_v18 = vadd.f32 %v14816_v45, %v11186_v53  ;;  %v8784_v17 = vmul.f32 -1.442695, %v1362_v40  ;;  %vm3462_vm6 = vweird.f32 %v14284_v12  ;;  %vm3463_vm7 = vweird.f32 %v14370_v62 }
 0x2e5   : > { %v4110_v32 = vadd.f32 %v4109_v49, %v3901_v29  ;;  %3947 = vmatmul.f32.gmra.mxu0 %v20200_v60  ;;  %v14944_v29 = vpop.f32.mrf.mxu3  ;;  %9549 = vpow2.f32 %v8813_v46  ;;  %v3085_v51 = vmul.f32 %v14525_v52, %v3084_v47  ;;  %v3460_v15 = vmul.f32 %v14370_v62, %v3459_v25  ;;  %v20209_v47 = vld [vmem:[#allocation42_spill] sm:$0xff]  ;;  %vm15018_vm10 = vmor %vm3462_vm6, %vm3463_vm7 }
 0x2e6   : > { %4156 = vmatmul.f32.gmra.mxu1 %v20201_v54  ;;  %v14956_v20 = vpop.eup %9545  ;;  %v20205_v54 = vld [vmem:[#allocation35_spill] sm:$0xff]  ;;  %v3093_v24 = vand.u32 2147483648, %v14434_v10  ;;  %v3466_v53 = vand.u32 2147483647, %v14284_v12  ;;  %v3114_v60 = vsub.f32 1.0, %v3113_v16  ;;  %v3488_v33 = vmul.f32 %v20210_v43, %v20209_v47 }
 0x2e7   : > { %v8819_v49 = vmul.f32 -1.442695, %v4110_v32  ;;  %20204 = vst [vmem:[#allocation80_spill] sm:$0xff] %v14956_v20  ;;  %v14971_v21 = vpop.eup %9547  ;;  %v14975_v31 = vpop.f32.mrf.mxu2  ;;  %v3086_v46 = vadd.f32 %v14525_v52, %v3085_v51  ;;  %v3091_v32 = vand.u32 2147483647, %v14434_v10  ;;  %v3461_v25 = vadd.f32 %v14370_v62, %v3460_v15 }
 0x2e8   : > { %v3468_v40 = vand.u32 2147483648, %v14284_v12  ;;  %v1156_v10 = vadd.f32 %v14824_v3, %v11393_v41  ;;  %v3094_v15 = vor.u32 1.1754944e-38, %v3093_v24  ;;  %v3115_v3 = vmul.f32 %v14612_v39, %v3114_v60  ;;  %v20220_v60 = vld [vmem:[#allocation65_spill] sm:$0xff] }
 0x2e9   : > { %9551 = vpow2.f32 %v8819_v49  ;;  %vm15009_vm9 = vcmp.eq.f32.partialorder %v3091_v32, 8.507059e+37  ;;  %vm15026_vm11 = vcmp.eq.f32.partialorder %v3466_v53, 8.507059e+37  ;;  %vm3117_vm12 = vweird.f32 %v14507_v6  ;;  %v20219_v53 = vld [vmem:[#allocation38_spill] sm:$0xff] }
 0x2ea   : > { %9553 = vrcp.f32 %v14937_v56  ;;  %v3903_v5 = vpop.f32.mrf.mxu0  ;;  %v3469_v24 = vor.u32 1.1754944e-38, %v3468_v40  ;;  %v1365_v12 = vadd.f32 %v14855_v30, %v1156_v10  ;;  %vm3118_vm13 = vweird.f32 %v14612_v39 }
 0x2eb   : > { %v4112_v50 = vpop.f32.mrf.mxu1  ;;  %v3904_v4 = vadd.f32 %v14876_v55, %v3903_v5  ;;  %v9550_v45 = vpop.eup %9549  ;;  %9555 = vpow2.f32 %v8815_v14  ;;  %v995_v14 = vadd.f32 %v14818_v0, %v786_v18  ;;  %vm3492_vm14 = vweird.f32 %v20209_v47  ;;  %vm15059_vm15 = vmor %vm3117_vm12, %vm3118_vm13 }
 0x2ec   : > { %9557 = vrcp.f32 %v14959_v11  ;;  %v3123_v30 = vand.u32 2147483648, %v14507_v6  ;;  %vm3493_vm0 = vweird.f32 %v20210_v43 }
 0x2ed   : > { %v4113_v22 = vadd.f32 %v4112_v50, %v3904_v4  ;;  %3950 = vmatmul.f32.gmra.mxu0 %v20205_v54  ;;  %9559 = vpow2.f32 %v8784_v17  ;;  %v15001_v50 = vadd.f32 1.0, %v9550_v45  ;;  %v15003_v16 = vpop.f32.mrf.mxu3  ;;  %v3090_v4 = vsel %vm14984_vm8, %v14525_v52, %v3086_v46  ;;  %vm15096_vm5 = vmor %vm3492_vm14, %vm3493_vm0 }
 0x2ee   : > { %4159 = vmatmul.f32.gmra.mxu1 %v20206_v34  ;;  %v3489_v52 = vsub.f32 1.0, %v3488_v33  ;;  %v3465_v34 = vsel %vm15018_vm10, %v14370_v62, %v3461_v25  ;;  %v8817_v35 = vmul.f32 -1.442695, %v995_v14  ;;  %v15041_v33 = vsel %vm15009_vm9, %v3094_v15, %v3090_v4 }
 0x2ef   : > { %v9552_v49 = vpop.eup %9551  ;;  %v8820_v36 = vmul.f32 -1.442695, %v4113_v22  ;;  %20212 = vst [vmem:[#allocation62_spill] sm:$0xff] %v15001_v50  ;;  %v15047_v25 = vsel %vm15026_vm11, %v3469_v24, %v3465_v34  ;;  %v3496_v14 = vand.u32 2147483647, %v20209_v47  ;;  %v15053_v18 = vpop.f32.mrf.mxu2  ;;  %v3124_v46 = vor.u32 1.1754944e-38, %v3123_v30 }
 0x2f0   : > { %v14994_v51 = vpop.eup %9553  ;;  %v14997_v5 = vadd.f32 1.0, %v9552_v49  ;;  %20221 = vst [vmem:[#allocation42_spill] sm:$0xff] %v15047_v25  ;;  %v3490_v40 = vmul.f32 %v20210_v43, %v3489_v52  ;;  %v3121_v15 = vand.u32 2147483647, %v14507_v6  ;;  %v8786_v52 = vmul.f32 -1.442695, %v1365_v12 }
 0x2f1   : > { %20211 = vst [vmem:[#allocation35_spill] sm:$0xff] %v14994_v51  ;;  %9561 = vpow2.f32 %v8820_v36  ;;  %v9556_v45 = vpop.eup %9555  ;;  %v3116_v36 = vadd.f32 %v14612_v39, %v3115_v3  ;;  %v3498_v24 = vand.u32 2147483648, %v20209_v47  ;;  %vm15085_vm3 = vcmp.eq.f32.partialorder %v3496_v14, 8.507059e+37 }
 0x2f2   : > { %9563 = vrcp.f32 %v14997_v5  ;;  %v3906_v22 = vpop.f32.mrf.mxu0  ;;  %v15034_v32 = vpop.eup %9557  ;;  %v3491_v12 = vadd.f32 %v20210_v43, %v3490_v40  ;;  %vm3122_vm2 = vcmp.eq.f32.partialorder %v3121_v15, 8.507059e+37  ;;  %v20229_v40 = vld [vmem:[#allocation68_spill] sm:$0xff]  ;;  %vm4562_vm1 = vweird.f32 %v14997_v5 }
 0x2f3   : > { %v4115_v0 = vpop.f32.mrf.mxu1  ;;  %v3907_v54 = vadd.f32 %v14876_v55, %v3906_v22  ;;  %9565 = vrcp.f32 %v15001_v50  ;;  %v9560_v49 = vpop.eup %9559  ;;  %v15051_v22 = vadd.f32 1.0, %v9556_v45  ;;  %v3153_v15 = vand.u32 2147483648, %v14578_v37 }
 0x2f4   : > { %9567 = vpow2.f32 %v8817_v35  ;;  %v15071_v45 = vadd.f32 1.0, %v9560_v49  ;;  %v3120_v35 = vsel %vm15059_vm15, %v14612_v39, %v3116_v36  ;;  %v4568_v49 = vand.u32 2147483648, %v14997_v5  ;;  %v20228_v36 = vld [vmem:[#allocation40_spill] sm:$0xff] }
 0x2f5   : > { %v4116_v62 = vadd.f32 %v4115_v0, %v3907_v54  ;;  %3953 = vmatmul.f32.gmra.mxu0 %v20219_v53  ;;  %20222 = vst [vmem:[#allocation26_spill] sm:$0xff] %v15051_v22  ;;  %v3143_v54 = vmul.f32 %v14685_v61, %v14578_v37  ;;  %vm3147_vm8 = vweird.f32 %v14578_v37  ;;  %vm3148_vm9 = vweird.f32 %v14685_v61 }
 0x2f6   : > { %4162 = vmatmul.f32.gmra.mxu1 %v20220_v60  ;;  %vm15143_vm11 = vmor %vm3147_vm8, %vm3148_vm9  ;;  %vm3523_vm0 = vweird.f32 %v14503_v42 }
 0x2f7   : > { %v9562_v10 = vpop.eup %9561  ;;  %v8821_v0 = vmul.f32 -1.442695, %v4116_v62 }
 0x2f8   : > { %v9564_v3 = vpop.eup %9563  ;;  %v15065_v17 = vadd.f32 1.0, %v9562_v10  ;;  %v15082_v10 = vpop.f32.mrf.mxu3 }
 0x2f9   : > { %9569 = vpow2.f32 %v8821_v0  ;;  %v4558_v34 = vmul.f32 %v9564_v3, %v14997_v5  ;;  %v15078_v53 = vpop.eup %9565  ;;  %v3144_v0 = vsub.f32 1.0, %v3143_v54  ;;  %vm4563_vm4 = vweird.f32 %v9564_v3 }
 0x2fa   : > { %9571 = vrcp.f32 %v15065_v17  ;;  %v3909_v6 = vpop.f32.mrf.mxu0  ;;  %20225 = vst [vmem:[#allocation38_spill] sm:$0xff] %v15078_v53  ;;  %v9568_v14 = vpop.eup %9567  ;;  %v3495_v54 = vsel %vm15096_vm5, %v20210_v43, %v3491_v12  ;;  %vm4564_vm6 = vmor %vm4562_vm1, %vm4563_vm4  ;;  %v4581_v50 = vand.u32 2147483647, %v15065_v17  ;;  %vm4577_vm12 = vweird.f32 %v15065_v17 }
 0x2fb   : > { %v4118_v62 = vpop.f32.mrf.mxu1  ;;  %9573 = vrcp.f32 %v15051_v22  ;;  %v3910_v60 = vadd.f32 %v14876_v55, %v3909_v6  ;;  %v4559_v30 = vsub.f32 1.0, %v4558_v34  ;;  %v4566_v34 = vand.u32 2147483647, %v14997_v5  ;;  %v15117_v12 = vpop.f32.mrf.mxu2 }
 0x2fc   : > { %9575 = vpow2.f32 %v8786_v52  ;;  %v15101_v52 = vsel %vm3122_vm2, %v3124_v46, %v3120_v35  ;;  %v3499_v6 = vor.u32 1.1754944e-38, %v3498_v24  ;;  %v4569_v46 = vor.u32 1.1754944e-38, %v4568_v49 }
 0x2fd   : > { %v4119_v39 = vadd.f32 %v4118_v62, %v3910_v60  ;;  %3956 = vmatmul.f32.gmra.mxu0 %v20228_v36  ;;  %v4560_v4 = vmul.f32 %v9564_v3, %v4559_v30  ;;  %9577 = vrcp.f32 %v15071_v45  ;;  %v1159_v60 = vadd.f32 %v14903_v26, %v11393_v41 }
 0x2fe   : > { %4165 = vmatmul.f32.gmra.mxu1 %v20229_v40  ;;  %v3145_v35 = vmul.f32 %v14685_v61, %v3144_v0  ;;  %vm4567_vm7 = vcmp.eq.f32.partialorder %v4566_v34, 8.507059e+37  ;;  %v15126_v34 = vsel %vm15085_vm3, %v3499_v6, %v3495_v54  ;;  %vm4582_vm15 = vcmp.eq.f32.partialorder %v4581_v50, 8.507059e+37 }
 0x2ff   : > { %v9570_v62 = vpop.eup %9569  ;;  %v8822_v30 = vmul.f32 -1.442695, %v4119_v39  ;;  %v4561_v47 = vadd.f32 %v9564_v3, %v4560_v4  ;;  %v1368_v49 = vadd.f32 %v14944_v29, %v1159_v60  ;;  %20233 = vst [vmem:[#allocation40_spill] sm:$0xff] %v15126_v34  ;;  %v20235_v60 = vld [vmem:[#allocation43_spill] sm:$0xff]  ;;  %v1162_v6 = vadd.f32 %v14975_v31, %v11393_v41 }
 0x300   : > { %v9572_v36 = vpop.eup %9571  ;;  %v15109_v40 = vadd.f32 1.0, %v9570_v62  ;;  %v15137_v54 = vpop.f32.mrf.mxu3  ;;  %vm3177_vm1 = vweird.f32 %v14655_v19 }
 0x301   : > { %v15114_v43 = vpop.eup %9573  ;;  %9579 = vpow2.f32 %v8822_v30  ;;  %v4565_v24 = vsel %vm4564_vm6, %v9564_v3, %v4561_v47  ;;  %v4573_v26 = vmul.f32 %v9572_v36, %v15065_v17  ;;  %v4583_v47 = vand.u32 2147483648, %v15065_v17 }
 0x302   : > { %20232 = vst [vmem:[#allocation65_spill] sm:$0xff] %v15114_v43  ;;  %v9576_v5 = vpop.eup %9575  ;;  %9581 = vrcp.f32 %v15109_v40  ;;  %v3912_v39 = vpop.f32.mrf.mxu0  ;;  %v4570_v62 = vsel %vm4567_vm7, %v4569_v46, %v4565_v24  ;;  %v3146_v46 = vadd.f32 %v14685_v61, %v3145_v35  ;;  %v3151_v24 = vand.u32 2147483647, %v14578_v37  ;;  %v20234_v43 = vld [vmem:[#allocation44_spill] sm:$0xff] }
 0x303   : > { %v4121_v4 = vpop.f32.mrf.mxu1  ;;  %v3913_v0 = vadd.f32 %v14876_v55, %v3912_v39  ;;  %5571 = vmatmul.f32.vlgmr.msrb.gmra.mxu2 %v4570_v62  ;;  %5780 = vmatmul.f32.vlgmr.msrb.gmra.mxu3 %v4570_v62  ;;  %v4574_v3 = vsub.f32 1.0, %v4573_v26  ;;  %v15128_v30 = vpop.eup %9577  ;;  %v20236_v39 = vld [vmem:[#allocation71_spill] sm:$0xff]  ;;  %vm4578_vm10 = vweird.f32 %v9572_v36  ;;  %v15147_v35 = vadd.f32 1.0, %v9568_v14 }
 0x304   : > { %v3173_v62 = vmul.f32 %v14738_v7, %v14655_v19  ;;  %vm4579_vm13 = vmor %vm4577_vm12, %vm4578_vm10  ;;  %v4584_v14 = vor.u32 1.1754944e-38, %v4583_v47  ;;  %vm15160_vm14 = vcmp.eq.f32.partialorder %v3151_v24, 8.507059e+37  ;;  %v15169_v24 = vpop.f32.mrf.mxu2  ;;  %vm3522_vm2 = vweird.f32 %v20234_v43 }
 0x305   : > { %v4122_v29 = vadd.f32 %v4121_v4, %v3913_v0  ;;  %3959 = vmatmul.f32.gmra.mxu0 %v20235_v60  ;;  %v4575_v26 = vmul.f32 %v9572_v36, %v4574_v3  ;;  %20239 = vst [vmem:[#allocation68_spill] sm:$0xff] %v15147_v35  ;;  %v3154_v4 = vor.u32 1.1754944e-38, %v3153_v15  ;;  %v3518_v0 = vmul.f32 %v14503_v42, %v20234_v43  ;;  %vm15230_vm10 = vmor %vm3522_vm2, %vm3523_vm0 }
 0x306   : > { %4168 = vmatmul.f32.gmra.mxu1 %v20236_v39  ;;  %v8788_v60 = vmul.f32 -1.442695, %v1368_v49  ;;  %v3150_v15 = vsel %vm15143_vm11, %v14685_v61, %v3146_v46  ;;  %v3174_v56 = vsub.f32 1.0, %v3173_v62  ;;  %v20242_v62 = vld [vmem:[#allocation45_spill] sm:$0xff]  ;;  %vm4592_vm4 = vweird.f32 %v15109_v40 }
 0x307   : > { %v9580_v3 = vpop.eup %9579  ;;  %v8823_v39 = vmul.f32 -1.442695, %v4122_v29  ;;  %v4576_v22 = vadd.f32 %v9572_v36, %v4575_v26  ;;  %v3519_v47 = vsub.f32 1.0, %v3518_v0  ;;  %v15178_v50 = vsel %vm15160_vm14, %v3154_v4, %v3150_v15  ;;  %v20243_v0 = vld [vmem:[#allocation73_spill] sm:$0xff] }
 0x308   : > { %v9582_v37 = vpop.eup %9581  ;;  %v15154_v53 = vadd.f32 1.0, %v9580_v3  ;;  %v1371_v15 = vadd.f32 %v15003_v16, %v1162_v6  ;;  %vm3178_vm6 = vweird.f32 %v14738_v7  ;;  %vm3207_vm0 = vweird.f32 %v14729_v1 }
 0x309   : > { %9583 = vpow2.f32 %v8823_v39  ;;  %v4580_v49 = vsel %vm4579_vm13, %v9572_v36, %v4576_v22  ;;  %v4588_v29 = vmul.f32 %v9582_v37, %v15109_v40  ;;  %v15173_v22 = vadd.f32 1.0, %v9576_v5  ;;  %vm15212_vm8 = vmor %vm3177_vm1, %vm3178_vm6 }
 0x30a   : > { %9585 = vrcp.f32 %v15154_v53  ;;  %v3915_v17 = vpop.f32.mrf.mxu0  ;;  %v4585_v3 = vsel %vm4582_vm15, %v4584_v14, %v4580_v49  ;;  %v4598_v36 = vand.u32 2147483648, %v15109_v40  ;;  %vm4593_vm3 = vweird.f32 %v9582_v37 }
 0x30b   : > { %v4124_v26 = vpop.f32.mrf.mxu1  ;;  %v3916_v61 = vadd.f32 %v14876_v55, %v3915_v17  ;;  %5574 = vmatmul.f32.gmra.mxu2 %v4585_v3  ;;  %5783 = vmatmul.f32.gmra.mxu3 %v4585_v3  ;;  %v4589_v46 = vsub.f32 1.0, %v4588_v29  ;;  %9587 = vrcp.f32 %v15147_v35  ;;  %v4596_v14 = vand.u32 2147483647, %v15109_v40  ;;  %vm4594_vm5 = vmor %vm4592_vm4, %vm4593_vm3 }
 0x30c   : > { %9589 = vpow2.f32 %v8788_v60  ;;  %v3175_v5 = vmul.f32 %v14738_v7, %v3174_v56  ;;  %v3183_v49 = vand.u32 2147483648, %v14655_v19  ;;  %v3520_v51 = vmul.f32 %v14503_v42, %v3519_v47 }
 0x30d   : > { %v4125_v31 = vadd.f32 %v4124_v26, %v3916_v61  ;;  %3962 = vmatmul.f32.gmra.mxu0 %v20242_v62  ;;  %v4590_v39 = vmul.f32 %v9582_v37, %v4589_v46  ;;  %v15189_v26 = vpop.f32.mrf.mxu3  ;;  %v4599_v60 = vor.u32 1.1754944e-38, %v4598_v36  ;;  %vm4597_vm7 = vcmp.eq.f32.partialorder %v4596_v14, 8.507059e+37 }
 0x30e   : > { %4171 = vmatmul.f32.gmra.mxu1 %v20243_v0  ;;  %v15204_v36 = vadd.f32 %v14503_v42, %v3520_v51  ;;  %v4613_v51 = vand.u32 2147483648, %v15154_v53  ;;  %vm4607_vm11 = vweird.f32 %v15154_v53  ;;  %vm3208_vm4 = vweird.f32 %v14814_v28 }
 0x30f   : > { %v9584_v4 = vpop.eup %9583  ;;  %v8824_v29 = vmul.f32 -1.442695, %v4125_v31  ;;  %v4591_v17 = vadd.f32 %v9582_v37, %v4590_v39  ;;  %v3176_v31 = vadd.f32 %v14738_v7, %v3175_v5  ;;  %v3181_v39 = vand.u32 2147483647, %v14655_v19 }
 0x310   : > { %v15191_v3 = vpop.eup %9585  ;;  %v15193_v61 = vadd.f32 1.0, %v9584_v4  ;;  %v8790_v5 = vmul.f32 -1.442695, %v1371_v15  ;;  %v3184_v4 = vor.u32 1.1754944e-38, %v3183_v49  ;;  %v1165_v49 = vadd.f32 %v15053_v18, %v11393_v41 }
 0x311   : > { %9591 = vpow2.f32 %v8824_v29  ;;  %v4595_v56 = vsel %vm4594_vm5, %v9582_v37, %v4591_v17  ;;  %v4603_v16 = vmul.f32 %v15191_v3, %v15154_v53  ;;  %v15199_v47 = vpop.eup %9587  ;;  %v3528_v29 = vand.u32 2147483648, %v20234_v43 }
 0x312   : > { %20244 = vst [vmem:[#allocation44_spill] sm:$0xff] %v15199_v47  ;;  %9593 = vrcp.f32 %v15193_v61  ;;  %v3918_v40 = vpop.f32.mrf.mxu0  ;;  %v4600_v46 = vsel %vm4597_vm7, %v4599_v60, %v4595_v56  ;;  %v9590_v14 = vpop.eup %9589  ;;  %v20247_v60 = vld [vmem:[#allocation48_spill] sm:$0xff]  ;;  %vm4608_vm9 = vweird.f32 %v15191_v3  ;;  %v3180_v15 = vsel %vm15212_vm8, %v14738_v7, %v3176_v31  ;;  %vm15342_vm7 = vmor %vm3207_vm0, %vm3208_vm4 }
 0x313   : > { %v4127_v6 = vpop.f32.mrf.mxu1  ;;  %9595 = vrcp.f32 %v15173_v22  ;;  %v3919_v37 = vadd.f32 %v14876_v55, %v3918_v40  ;;  %5577 = vmatmul.f32.gmra.mxu2 %v4600_v46  ;;  %5786 = vmatmul.f32.gmra.mxu3 %v4600_v46  ;;  %v4604_v62 = vsub.f32 1.0, %v4603_v16  ;;  %v20248_v56 = vld [vmem:[#allocation76_spill] sm:$0xff]  ;;  %v4611_v40 = vand.u32 2147483647, %v15154_v53  ;;  %v15224_v46 = vpop.f32.mrf.mxu2  ;;  %vm4609_vm13 = vmor %vm4607_vm11, %vm4608_vm9 }
 0x314   : > { %vm15247_vm12 = vcmp.eq.f32.partialorder %v3181_v39, 8.507059e+37  ;;  %v15253_v7 = vadd.f32 1.0, %v9590_v14  ;;  %9597 = vpow2.f32 %v8790_v5  ;;  %v1374_v14 = vadd.f32 %v15082_v10, %v1165_v49 }
 0x315   : > { %v4128_v17 = vadd.f32 %v4127_v6, %v3919_v37  ;;  %3965 = vmatmul.f32.gmra.mxu0 %v20247_v60  ;;  %v4605_v16 = vmul.f32 %v15191_v3, %v4604_v62  ;;  %v3203_v6 = vmul.f32 %v14814_v28, %v14729_v1  ;;  %v4614_v37 = vor.u32 1.1754944e-38, %v4613_v51  ;;  %v15262_v39 = vpop.f32.mrf.mxu3 }
 0x316   : > { %4174 = vmatmul.f32.gmra.mxu1 %v20248_v56  ;;  %vm4612_vm14 = vcmp.eq.f32.partialorder %v4611_v40, 8.507059e+37  ;;  %v1168_v51 = vadd.f32 %v15117_v12, %v11393_v41  ;;  %v15271_v40 = vor.u32 1.1754944e-38, %v3528_v29  ;;  %v4628_v10 = vand.u32 2147483648, %v15193_v61 }
 0x317   : > { %v9592_v62 = vpop.eup %9591  ;;  %v8825_v60 = vmul.f32 -1.442695, %v4128_v17  ;;  %v4606_v56 = vadd.f32 %v15191_v3, %v4605_v16  ;;  %v3204_v35 = vsub.f32 1.0, %v3203_v6  ;;  %v15277_v49 = vsel %vm15247_vm12, %v3184_v4, %v3180_v15 }
 0x318   : > { %v15251_v0 = vpop.eup %9593  ;;  %v15255_v31 = vadd.f32 1.0, %v9592_v62  ;;  %20253 = vst [vmem:[#allocation43_spill] sm:$0xff] %v15277_v49  ;;  %v15281_v6 = vmul.f32 %v14594_v63, %v14505_v13  ;;  %v4626_v29 = vand.u32 2147483647, %v15193_v61  ;;  %v3213_v15 = vand.u32 2147483648, %v14729_v1  ;;  %v20261_v49 = vld [vmem:[#allocation53_spill] sm:$0xff] }
 0x319   : > { %v15259_v17 = vpop.eup %9595  ;;  %9599 = vpow2.f32 %v8825_v60  ;;  %v4610_v53 = vsel %vm4609_vm13, %v15191_v3, %v4606_v56  ;;  %v4618_v16 = vmul.f32 %v15251_v0, %v15193_v61  ;;  %v20255_v56 = vld [vmem:[#allocation67_spill] sm:$0xff]  ;;  %vm4623_vm15 = vweird.f32 %v15251_v0 }
 0x31a   : > { %9601 = vrcp.f32 %v15255_v31  ;;  %v3921_v5 = vpop.f32.mrf.mxu0  ;;  %v4615_v47 = vsel %vm4612_vm14, %v4614_v37, %v4610_v53  ;;  %v20254_v37 = vld [vmem:[#allocation50_spill] sm:$0xff]  ;;  %v9598_v53 = vpop.eup %9597  ;;  %v3205_v4 = vmul.f32 %v14814_v28, %v3204_v35  ;;  %vm4622_vm2 = vweird.f32 %v15193_v61 }
 0x31b   : > { %v4130_v62 = vpop.f32.mrf.mxu1  ;;  %v3922_v60 = vadd.f32 %v14876_v55, %v3921_v5  ;;  %5580 = vmatmul.f32.gmra.mxu2 %v4615_v47  ;;  %5789 = vmatmul.f32.gmra.mxu3 %v4615_v47  ;;  %v4619_v3 = vsub.f32 1.0, %v4618_v16  ;;  %9603 = vrcp.f32 %v15253_v7  ;;  %v8792_v16 = vmul.f32 -1.442695, %v1374_v14  ;;  %vm15302_vm3 = vmor %vm4622_vm2, %vm4623_vm15 }
 0x31c   : > { %v1377_v5 = vadd.f32 %v15137_v54, %v1168_v51  ;;  %v4629_v14 = vor.u32 1.1754944e-38, %v4628_v10  ;;  %v3211_v54 = vand.u32 2147483647, %v14729_v1  ;;  %vm4627_vm5 = vcmp.eq.f32.partialorder %v4626_v29, 8.507059e+37 }
 0x31d   : > { %v4131_v12 = vadd.f32 %v4130_v62, %v3922_v60  ;;  %3968 = vmatmul.f32.gmra.mxu0 %v20254_v37  ;;  %v4620_v47 = vmul.f32 %v15251_v0, %v4619_v3  ;;  %v15294_v3 = vpop.f32.mrf.mxu2  ;;  %v3206_v34 = vadd.f32 %v14814_v28, %v3205_v4  ;;  %v3214_v25 = vor.u32 1.1754944e-38, %v3213_v15  ;;  %v20271_v15 = vld [vmem:[#allocation21_spill] sm:$0xff] }
 0x31e   : > { %4177 = vmatmul.f32.gmra.mxu1 %v20255_v56  ;;  %v8794_v35 = vmul.f32 -1.442695, %v1377_v5  ;;  %vm15348_vm8 = vcmp.eq.f32.partialorder %v3211_v54, 8.507059e+37  ;;  %vm4637_vm9 = vweird.f32 %v15255_v31  ;;  %vm3237_vm13 = vweird.f32 %v14792_v8 }
 0x31f   : > { %v9600_v18 = vpop.eup %9599  ;;  %v8826_v62 = vmul.f32 -1.442695, %v4131_v12  ;;  %v4621_v60 = vadd.f32 %v15251_v0, %v4620_v47  ;;  %v20258_v12 = vand.u32 2147483647, %v20234_v43  ;;  %v3243_v47 = vand.u32 2147483648, %v14792_v8 }
 0x320   : > { %v15296_v37 = vpop.eup %9601  ;;  %v15298_v56 = vadd.f32 1.0, %v9600_v18  ;;  %v15321_v18 = vadd.f32 1.0, %v9598_v53  ;;  %v4643_v53 = vand.u32 2147483648, %v15255_v31  ;;  %vm3238_vm14 = vweird.f32 %v14892_v2 }
 0x321   : > { %9605 = vpow2.f32 %v8826_v62  ;;  %v4625_v61 = vsel %vm15302_vm3, %v15251_v0, %v4621_v60  ;;  %v4633_v51 = vmul.f32 %v15296_v37, %v15255_v31  ;;  %vm15315_vm1 = vcmp.eq.f32.partialorder %v20258_v12, 8.507059e+37  ;;  %v15319_v10 = vpop.eup %9603  ;;  %v15327_v12 = vpop.f32.mrf.mxu3  ;;  %vm15417_vm3 = vmor %vm3237_vm13, %vm3238_vm14 }
 0x322   : > { %9607 = vrcp.f32 %v15298_v56  ;;  %v1171_v62 = vadd.f32 %v15169_v24, %v11393_v41  ;;  %v3924_v0 = vpop.f32.mrf.mxu0  ;;  %v4630_v60 = vsel %vm4627_vm5, %v4629_v14, %v4625_v61  ;;  %v3233_v24 = vmul.f32 %v14892_v2, %v14792_v8 }
 0x323   : > { %v4133_v29 = vpop.f32.mrf.mxu1  ;;  %9609 = vpow2.f32 %v8792_v16  ;;  %v3925_v43 = vadd.f32 %v14876_v55, %v3924_v0  ;;  %5583 = vmatmul.f32.gmra.mxu2 %v4630_v60  ;;  %5792 = vmatmul.f32.gmra.mxu3 %v4630_v60  ;;  %v4634_v20 = vsub.f32 1.0, %v4633_v51  ;;  %v20262_v16 = vld [vmem:[#allocation20_spill] sm:$0xff]  ;;  %vm4638_vm6 = vweird.f32 %v15296_v37 }
 0x324   : > { %v4641_v14 = vand.u32 2147483647, %v15255_v31  ;;  %9611 = vrcp.f32 %v15321_v18  ;;  %vm4639_vm11 = vmor %vm4637_vm9, %vm4638_vm6  ;;  %v4644_v60 = vor.u32 1.1754944e-38, %v4643_v53  ;;  %v3234_v54 = vsub.f32 1.0, %v3233_v24 }
 0x325   : > { %v4134_v48 = vadd.f32 %v4133_v29, %v3925_v43  ;;  %3971 = vmatmul.f32.gmra.mxu0 %v20261_v49  ;;  %v4635_v5 = vmul.f32 %v15296_v37, %v4634_v20  ;;  %v1380_v49 = vadd.f32 %v15189_v26, %v1171_v62  ;;  %v3549_v20 = vsub.f32 1.0, %v15281_v6 }
 0x326   : > { %4180 = vmatmul.f32.gmra.mxu1 %v20262_v16  ;;  %9613 = vpow2.f32 %v8794_v35  ;;  %v3210_v26 = vsel %vm15342_vm7, %v14814_v28, %v3206_v34  ;;  %vm4642_vm12 = vcmp.eq.f32.partialorder %v4641_v14, 8.507059e+37  ;;  %v20267_v28 = vsel %vm15230_vm10, %v14503_v42, %v15204_v36 }
 0x327   : > { %v9606_v61 = vpop.eup %9605  ;;  %v8827_v51 = vmul.f32 -1.442695, %v4134_v48  ;;  %v4636_v0 = vadd.f32 %v15296_v37, %v4635_v5  ;;  %v15361_v48 = vpop.f32.mrf.mxu2  ;;  %v8796_v31 = vmul.f32 -1.442695, %v1380_v49  ;;  %v15373_v34 = vsel %vm15315_vm1, %v15271_v40, %v20267_v28 }
 0x328   : > { %v9608_v1 = vpop.eup %9607  ;;  %v15355_v29 = vadd.f32 1.0, %v9606_v61  ;;  %20268 = vst [vmem:[#allocation71_spill] sm:$0xff] %v15373_v34  ;;  %v15378_v5 = vsel %vm15348_vm8, %v3214_v25, %v3210_v26  ;;  %v15381_v14 = vmul.f32 %v14594_v63, %v3549_v20  ;;  %v4658_v36 = vand.u32 2147483648, %v15298_v56  ;;  %v20270_v61 = vld [vmem:[#allocation55_spill] sm:$0xff] }
 0x329   : > { %v9610_v62 = vpop.eup %9609  ;;  %9615 = vpow2.f32 %v8827_v51  ;;  %v4640_v6 = vsel %vm4639_vm11, %v15296_v37, %v4636_v0  ;;  %v4648_v35 = vmul.f32 %v9608_v1, %v15298_v56  ;;  %20269 = vst [vmem:[#allocation45_spill] sm:$0xff] %v15378_v5  ;;  %v3235_v40 = vmul.f32 %v14892_v2, %v3234_v54  ;;  %v15392_v25 = vpop.f32.mrf.mxu3  ;;  %v20292_v5 = vld [vmem:[#allocation61_spill] sm:$0xff] }
 0x32a   : > { %9617 = vrcp.f32 %v15355_v29  ;;  %v3927_v43 = vpop.f32.mrf.mxu0  ;;  %v4645_v53 = vsel %vm4642_vm12, %v4644_v60, %v4640_v6  ;;  %v15383_v19 = vpop.eup %9611  ;;  %v15385_v42 = vadd.f32 1.0, %v9610_v62  ;;  %vm4653_vm10 = vweird.f32 %v9608_v1 }
 0x32b   : > { %v4136_v16 = vpop.f32.mrf.mxu1  ;;  %v3928_v37 = vadd.f32 %v14876_v55, %v3927_v43  ;;  %5586 = vmatmul.f32.gmra.mxu2 %v4645_v53  ;;  %5795 = vmatmul.f32.gmra.mxu3 %v4645_v53  ;;  %v4649_v24 = vsub.f32 1.0, %v4648_v35  ;;  %v4656_v51 = vand.u32 2147483647, %v15298_v56  ;;  %9619 = vpow2.f32 %v8796_v31 }
 0x32c   : > { %v9614_v4 = vpop.eup %9613  ;;  %v3263_v0 = vmul.f32 %v14971_v21, %v14874_v58  ;;  %v1174_v26 = vadd.f32 %v15224_v46, %v11393_v41  ;;  %vm4652_vm15 = vweird.f32 %v15298_v56  ;;  %v4659_v43 = vor.u32 1.1754944e-38, %v4658_v36 }
 0x32d   : > { %v4137_v49 = vadd.f32 %v4136_v16, %v3928_v37  ;;  %3974 = vmatmul.f32.gmra.mxu0 %v20270_v61  ;;  %v4650_v20 = vmul.f32 %v9608_v1, %v4649_v24  ;;  %v15404_v35 = vadd.f32 1.0, %v9614_v4  ;;  %vm4654_vm0 = vmor %vm4652_vm15, %vm4653_vm10  ;;  %v15409_v16 = vadd.f32 %v14892_v2, %v3235_v40 }
 0x32e   : > { %4183 = vmatmul.f32.gmra.mxu1 %v20271_v15  ;;  %vm4657_vm2 = vcmp.eq.f32.partialorder %v4656_v51, 8.507059e+37  ;;  %v3241_v36 = vand.u32 2147483647, %v14792_v8  ;;  %v1383_v40 = vadd.f32 %v15262_v39, %v1174_v26  ;;  %v3244_v51 = vor.u32 1.1754944e-38, %v3243_v47  ;;  %v20274_v39 = vld [vmem:[#allocation57_spill] sm:$0xff] }
 0x32f   : > { %v9616_v60 = vpop.eup %9615  ;;  %v8828_v54 = vmul.f32 -1.442695, %v4137_v49  ;;  %v4651_v62 = vadd.f32 %v9608_v1, %v4650_v20  ;;  %v15426_v49 = vpop.f32.mrf.mxu2  ;;  %v4673_v20 = vand.u32 2147483648, %v15355_v29  ;;  %v3240_v8 = vsel %vm15417_vm3, %v14892_v2, %v15409_v16 }
 0x330   : > { %v15402_v6 = vpop.eup %9617  ;;  %v15406_v31 = vadd.f32 1.0, %v9616_v60  ;;  %v4671_v26 = vand.u32 2147483647, %v15355_v29  ;;  %vm15441_vm5 = vcmp.eq.f32.partialorder %v3241_v36, 8.507059e+37  ;;  %vm3267_vm1 = vweird.f32 %v14874_v58 }
 0x331   : > { %9621 = vpow2.f32 %v8828_v54  ;;  %v4655_v53 = vsel %vm4654_vm0, %v9608_v1, %v4651_v62  ;;  %v4663_v46 = vmul.f32 %v15402_v6, %v15355_v29  ;;  %v3264_v1 = vsub.f32 1.0, %v3263_v0  ;;  %v9620_v15 = vpop.eup %9619 }
 0x332   : > { %9623 = vrcp.f32 %v15406_v31  ;;  %v3930_v28 = vpop.f32.mrf.mxu0  ;;  %v4660_v24 = vsel %vm4657_vm2, %v4659_v43, %v4655_v53  ;;  %vm4668_vm4 = vweird.f32 %v15402_v6  ;;  %v1177_v54 = vadd.f32 %v15294_v3, %v11393_v41  ;;  %v15447_v53 = vpop.f32.mrf.mxu3 }
 0x333   : > { %v4139_v37 = vpop.f32.mrf.mxu1  ;;  %9625 = vrcp.f32 %v15385_v42  ;;  %v3931_v4 = vadd.f32 %v14876_v55, %v3930_v28  ;;  %5589 = vmatmul.f32.gmra.mxu2 %v4660_v24  ;;  %5798 = vmatmul.f32.gmra.mxu3 %v4660_v24  ;;  %v4664_v61 = vsub.f32 1.0, %v4663_v46  ;;  %v20275_v55 = vld [vmem:[#allocation22_spill] sm:$0xff]  ;;  %v3265_v2 = vmul.f32 %v14971_v21, %v3264_v1 }
 0x334   : > { %9627 = vrcp.f32 %v15404_v35  ;;  %v8798_v43 = vmul.f32 -1.442695, %v1383_v40  ;;  %vm4667_vm6 = vweird.f32 %v15355_v29  ;;  %v15453_v3 = vadd.f32 1.0, %v9620_v15 }
 0x335   : > { %v4140_v0 = vadd.f32 %v4139_v37, %v3931_v4  ;;  %3977 = vmatmul.f32.gmra.mxu0 %v20274_v39  ;;  %v4665_v60 = vmul.f32 %v15402_v6, %v4664_v61  ;;  %vm4669_vm7 = vmor %vm4667_vm6, %vm4668_vm4  ;;  %v4674_v37 = vor.u32 1.1754944e-38, %v4673_v20  ;;  %vm3268_vm8 = vweird.f32 %v14971_v21 }
 0x336   : > { %4186 = vmatmul.f32.gmra.mxu1 %v20275_v55  ;;  %vm4672_vm9 = vcmp.eq.f32.partialorder %v4671_v26, 8.507059e+37  ;;  %v1386_v40 = vadd.f32 %v15327_v12, %v1177_v54  ;;  %v15470_v20 = vadd.f32 %v14971_v21, %v3265_v2  ;;  %vm15481_vm11 = vmor %vm3267_vm1, %vm3268_vm8  ;;  %v3273_v26 = vand.u32 2147483648, %v14874_v58 }
 0x337   : > { %v9622_v47 = vpop.eup %9621  ;;  %v8829_v16 = vmul.f32 -1.442695, %v4140_v0  ;;  %v4666_v46 = vadd.f32 %v15402_v6, %v4665_v60  ;;  %v15474_v0 = vld [vmem:[#allocation10] ss:$0 sm:$0xff]  ;;  %v4688_v60 = vand.u32 2147483648, %v15406_v31  ;;  %v3293_v54 = vmul.f32 %v15034_v32, %v14959_v11 }
 0x338   : > { %v15451_v56 = vpop.eup %9623  ;;  %v15455_v28 = vadd.f32 1.0, %v9622_v47  ;;  %v20281_v47 = vld [vmem:[#allocation58_spill] sm:$0xff]  ;;  %v4686_v62 = vand.u32 2147483647, %v15406_v31  ;;  %vm4682_vm10 = vweird.f32 %v15406_v31  ;;  %vm3297_vm0 = vweird.f32 %v14959_v11 }
 0x339   : > { %v15460_v24 = vpop.eup %9625  ;;  %9629 = vpow2.f32 %v8829_v16  ;;  %v4670_v36 = vsel %vm4669_vm7, %v15402_v6, %v4666_v46  ;;  %v4678_v29 = vmul.f32 %v15451_v56, %v15406_v31  ;;  %v1180_v6 = vadd.f32 %v15361_v48, %v11393_v41  ;;  %v15495_v16 = vpop.f32.mrf.mxu2 }
 0x33a   : > { %v15465_v1 = vpop.eup %9627  ;;  %9631 = vrcp.f32 %v15455_v28  ;;  %v3933_v4 = vpop.f32.mrf.mxu0  ;;  %v4675_v15 = vsel %vm4672_vm9, %v4674_v37, %v4670_v36  ;;  %v15488_v48 = vsel %vm15441_vm5, %v3244_v51, %v3240_v8  ;;  %vm4683_vm12 = vweird.f32 %v15451_v56 }
 0x33b   : > { %v4142_v61 = vpop.f32.mrf.mxu1  ;;  %9633 = vpow2.f32 %v8798_v43  ;;  %v3934_v39 = vadd.f32 %v15474_v0, %v3933_v4  ;;  %5592 = vmatmul.f32.gmra.mxu2 %v4675_v15  ;;  %5801 = vmatmul.f32.gmra.mxu3 %v4675_v15  ;;  %v4679_v55 = vsub.f32 1.0, %v4678_v29  ;;  %20280 = vst [vmem:[#allocation73_spill] sm:$0xff] %v15488_v48  ;;  %v20282_v43 = vld [vmem:[#allocation39_spill] sm:$0xff]  ;;  %v8800_v8 = vmul.f32 -1.442695, %v1386_v40  ;;  %vm4684_vm13 = vmor %vm4682_vm10, %vm4683_vm12 }
 0x33c   : > { %9635 = vrcp.f32 %v15453_v3  ;;  %v3271_v37 = vand.u32 2147483647, %v14874_v58  ;;  %v1389_v29 = vadd.f32 %v15392_v25, %v1180_v6  ;;  %v4689_v40 = vor.u32 1.1754944e-38, %v4688_v60  ;;  %v15515_v58 = vpop.f32.mrf.mxu3 }
 0x33d   : > { %v4143_v2 = vadd.f32 %v4142_v61, %v3934_v39  ;;  %3980 = vmatmul.f32.gmra.mxu0 %v20281_v47  ;;  %v4680_v46 = vmul.f32 %v15451_v56, %v4679_v55  ;;  %v15513_v55 = vor.u32 1.1754944e-38, %v3273_v26  ;;  %v3294_v47 = vsub.f32 1.0, %v3293_v54 }
 0x33e   : > { %4189 = vmatmul.f32.gmra.mxu1 %v20282_v43  ;;  %vm4687_vm14 = vcmp.eq.f32.partialorder %v4686_v62, 8.507059e+37  ;;  %v1183_v31 = vadd.f32 %v15426_v49, %v11393_v41  ;;  %v15525_v54 = vadd.f32 %v14594_v63, %v15381_v14  ;;  %v4703_v49 = vand.u32 2147483648, %v15455_v28  ;;  %v20283_v14 = vld [vmem:[#allocation59_spill] sm:$0xff] }
 0x33f   : > { %v9630_v36 = vpop.eup %9629  ;;  %v8830_v4 = vmul.f32 -1.442695, %v4143_v2  ;;  %v4681_v61 = vadd.f32 %v15451_v56, %v4680_v46  ;;  %v8802_v46 = vmul.f32 -1.442695, %v1389_v29  ;;  %vm3298_vm2 = vweird.f32 %v15034_v32 }
 0x340   : > { %v15509_v15 = vpop.eup %9631  ;;  %v15511_v39 = vadd.f32 1.0, %v9630_v36  ;;  %vm4697_vm3 = vweird.f32 %v15455_v28  ;;  %vm15557_vm5 = vcmp.eq.f32.partialorder %v3271_v37, 8.507059e+37  ;;  %vm15574_vm6 = vmor %vm3297_vm0, %vm3298_vm2  ;;  %vm3327_vm9 = vweird.f32 %v15071_v45 }
 0x341   : > { %v9634_v43 = vpop.eup %9633  ;;  %9637 = vpow2.f32 %v8830_v4  ;;  %v4685_v25 = vsel %vm4684_vm13, %v15451_v56, %v4681_v61  ;;  %v4693_v6 = vmul.f32 %v15509_v15, %v15455_v28  ;;  %v3295_v61 = vmul.f32 %v15034_v32, %v3294_v47 }
 0x342   : > { %9639 = vrcp.f32 %v15511_v39  ;;  %v3936_v2 = vpop.f32.mrf.mxu0  ;;  %v4690_v26 = vsel %vm4687_vm14, %v4689_v40, %v4685_v25  ;;  %v15528_v36 = vpop.eup %9635  ;;  %v15530_v4 = vadd.f32 1.0, %v9634_v43  ;;  %v3303_v40 = vand.u32 2147483648, %v14959_v11 }
 0x343   : > { %v4145_v60 = vpop.f32.mrf.mxu1  ;;  %9641 = vpow2.f32 %v8800_v8  ;;  %v3937_v56 = vadd.f32 %v15474_v0, %v3936_v2  ;;  %5595 = vmatmul.f32.gmra.mxu2 %v4690_v26  ;;  %5804 = vmatmul.f32.gmra.mxu3 %v4690_v26  ;;  %v4694_v62 = vsub.f32 1.0, %v4693_v6  ;;  %v20284_v8 = vld [vmem:[#allocation41_spill] sm:$0xff]  ;;  %vm4698_vm15 = vweird.f32 %v15509_v15  ;;  %v15545_v26 = vpop.f32.mrf.mxu2 }
 0x344   : > { %v4701_v6 = vand.u32 2147483647, %v15455_v28  ;;  %v1392_v43 = vadd.f32 %v15447_v53, %v1183_v31  ;;  %v3323_v47 = vmul.f32 %v15128_v30, %v15071_v45  ;;  %9643 = vpow2.f32 %v8802_v46  ;;  %vm15553_vm4 = vmor %vm4697_vm3, %vm4698_vm15 }
 0x345   : > { %v4146_v25 = vadd.f32 %v4145_v60, %v3937_v56  ;;  %3983 = vmatmul.f32.gmra.mxu0 %v20283_v14  ;;  %v4695_v29 = vmul.f32 %v15509_v15, %v4694_v62  ;;  %v4704_v31 = vor.u32 1.1754944e-38, %v4703_v49  ;;  %v15562_v46 = vadd.f32 %v15034_v32, %v3295_v61 }
 0x346   : > { %4192 = vmatmul.f32.gmra.mxu1 %v20284_v8  ;;  %vm4702_vm1 = vcmp.eq.f32.partialorder %v4701_v6, 8.507059e+37  ;;  %v8804_v49 = vmul.f32 -1.442695, %v1392_v43  ;;  %v3324_v53 = vsub.f32 1.0, %v3323_v47  ;;  %v1186_v43 = vadd.f32 %v15495_v16, %v11393_v41  ;;  %v20300_v8 = vld [vmem:[#allocation63_spill] sm:$0xff] }
 0x347   : > { %v9638_v2 = vpop.eup %9637  ;;  %v8831_v60 = vmul.f32 -1.442695, %v4146_v25  ;;  %v4696_v56 = vadd.f32 %v15509_v15, %v4695_v29  ;;  %v3301_v25 = vand.u32 2147483647, %v14959_v11  ;;  %v4718_v48 = vand.u32 2147483648, %v15511_v39 }
 0x348   : > { %v15549_v62 = vpop.eup %9639  ;;  %v15551_v14 = vadd.f32 1.0, %v9638_v2  ;;  %v3300_v47 = vsel %vm15574_vm6, %v15034_v32, %v15562_v46  ;;  %vm4712_vm12 = vweird.f32 %v15511_v39  ;;  %vm3328_vm10 = vweird.f32 %v15128_v30 }
 0x349   : > { %v9642_v29 = vpop.eup %9641  ;;  %9645 = vpow2.f32 %v8831_v60  ;;  %v4700_v28 = vsel %vm15553_vm4, %v15509_v15, %v4696_v56  ;;  %v4708_v2 = vmul.f32 %v15549_v62, %v15511_v39  ;;  %v15580_v15 = vpop.f32.mrf.mxu3  ;;  %v3304_v56 = vor.u32 1.1754944e-38, %v3303_v40  ;;  %vm15645_vm2 = vmor %vm3327_vm9, %vm3328_vm10 }
 0x34a   : > { %9647 = vrcp.f32 %v15551_v14  ;;  %v3939_v61 = vpop.f32.mrf.mxu0  ;;  %v4705_v51 = vsel %vm4702_vm1, %v4704_v31, %v4700_v28  ;;  %v15583_v34 = vadd.f32 1.0, %v9642_v29  ;;  %v9644_v31 = vpop.eup %9643  ;;  %vm4713_vm7 = vweird.f32 %v15549_v62 }
 0x34b   : > { %v4148_v60 = vpop.f32.mrf.mxu1  ;;  %9649 = vrcp.f32 %v15530_v4  ;;  %v3940_v6 = vadd.f32 %v15474_v0, %v3939_v61  ;;  %5598 = vmatmul.f32.gmra.mxu2 %v4705_v51  ;;  %5807 = vmatmul.f32.gmra.mxu3 %v4705_v51  ;;  %v4709_v11 = vsub.f32 1.0, %v4708_v2  ;;  %v20293_v61 = vld [vmem:[#allocation25_spill] sm:$0xff]  ;;  %v4716_v40 = vand.u32 2147483647, %v15511_v39  ;;  %vm4714_vm14 = vmor %vm4712_vm12, %vm4713_vm7  ;;  %v15618_v39 = vpop.f32.mrf.mxu2 }
 0x34c   : > { %20291 = vst [vmem:[#allocation48_spill] sm:$0xff] %v15583_v34  ;;  %9651 = vpow2.f32 %v8804_v49  ;;  %vm15597_vm8 = vcmp.eq.f32.partialorder %v3301_v25, 8.507059e+37  ;;  %v3325_v29 = vmul.f32 %v15128_v30, %v3324_v53  ;;  %vm3553_vm13 = vweird.f32 %v14594_v63 }
 0x34d   : > { %v4149_v28 = vadd.f32 %v4148_v60, %v3940_v6  ;;  %3986 = vmatmul.f32.gmra.mxu0 %v20292_v5  ;;  %v4710_v51 = vmul.f32 %v15549_v62, %v4709_v11  ;;  %v15609_v25 = vadd.f32 1.0, %v9644_v31  ;;  %v1395_v37 = vadd.f32 %v15515_v58, %v1186_v43 }
 0x34e   : > { %4195 = vmatmul.f32.gmra.mxu1 %v20293_v61  ;;  %v4719_v60 = vor.u32 1.1754944e-38, %v4718_v48  ;;  %vm4717_vm15 = vcmp.eq.f32.partialorder %v4716_v40, 8.507059e+37  ;;  %vm3552_vm0 = vweird.f32 %v14505_v13  ;;  %v15626_v48 = vadd.f32 %v15128_v30, %v3325_v29 }
 0x34f   : > { %v9646_v32 = vpop.eup %9645  ;;  %v8832_v46 = vmul.f32 -1.442695, %v4149_v28  ;;  %v4711_v5 = vadd.f32 %v15549_v62, %v4710_v51  ;;  %20296 = vst [vmem:[#allocation76_spill] sm:$0xff] %v15609_v25  ;;  %v3331_v28 = vand.u32 2147483647, %v15071_v45  ;;  %v20297_v51 = vsel %vm15481_vm11, %v14971_v21, %v15470_v20  ;;  %vm15697_vm6 = vmor %vm3552_vm0, %vm3553_vm13 }
 0x350   : > { %v15607_v2 = vpop.eup %9647  ;;  %v15612_v49 = vadd.f32 1.0, %v9646_v32  ;;  %v15639_v40 = vsel %vm15557_vm5, %v15513_v55, %v20297_v51  ;;  %v8806_v12 = vmul.f32 -1.442695, %v1395_v37  ;;  %v15653_v21 = vsel %vm15597_vm8, %v3304_v56, %v3300_v47 }
 0x351   : > { %v15616_v53 = vpop.eup %9649  ;;  %9653 = vpow2.f32 %v8832_v46  ;;  %v4715_v6 = vsel %vm4714_vm14, %v15549_v62, %v4711_v5  ;;  %v4723_v11 = vmul.f32 %v15607_v2, %v15551_v14  ;;  %v4733_v46 = vand.u32 2147483648, %v15551_v14  ;;  %v15655_v20 = vpop.f32.mrf.mxu3 }
 0x352   : > { %9655 = vrcp.f32 %v15612_v49  ;;  %v3942_v58 = vpop.f32.mrf.mxu0  ;;  %v4720_v31 = vsel %vm4717_vm15, %v4719_v60, %v4715_v6  ;;  %v9652_v32 = vpop.eup %9651  ;;  %vm4728_vm11 = vweird.f32 %v15607_v2  ;;  %v4731_v60 = vand.u32 2147483647, %v15551_v14 }
 0x353   : > { %v4151_v43 = vpop.f32.mrf.mxu1  ;;  %9657 = vrcp.f32 %v15583_v34  ;;  %v3943_v62 = vadd.f32 %v15474_v0, %v3942_v58  ;;  %5601 = vmatmul.f32.gmra.mxu2 %v4720_v31  ;;  %5810 = vmatmul.f32.gmra.mxu3 %v4720_v31  ;;  %v4724_v61 = vsub.f32 1.0, %v4723_v11  ;;  %v3330_v16 = vsel %vm15645_vm2, %v15128_v30, %v15626_v48 }
 0x354   : > { %9659 = vrcp.f32 %v15609_v25  ;;  %vm15666_vm3 = vcmp.eq.f32.partialorder %v3331_v28, 8.507059e+37  ;;  %v3333_v47 = vand.u32 2147483648, %v15071_v45  ;;  %v15673_v6 = vadd.f32 1.0, %v9652_v32  ;;  %v20352_v25 = vld [vmem:[#allocation19_spill] sm:$0xff] }
 0x355   : > { %v4152_v55 = vadd.f32 %v4151_v43, %v3943_v62  ;;  %3989 = vmatmul.f32.gmra.mxu0 %v20300_v8  ;;  %v4725_v5 = vmul.f32 %v15607_v2, %v4724_v61  ;;  %vm4727_vm4 = vweird.f32 %v15551_v14  ;;  %9661 = vpow2.f32 %v8806_v12 }
 0x356   : > { %4198 = vmatmul.f32.gmra.mxu1 %v14497_v27  ;;  %v3353_v27 = vmul.f32 %v15259_v17, %v15173_v22  ;;  %20303 = vst [vmem:[#allocation50_spill] sm:$0xff] %v15673_v6  ;;  %v1189_v30 = vadd.f32 %v15545_v26, %v11393_v41  ;;  %vm4729_vm5 = vmor %vm4727_vm4, %vm4728_vm11  ;;  %v4734_v45 = vor.u32 1.1754944e-38, %v4733_v46  ;;  %vm4732_vm1 = vcmp.eq.f32.partialorder %v4731_v60, 8.507059e+37 }
 0x357   : > { %v9654_v37 = vpop.eup %9653  ;;  %v8833_v11 = vmul.f32 -1.442695, %v4152_v55  ;;  %v4726_v58 = vadd.f32 %v15607_v2, %v4725_v5  ;;  %v3334_v29 = vor.u32 1.1754944e-38, %v3333_v47  ;;  %v3363_v55 = vand.u32 2147483648, %v15173_v22  ;;  %v1194_v47 = vpop.f32.mrf.mxu2 }
 0x358   : > { %v15677_v43 = vpop.eup %9655  ;;  %v15681_v31 = vadd.f32 1.0, %v9654_v37  ;;  %v3354_v32 = vsub.f32 1.0, %v3353_v27  ;;  %v1398_v5 = vadd.f32 %v15580_v15, %v1189_v30  ;;  %v1192_v60 = vadd.f32 %v15618_v39, %v11393_v41 }
 0x359   : > { %v15685_v48 = vpop.eup %9657  ;;  %9663 = vpow2.f32 %v8833_v11  ;;  %v4730_v28 = vsel %vm4729_vm5, %v15607_v2, %v4726_v58  ;;  %v4738_v14 = vmul.f32 %v15677_v43, %v15612_v49  ;;  %v4748_v27 = vand.u32 2147483648, %v15612_v49  ;;  %v20308_v11 = vld [vmem:[#allocation64_spill] sm:$0xff] }
 0x35a   : > { %20304 = vst [vmem:[#allocation67_spill] sm:$0xff] %v15685_v48  ;;  %v15690_v62 = vpop.eup %9659  ;;  %9665 = vrcp.f32 %v15681_v31  ;;  %v3945_v26 = vpop.f32.mrf.mxu0  ;;  %v4735_v51 = vsel %vm4732_vm1, %v4734_v45, %v4730_v28  ;;  %vm4743_vm7 = vweird.f32 %v15677_v43  ;;  %v4746_v45 = vand.u32 2147483647, %v15612_v49 }
 0x35b   : > { %20305 = vst [vmem:[#allocation53_spill] sm:$0xff] %v15690_v62  ;;  %v4154_v61 = vpop.f32.mrf.mxu1  ;;  %v3946_v2 = vadd.f32 %v15474_v0, %v3945_v26  ;;  %5604 = vmatmul.f32.gmra.mxu2 %v4735_v51  ;;  %5813 = vmatmul.f32.gmra.mxu3 %v4735_v51  ;;  %v4739_v46 = vsub.f32 1.0, %v4738_v14  ;;  %9667 = vrcp.f32 %v15673_v6  ;;  %v9662_v28 = vpop.eup %9661  ;;  %v15719_v15 = vsel %vm15666_vm3, %v3334_v29, %v3330_v16 }
 0x35c   : > { %v3355_v39 = vmul.f32 %v15259_v17, %v3354_v32  ;;  %vm3357_vm8 = vweird.f32 %v15173_v22  ;;  %vm3358_vm9 = vweird.f32 %v15259_v17  ;;  %v1403_v14 = vpop.f32.mrf.mxu3  ;;  %vm4742_vm12 = vweird.f32 %v15612_v49 }
 0x35d   : > { %v4155_v37 = vadd.f32 %v4154_v61, %v3946_v2  ;;  %3992 = vmatmul.f32.gmra.mxu0 %v20308_v11  ;;  %v4740_v58 = vmul.f32 %v15677_v43, %v4739_v46  ;;  %v3361_v61 = vand.u32 2147483647, %v15173_v22  ;;  %v8808_v2 = vmul.f32 -1.442695, %v1398_v5  ;;  %vm4744_vm10 = vmor %vm4742_vm12, %vm4743_vm7 }
 0x35e   : > { %4201 = vmatmul.f32.gmra.mxu1 %v14557_v38  ;;  %v1401_v16 = vadd.f32 %v15655_v20, %v1192_v60  ;;  %v4749_v29 = vor.u32 1.1754944e-38, %v4748_v27  ;;  %vm4747_vm13 = vcmp.eq.f32.partialorder %v4746_v45, 8.507059e+37  ;;  %v15736_v49 = vadd.f32 1.0, %v9662_v28  ;;  %vm15749_vm14 = vmor %vm3357_vm8, %vm3358_vm9 }
 0x35f   : > { %v9664_v30 = vpop.eup %9663  ;;  %v8834_v38 = vmul.f32 -1.442695, %v4155_v37  ;;  %v4741_v26 = vadd.f32 %v15677_v43, %v4740_v58  ;;  %v3383_v11 = vmul.f32 %v15319_v10, %v15253_v7  ;;  %v3356_v58 = vadd.f32 %v15259_v17, %v3355_v39 }
 0x360   : > { %v9666_v51 = vpop.eup %9665  ;;  %v15728_v56 = vadd.f32 1.0, %v9664_v30  ;;  %20310 = vst [vmem:[#allocation55_spill] sm:$0xff] %v15736_v49  ;;  %v3364_v45 = vor.u32 1.1754944e-38, %v3363_v55  ;;  %v8810_v30 = vmul.f32 -1.442695, %v1401_v16  ;;  %v1195_v28 = vadd.f32 %v1194_v47, %v11393_v41  ;;  %v1197_v47 = vpop.f32.mrf.mxu2 }
 0x361   : > { %9669 = vpow2.f32 %v8834_v38  ;;  %v4745_v32 = vsel %vm4744_vm10, %v15677_v43, %v4741_v26  ;;  %v4753_v46 = vmul.f32 %v9666_v51, %v15681_v31  ;;  %v15734_v37 = vpop.eup %9667  ;;  %v4763_v38 = vand.u32 2147483648, %v15681_v31 }
 0x362   : > { %20309 = vst [vmem:[#allocation20_spill] sm:$0xff] %v15734_v37  ;;  %9671 = vrcp.f32 %v15728_v56  ;;  %v3948_v5 = vpop.f32.mrf.mxu0  ;;  %v4750_v60 = vsel %vm4747_vm13, %v4749_v29, %v4745_v32  ;;  %v20313_v32 = vld [vmem:[#allocation66_spill] sm:$0xff]  ;;  %vm4758_vm15 = vweird.f32 %v9666_v51  ;;  %v4761_v39 = vand.u32 2147483647, %v15681_v31 }
 0x363   : > { %v4157_v20 = vpop.f32.mrf.mxu1  ;;  %v3949_v27 = vadd.f32 %v15474_v0, %v3948_v5  ;;  %5607 = vmatmul.f32.gmra.mxu2 %v4750_v60  ;;  %5816 = vmatmul.f32.gmra.mxu3 %v4750_v60  ;;  %v4754_v43 = vsub.f32 1.0, %v4753_v46  ;;  %9673 = vpow2.f32 %v8808_v2  ;;  %vm15757_vm0 = vcmp.eq.f32.partialorder %v3361_v61, 8.507059e+37 }
 0x364   : > { %9675 = vrcp.f32 %v15736_v49  ;;  %v3384_v22 = vsub.f32 1.0, %v3383_v11  ;;  %vm4757_vm2 = vweird.f32 %v15681_v31  ;;  %v4764_v11 = vor.u32 1.1754944e-38, %v4763_v38 }
 0x365   : > { %v4158_v29 = vadd.f32 %v4157_v20, %v3949_v27  ;;  %3995 = vmatmul.f32.gmra.mxu0 %v20313_v32  ;;  %v4755_v55 = vmul.f32 %v9666_v51, %v4754_v43  ;;  %9677 = vpow2.f32 %v8810_v30  ;;  %v1404_v27 = vadd.f32 %v1403_v14, %v1195_v28  ;;  %vm4759_vm11 = vmor %vm4757_vm2, %vm4758_vm15  ;;  %v1406_v43 = vpop.f32.mrf.mxu3 }
 0x366   : > { %4204 = vmatmul.f32.gmra.mxu1 %v14617_v57  ;;  %v3360_v57 = vsel %vm15749_vm14, %v15259_v17, %v3356_v58  ;;  %vm4762_vm3 = vcmp.eq.f32.partialorder %v4761_v39, 8.507059e+37  ;;  %v3385_v14 = vmul.f32 %v15319_v10, %v3384_v22  ;;  %v3393_v30 = vand.u32 2147483648, %v15253_v7 }
 0x367   : > { %v9670_v46 = vpop.eup %9669  ;;  %v8835_v5 = vmul.f32 -1.442695, %v4158_v29  ;;  %v4756_v20 = vadd.f32 %v9666_v51, %v4755_v55  ;;  %vm3387_vm4 = vweird.f32 %v15253_v7  ;;  %v8812_v39 = vmul.f32 -1.442695, %v1404_v27 }
 0x368   : > { %v15766_v60 = vpop.eup %9671  ;;  %v15768_v61 = vadd.f32 1.0, %v9670_v46  ;;  %v1198_v46 = vadd.f32 %v1197_v47, %v11393_v41  ;;  %v4778_v22 = vand.u32 2147483648, %v15728_v56  ;;  %vm3388_vm5 = vweird.f32 %v15319_v10 }
 0x369   : > { %9679 = vpow2.f32 %v8835_v5  ;;  %v4760_v32 = vsel %vm4759_vm11, %v9666_v51, %v4756_v20  ;;  %v4768_v31 = vmul.f32 %v15766_v60, %v15728_v56  ;;  %v9674_v29 = vpop.eup %9673  ;;  %v15779_v51 = vsel %vm15757_vm0, %v3364_v45, %v3360_v57  ;;  %v20317_v20 = vld [vmem:[#allocation69_spill] sm:$0xff]  ;;  %vm15802_vm8 = vmor %vm3387_vm4, %vm3388_vm5 }
 0x36a   : > { %9681 = vrcp.f32 %v15768_v61  ;;  %v3951_v17 = vpop.f32.mrf.mxu0  ;;  %v4765_v26 = vsel %vm4762_vm3, %v4764_v11, %v4760_v32  ;;  %v15782_v55 = vpop.eup %9675  ;;  %vm4773_vm1 = vweird.f32 %v15766_v60  ;;  %v4776_v45 = vand.u32 2147483647, %v15728_v56 }
 0x36b   : > { %v4160_v58 = vpop.f32.mrf.mxu1  ;;  %v3952_v28 = vadd.f32 %v15474_v0, %v3951_v17  ;;  %5610 = vmatmul.f32.gmra.mxu2 %v4765_v26  ;;  %5819 = vmatmul.f32.gmra.mxu3 %v4765_v26  ;;  %v4769_v38 = vsub.f32 1.0, %v4768_v31  ;;  %20316 = vst [vmem:[#allocation21_spill] sm:$0xff] %v15782_v55  ;;  %v9678_v57 = vpop.eup %9677  ;;  %v15792_v11 = vadd.f32 1.0, %v9674_v29  ;;  %v3386_v47 = vadd.f32 %v15319_v10, %v3385_v14 }
 0x36c   : > { %v3391_v27 = vand.u32 2147483647, %v15253_v7  ;;  %v3394_v32 = vor.u32 1.1754944e-38, %v3393_v30  ;;  %vm4772_vm7 = vweird.f32 %v15728_v56  ;;  %v3413_v29 = vmul.f32 %v15383_v19, %v15321_v18 }
 0x36d   : > { %v4161_v5 = vadd.f32 %v4160_v58, %v3952_v28  ;;  %3998 = vmatmul.f32.gmra.mxu0 %v20317_v20  ;;  %v4770_v2 = vmul.f32 %v15766_v60, %v4769_v38  ;;  %20318 = vst [vmem:[#allocation57_spill] sm:$0xff] %v15792_v11  ;;  %9683 = vpow2.f32 %v8812_v39  ;;  %v1407_v14 = vadd.f32 %v1406_v43, %v1198_v46  ;;  %v1200_v28 = vpop.f32.mrf.mxu2  ;;  %vm4774_vm9 = vmor %vm4772_vm7, %vm4773_vm1 }
 0x36e   : > { %4207 = vmatmul.f32.gmra.mxu1 %v14690_v23  ;;  %v4779_v56 = vor.u32 1.1754944e-38, %v4778_v22  ;;  %vm4777_vm12 = vcmp.eq.f32.partialorder %v4776_v45, 8.507059e+37  ;;  %v3390_v46 = vsel %vm15802_vm8, %v15319_v10, %v3386_v47  ;;  %vm3392_vm10 = vcmp.eq.f32.partialorder %v3391_v27, 8.507059e+37  ;;  %v20322_v23 = vld [vmem:[#allocation70_spill] sm:$0xff] }
 0x36f   : > { %v9680_v31 = vpop.eup %9679  ;;  %v8836_v17 = vmul.f32 -1.442695, %v4161_v5  ;;  %v4771_v58 = vadd.f32 %v15766_v60, %v4770_v2  ;;  %v15814_v5 = vadd.f32 1.0, %v9678_v57  ;;  %v1201_v2 = vadd.f32 %v1200_v28, %v11393_v41  ;;  %v1409_v57 = vpop.f32.mrf.mxu3 }
 0x370   : > { %v9682_v26 = vpop.eup %9681  ;;  %v15808_v30 = vadd.f32 1.0, %v9680_v31  ;;  %v8814_v45 = vmul.f32 -1.442695, %v1407_v14  ;;  %v4793_v31 = vand.u32 2147483648, %v15768_v61  ;;  %v4791_v47 = vand.u32 2147483647, %v15768_v61 }
 0x371   : > { %9685 = vpow2.f32 %v8836_v17  ;;  %v4775_v7 = vsel %vm4774_vm9, %v15766_v60, %v4771_v58  ;;  %v4783_v38 = vmul.f32 %v9682_v26, %v15768_v61  ;;  %20321 = vst [vmem:[#allocation22_spill] sm:$0xff] %v15814_v5  ;;  %v3443_v17 = vmul.f32 %v15460_v24, %v15385_v42 }
 0x372   : > { %9687 = vrcp.f32 %v15808_v30  ;;  %v3954_v20 = vpop.f32.mrf.mxu0  ;;  %v4780_v43 = vsel %vm4777_vm12, %v4779_v56, %v4775_v7  ;;  %vm4788_vm13 = vweird.f32 %v9682_v26  ;;  %v15830_v27 = vsel %vm3392_vm10, %v3394_v32, %v3390_v46 }
 0x373   : > { %v4163_v39 = vpop.f32.mrf.mxu1  ;;  %v3955_v22 = vadd.f32 %v15474_v0, %v3954_v20  ;;  %5613 = vmatmul.f32.gmra.mxu2 %v4780_v43  ;;  %5822 = vmatmul.f32.gmra.mxu3 %v4780_v43  ;;  %v4784_v60 = vsub.f32 1.0, %v4783_v38  ;;  %9689 = vrcp.f32 %v15792_v11  ;;  %v9684_v28 = vpop.eup %9683  ;;  %v3414_v14 = vsub.f32 1.0, %v3413_v29  ;;  %v20357_v11 = vld [vmem:[#allocation34_spill] sm:$0xff] }
 0x374   : > { %9691 = vrcp.f32 %v15814_v5  ;;  %vm3417_vm14 = vweird.f32 %v15321_v18  ;;  %v1410_v7 = vadd.f32 %v1409_v57, %v1201_v2  ;;  %vm4787_vm15 = vweird.f32 %v15768_v61 }
 0x375   : > { %v4164_v58 = vadd.f32 %v4163_v39, %v3955_v22  ;;  %4001 = vmatmul.f32.gmra.mxu0 %v20322_v23  ;;  %v4785_v10 = vmul.f32 %v9682_v26, %v4784_v60  ;;  %9693 = vpow2.f32 %v8814_v45  ;;  %vm4789_vm0 = vmor %vm4787_vm15, %vm4788_vm13  ;;  %vm3418_vm2 = vweird.f32 %v15383_v19 }
 0x376   : > { %4210 = vmatmul.f32.gmra.mxu1 %v14776_v59  ;;  %v4794_v59 = vor.u32 1.1754944e-38, %v4793_v31  ;;  %v3444_v43 = vsub.f32 1.0, %v3443_v17  ;;  %vm4792_vm11 = vcmp.eq.f32.partialorder %v4791_v47, 8.507059e+37  ;;  %v15840_v2 = vadd.f32 1.0, %v9684_v28  ;;  %vm15863_vm7 = vmor %vm3417_vm14, %vm3418_vm2 }
 0x377   : > { %v9686_v56 = vpop.eup %9685  ;;  %v8837_v38 = vmul.f32 -1.442695, %v4164_v58  ;;  %v4786_v20 = vadd.f32 %v9682_v26, %v4785_v10  ;;  %v3415_v45 = vmul.f32 %v15383_v19, %v3414_v14  ;;  %v8816_v31 = vmul.f32 -1.442695, %v1410_v7  ;;  %v1203_v14 = vpop.f32.mrf.mxu2 }
 0x378   : > { %v9688_v39 = vpop.eup %9687  ;;  %v15835_v22 = vadd.f32 1.0, %v9686_v56  ;;  %20324 = vst [vmem:[#allocation39_spill] sm:$0xff] %v15840_v2  ;;  %v4806_v10 = vand.u32 2147483647, %v15808_v30  ;;  %v4808_v47 = vand.u32 2147483648, %v15808_v30  ;;  %v3423_v28 = vand.u32 2147483648, %v15321_v18 }
 0x379   : > { %v4790_v32 = vsel %vm4789_vm0, %v9682_v26, %v4786_v20  ;;  %v4798_v29 = vmul.f32 %v9688_v39, %v15808_v30  ;;  %v15838_v46 = vpop.eup %9689  ;;  %9695 = vpow2.f32 %v8837_v38  ;;  %v3421_v26 = vand.u32 2147483647, %v15321_v18  ;;  %v20326_v38 = vld [vmem:[#allocation72_spill] sm:$0xff]  ;;  %v20327_v20 = vld [vmem:[#allocation78_spill] sm:$0xff] }
 0x37a   : > { %20323 = vst [vmem:[#allocation58_spill] sm:$0xff] %v15838_v46  ;;  %v3957_v60 = vpop.f32.mrf.mxu0  ;;  %v4795_v57 = vsel %vm4792_vm11, %v4794_v59, %v4790_v32  ;;  %v15845_v23 = vpop.eup %9691  ;;  %v3445_v56 = vmul.f32 %v15460_v24, %v3444_v43  ;;  %9697 = vrcp.f32 %v15835_v22  ;;  %vm4803_vm3 = vweird.f32 %v9688_v39 }
 0x37b   : > { %v4166_v61 = vpop.f32.mrf.mxu1  ;;  %v3958_v58 = vadd.f32 %v15474_v0, %v3957_v60  ;;  %5616 = vmatmul.f32.gmra.mxu2 %v4795_v57  ;;  %5825 = vmatmul.f32.gmra.mxu3 %v4795_v57  ;;  %v4799_v17 = vsub.f32 1.0, %v4798_v29  ;;  %20325 = vst [vmem:[#allocation59_spill] sm:$0xff] %v15845_v23  ;;  %v9694_v32 = vpop.eup %9693  ;;  %9699 = vrcp.f32 %v15840_v2  ;;  %v3416_v60 = vadd.f32 %v15383_v19, %v3415_v45 }
 0x37c   : > { %v1412_v29 = vpop.f32.mrf.mxu3  ;;  %vm3447_vm4 = vweird.f32 %v15385_v42  ;;  %vm3448_vm5 = vweird.f32 %v15460_v24  ;;  %9701 = vpow2.f32 %v8816_v31  ;;  %vm4802_vm1 = vweird.f32 %v15808_v30  ;;  %v5549_v30 = vld [vmem:[%s19679_s6] sm:$0x3] }
 0x37d   : > { %v4167_v7 = vadd.f32 %v4166_v61, %v3958_v58  ;;  %4004 = vmatmul.f32.gmra.mxu0 %v20326_v38  ;;  %v4800_v59 = vmul.f32 %v9688_v39, %v4799_v17  ;;  %v3451_v57 = vand.u32 2147483647, %v15385_v42  ;;  %v1204_v45 = vadd.f32 %v1203_v14, %v11393_v41  ;;  %vm4804_vm8 = vmor %vm4802_vm1, %vm4803_vm3 }
 0x37e   : > { %4213 = vmatmul.f32.gmra.mxu1 %v20327_v20  ;;  %v4809_v31 = vor.u32 1.1754944e-38, %v4808_v47  ;;  %v3453_v38 = vand.u32 2147483648, %v15385_v42  ;;  %vm4807_vm9 = vcmp.eq.f32.partialorder %v4806_v10, 8.507059e+37  ;;  %vm15874_vm12 = vcmp.eq.f32.partialorder %v3421_v26, 8.507059e+37  ;;  %vm15885_vm10 = vmor %vm3447_vm4, %vm3448_vm5 }
 0x37f   : > { %v4801_v43 = vadd.f32 %v9688_v39, %v4800_v59  ;;  %v9696_v58 = vpop.eup %9695  ;;  %v8838_v17 = vmul.f32 -1.442695, %v4167_v7  ;;  %v3446_v59 = vadd.f32 %v15460_v24, %v3445_v56  ;;  %v15879_v8 = vadd.f32 1.0, %v9694_v32 }
 0x380   : > { %v3424_v47 = vor.u32 1.1754944e-38, %v3423_v28  ;;  %v15891_v26 = vpop.eup %9697  ;;  %v15893_v10 = vadd.f32 1.0, %v9696_v58  ;;  %v15896_v28 = vperm.slane %v5549_v30, 0  ;;  %v3420_v42 = vsel %vm15863_vm7, %v15383_v19, %v3416_v60 }
 0x381   : > { %v4805_v18 = vsel %vm4804_vm8, %v9688_v39, %v4801_v43  ;;  %20332 = vst [vmem:[#allocation41_spill] sm:$0xff] %v15879_v8  ;;  %v3473_v39 = vmul.f32 %v15465_v1, %v15404_v35  ;;  %v15901_v32 = vpop.eup %9699  ;;  %v1413_v43 = vadd.f32 %v1412_v29, %v1204_v45  ;;  %9703 = vpow2.f32 %v8838_v17 }
 0x382   : > { %v3960_v41 = vpop.f32.mrf.mxu0  ;;  %v4810_v7 = vsel %vm4807_vm9, %v4809_v31, %v4805_v18  ;;  %20335 = vst [vmem:[#allocation61_spill] sm:$0xff] %v15901_v32  ;;  %vm15903_vm13 = vcmp.eq.f32.partialorder %v3451_v57, 8.507059e+37  ;;  %v3454_v58 = vor.u32 1.1754944e-38, %v3453_v38  ;;  %v9702_v18 = vpop.eup %9701  ;;  %v3450_v19 = vsel %vm15885_vm10, %v15460_v24, %v3446_v59 }
 0x383   : > { %v4169_v14 = vpop.f32.mrf.mxu1  ;;  %v3961_v56 = vadd.f32 %v15474_v0, %v3960_v41  ;;  %5619 = vmatmul.f32.gmra.mxu2 %v4810_v7  ;;  %5828 = vmatmul.f32.gmra.mxu3 %v4810_v7  ;;  %v20338_v41 = vld [vmem:[#allocation74_spill] sm:$0xff]  ;;  %v15909_v7 = vperm.slane %v5549_v30, 1  ;;  %v3503_v29 = vmul.f32 %v15528_v36, %v15453_v3  ;;  %9705 = vrcp.f32 %v15879_v8 }
 0x384   : > { %v4813_v57 = vmul.f32 %v15891_v26, %v15835_v22  ;;  %v15921_v45 = vsel %vm15874_vm12, %v3424_v47, %v3420_v42  ;;  %9707 = vrcp.f32 %v15893_v10  ;;  %v15926_v30 = vadd.f32 1.0, %v9702_v18 }
 0x385   : > { %v4170_v2 = vadd.f32 %v4169_v14, %v3961_v56  ;;  %4007 = vmatmul.f32.gmra.mxu0 %v20338_v41  ;;  %v15928_v38 = vmul.f32 -1.442695, %v1413_v43  ;;  %v15932_v14 = vsel %vm15903_vm13, %v3454_v58, %v3450_v19  ;;  %v3504_v56 = vsub.f32 1.0, %v3503_v29 }
 0x386   : > { %4216 = vmatmul.f32.gmra.mxu1 %v14949_v44  ;;  %v5572_v60 = vpop.f32.mrf.mxu2  ;;  %v5781_v61 = vpop.f32.mrf.mxu3  ;;  %v3474_v44 = vsub.f32 1.0, %v3473_v39  ;;  %v4814_v59 = vsub.f32 1.0, %v4813_v57  ;;  %v4823_v39 = vand.u32 2147483648, %v15835_v22  ;;  %vm4818_vm14 = vweird.f32 %v15891_v26 }
 0x387   : > { %v8839_v17 = vmul.f32 -1.442695, %v4170_v2  ;;  %v5573_v24 = vadd.f32 %v5572_v60, %v15896_v28  ;;  %v5782_v16 = vadd.f32 %v5781_v61, %v15909_v7  ;;  %v9704_v42 = vpop.eup %9703  ;;  %v4821_v43 = vand.u32 2147483647, %v15835_v22 }
 0x388   : > { %v4815_v41 = vmul.f32 %v15891_v26, %v4814_v59  ;;  %v3475_v31 = vmul.f32 %v15465_v1, %v3474_v44  ;;  %vm3477_vm15 = vweird.f32 %v15404_v35  ;;  %vm4817_vm0 = vweird.f32 %v15835_v22 }
 0x389   : > { %v8883_v20 = vmul.f32 -1.442695, %v5573_v24  ;;  %v8884_v47 = vmul.f32 -1.442695, %v5782_v16  ;;  %9709 = vpow2.f32 %v8839_v17  ;;  %v15941_v58 = vpop.eup %9705  ;;  %vm3478_vm2 = vweird.f32 %v15465_v1  ;;  %vm4819_vm11 = vmor %vm4817_vm0, %vm4818_vm14  ;;  %v20340_v17 = vld [vmem:[#allocation75_spill] sm:$0xff] }
 0x38a   : > { %v3963_v2 = vpop.f32.mrf.mxu0  ;;  %20339 = vst [vmem:[#allocation25_spill] sm:$0xff] %v15941_v58  ;;  %v4816_v29 = vadd.f32 %v15891_v26, %v4815_v41  ;;  %v15946_v60 = vpop.eup %9707  ;;  %v15948_v61 = vadd.f32 1.0, %v9704_v42  ;;  %v4824_v44 = vor.u32 1.1754944e-38, %v4823_v39  ;;  %v3505_v24 = vmul.f32 %v15528_v36, %v3504_v56  ;;  %vm15972_vm1 = vmor %vm3477_vm15, %vm3478_vm2 }
 0x38b   : > { %9711 = vpow2.f32 %v8883_v20  ;;  %v3964_v18 = vadd.f32 %v15474_v0, %v3963_v2  ;;  %v4172_v19 = vpop.f32.mrf.mxu1  ;;  %vm4822_vm3 = vcmp.eq.f32.partialorder %v4821_v43, 8.507059e+37  ;;  %vm3507_vm4 = vweird.f32 %v15453_v3 }
 0x38c   : > { %9713 = vpow2.f32 %v8884_v47  ;;  %v4820_v16 = vsel %vm4819_vm11, %v15891_v26, %v4816_v29  ;;  %v3483_v47 = vand.u32 2147483648, %v15404_v35  ;;  %v15963_v26 = vadd.f32 %v15465_v1, %v3475_v31 }
 0x38d   : > { %v4173_v57 = vadd.f32 %v4172_v19, %v3964_v18  ;;  %4010 = vmatmul.f32.gmra.mxu0 %v20340_v17  ;;  %v4825_v2 = vsel %vm4822_vm3, %v4824_v44, %v4820_v16  ;;  %vm3508_vm5 = vweird.f32 %v15528_v36  ;;  %9715 = vrcp.f32 %v15948_v61 }
 0x38e   : > { %4219 = vmatmul.f32.gmra.mxu1 %v14951_v9  ;;  %v5575_v22 = vpop.f32.mrf.mxu2  ;;  %v5784_v59 = vpop.f32.mrf.mxu3  ;;  %5622 = vmatmul.f32.gmra.mxu2 %v4825_v2  ;;  %v4828_v9 = vmul.f32 %v15946_v60, %v15893_v10  ;;  %v15977_v29 = vadd.f32 %v15528_v36, %v3505_v24  ;;  %v3513_v31 = vand.u32 2147483648, %v15453_v3  ;;  %vm15992_vm7 = vmor %vm3507_vm4, %vm3508_vm5  ;;  %vm4832_vm8 = vweird.f32 %v15893_v10 }
 0x38f   : > { %v8840_v42 = vmul.f32 -1.442695, %v4173_v57  ;;  %v5576_v41 = vadd.f32 %v5575_v22, %v15896_v28  ;;  %v5785_v39 = vadd.f32 %v5784_v59, %v15909_v7  ;;  %v9710_v18 = vpop.eup %9709  ;;  %5831 = vmatmul.f32.gmra.mxu3 %v4825_v2  ;;  %v15984_v22 = vmul.f32 %v15616_v53, %v15530_v4 }
 0x390   : > { %v4829_v2 = vsub.f32 1.0, %v4828_v9  ;;  %v16016_v9 = vor.u32 1.1754944e-38, %v3513_v31  ;;  %vm4833_vm9 = vweird.f32 %v15946_v60  ;;  %v4838_v31 = vand.u32 2147483648, %v15893_v10 }
 0x391   : > { %v9712_v56 = vpop.eup %9711  ;;  %v8885_v43 = vmul.f32 -1.442695, %v5576_v41  ;;  %9717 = vpow2.f32 %v8840_v42  ;;  %v8886_v17 = vmul.f32 -1.442695, %v5785_v39  ;;  %v15997_v41 = vadd.f32 1.0, %v9710_v18  ;;  %vm16043_vm14 = vmor %vm4832_vm8, %vm4833_vm9 }
 0x392   : > { %v9714_v57 = vpop.eup %9713  ;;  %v15980_v44 = vadd.f32 1.0, %v9712_v56  ;;  %v3966_v16 = vpop.f32.mrf.mxu0  ;;  %v4836_v39 = vand.u32 2147483647, %v15893_v10  ;;  %v20385_v24 = vsub.f32 1.0, %v15984_v22 }
 0x393   : > { %v15986_v59 = vadd.f32 1.0, %v9714_v57  ;;  %9719 = vpow2.f32 %v8885_v43  ;;  %v3967_v56 = vadd.f32 %v15474_v0, %v3966_v16  ;;  %v20345_v43 = vld [vmem:[#allocation77_spill] sm:$0xff]  ;;  %v16009_v57 = vor.u32 1.1754944e-38, %v3483_v47  ;;  %v16019_v0 = vpop.eup %9715 }
 0x394   : > { %9721 = vrcp.f32 %v15980_v44  ;;  %v6494_v16 = vand.u32 2147483647, %v15980_v44  ;;  %vm16026_vm12 = vcmp.eq.f32.partialorder %v4836_v39, 8.507059e+37  ;;  %vm6490_vm10 = vweird.f32 %v15980_v44 }
 0x395   : > { %9723 = vrcp.f32 %v15986_v59  ;;  %4013 = vmatmul.f32.gmra.mxu0 %v20345_v43  ;;  %vm6505_vm13 = vweird.f32 %v15986_v59  ;;  %v6509_v39 = vand.u32 2147483647, %v15986_v59 }
 0x396   : > { %4222 = vmatmul.f32.gmra.mxu1 %v15041_v33  ;;  %9725 = vpow2.f32 %v8886_v17  ;;  %v5578_v42 = vpop.f32.mrf.mxu2  ;;  %v4830_v33 = vmul.f32 %v15946_v60, %v4829_v2  ;;  %v4175_v17 = vpop.f32.mrf.mxu1  ;;  %v6496_v2 = vand.u32 2147483648, %v15980_v44  ;;  %vm16049_vm15 = vcmp.eq.f32.partialorder %v6494_v16, 8.507059e+37 }
 0x397   : > { %v9718_v47 = vpop.eup %9717  ;;  %9727 = vrcp.f32 %v15997_v41  ;;  %v5579_v58 = vadd.f32 %v5578_v42, %v15896_v28  ;;  %v5787_v20 = vpop.f32.mrf.mxu3  ;;  %v4176_v8 = vadd.f32 %v4175_v17, %v3967_v56  ;;  %vm16069_vm2 = vcmp.eq.f32.partialorder %v6509_v39, 8.507059e+37 }
 0x398   : > { %v4831_v32 = vadd.f32 %v15946_v60, %v4830_v33  ;;  %v5788_v56 = vadd.f32 %v5787_v20, %v15909_v7  ;;  %v16058_v37 = vadd.f32 1.0, %v9718_v47  ;;  %v6497_v6 = vor.u32 1.1754944e-38, %v6496_v2 }
 0x399   : > { %v9720_v18 = vpop.eup %9719  ;;  %v8887_v46 = vmul.f32 -1.442695, %v5579_v58  ;;  %v4839_v58 = vor.u32 1.1754944e-38, %v4838_v31  ;;  %v8841_v62 = vmul.f32 -1.442695, %v4176_v8 }
 0x39a   : > { %v9722_v23 = vpop.eup %9721  ;;  %v16037_v5 = vadd.f32 1.0, %v9720_v18  ;;  %v6511_v18 = vand.u32 2147483648, %v15986_v59  ;;  %v4835_v10 = vsel %vm16043_vm14, %v15946_v60, %v4831_v32  ;;  %v8888_v47 = vmul.f32 -1.442695, %v5788_v56  ;;  %v3969_v42 = vpop.f32.mrf.mxu0 }
 0x39b   : > { %v9724_v17 = vpop.eup %9723  ;;  %v6486_v33 = vmul.f32 %v9722_v23, %v15980_v44  ;;  %v4840_v60 = vsel %vm16026_vm12, %v4839_v58, %v4835_v10  ;;  %vm6491_vm0 = vweird.f32 %v9722_v23 }
 0x39c   : > { %v9726_v55 = vpop.eup %9725  ;;  %v6501_v49 = vmul.f32 %v9724_v17, %v15986_v59  ;;  %9729 = vrcp.f32 %v16037_v5  ;;  %5625 = vmatmul.f32.gmra.mxu2 %v4840_v60  ;;  %5834 = vmatmul.f32.gmra.mxu3 %v4840_v60  ;;  %vm6506_vm11 = vweird.f32 %v9724_v17  ;;  %vm6492_vm3 = vmor %vm6490_vm10, %vm6491_vm0  ;;  %v6512_v39 = vor.u32 1.1754944e-38, %v6511_v18 }
 0x39d   : > { %v6487_v20 = vsub.f32 1.0, %v6486_v33  ;;  %v16061_v16 = vadd.f32 1.0, %v9726_v55  ;;  %4016 = vmatmul.f32.gmra.mxu0 %v20352_v25  ;;  %v16065_v48 = vpop.eup %9727  ;;  %9731 = vpow2.f32 %v8887_v46  ;;  %v6524_v25 = vand.u32 2147483647, %v16037_v5  ;;  %vm6507_vm4 = vmor %vm6505_vm13, %vm6506_vm11 }
 0x39e   : > { %4225 = vmatmul.f32.gmra.mxu1 %v15101_v52  ;;  %v6502_v32 = vsub.f32 1.0, %v6501_v49  ;;  %v16076_v49 = vld [vmem:[#allocation10] ss:$0 sm:$0xff]  ;;  %v4843_v46 = vmul.f32 %v16019_v0, %v15948_v61  ;;  %v6526_v56 = vand.u32 2147483648, %v16037_v5  ;;  %vm6520_vm5 = vweird.f32 %v16037_v5 }
 0x39f   : > { %v6488_v34 = vmul.f32 %v9722_v23, %v6487_v20  ;;  %9733 = vrcp.f32 %v16061_v16  ;;  %v3970_v55 = vadd.f32 %v16076_v49, %v3969_v42  ;;  %v6539_v18 = vand.u32 2147483647, %v16061_v16 }
 0x3a0   : > { %v6503_v52 = vmul.f32 %v9724_v17, %v6502_v32  ;;  %9735 = vrcp.f32 %v16058_v37  ;;  %v4844_v60 = vsub.f32 1.0, %v4843_v46  ;;  %vm16102_vm8 = vcmp.eq.f32.partialorder %v6524_v25, 8.507059e+37 }
 0x3a1   : > { %v6489_v8 = vadd.f32 %v9722_v23, %v6488_v34  ;;  %9737 = vpow2.f32 %v8888_v47  ;;  %v4178_v34 = vpop.f32.mrf.mxu1  ;;  %v6527_v42 = vor.u32 1.1754944e-38, %v6526_v56  ;;  %v6541_v31 = vand.u32 2147483648, %v16061_v16 }
 0x3a2   : > { %v9730_v43 = vpop.eup %9729  ;;  %v6504_v2 = vadd.f32 %v9724_v17, %v6503_v52  ;;  %9739 = vpow2.f32 %v8841_v62  ;;  %v4179_v58 = vadd.f32 %v4178_v34, %v3970_v55  ;;  %v4845_v25 = vmul.f32 %v16019_v0, %v4844_v60  ;;  %v5581_v34 = vpop.f32.mrf.mxu2 }
 0x3a3   : > { %v6493_v33 = vsel %vm6492_vm3, %v9722_v23, %v6489_v8  ;;  %v6516_v10 = vmul.f32 %v9730_v43, %v16037_v5  ;;  %v9732_v20 = vpop.eup %9731  ;;  %vm6521_vm9 = vweird.f32 %v9730_v43  ;;  %vm6535_vm12 = vweird.f32 %v16061_v16 }
 0x3a4   : > { %v6498_v44 = vsel %vm16049_vm15, %v6497_v6, %v6493_v33  ;;  %v6508_v32 = vsel %vm6507_vm4, %v9724_v17, %v6504_v2  ;;  %v16106_v6 = vadd.f32 1.0, %v9732_v20  ;;  %v8842_v46 = vmul.f32 -1.442695, %v4179_v58  ;;  %vm6522_vm14 = vmor %vm6520_vm5, %vm6521_vm9 }
 0x3a5   : > { %v16093_v62 = vpop.eup %9733  ;;  %8405 = vst [vmem:[%s16097_s15] sm:$0xff] %v6498_v44  ;;  %v6513_v23 = vsel %vm16069_vm2, %v6512_v39, %v6508_v32  ;;  %v6517_v59 = vsub.f32 1.0, %v6516_v10  ;;  %4019 = vmatmul.f32.gmra.mxu0 %v20357_v11  ;;  %vm16121_vm10 = vcmp.eq.f32.partialorder %v6539_v18, 8.507059e+37  ;;  %v4846_v44 = vadd.f32 %v16019_v0, %v4845_v25  ;;  %v5790_v11 = vpop.f32.mrf.mxu3 }
 0x3a6   : > { %4228 = vmatmul.f32.gmra.mxu1 %v15178_v50  ;;  %v16110_v17 = vpop.eup %9735  ;;  %8406 = vst [vmem:[%s16097_s15 + $0x8] sm:$0xff] %v6513_v23  ;;  %v6531_v52 = vmul.f32 %v16093_v62, %v16061_v16  ;;  %9741 = vrcp.f32 %v16106_v6  ;;  %vm6536_vm13 = vweird.f32 %v16093_v62  ;;  %v6554_v10 = vand.u32 2147483647, %v16106_v6 }
 0x3a7   : > { %v9738_v8 = vpop.eup %9737  ;;  %v6518_v55 = vmul.f32 %v9730_v43, %v6517_v59  ;;  %v6556_v20 = vand.u32 2147483648, %v16106_v6  ;;  %vm4848_vm15 = vweird.f32 %v16019_v0  ;;  %v6542_v18 = vor.u32 1.1754944e-38, %v6541_v31  ;;  %vm16142_vm2 = vmor %vm6535_vm12, %vm6536_vm13 }
 0x3a8   : > { %v16118_v2 = vpop.eup %9739  ;;  %v6532_v50 = vsub.f32 1.0, %v6531_v52  ;;  %v16125_v56 = vadd.f32 1.0, %v9738_v8  ;;  %vm4847_vm0 = vweird.f32 %v15948_v61  ;;  %vm6550_vm11 = vweird.f32 %v16106_v6  ;;  %v20364_v8 = vld [vmem:[#allocation36_spill] sm:$0xff] }
 0x3a9   : > { %v6519_v33 = vadd.f32 %v9730_v43, %v6518_v55  ;;  %v4851_v59 = vand.u32 2147483647, %v15948_v61  ;;  %vm16156_vm3 = vmor %vm4847_vm0, %vm4848_vm15  ;;  %v5582_v31 = vadd.f32 %v5581_v34, %v15896_v28  ;;  %v5791_v25 = vadd.f32 %v5790_v11, %v15909_v7  ;;  %v20365_v55 = vld [vmem:[#allocation43_spill] sm:$0xff] }
 0x3aa   : > { %v6533_v58 = vmul.f32 %v16093_v62, %v6532_v50  ;;  %9743 = vrcp.f32 %v16125_v56  ;;  %v6569_v47 = vand.u32 2147483647, %v16125_v56  ;;  %vm16169_vm4 = vcmp.eq.f32.partialorder %v6554_v10, 8.507059e+37 }
 0x3ab   : > { %v6523_v32 = vsel %vm6522_vm14, %v9730_v43, %v6519_v33  ;;  %9745 = vpow2.f32 %v8842_v46  ;;  %v4853_v43 = vand.u32 2147483648, %v15948_v61  ;;  %v3972_v61 = vpop.f32.mrf.mxu0  ;;  %v6557_v34 = vor.u32 1.1754944e-38, %v6556_v20 }
 0x3ac   : > { %v6528_v60 = vsel %vm16102_vm8, %v6527_v42, %v6523_v32  ;;  %v6534_v5 = vadd.f32 %v16093_v62, %v6533_v58  ;;  %v16149_v52 = vpop.eup %9741  ;;  %v6571_v42 = vand.u32 2147483648, %v16125_v56  ;;  %v4850_v58 = vsel %vm16156_vm3, %v16019_v0, %v4846_v44 }
 0x3ad   : > { %8407 = vst [vmem:[%s16097_s15 + $0x10] sm:$0xff] %v6528_v60  ;;  %4022 = vmatmul.f32.gmra.mxu0 %v20364_v8  ;;  %v6546_v50 = vmul.f32 %v16149_v52, %v16106_v6  ;;  %vm6565_vm5 = vweird.f32 %v16125_v56  ;;  %vm4852_vm8 = vcmp.eq.f32.partialorder %v4851_v59, 8.507059e+37  ;;  %v4854_v60 = vor.u32 1.1754944e-38, %v4853_v43  ;;  %v4181_v8 = vpop.f32.mrf.mxu1 }
 0x3ae   : > { %4231 = vmatmul.f32.gmra.mxu1 %v20365_v55  ;;  %v6538_v46 = vsel %vm16142_vm2, %v16093_v62, %v6534_v5  ;;  %v8889_v62 = vmul.f32 -1.442695, %v5582_v31  ;;  %v8890_v10 = vmul.f32 -1.442695, %v5791_v25  ;;  %v3973_v11 = vadd.f32 %v16076_v49, %v3972_v61  ;;  %v5584_v25 = vpop.f32.mrf.mxu2 }
 0x3af   : > { %v6543_v32 = vsel %vm16121_vm10, %v6542_v18, %v6538_v46  ;;  %v6547_v23 = vsub.f32 1.0, %v6546_v50  ;;  %v4858_v20 = vmul.f32 %v16065_v48, %v15997_v41  ;;  %vm6551_vm9 = vweird.f32 %v16149_v52 }
 0x3b0   : > { %v9744_v5 = vpop.eup %9743  ;;  %8408 = vst [vmem:[%s16097_s15 + $0x18] sm:$0xff] %v6543_v32  ;;  %vm16187_vm12 = vcmp.eq.f32.partialorder %v6569_v47, 8.507059e+37  ;;  %v6572_v44 = vor.u32 1.1754944e-38, %v6571_v42  ;;  %v4855_v18 = vsel %vm4852_vm8, %v4854_v60, %v4850_v58  ;;  %9747 = vpow2.f32 %v8889_v62  ;;  %v5793_v60 = vpop.f32.mrf.mxu3  ;;  %vm6552_vm0 = vmor %vm6550_vm11, %vm6551_vm9 }
 0x3b1   : > { %v16183_v16 = vpop.eup %9745  ;;  %v6561_v0 = vmul.f32 %v9744_v5, %v16125_v56  ;;  %v6548_v59 = vmul.f32 %v16149_v52, %v6547_v23  ;;  %5628 = vmatmul.f32.gmra.mxu2 %v4855_v18  ;;  %5837 = vmatmul.f32.gmra.mxu3 %v4855_v18  ;;  %v4182_v43 = vadd.f32 %v4181_v8, %v3973_v11  ;;  %v4859_v31 = vsub.f32 1.0, %v4858_v20  ;;  %v20376_v8 = vld [vmem:[#allocation37_spill] sm:$0xff] }
 0x3b2   : > { %v20370_v61 = vand.u32 2147483647, %v15404_v35  ;;  %v20373_v47 = vand.u32 2147483647, %v15453_v3  ;;  %vm6566_vm14 = vweird.f32 %v9744_v5  ;;  %9749 = vpow2.f32 %v8890_v10  ;;  %v20377_v20 = vld [vmem:[#allocation45_spill] sm:$0xff] }
 0x3b3   : > { %v6562_v42 = vsub.f32 1.0, %v6561_v0  ;;  %vm4863_vm15 = vweird.f32 %v16065_v48  ;;  %v6549_v50 = vadd.f32 %v16149_v52, %v6548_v59  ;;  %v8843_v58 = vmul.f32 -1.442695, %v4182_v43  ;;  %v3975_v11 = vpop.f32.mrf.mxu0  ;;  %vm6567_vm3 = vmor %vm6565_vm5, %vm6566_vm14 }
 0x3b4   : > { %vm16194_vm10 = vcmp.eq.f32.partialorder %v20370_v61, 8.507059e+37  ;;  %vm16200_vm13 = vcmp.eq.f32.partialorder %v20373_v47, 8.507059e+37  ;;  %v4860_v35 = vmul.f32 %v16065_v48, %v4859_v31  ;;  %v4866_v32 = vand.u32 2147483647, %v15997_v41 }
 0x3b5   : > { %v6563_v3 = vmul.f32 %v9744_v5, %v6562_v42  ;;  %v4868_v62 = vand.u32 2147483648, %v15997_v41  ;;  %v5585_v23 = vadd.f32 %v5584_v25, %v15896_v28  ;;  %v5794_v10 = vadd.f32 %v5793_v60, %v15909_v7  ;;  %4025 = vmatmul.f32.gmra.mxu0 %v20376_v8 }
 0x3b6   : > { %4234 = vmatmul.f32.gmra.mxu1 %v20377_v20  ;;  %v6553_v0 = vsel %vm6552_vm0, %v16149_v52, %v6549_v50  ;;  %9751 = vpow2.f32 %v8843_v58  ;;  %v4861_v18 = vadd.f32 %v16065_v48, %v4860_v35  ;;  %vm4862_vm2 = vweird.f32 %v15997_v41  ;;  %v9748_v25 = vpop.eup %9747 }
 0x3b7   : > { %v6558_v6 = vsel %vm16169_vm4, %v6557_v34, %v6553_v0  ;;  %v6564_v59 = vadd.f32 %v9744_v5, %v6563_v3  ;;  %vm4864_vm11 = vmor %vm4862_vm2, %vm4863_vm15  ;;  %v4869_v43 = vor.u32 1.1754944e-38, %v4868_v62  ;;  %v8891_v31 = vmul.f32 -1.442695, %v5585_v23  ;;  %v20381_v23 = vld [vmem:[#allocation73_spill] sm:$0xff] }
 0x3b8   : > { %8409 = vst [vmem:[%s16097_s15 + $0x20] sm:$0xff] %v6558_v6  ;;  %v4865_v52 = vsel %vm4864_vm11, %v16065_v48, %v4861_v18  ;;  %vm4867_vm8 = vcmp.eq.f32.partialorder %v4866_v32, 8.507059e+37  ;;  %v8892_v41 = vmul.f32 -1.442695, %v5794_v10  ;;  %v3976_v33 = vadd.f32 %v16076_v49, %v3975_v11  ;;  %v9750_v34 = vpop.eup %9749  ;;  %v4184_v48 = vpop.f32.mrf.mxu1 }
 0x3b9   : > { %v6568_v61 = vsel %vm6567_vm3, %v9744_v5, %v6564_v59  ;;  %v16230_v47 = vadd.f32 1.0, %v9748_v25  ;;  %v4870_v42 = vsel %vm4867_vm8, %v4869_v43, %v4865_v52  ;;  %9753 = vpow2.f32 %v8891_v31  ;;  %v5796_v8 = vpop.f32.mrf.mxu3 }
 0x3ba   : > { %v6573_v50 = vsel %vm16187_vm12, %v6572_v44, %v6568_v61  ;;  %v16234_v58 = vadd.f32 1.0, %v9750_v34  ;;  %5631 = vmatmul.f32.gmra.mxu2 %v4870_v42  ;;  %5840 = vmatmul.f32.gmra.mxu3 %v4870_v42  ;;  %9755 = vpow2.f32 %v8892_v41  ;;  %v4873_v56 = vmul.f32 %v16110_v17, %v16058_v37 }
 0x3bb   : > { %v16239_v35 = vadd.f32 1.0, %v16118_v2  ;;  %8410 = vst [vmem:[%s16097_s15 + $0x28] sm:$0xff] %v6573_v50  ;;  %9757 = vrcp.f32 %v16230_v47  ;;  %v4185_v5 = vadd.f32 %v4184_v48, %v3976_v33  ;;  %v20378_v32 = vand.u32 2147483648, %v14505_v13  ;;  %v20380_v2 = vld [vmem:[#allocation23_spill] sm:$0xff] }
 0x3bc   : > { %v9752_v44 = vpop.eup %9751  ;;  %v16246_v60 = vadd.f32 1.0, %v16183_v16  ;;  %v6586_v3 = vand.u32 2147483648, %v16230_v47  ;;  %9759 = vrcp.f32 %v16234_v58  ;;  %v20379_v62 = vand.u32 2147483647, %v14505_v13 }
 0x3bd   : > { %v3559_v39 = vor.u32 1.1754944e-38, %v20378_v32  ;;  %9761 = vpow2.f32 %v15928_v38  ;;  %4028 = vmatmul.f32.gmra.mxu0 %v20380_v2  ;;  %v20382_v10 = vsel %vm15972_vm1, %v15465_v1, %v15963_v26  ;;  %v20383_v13 = vsel %vm15992_vm7, %v15528_v36, %v15977_v29 }
 0x3be   : > { %vm3557_vm4 = vcmp.eq.f32.partialorder %v20379_v62, 8.507059e+37  ;;  %4237 = vmatmul.f32.gmra.mxu1 %v20381_v23  ;;  %v16263_v16 = vsel %vm16194_vm10, %v16009_v57, %v20382_v10  ;;  %v16273_v38 = vsel %vm16200_vm13, %v16016_v9, %v20383_v13  ;;  %v20384_v1 = vsel %vm15697_vm6, %v14594_v63, %v15525_v54  ;;  %v5587_v54 = vpop.f32.mrf.mxu2 }
 0x3bf   : > { %v16280_v26 = vsel %vm3557_vm4, %v3559_v39, %v20384_v1  ;;  %v6584_v19 = vand.u32 2147483647, %v16230_v47  ;;  %v4874_v57 = vsub.f32 1.0, %v4873_v56  ;;  %v16286_v55 = vmul.f32 %v15616_v53, %v20385_v24  ;;  %v9754_v29 = vpop.eup %9753 }
 0x3c0   : > { %v3543_v36 = vand.u32 2147483648, %v15530_v4  ;;  %9763 = vrcp.f32 %v16239_v35  ;;  %v6599_v12 = vand.u32 2147483647, %v16234_v58  ;;  %v6601_v9 = vand.u32 2147483648, %v16234_v58  ;;  %v9756_v46 = vpop.eup %9755 }
 0x3c1   : > { %v8844_v63 = vmul.f32 -1.442695, %v4185_v5  ;;  %9765 = vrcp.f32 %v16246_v60  ;;  %vm6580_vm6 = vweird.f32 %v16230_v47  ;;  %v16294_v22 = vor.u32 1.1754944e-38, %v6586_v3  ;;  %v9758_v20 = vpop.eup %9757  ;;  %v20392_v3 = vld [vmem:[#allocation24_spill] sm:$0xff] }
 0x3c2   : > { %v16296_v11 = vadd.f32 1.0, %v9754_v29  ;;  %vm6595_vm1 = vweird.f32 %v16234_v58  ;;  %v16299_v0 = vadd.f32 1.0, %v9752_v44  ;;  %v16301_v18 = vadd.f32 1.0, %v9756_v46  ;;  %v16305_v43 = vpop.eup %9759  ;;  %v3978_v44 = vpop.f32.mrf.mxu0 }
 0x3c3   : > { %v4881_v6 = vand.u32 2147483647, %v16058_v37  ;;  %v4883_v59 = vand.u32 2147483648, %v16058_v37  ;;  %v6576_v31 = vmul.f32 %v9758_v20, %v16230_v47  ;;  %vm16308_vm7 = vcmp.eq.f32.partialorder %v6584_v19, 8.507059e+37  ;;  %v16315_v33 = vpop.eup %9761 }
 0x3c4   : > { %9767 = vrcp.f32 %v16296_v11  ;;  %v4875_v52 = vmul.f32 %v16110_v17, %v4874_v57  ;;  %v5588_v41 = vadd.f32 %v5587_v54, %v15896_v28  ;;  %v6591_v34 = vmul.f32 %v16305_v43, %v16234_v58 }
 0x3c5   : > { %vm16319_vm5 = vcmp.eq.f32.partialorder %v6599_v12, 8.507059e+37  ;;  %v6602_v42 = vor.u32 1.1754944e-38, %v6601_v9  ;;  %9769 = vpow2.f32 %v8844_v63  ;;  %v5797_v50 = vadd.f32 %v5796_v8, %v15909_v7  ;;  %4031 = vmatmul.f32.gmra.mxu0 %v20392_v3  ;;  %v4187_v8 = vpop.f32.mrf.mxu1 }
 0x3c6   : > { %v6577_v48 = vsub.f32 1.0, %v6576_v31  ;;  %9771 = vrcp.f32 %v16301_v18  ;;  %vm4877_vm9 = vweird.f32 %v16058_v37  ;;  %vm4878_vm12 = vweird.f32 %v16110_v17  ;;  %v16327_v56 = vpop.eup %9763  ;;  %4240 = vmatmul.f32.gmra.mxu1 %v15639_v40 }
 0x3c7   : > { %vm6581_vm10 = vweird.f32 %v9758_v20  ;;  %v6592_v5 = vsub.f32 1.0, %v6591_v34  ;;  %vm16329_vm13 = vcmp.eq.f32.partialorder %v4881_v6, 8.507059e+37  ;;  %v4884_v39 = vor.u32 1.1754944e-38, %v4883_v59  ;;  %v16335_v62 = vpop.eup %9765  ;;  %vm16347_vm0 = vmor %vm4877_vm9, %vm4878_vm12 }
 0x3c8   : > { %v6578_v2 = vmul.f32 %v9758_v20, %v6577_v48  ;;  %vm6596_vm14 = vweird.f32 %v16305_v43  ;;  %v4876_v23 = vadd.f32 %v16110_v17, %v4875_v52  ;;  %v8893_v10 = vmul.f32 -1.442695, %v5588_v41  ;;  %vm6582_vm2 = vmor %vm6580_vm6, %vm6581_vm10 }
 0x3c9   : > { %v6593_v13 = vmul.f32 %v16305_v43, %v6592_v5  ;;  %vm6610_vm15 = vweird.f32 %v16296_v11  ;;  %v6614_v1 = vand.u32 2147483647, %v16296_v11  ;;  %v6616_v19 = vand.u32 2147483648, %v16296_v11  ;;  %vm6597_vm3 = vmor %vm6595_vm1, %vm6596_vm14 }
 0x3ca   : > { %v8894_v57 = vmul.f32 -1.442695, %v5797_v50  ;;  %v9768_v24 = vpop.eup %9767  ;;  %v6579_v29 = vadd.f32 %v9758_v20, %v6578_v2  ;;  %v4880_v12 = vsel %vm16347_vm0, %v16110_v17, %v4876_v23  ;;  %9773 = vpow2.f32 %v8893_v10 }
 0x3cb   : > { %v3979_v9 = vadd.f32 %v16076_v49, %v3978_v44  ;;  %v16355_v63 = vpop.eup %9769  ;;  %v6594_v37 = vadd.f32 %v16305_v43, %v6593_v13  ;;  %v6606_v54 = vmul.f32 %v9768_v24, %v16296_v11  ;;  %vm6625_vm11 = vweird.f32 %v16301_v18  ;;  %v20397_v44 = vld [vmem:[#allocation46_spill] sm:$0xff] }
 0x3cc   : > { %v6629_v46 = vand.u32 2147483647, %v16301_v18  ;;  %v6631_v17 = vand.u32 2147483648, %v16301_v18  ;;  %v9772_v6 = vpop.eup %9771  ;;  %v6583_v59 = vsel %vm6582_vm2, %v9758_v20, %v6579_v29  ;;  %v4885_v47 = vsel %vm16329_vm13, %v4884_v39, %v4880_v12  ;;  %v5799_v39 = vpop.f32.mrf.mxu3 }
 0x3cd   : > { %9775 = vpow2.f32 %v8894_v57  ;;  %v4188_v31 = vadd.f32 %v4187_v8, %v3979_v9  ;;  %v6588_v52 = vsel %vm16308_vm7, %v16294_v22, %v6583_v59  ;;  %v6598_v41 = vsel %vm6597_vm3, %v16305_v43, %v6594_v37  ;;  %5634 = vmatmul.f32.gmra.mxu2 %v4885_v47  ;;  %5843 = vmatmul.f32.gmra.mxu3 %v4885_v47  ;;  %v5590_v22 = vpop.f32.mrf.mxu2  ;;  %v3981_v8 = vpop.f32.mrf.mxu0 }
 0x3ce   : > { %v6607_v34 = vsub.f32 1.0, %v6606_v54  ;;  %v6621_v20 = vmul.f32 %v9772_v6, %v16301_v18  ;;  %8411 = vst [vmem:[%s16097_s15 + $0x30] sm:$0xff] %v6588_v52  ;;  %v6603_v58 = vsel %vm16319_vm5, %v6602_v42, %v6598_v41  ;;  %vm16379_vm8 = vcmp.eq.f32.partialorder %v6614_v1, 8.507059e+37  ;;  %4034 = vmatmul.f32.gmra.mxu0 %v20397_v44  ;;  %4243 = vmatmul.f32.gmra.mxu1 %v15653_v21  ;;  %v20404_v52 = vld [vmem:[#allocation27_spill] sm:$0xff] }
 0x3cf   : > { %v8845_v48 = vmul.f32 -1.442695, %v4188_v31  ;;  %v4888_v25 = vmul.f32 %v16327_v56, %v16239_v35  ;;  %8412 = vst [vmem:[%s16097_s15 + $0x38] sm:$0xff] %v6603_v58  ;;  %vm6611_vm4 = vweird.f32 %v9768_v24  ;;  %v6617_v5 = vor.u32 1.1754944e-38, %v6616_v19 }
 0x3d0   : > { %v6608_v43 = vmul.f32 %v9768_v24, %v6607_v34  ;;  %v6622_v32 = vsub.f32 1.0, %v6621_v20  ;;  %v9774_v61 = vpop.eup %9773  ;;  %vm6626_vm6 = vweird.f32 %v9772_v6  ;;  %vm16388_vm1 = vcmp.eq.f32.partialorder %v6629_v46, 8.507059e+37  ;;  %vm6612_vm7 = vmor %vm6610_vm15, %vm6611_vm4 }
 0x3d1   : > { %v6632_v3 = vor.u32 1.1754944e-38, %v6631_v17  ;;  %v4889_v2 = vsub.f32 1.0, %v4888_v25  ;;  %v16392_v13 = vadd.f32 1.0, %v9774_v61  ;;  %v5591_v1 = vadd.f32 %v5590_v22, %v15896_v28  ;;  %vm6627_vm5 = vmor %vm6625_vm11, %vm6626_vm6  ;;  %v4190_v25 = vpop.f32.mrf.mxu1 }
 0x3d2   : > { %v6609_v23 = vadd.f32 %v9768_v24, %v6608_v43  ;;  %v6623_v10 = vmul.f32 %v9772_v6, %v6622_v32  ;;  %9777 = vpow2.f32 %v8845_v48  ;;  %v4896_v40 = vand.u32 2147483647, %v16239_v35 }
 0x3d3   : > { %v9776_v19 = vpop.eup %9775  ;;  %v4890_v21 = vmul.f32 %v16327_v56, %v4889_v2  ;;  %v5800_v57 = vadd.f32 %v5799_v39, %v15909_v7  ;;  %9779 = vrcp.f32 %v16392_v13  ;;  %v4898_v9 = vand.u32 2147483648, %v16239_v35 }
 0x3d4   : > { %v6613_v29 = vsel %vm6612_vm7, %v9768_v24, %v6609_v23  ;;  %v6624_v12 = vadd.f32 %v9772_v6, %v6623_v10  ;;  %v16408_v11 = vadd.f32 1.0, %v9776_v19  ;;  %vm4892_vm9 = vweird.f32 %v16239_v35 }
 0x3d5   : > { %v6618_v37 = vsel %vm16379_vm8, %v6617_v5, %v6613_v29  ;;  %vm4893_vm12 = vweird.f32 %v16327_v56  ;;  %v6644_v54 = vand.u32 2147483647, %v16392_v13  ;;  %v4891_v46 = vadd.f32 %v16327_v56, %v4890_v21  ;;  %v5593_v22 = vpop.f32.mrf.mxu2 }
 0x3d6   : > { %8413 = vst [vmem:[%s16097_s15 + $0x40] sm:$0xff] %v6618_v37  ;;  %v6628_v24 = vsel %vm6627_vm5, %v9772_v6, %v6624_v12  ;;  %v8895_v17 = vmul.f32 -1.442695, %v5591_v1  ;;  %v6646_v18 = vand.u32 2147483648, %v16392_v13  ;;  %9781 = vrcp.f32 %v16408_v11  ;;  %vm16420_vm10 = vmor %vm4892_vm9, %vm4893_vm12  ;;  %4037 = vmatmul.f32.gmra.mxu0 %v20404_v52  ;;  %4246 = vmatmul.f32.gmra.mxu1 %v15719_v15 }
 0x3d7   : > { %v6633_v59 = vsel %vm16388_vm1, %v6632_v3, %v6628_v24  ;;  %v8896_v47 = vmul.f32 -1.442695, %v5800_v57  ;;  %vm16424_vm13 = vcmp.eq.f32.partialorder %v4896_v40, 8.507059e+37  ;;  %v4899_v31 = vor.u32 1.1754944e-38, %v4898_v9  ;;  %v5802_v9 = vpop.f32.mrf.mxu3 }
 0x3d8   : > { %8414 = vst [vmem:[%s16097_s15 + $0x48] sm:$0xff] %v6633_v59  ;;  %v16432_v41 = vadd.f32 %v15616_v53, %v16286_v55  ;;  %v3541_v34 = vand.u32 2147483647, %v15530_v4  ;;  %v9778_v20 = vpop.eup %9777  ;;  %v4895_v58 = vsel %vm16420_vm10, %v16327_v56, %v4891_v46  ;;  %9783 = vpow2.f32 %v8895_v17  ;;  %v20407_v17 = vld [vmem:[#allocation29_spill] sm:$0xff] }
 0x3d9   : > { %v3982_v50 = vadd.f32 %v16076_v49, %v3981_v8  ;;  %v4903_v48 = vmul.f32 %v16335_v62, %v16246_v60  ;;  %vm3537_vm14 = vweird.f32 %v15530_v4  ;;  %vm3538_vm15 = vweird.f32 %v15616_v53  ;;  %v9780_v15 = vpop.eup %9779 }
 0x3da   : > { %9785 = vrcp.f32 %v16299_v0  ;;  %v16445_v55 = vadd.f32 1.0, %v16355_v63  ;;  %vm6640_vm0 = vweird.f32 %v16392_v13  ;;  %v4900_v56 = vsel %vm16424_vm13, %v4899_v31, %v4895_v58  ;;  %vm16495_vm9 = vmor %vm3537_vm14, %vm3538_vm15 }
 0x3db   : > { %v6636_v43 = vmul.f32 %v9780_v15, %v16392_v13  ;;  %vm16451_vm2 = vcmp.eq.f32.partialorder %v6644_v54, 8.507059e+37  ;;  %v6647_v32 = vor.u32 1.1754944e-38, %v6646_v18  ;;  %5637 = vmatmul.f32.gmra.mxu2 %v4900_v56  ;;  %5846 = vmatmul.f32.gmra.mxu3 %v4900_v56  ;;  %9787 = vpow2.f32 %v8896_v47  ;;  %v3984_v18 = vpop.f32.mrf.mxu0 }
 0x3dc   : > { %v4191_v39 = vadd.f32 %v4190_v25, %v3982_v50  ;;  %vm6655_vm11 = vweird.f32 %v16408_v11  ;;  %v6659_v63 = vand.u32 2147483647, %v16408_v11  ;;  %v6661_v44 = vand.u32 2147483648, %v16408_v11  ;;  %v9782_v3 = vpop.eup %9781 }
 0x3dd   : > { %v16458_v61 = vadd.f32 1.0, %v9778_v20  ;;  %v4904_v42 = vsub.f32 1.0, %v4903_v48  ;;  %v6637_v2 = vsub.f32 1.0, %v6636_v43  ;;  %v4911_v10 = vand.u32 2147483647, %v16246_v60 }
 0x3de   : > { %v8846_v23 = vmul.f32 -1.442695, %v4191_v39  ;;  %v5594_v1 = vadd.f32 %v5593_v22, %v15896_v28  ;;  %vm6641_vm3 = vweird.f32 %v9780_v15  ;;  %v6651_v19 = vmul.f32 %v9782_v3, %v16408_v11  ;;  %v9784_v57 = vpop.eup %9783  ;;  %4040 = vmatmul.f32.gmra.mxu0 %v20407_v17  ;;  %4249 = vmatmul.f32.gmra.mxu1 %v15779_v51  ;;  %v4193_v39 = vpop.f32.mrf.mxu1 }
 0x3df   : > { %v4905_v21 = vmul.f32 %v16335_v62, %v4904_v42  ;;  %v4913_v40 = vand.u32 2147483648, %v16246_v60  ;;  %v6638_v29 = vmul.f32 %v9780_v15, %v6637_v2  ;;  %vm4907_vm8 = vweird.f32 %v16246_v60  ;;  %vm6642_vm6 = vmor %vm6640_vm0, %vm6641_vm3  ;;  %v20421_v60 = vld [vmem:[#allocation42_spill] sm:$0xff] }
 0x3e0   : > { %vm4908_vm4 = vweird.f32 %v16335_v62  ;;  %v8897_v12 = vmul.f32 -1.442695, %v5594_v1  ;;  %v16467_v37 = vpop.eup %9785  ;;  %v6652_v24 = vsub.f32 1.0, %v6651_v19  ;;  %v16469_v54 = vadd.f32 1.0, %v9784_v57 }
 0x3e1   : > { %9789 = vpow2.f32 %v8846_v23  ;;  %v4906_v46 = vadd.f32 %v16335_v62, %v4905_v21  ;;  %v9788_v8 = vpop.eup %9787  ;;  %v6639_v59 = vadd.f32 %v9780_v15, %v6638_v29  ;;  %vm6656_vm1 = vweird.f32 %v9782_v3  ;;  %vm4909_vm5 = vmor %vm4907_vm8, %vm4908_vm4 }
 0x3e2   : > { %vm4912_vm7 = vcmp.eq.f32.partialorder %v4911_v10, 8.507059e+37  ;;  %9791 = vpow2.f32 %v8897_v12  ;;  %v6653_v47 = vmul.f32 %v9782_v3, %v6652_v24  ;;  %v4914_v51 = vor.u32 1.1754944e-38, %v4913_v40  ;;  %vm6657_vm12 = vmor %vm6655_vm11, %vm6656_vm1  ;;  %v5596_v12 = vpop.f32.mrf.mxu2 }
 0x3e3   : > { %9793 = vrcp.f32 %v16469_v54  ;;  %v5803_v35 = vadd.f32 %v5802_v9, %v15909_v7  ;;  %v6643_v6 = vsel %vm6642_vm6, %v9780_v15, %v6639_v59  ;;  %v16483_v31 = vadd.f32 1.0, %v9788_v8  ;;  %v5805_v9 = vpop.f32.mrf.mxu3  ;;  %v3987_v8 = vpop.f32.mrf.mxu0 }
 0x3e4   : > { %v4910_v13 = vsel %vm4909_vm5, %v16335_v62, %v4906_v46  ;;  %v4918_v52 = vmul.f32 %v16467_v37, %v16299_v0  ;;  %v6648_v20 = vsel %vm16451_vm2, %v6647_v32, %v6643_v6  ;;  %v6654_v58 = vadd.f32 %v9782_v3, %v6653_v47 }
 0x3e5   : > { %v4915_v50 = vsel %vm4912_vm7, %v4914_v51, %v4910_v13  ;;  %v3985_v48 = vadd.f32 %v16076_v49, %v3984_v18  ;;  %8415 = vst [vmem:[%s16097_s15 + $0x50] sm:$0xff] %v6648_v20  ;;  %v6662_v62 = vor.u32 1.1754944e-38, %v6661_v44  ;;  %v6674_v15 = vand.u32 2147483647, %v16469_v54 }
 0x3e6   : > { %v6676_v56 = vand.u32 2147483648, %v16469_v54  ;;  %9795 = vrcp.f32 %v16483_v31  ;;  %5640 = vmatmul.f32.gmra.mxu2 %v4915_v50  ;;  %5849 = vmatmul.f32.gmra.mxu3 %v4915_v50  ;;  %v6658_v22 = vsel %vm6657_vm12, %v9782_v3, %v6654_v58  ;;  %vm6660_vm10 = vcmp.eq.f32.partialorder %v6659_v63, 8.507059e+37  ;;  %v20410_v3 = vld [vmem:[#allocation54_spill] sm:$0xff] }
 0x3e7   : > { %v9790_v25 = vpop.eup %9789  ;;  %v8898_v43 = vmul.f32 -1.442695, %v5803_v35  ;;  %v16508_v5 = vor.u32 1.1754944e-38, %v3543_v36  ;;  %9797 = vrcp.f32 %v16445_v55  ;;  %v6663_v32 = vsel %vm6660_vm10, %v6662_v62, %v6658_v22  ;;  %4043 = vmatmul.f32.gmra.mxu0 %v20410_v3  ;;  %4252 = vmatmul.f32.gmra.mxu1 %v15830_v27  ;;  %v4196_v3 = vpop.f32.mrf.mxu1 }
 0x3e8   : > { %v9792_v11 = vpop.eup %9791  ;;  %v4919_v44 = vsub.f32 1.0, %v4918_v52  ;;  %v3540_v42 = vsel %vm16495_vm9, %v15616_v53, %v16432_v41  ;;  %8416 = vst [vmem:[%s16097_s15 + $0x58] sm:$0xff] %v6663_v32  ;;  %9799 = vrcp.f32 %v16458_v61  ;;  %vm6670_vm13 = vweird.f32 %v16469_v54 }
 0x3e9   : > { %v9794_v2 = vpop.eup %9793  ;;  %v16518_v63 = vadd.f32 1.0, %v9792_v11  ;;  %v4194_v36 = vadd.f32 %v4193_v39, %v3985_v48  ;;  %vm16523_vm14 = vcmp.eq.f32.partialorder %v6674_v15, 8.507059e+37  ;;  %v6677_v1 = vor.u32 1.1754944e-38, %v6676_v56  ;;  %v20415_v11 = vld [vmem:[#allocation79_spill] sm:$0xff] }
 0x3ea   : > { %v6666_v23 = vmul.f32 %v9794_v2, %v16469_v54  ;;  %9801 = vpow2.f32 %v8898_v43  ;;  %vm6685_vm15 = vweird.f32 %v16483_v31  ;;  %v6689_v19 = vand.u32 2147483647, %v16483_v31 }
 0x3eb   : > { %v6691_v21 = vand.u32 2147483648, %v16483_v31  ;;  %v16530_v40 = vadd.f32 1.0, %v9790_v25  ;;  %9803 = vrcp.f32 %v16518_v63  ;;  %v4920_v29 = vmul.f32 %v16467_v37, %v4919_v44 }
 0x3ec   : > { %v9796_v57 = vpop.eup %9795  ;;  %v6667_v27 = vsub.f32 1.0, %v6666_v23  ;;  %vm4922_vm0 = vweird.f32 %v16299_v0  ;;  %vm4923_vm2 = vweird.f32 %v16467_v37  ;;  %vm6671_vm11 = vweird.f32 %v9794_v2 }
 0x3ed   : > { %v6681_v24 = vmul.f32 %v9796_v57, %v16483_v31  ;;  %v6704_v46 = vand.u32 2147483647, %v16518_v63  ;;  %v8847_v17 = vmul.f32 -1.442695, %v4194_v36  ;;  %v16538_v59 = vpop.eup %9797  ;;  %v4921_v47 = vadd.f32 %v16467_v37, %v4920_v29  ;;  %vm16549_vm8 = vmor %vm4922_vm0, %vm4923_vm2 }
 0x3ee   : > { %v6668_v18 = vmul.f32 %v9794_v2, %v6667_v27  ;;  %v4926_v51 = vand.u32 2147483647, %v16299_v0  ;;  %v4928_v35 = vand.u32 2147483648, %v16299_v0  ;;  %v16543_v6 = vpop.eup %9799  ;;  %vm6686_vm3 = vweird.f32 %v9796_v57  ;;  %vm6672_vm4 = vmor %vm6670_vm13, %vm6671_vm11 }
 0x3ef   : > { %v6682_v13 = vsub.f32 1.0, %v6681_v24  ;;  %v5597_v20 = vadd.f32 %v5596_v12, %v15896_v28  ;;  %v5806_v58 = vadd.f32 %v5805_v9, %v15909_v7  ;;  %v4925_v62 = vsel %vm16549_vm8, %v16467_v37, %v4921_v47  ;;  %4046 = vmatmul.f32.gmra.mxu0 %v20415_v11  ;;  %4255 = vmatmul.f32.gmra.mxu1 %v15921_v45  ;;  %vm6687_vm1 = vmor %vm6685_vm15, %vm6686_vm3  ;;  %v5808_v47 = vpop.f32.mrf.mxu3  ;;  %v4199_v41 = vpop.f32.mrf.mxu1 }
 0x3f0   : > { %v9802_v50 = vpop.eup %9801  ;;  %v6669_v48 = vadd.f32 %v9794_v2, %v6668_v18  ;;  %v4929_v15 = vor.u32 1.1754944e-38, %v4928_v35  ;;  %v3988_v56 = vadd.f32 %v16076_v49, %v3987_v8  ;;  %vm4927_vm6 = vcmp.eq.f32.partialorder %v4926_v51, 8.507059e+37  ;;  %v20420_v51 = vld [vmem:[#allocation60_spill] sm:$0xff] }
 0x3f1   : > { %v9804_v25 = vpop.eup %9803  ;;  %v6683_v0 = vmul.f32 %v9796_v57, %v6682_v13  ;;  %v16562_v22 = vadd.f32 1.0, %v9802_v50  ;;  %v8899_v43 = vmul.f32 -1.442695, %v5597_v20  ;;  %9805 = vpow2.f32 %v8847_v17 }
 0x3f2   : > { %v6673_v32 = vsel %vm6672_vm4, %v9794_v2, %v6669_v48  ;;  %v6696_v37 = vmul.f32 %v9804_v25, %v16518_v63  ;;  %v4930_v49 = vsel %vm4927_vm6, %v4929_v15, %v4925_v62  ;;  %v6706_v44 = vand.u32 2147483648, %v16518_v63  ;;  %v3990_v62 = vpop.f32.mrf.mxu0 }
 0x3f3   : > { %v6678_v39 = vsel %vm16523_vm14, %v6677_v1, %v6673_v32  ;;  %v6684_v54 = vadd.f32 %v9796_v57, %v6683_v0  ;;  %9807 = vrcp.f32 %v16562_v22  ;;  %5643 = vmatmul.f32.gmra.mxu2 %v4930_v49  ;;  %5852 = vmatmul.f32.gmra.mxu3 %v4930_v49  ;;  %vm6690_vm7 = vcmp.eq.f32.partialorder %v6689_v19, 8.507059e+37  ;;  %v5599_v19 = vpop.f32.mrf.mxu2  ;;  %v16613_v32 = vld [vmem:[#allocation10] ss:$0 sm:$0xff] }
 0x3f4   : > { %8417 = vst [vmem:[%s16097_s15 + $0x60] sm:$0xff] %v6678_v39  ;;  %v6692_v45 = vor.u32 1.1754944e-38, %v6691_v21  ;;  %v6697_v2 = vsub.f32 1.0, %v6696_v37  ;;  %v8900_v36 = vmul.f32 -1.442695, %v5806_v58  ;;  %9809 = vpow2.f32 %v8899_v43 }
 0x3f5   : > { %v6688_v23 = vsel %vm6687_vm1, %v9796_v57, %v6684_v54  ;;  %v4197_v10 = vadd.f32 %v4196_v3, %v3988_v56  ;;  %v4933_v1 = vmul.f32 %v16538_v59, %v16445_v55  ;;  %vm16579_vm5 = vcmp.eq.f32.partialorder %v3541_v34, 8.507059e+37 }
 0x3f6   : > { %v6693_v31 = vsel %vm6690_vm7, %v6692_v45, %v6688_v23  ;;  %v6698_v29 = vmul.f32 %v9804_v25, %v6697_v2  ;;  %vm6700_vm12 = vweird.f32 %v16518_v63  ;;  %vm6701_vm10 = vweird.f32 %v9804_v25 }
 0x3f7   : > { %8418 = vst [vmem:[%s16097_s15 + $0x68] sm:$0xff] %v6693_v31  ;;  %vm16585_vm13 = vcmp.eq.f32.partialorder %v6704_v46, 8.507059e+37  ;;  %v6707_v57 = vor.u32 1.1754944e-38, %v6706_v44  ;;  %v8848_v12 = vmul.f32 -1.442695, %v4197_v10  ;;  %v4934_v9 = vsub.f32 1.0, %v4933_v1  ;;  %v9806_v24 = vpop.eup %9805  ;;  %vm6702_vm14 = vmor %vm6700_vm12, %vm6701_vm10  ;;  %4049 = vmatmul.f32.gmra.mxu0 %v20420_v51  ;;  %4258 = vmatmul.f32.gmra.mxu1 %v15932_v14 }
 0x3f8   : > { %v6699_v4 = vadd.f32 %v9804_v25, %v6698_v29  ;;  %v6719_v34 = vand.u32 2147483647, %v16562_v22  ;;  %v6721_v17 = vand.u32 2147483648, %v16562_v22  ;;  %9811 = vpow2.f32 %v8900_v36 }
 0x3f9   : > { %v9808_v8 = vpop.eup %9807  ;;  %v4935_v63 = vmul.f32 %v16538_v59, %v4934_v9  ;;  %vm4938_vm15 = vweird.f32 %v16538_v59  ;;  %v4943_v46 = vand.u32 2147483648, %v16445_v55  ;;  %v5600_v18 = vadd.f32 %v5599_v19, %v15896_v28 }
 0x3fa   : > { %v6703_v35 = vsel %vm6702_vm14, %v9804_v25, %v6699_v4  ;;  %v6711_v13 = vmul.f32 %v9808_v8, %v16562_v22  ;;  %vm4937_vm0 = vweird.f32 %v16445_v55  ;;  %v4941_v52 = vand.u32 2147483647, %v16445_v55  ;;  %v9810_v20 = vpop.eup %9809 }
 0x3fb   : > { %v6708_v58 = vsel %vm16585_vm13, %v6707_v57, %v6703_v35  ;;  %9813 = vpow2.f32 %v8848_v12  ;;  %v4936_v50 = vadd.f32 %v16538_v59, %v4935_v63  ;;  %v8901_v48 = vmul.f32 -1.442695, %v5600_v18  ;;  %vm4939_vm2 = vmor %vm4937_vm0, %vm4938_vm15  ;;  %v5602_v12 = vpop.f32.mrf.mxu2 }
 0x3fc   : > { %8419 = vst [vmem:[%s16097_s15 + $0x70] sm:$0xff] %v6708_v58  ;;  %v6712_v15 = vsub.f32 1.0, %v6711_v13  ;;  %v16604_v56 = vadd.f32 1.0, %v9806_v24  ;;  %v16606_v14 = vadd.f32 1.0, %v9810_v20  ;;  %v5809_v55 = vadd.f32 %v5808_v47, %v15909_v7 }
 0x3fd   : > { %vm6716_vm11 = vweird.f32 %v9808_v8  ;;  %v4940_v25 = vsel %vm4939_vm2, %v16538_v59, %v4936_v50  ;;  %v4944_v0 = vor.u32 1.1754944e-38, %v4943_v46  ;;  %9815 = vpow2.f32 %v8901_v48 }
 0x3fe   : > { %v9812_v43 = vpop.eup %9811  ;;  %v6713_v11 = vmul.f32 %v9808_v8, %v6712_v15  ;;  %9817 = vrcp.f32 %v16606_v14  ;;  %vm4942_vm3 = vcmp.eq.f32.partialorder %v4941_v52, 8.507059e+37  ;;  %v3991_v37 = vadd.f32 %v16613_v32, %v3990_v62  ;;  %v5811_v52 = vpop.f32.mrf.mxu3 }
 0x3ff   : > { %v16616_v49 = vadd.f32 1.0, %v9812_v43  ;;  %v4945_v39 = vsel %vm4942_vm3, %v4944_v0, %v4940_v25  ;;  %v8902_v54 = vmul.f32 -1.442695, %v5809_v55  ;;  %v4948_v44 = vmul.f32 %v16543_v6, %v16458_v61  ;;  %4052 = vmatmul.f32.gmra.mxu0 %v20421_v60  ;;  %4261 = vmatmul.f32.gmra.mxu1 %v16263_v16  ;;  %v3993_v15 = vpop.f32.mrf.mxu0  ;;  %v20428_v55 = vld [vmem:[#allocation40_spill] sm:$0xff] }
 0x400   : > { %9819 = vrcp.f32 %v16530_v40  ;;  %v6714_v59 = vadd.f32 %v9808_v8, %v6713_v11  ;;  %vm6715_vm8 = vweird.f32 %v16562_v22  ;;  %5646 = vmatmul.f32.gmra.mxu2 %v4945_v39  ;;  %5855 = vmatmul.f32.gmra.mxu3 %v4945_v39  ;;  %v16630_v45 = vsel %vm16579_vm5, %v16508_v5, %v3540_v42 }
 0x401   : > { %v9814_v2 = vpop.eup %9813  ;;  %vm6717_vm4 = vmor %vm6715_vm8, %vm6716_vm11  ;;  %v6722_v36 = vor.u32 1.1754944e-38, %v6721_v17  ;;  %v6734_v3 = vand.u32 2147483647, %v16606_v14  ;;  %v6736_v22 = vand.u32 2147483648, %v16606_v14  ;;  %9821 = vrcp.f32 %v16616_v49 }
 0x402   : > { %v6718_v53 = vsel %vm6717_vm4, %v9808_v8, %v6714_v59  ;;  %vm6720_vm9 = vcmp.eq.f32.partialorder %v6719_v34, 8.507059e+37  ;;  %9823 = vrcp.f32 %v16604_v56  ;;  %vm4952_vm6 = vweird.f32 %v16458_v61 }
 0x403   : > { %v9816_v5 = vpop.eup %9815  ;;  %v6723_v42 = vsel %vm6720_vm9, %v6722_v36, %v6718_v53  ;;  %9825 = vpow2.f32 %v8902_v54  ;;  %v4200_v23 = vadd.f32 %v4199_v41, %v3991_v37  ;;  %v4949_v10 = vsub.f32 1.0, %v4948_v44  ;;  %v4202_v41 = vpop.f32.mrf.mxu1 }
 0x404   : > { %v9818_v1 = vpop.eup %9817  ;;  %8420 = vst [vmem:[%s16097_s15 + $0x78] sm:$0xff] %v6723_v42  ;;  %vm6730_vm1 = vweird.f32 %v16606_v14  ;;  %v6749_v27 = vand.u32 2147483647, %v16616_v49  ;;  %v16643_v31 = vadd.f32 1.0, %v9814_v2  ;;  %v16645_v16 = vadd.f32 1.0, %v9816_v5  ;;  %v5605_v5 = vpop.f32.mrf.mxu2 }
 0x405   : > { %v6726_v29 = vmul.f32 %v9818_v1, %v16606_v14  ;;  %vm16648_vm7 = vcmp.eq.f32.partialorder %v6734_v3, 8.507059e+37  ;;  %v6737_v21 = vor.u32 1.1754944e-38, %v6736_v22  ;;  %v4950_v57 = vmul.f32 %v16543_v6, %v4949_v10 }
 0x406   : > { %vm4953_vm5 = vweird.f32 %v16543_v6  ;;  %v16654_v9 = vpop.eup %9819  ;;  %vm6745_vm12 = vweird.f32 %v16616_v49  ;;  %v6751_v24 = vand.u32 2147483648, %v16616_v49  ;;  %9827 = vrcp.f32 %v16645_v16 }
 0x407   : > { %v4956_v4 = vand.u32 2147483647, %v16458_v61  ;;  %v9822_v34 = vpop.eup %9821  ;;  %v6727_v17 = vsub.f32 1.0, %v6726_v29  ;;  %v8849_v8 = vmul.f32 -1.442695, %v4200_v23  ;;  %v4951_v63 = vadd.f32 %v16543_v6, %v4950_v57  ;;  %vm16674_vm14 = vmor %vm4952_vm6, %vm4953_vm5  ;;  %4055 = vmatmul.f32.gmra.mxu0 %v20428_v55  ;;  %4264 = vmatmul.f32.gmra.mxu1 %v16273_v38 }
 0x408   : > { %v4958_v46 = vand.u32 2147483648, %v16458_v61  ;;  %v16662_v18 = vpop.eup %9823  ;;  %vm6731_vm10 = vweird.f32 %v9818_v1  ;;  %v6741_v47 = vmul.f32 %v9822_v34, %v16616_v49  ;;  %vm16665_vm13 = vcmp.eq.f32.partialorder %v6749_v27, 8.507059e+37  ;;  %v20431_v49 = vld [vmem:[#allocation71_spill] sm:$0xff] }
 0x409   : > { %v6764_v35 = vand.u32 2147483647, %v16645_v16  ;;  %v9826_v20 = vpop.eup %9825  ;;  %v6728_v58 = vmul.f32 %v9818_v1, %v6727_v17  ;;  %v4955_v50 = vsel %vm16674_vm14, %v16543_v6, %v4951_v63  ;;  %v5603_v62 = vadd.f32 %v5602_v12, %v15896_v28  ;;  %vm6732_vm0 = vmor %vm6730_vm1, %vm6731_vm10 }
 0x40a   : > { %v4959_v48 = vor.u32 1.1754944e-38, %v4958_v46  ;;  %v6742_v61 = vsub.f32 1.0, %v6741_v47  ;;  %v6766_v25 = vand.u32 2147483648, %v16645_v16  ;;  %v16685_v0 = vadd.f32 1.0, %v9826_v20  ;;  %v3996_v20 = vpop.f32.mrf.mxu0 }
 0x40b   : > { %vm4957_vm15 = vcmp.eq.f32.partialorder %v4956_v4, 8.507059e+37  ;;  %v6729_v43 = vadd.f32 %v9818_v1, %v6728_v58  ;;  %v8903_v37 = vmul.f32 -1.442695, %v5603_v62  ;;  %v5812_v39 = vadd.f32 %v5811_v52, %v15909_v7 }
 0x40c   : > { %v4960_v11 = vsel %vm4957_vm15, %v4959_v48, %v4955_v50  ;;  %v9828_v6 = vpop.eup %9827  ;;  %v6743_v54 = vmul.f32 %v9822_v34, %v6742_v61  ;;  %vm6746_vm2 = vweird.f32 %v9822_v34  ;;  %9829 = vrcp.f32 %v16685_v0 }
 0x40d   : > { %5649 = vmatmul.f32.gmra.mxu2 %v4960_v11  ;;  %5858 = vmatmul.f32.gmra.mxu3 %v4960_v11  ;;  %v3994_v38 = vadd.f32 %v16613_v32, %v3993_v15  ;;  %v6733_v44 = vsel %vm6732_vm0, %v9818_v1, %v6729_v43  ;;  %v6752_v59 = vor.u32 1.1754944e-38, %v6751_v24  ;;  %v6756_v2 = vmul.f32 %v9828_v6, %v16645_v16  ;;  %vm6747_vm8 = vmor %vm6745_vm12, %vm6746_vm2  ;;  %v5814_v24 = vpop.f32.mrf.mxu3 }
 0x40e   : > { %9831 = vpow2.f32 %v8849_v8  ;;  %v6738_v36 = vsel %vm16648_vm7, %v6737_v21, %v6733_v44  ;;  %v6744_v3 = vadd.f32 %v9822_v34, %v6743_v54  ;;  %vm6760_vm11 = vweird.f32 %v16645_v16 }
 0x40f   : > { %vm16697_vm3 = vcmp.eq.f32.partialorder %v6764_v35, 8.507059e+37  ;;  %8421 = vst [vmem:[%s16097_s15 + $0x80] sm:$0xff] %v6738_v36  ;;  %v6757_v22 = vsub.f32 1.0, %v6756_v2  ;;  %v6767_v60 = vor.u32 1.1754944e-38, %v6766_v25  ;;  %9833 = vpow2.f32 %v8903_v37  ;;  %4058 = vmatmul.f32.gmra.mxu0 %v20431_v49  ;;  %4267 = vmatmul.f32.gmra.mxu1 %v16630_v45 }
 0x410   : > { %v8904_v53 = vmul.f32 -1.442695, %v5812_v39  ;;  %v6748_v42 = vsel %vm6747_vm8, %v9822_v34, %v6744_v3  ;;  %v6779_v23 = vand.u32 2147483647, %v16685_v0  ;;  %v4203_v10 = vadd.f32 %v4202_v41, %v3994_v38 }
 0x411   : > { %v4963_v1 = vmul.f32 %v16654_v9, %v16530_v40  ;;  %v6753_v27 = vsel %vm16665_vm13, %v6752_v59, %v6748_v42  ;;  %v6758_v29 = vmul.f32 %v9828_v6, %v6757_v22  ;;  %vm6761_vm4 = vweird.f32 %v9828_v6 }
 0x412   : > { %vm6775_vm9 = vweird.f32 %v16685_v0  ;;  %9835 = vpow2.f32 %v8904_v53  ;;  %v9830_v19 = vpop.eup %9829  ;;  %8422 = vst [vmem:[%s16097_s15 + $0x88] sm:$0xff] %v6753_v27  ;;  %v6781_v21 = vand.u32 2147483648, %v16685_v0  ;;  %vm4967_vm6 = vweird.f32 %v16530_v40  ;;  %vm6762_vm1 = vmor %vm6760_vm11, %vm6761_vm4 }
 0x413   : > { %v4964_v57 = vsub.f32 1.0, %v4963_v1  ;;  %v5606_v12 = vadd.f32 %v5605_v5, %v15896_v28  ;;  %v6759_v34 = vadd.f32 %v9828_v6, %v6758_v29  ;;  %v6771_v17 = vmul.f32 %v9830_v19, %v16685_v0 }
 0x414   : > { %v9832_v4 = vpop.eup %9831  ;;  %v8850_v8 = vmul.f32 -1.442695, %v4203_v10  ;;  %v4971_v63 = vand.u32 2147483647, %v16530_v40  ;;  %vm4968_vm7 = vweird.f32 %v16654_v9  ;;  %v4973_v46 = vand.u32 2147483648, %v16530_v40 }
 0x415   : > { %v4965_v45 = vmul.f32 %v16654_v9, %v4964_v57  ;;  %v8905_v47 = vmul.f32 -1.442695, %v5606_v12  ;;  %v9834_v51 = vpop.eup %9833  ;;  %v6763_v35 = vsel %vm6762_vm1, %v9828_v6, %v6759_v34  ;;  %v6772_v13 = vsub.f32 1.0, %v6771_v17  ;;  %vm4969_vm10 = vmor %vm4967_vm6, %vm4968_vm7  ;;  %v5608_v12 = vpop.f32.mrf.mxu2 }
 0x416   : > { %vm6776_vm5 = vweird.f32 %v9830_v19  ;;  %v5815_v52 = vadd.f32 %v5814_v24, %v15909_v7  ;;  %v6768_v58 = vsel %vm16697_vm3, %v6767_v60, %v6763_v35  ;;  %v16727_v16 = vadd.f32 1.0, %v9834_v51 }
 0x417   : > { %v4966_v50 = vadd.f32 %v16654_v9, %v4965_v45  ;;  %9837 = vpow2.f32 %v8905_v47  ;;  %8423 = vst [vmem:[%s16097_s15 + $0x90] sm:$0xff] %v6768_v58  ;;  %v6773_v62 = vmul.f32 %v9830_v19, %v6772_v13  ;;  %vm16731_vm12 = vcmp.eq.f32.partialorder %v4971_v63, 8.507059e+37  ;;  %4061 = vmatmul.f32.gmra.mxu0 %v16280_v26  ;;  %vm6777_vm13 = vmor %vm6775_vm9, %vm6776_vm5  ;;  %v4205_v26 = vpop.f32.mrf.mxu1  ;;  %v5817_v63 = vpop.f32.mrf.mxu3 }
 0x418   : > { %v9836_v48 = vpop.eup %9835  ;;  %9839 = vpow2.f32 %v8850_v8  ;;  %v8906_v55 = vmul.f32 -1.442695, %v5815_v52  ;;  %v4974_v61 = vor.u32 1.1754944e-38, %v4973_v46  ;;  %v3997_v25 = vadd.f32 %v16613_v32, %v3996_v20  ;;  %v3999_v20 = vpop.f32.mrf.mxu0 }
 0x419   : > { %9841 = vrcp.f32 %v16727_v16  ;;  %v4978_v43 = vmul.f32 %v16662_v18, %v16604_v56  ;;  %v6774_v11 = vadd.f32 %v9830_v19, %v6773_v62  ;;  %v16743_v37 = vadd.f32 1.0, %v9836_v48 }
 0x41a   : > { %v4970_v39 = vsel %vm4969_vm10, %v16654_v9, %v4966_v50  ;;  %9843 = vpow2.f32 %v8906_v55  ;;  %vm6780_vm14 = vcmp.eq.f32.partialorder %v6779_v23, 8.507059e+37  ;;  %v6782_v40 = vor.u32 1.1754944e-38, %v6781_v21 }
 0x41b   : > { %v16750_v6 = vadd.f32 1.0, %v9832_v4  ;;  %v4975_v54 = vsel %vm16731_vm12, %v4974_v61, %v4970_v39  ;;  %v6778_v38 = vsel %vm6777_vm13, %v9830_v19, %v6774_v11  ;;  %v6794_v44 = vand.u32 2147483647, %v16727_v16 }
 0x41c   : > { %v6796_v9 = vand.u32 2147483648, %v16727_v16  ;;  %9845 = vrcp.f32 %v16743_v37  ;;  %5652 = vmatmul.f32.gmra.mxu2 %v4975_v54  ;;  %5861 = vmatmul.f32.gmra.mxu3 %v4975_v54  ;;  %v6783_v59 = vsel %vm6780_vm14, %v6782_v40, %v6778_v38  ;;  %v4206_v2 = vadd.f32 %v4205_v26, %v3997_v25 }
 0x41d   : > { %v9838_v0 = vpop.eup %9837  ;;  %9847 = vrcp.f32 %v15926_v30  ;;  %8424 = vst [vmem:[%s16097_s15 + $0x98] sm:$0xff] %v6783_v59  ;;  %v6811_v3 = vand.u32 2147483648, %v16743_v37  ;;  %v4979_v22 = vsub.f32 1.0, %v4978_v43  ;;  %vm6790_vm15 = vweird.f32 %v16727_v16 }
 0x41e   : > { %v9840_v36 = vpop.eup %9839  ;;  %9849 = vrcp.f32 %v16643_v31  ;;  %v16761_v14 = vadd.f32 1.0, %v9838_v0  ;;  %v6809_v53 = vand.u32 2147483647, %v16743_v37  ;;  %vm16767_vm0 = vcmp.eq.f32.partialorder %v6794_v44, 8.507059e+37 }
 0x41f   : > { %v9842_v60 = vpop.eup %9841  ;;  %9851 = vrcp.f32 %v16750_v6  ;;  %v6797_v23 = vor.u32 1.1754944e-38, %v6796_v9  ;;  %vm6805_vm2 = vweird.f32 %v16743_v37  ;;  %v16773_v10 = vadd.f32 1.0, %v9840_v36 }
 0x420   : > { %v9844_v41 = vpop.eup %9843  ;;  %v6786_v5 = vmul.f32 %v9842_v60, %v16727_v16  ;;  %9853 = vrcp.f32 %v16761_v14  ;;  %v8851_v27 = vmul.f32 -1.442695, %v4206_v2  ;;  %v4986_v29 = vand.u32 2147483647, %v16604_v56  ;;  %v4208_v2 = vpop.f32.mrf.mxu1 }
 0x421   : > { %v16775_v1 = vadd.f32 1.0, %v9844_v41  ;;  %v6812_v21 = vor.u32 1.1754944e-38, %v6811_v3  ;;  %v4980_v57 = vmul.f32 %v16662_v18, %v4979_v22  ;;  %vm4982_vm11 = vweird.f32 %v16604_v56 }
 0x422   : > { %v16778_v49 = vpop.eup %9845  ;;  %v6787_v19 = vsub.f32 1.0, %v6786_v5  ;;  %vm16786_vm3 = vcmp.eq.f32.partialorder %v6809_v53, 8.507059e+37  ;;  %v6824_v17 = vand.u32 2147483647, %v16761_v14  ;;  %vm4983_vm8 = vweird.f32 %v16662_v18 }
 0x423   : > { %v16782_v24 = vpop.eup %9847  ;;  %v6801_v4 = vmul.f32 %v16778_v49, %v16743_v37  ;;  %v4988_v8 = vand.u32 2147483648, %v16604_v56  ;;  %vm6791_vm4 = vweird.f32 %v9842_v60  ;;  %v6826_v47 = vand.u32 2147483648, %v16761_v14  ;;  %vm16810_vm7 = vmor %vm4982_vm11, %vm4983_vm8 }
 0x424   : > { %v16793_v45 = vpop.eup %9849  ;;  %v6788_v46 = vmul.f32 %v9842_v60, %v6787_v19  ;;  %9855 = vrcp.f32 %v16775_v1  ;;  %vm6820_vm9 = vweird.f32 %v16761_v14  ;;  %v4981_v13 = vadd.f32 %v16662_v18, %v4980_v57  ;;  %vm6792_vm5 = vmor %vm6790_vm15, %vm6791_vm4  ;;  %v5820_v57 = vpop.f32.mrf.mxu3 }
 0x425   : > { %v16797_v51 = vpop.eup %9851  ;;  %v6802_v35 = vsub.f32 1.0, %v6801_v4  ;;  %9857 = vpow2.f32 %v8851_v27  ;;  %vm16801_vm6 = vcmp.eq.f32.partialorder %v4986_v29, 8.507059e+37  ;;  %vm6806_vm1 = vweird.f32 %v16778_v49 }
 0x426   : > { %v9854_v58 = vpop.eup %9853  ;;  %v6789_v50 = vadd.f32 %v9842_v60, %v6788_v46  ;;  %v5609_v62 = vadd.f32 %v5608_v12, %v15896_v28  ;;  %v5818_v15 = vadd.f32 %v5817_v63, %v15909_v7  ;;  %vm16821_vm12 = vcmp.eq.f32.partialorder %v6824_v17, 8.507059e+37  ;;  %vm6807_vm13 = vmor %vm6805_vm2, %vm6806_vm1 }
 0x427   : > { %v6803_v55 = vmul.f32 %v16778_v49, %v6802_v35  ;;  %v6816_v61 = vmul.f32 %v9854_v58, %v16761_v14  ;;  %v6839_v56 = vand.u32 2147483647, %v16775_v1  ;;  %v4989_v43 = vor.u32 1.1754944e-38, %v4988_v8  ;;  %v4002_v8 = vpop.f32.mrf.mxu0 }
 0x428   : > { %v6793_v11 = vsel %vm6792_vm5, %v9842_v60, %v6789_v50  ;;  %v6827_v39 = vor.u32 1.1754944e-38, %v6826_v47  ;;  %v4985_v40 = vsel %vm16810_vm7, %v16662_v18, %v4981_v13  ;;  %v8907_v16 = vmul.f32 -1.442695, %v5609_v62  ;;  %v4211_v25 = vpop.f32.mrf.mxu1 }
 0x429   : > { %v6798_v54 = vsel %vm16767_vm0, %v6797_v23, %v6793_v11  ;;  %v6804_v38 = vadd.f32 %v16778_v49, %v6803_v55  ;;  %v6817_v44 = vsub.f32 1.0, %v6816_v61  ;;  %vm6835_vm10 = vweird.f32 %v16775_v1  ;;  %v5611_v23 = vpop.f32.mrf.mxu2 }
 0x42a   : > { %v4990_v9 = vsel %vm16801_vm6, %v4989_v43, %v4985_v40  ;;  %v9856_v26 = vpop.eup %9855  ;;  %8425 = vst [vmem:[%s16097_s15 + $0xa0] sm:$0xff] %v6798_v54  ;;  %v6841_v18 = vand.u32 2147483648, %v16775_v1  ;;  %v8908_v0 = vmul.f32 -1.442695, %v5818_v15  ;;  %v4000_v59 = vadd.f32 %v16613_v32, %v3999_v20 }
 0x42b   : > { %5655 = vmatmul.f32.gmra.mxu2 %v4990_v9  ;;  %5864 = vmatmul.f32.gmra.mxu3 %v4990_v9  ;;  %v4993_v36 = vmul.f32 %v16793_v45, %v16643_v31  ;;  %v9858_v3 = vpop.eup %9857  ;;  %v6808_v22 = vsel %vm6807_vm13, %v16778_v49, %v6804_v38  ;;  %v6818_v60 = vmul.f32 %v9854_v58, %v6817_v44  ;;  %vm6821_vm14 = vweird.f32 %v9854_v58 }
 0x42c   : > { %v6831_v37 = vmul.f32 %v9856_v26, %v16775_v1  ;;  %vm16846_vm15 = vcmp.eq.f32.partialorder %v6839_v56, 8.507059e+37  ;;  %v6813_v41 = vsel %vm16786_vm3, %v6812_v21, %v6808_v22  ;;  %9859 = vpow2.f32 %v8907_v16  ;;  %vm6822_vm2 = vmor %vm6820_vm9, %vm6821_vm14 }
 0x42d   : > { %v4209_v5 = vadd.f32 %v4208_v2, %v4000_v59  ;;  %v4994_v42 = vsub.f32 1.0, %v4993_v36  ;;  %8426 = vst [vmem:[%s16097_s15 + $0xa8] sm:$0xff] %v6813_v41  ;;  %v6819_v27 = vadd.f32 %v9854_v58, %v6818_v60  ;;  %vm6836_vm0 = vweird.f32 %v9856_v26  ;;  %v5823_v59 = vpop.f32.mrf.mxu3 }
 0x42e   : > { %v6832_v29 = vsub.f32 1.0, %v6831_v37  ;;  %9861 = vpow2.f32 %v8908_v0  ;;  %vm4998_vm11 = vweird.f32 %v16793_v45  ;;  %v5001_v21 = vand.u32 2147483647, %v16643_v31  ;;  %vm6837_vm4 = vmor %vm6835_vm10, %vm6836_vm0 }
 0x42f   : > { %v8852_v49 = vmul.f32 -1.442695, %v4209_v5  ;;  %v4995_v19 = vmul.f32 %v16793_v45, %v4994_v42  ;;  %v6823_v12 = vsel %vm6822_vm2, %v9854_v58, %v6819_v27  ;;  %v5003_v34 = vand.u32 2147483648, %v16643_v31 }
 0x430   : > { %v6833_v4 = vmul.f32 %v9856_v26, %v6832_v29  ;;  %v5612_v17 = vadd.f32 %v5611_v23, %v15896_v28  ;;  %v6828_v14 = vsel %vm16821_vm12, %v6827_v39, %v6823_v12  ;;  %v6842_v63 = vor.u32 1.1754944e-38, %v6841_v18 }
 0x431   : > { %v4996_v46 = vadd.f32 %v16793_v45, %v4995_v19  ;;  %vm4997_vm3 = vweird.f32 %v16643_v31  ;;  %8427 = vst [vmem:[%s16097_s15 + $0xb0] sm:$0xff] %v6828_v14  ;;  %v5004_v35 = vor.u32 1.1754944e-38, %v5003_v34  ;;  %v5821_v52 = vadd.f32 %v5820_v57, %v15909_v7  ;;  %v5614_v39 = vpop.f32.mrf.mxu2 }
 0x432   : > { %v6834_v47 = vadd.f32 %v9856_v26, %v6833_v4  ;;  %vm4999_vm8 = vmor %vm4997_vm3, %vm4998_vm11  ;;  %v8909_v13 = vmul.f32 -1.442695, %v5612_v17  ;;  %v9860_v20 = vpop.eup %9859  ;;  %9863 = vpow2.f32 %v8852_v49  ;;  %vm5002_vm9 = vcmp.eq.f32.partialorder %v5001_v21, 8.507059e+37 }
 0x433   : > { %v5000_v58 = vsel %vm4999_vm8, %v16793_v45, %v4996_v46  ;;  %v4003_v50 = vadd.f32 %v16613_v32, %v4002_v8  ;;  %v16871_v62 = vadd.f32 1.0, %v9860_v20  ;;  %v8910_v1 = vmul.f32 -1.442695, %v5821_v52  ;;  %v4005_v46 = vpop.f32.mrf.mxu0 }
 0x434   : > { %v9862_v31 = vpop.eup %9861  ;;  %v6838_v48 = vsel %vm6837_vm4, %v9856_v26, %v6834_v47  ;;  %v5005_v15 = vsel %vm5002_vm9, %v5004_v35, %v5000_v58  ;;  %9865 = vpow2.f32 %v8909_v13  ;;  %v5008_v45 = vmul.f32 %v16797_v51, %v16750_v6 }
 0x435   : > { %v6843_v55 = vsel %vm16846_vm15, %v6842_v63, %v6838_v48  ;;  %v16875_v61 = vadd.f32 1.0, %v9862_v31  ;;  %5658 = vmatmul.f32.gmra.mxu2 %v5005_v15  ;;  %5867 = vmatmul.f32.gmra.mxu3 %v5005_v15  ;;  %v16880_v56 = vadd.f32 1.0, %v9858_v3  ;;  %9867 = vrcp.f32 %v16871_v62 }
 0x436   : > { %8428 = vst [vmem:[%s16097_s15 + $0xb8] sm:$0xff] %v6843_v55  ;;  %v4212_v43 = vadd.f32 %v4211_v25, %v4003_v50  ;;  %v16885_v11 = vadd.f32 1.0, %v16315_v33  ;;  %v6854_v16 = vand.u32 2147483647, %v16871_v62  ;;  %v6856_v54 = vand.u32 2147483648, %v16871_v62 }
 0x437   : > { %9869 = vrcp.f32 %v16875_v61  ;;  %v5009_v38 = vsub.f32 1.0, %v5008_v45  ;;  %v6869_v9 = vand.u32 2147483647, %v16875_v61  ;;  %vm5012_vm6 = vweird.f32 %v16750_v6 }
 0x438   : > { %9871 = vpow2.f32 %v8910_v1  ;;  %v9864_v40 = vpop.eup %9863  ;;  %v8853_v26 = vmul.f32 -1.442695, %v4212_v43  ;;  %vm6850_vm1 = vweird.f32 %v16871_v62  ;;  %v5615_v0 = vadd.f32 %v5614_v39, %v15896_v28 }
 0x439   : > { %9873 = vrcp.f32 %v16773_v10  ;;  %v5010_v18 = vmul.f32 %v16797_v51, %v5009_v38  ;;  %vm6865_vm7 = vweird.f32 %v16875_v61  ;;  %v6871_v36 = vand.u32 2147483648, %v16875_v61 }
 0x43a   : > { %v9866_v44 = vpop.eup %9865  ;;  %9875 = vrcp.f32 %v16880_v56  ;;  %v5016_v3 = vand.u32 2147483647, %v16750_v6  ;;  %v5018_v22 = vand.u32 2147483648, %v16750_v6  ;;  %vm16903_vm5 = vcmp.eq.f32.partialorder %v6854_v16, 8.507059e+37 }
 0x43b   : > { %v16894_v33 = vadd.f32 1.0, %v9866_v44  ;;  %v9868_v2 = vpop.eup %9867  ;;  %v6857_v41 = vor.u32 1.1754944e-38, %v6856_v54  ;;  %v16907_v5 = vadd.f32 1.0, %v9864_v40  ;;  %vm16911_vm12 = vcmp.eq.f32.partialorder %v6869_v9, 8.507059e+37  ;;  %v5617_v54 = vpop.f32.mrf.mxu2 }
 0x43c   : > { %v6846_v37 = vmul.f32 %v9868_v2, %v16871_v62  ;;  %vm5013_vm10 = vweird.f32 %v16797_v51  ;;  %v5824_v29 = vadd.f32 %v5823_v59, %v15909_v7  ;;  %v5011_v57 = vadd.f32 %v16797_v51, %v5010_v18  ;;  %v5826_v18 = vpop.f32.mrf.mxu3 }
 0x43d   : > { %v9870_v60 = vpop.eup %9869  ;;  %9877 = vrcp.f32 %v16894_v33  ;;  %v8911_v12 = vmul.f32 -1.442695, %v5615_v0  ;;  %vm6851_vm13 = vweird.f32 %v9868_v2  ;;  %vm5017_vm14 = vcmp.eq.f32.partialorder %v5016_v3, 8.507059e+37  ;;  %vm5014_vm15 = vmor %vm5012_vm6, %vm5013_vm10 }
 0x43e   : > { %v9872_v42 = vpop.eup %9871  ;;  %v6861_v23 = vmul.f32 %v9870_v60, %v16875_v61  ;;  %9879 = vpow2.f32 %v8853_v26  ;;  %v6847_v19 = vsub.f32 1.0, %v6846_v37  ;;  %v5019_v17 = vor.u32 1.1754944e-38, %v5018_v22  ;;  %vm6852_vm2 = vmor %vm6850_vm1, %vm6851_vm13  ;;  %v4214_v26 = vpop.f32.mrf.mxu1 }
 0x43f   : > { %v16917_v49 = vpop.eup %9873  ;;  %v16919_v21 = vadd.f32 1.0, %v9872_v42  ;;  %v6884_v14 = vand.u32 2147483647, %v16894_v33  ;;  %v6886_v63 = vand.u32 2147483648, %v16894_v33  ;;  %vm6866_vm0 = vweird.f32 %v9870_v60 }
 0x440   : > { %v16922_v4 = vpop.eup %9875  ;;  %v6862_v34 = vsub.f32 1.0, %v6861_v23  ;;  %v6848_v8 = vmul.f32 %v9868_v2, %v6847_v19  ;;  %v5015_v35 = vsel %vm5014_vm15, %v16797_v51, %v5011_v57  ;;  %v8912_v13 = vmul.f32 -1.442695, %v5824_v29  ;;  %vm6867_vm3 = vmor %vm6865_vm7, %vm6866_vm0 }
 0x441   : > { %9881 = vrcp.f32 %v16919_v21  ;;  %v6872_v58 = vor.u32 1.1754944e-38, %v6871_v36  ;;  %v5020_v50 = vsel %vm5017_vm14, %v5019_v17, %v5015_v35  ;;  %vm6880_vm11 = vweird.f32 %v16894_v33  ;;  %v4008_v17 = vpop.f32.mrf.mxu0 }
 0x442   : > { %v6863_v47 = vmul.f32 %v9870_v60, %v6862_v34  ;;  %v6849_v20 = vadd.f32 %v9868_v2, %v6848_v8  ;;  %9883 = vpow2.f32 %v8911_v12  ;;  %5661 = vmatmul.f32.gmra.mxu2 %v5020_v50  ;;  %5870 = vmatmul.f32.gmra.mxu3 %v5020_v50  ;;  %v4006_v51 = vadd.f32 %v16613_v32, %v4005_v46 }
 0x443   : > { %v9878_v52 = vpop.eup %9877  ;;  %vm16943_vm8 = vcmp.eq.f32.partialorder %v6884_v14, 8.507059e+37  ;;  %v6887_v62 = vor.u32 1.1754944e-38, %v6886_v63  ;;  %v5023_v1 = vmul.f32 %v16917_v49, %v16773_v10  ;;  %9885 = vpow2.f32 %v8912_v13 }
 0x444   : > { %v16932_v31 = vpop.eup %9879  ;;  %v6864_v48 = vadd.f32 %v9870_v60, %v6863_v47  ;;  %v6876_v6 = vmul.f32 %v9878_v52, %v16894_v33  ;;  %v6853_v15 = vsel %vm6852_vm2, %v9868_v2, %v6849_v20  ;;  %vm6895_vm4 = vweird.f32 %v16919_v21 }
 0x445   : > { %v6858_v25 = vsel %vm16903_vm5, %v6857_v41, %v6853_v15  ;;  %v6899_v40 = vand.u32 2147483647, %v16919_v21  ;;  %v5024_v16 = vsub.f32 1.0, %v5023_v1  ;;  %vm6881_vm9 = vweird.f32 %v9878_v52 }
 0x446   : > { %v6868_v45 = vsel %vm6867_vm3, %v9870_v60, %v6864_v48  ;;  %v6877_v43 = vsub.f32 1.0, %v6876_v6  ;;  %8429 = vst [vmem:[%s16097_s15 + $0xc0] sm:$0xff] %v6858_v25  ;;  %v6901_v9 = vand.u32 2147483648, %v16919_v21  ;;  %v4215_v59 = vadd.f32 %v4214_v26, %v4006_v51  ;;  %vm6882_vm1 = vmor %vm6880_vm11, %vm6881_vm9  ;;  %v4217_v50 = vpop.f32.mrf.mxu1  ;;  %v5620_v6 = vpop.f32.mrf.mxu2 }
 0x447   : > { %v9882_v39 = vpop.eup %9881  ;;  %v6873_v61 = vsel %vm16911_vm12, %v6872_v58, %v6868_v45  ;;  %v5025_v2 = vmul.f32 %v16917_v49, %v5024_v16  ;;  %vm5028_vm6 = vweird.f32 %v16917_v49  ;;  %v5033_v36 = vand.u32 2147483648, %v16773_v10 }
 0x448   : > { %8430 = vst [vmem:[%s16097_s15 + $0xc8] sm:$0xff] %v6873_v61  ;;  %v6878_v38 = vmul.f32 %v9878_v52, %v6877_v43  ;;  %v6891_v44 = vmul.f32 %v9882_v39, %v16919_v21  ;;  %v9884_v0 = vpop.eup %9883  ;;  %v5618_v37 = vadd.f32 %v5617_v54, %v15896_v28  ;;  %vm6896_vm7 = vweird.f32 %v9882_v39 }
 0x449   : > { %v16962_v60 = vadd.f32 1.0, %v9884_v0  ;;  %v5026_v53 = vadd.f32 %v16917_v49, %v5025_v2  ;;  %vm5027_vm5 = vweird.f32 %v16773_v10  ;;  %v5827_v41 = vadd.f32 %v5826_v18, %v15909_v7  ;;  %v9886_v42 = vpop.eup %9885  ;;  %vm6897_vm10 = vmor %vm6895_vm4, %vm6896_vm7  ;;  %v5829_v0 = vpop.f32.mrf.mxu3 }
 0x44a   : > { %v6879_v3 = vadd.f32 %v9878_v52, %v6878_v38  ;;  %v6892_v22 = vsub.f32 1.0, %v6891_v44  ;;  %v5031_v29 = vand.u32 2147483647, %v16773_v10  ;;  %v6902_v33 = vor.u32 1.1754944e-38, %v6901_v9  ;;  %vm16978_vm12 = vmor %vm5027_vm5, %vm5028_vm6 }
 0x44b   : > { %9887 = vrcp.f32 %v16962_v60  ;;  %v16974_v57 = vadd.f32 1.0, %v9886_v42  ;;  %v8854_v12 = vmul.f32 -1.442695, %v4215_v59  ;;  %v5030_v10 = vsel %vm16978_vm12, %v16917_v49, %v5026_v53  ;;  %v4011_v59 = vpop.f32.mrf.mxu0 }
 0x44c   : > { %v6883_v23 = vsel %vm6882_vm1, %v9878_v52, %v6879_v3  ;;  %v6893_v27 = vmul.f32 %v9882_v39, %v6892_v22  ;;  %v5034_v14 = vor.u32 1.1754944e-38, %v5033_v36  ;;  %v8913_v63 = vmul.f32 -1.442695, %v5618_v37 }
 0x44d   : > { %v6888_v19 = vsel %vm16943_vm8, %v6887_v62, %v6883_v23  ;;  %v6914_v46 = vand.u32 2147483647, %v16962_v60  ;;  %v6916_v47 = vand.u32 2147483648, %v16962_v60  ;;  %9889 = vrcp.f32 %v16974_v57 }
 0x44e   : > { %8431 = vst [vmem:[%s16097_s15 + $0xd0] sm:$0xff] %v6888_v19  ;;  %v6894_v8 = vadd.f32 %v9882_v39, %v6893_v27  ;;  %v8914_v35 = vmul.f32 -1.442695, %v5827_v41  ;;  %9891 = vrcp.f32 %v16907_v5  ;;  %vm6900_vm13 = vcmp.eq.f32.partialorder %v6899_v40, 8.507059e+37 }
 0x44f   : > { %vm5032_vm14 = vcmp.eq.f32.partialorder %v5031_v29, 8.507059e+37  ;;  %9893 = vpow2.f32 %v8913_v63  ;;  %v4009_v20 = vadd.f32 %v16613_v32, %v4008_v17  ;;  %v16996_v21 = vadd.f32 1.0, %v16932_v31 }
 0x450   : > { %v6898_v13 = vsel %vm6897_vm10, %v9882_v39, %v6894_v8  ;;  %v5035_v52 = vsel %vm5032_vm14, %v5034_v14, %v5030_v10  ;;  %vm6910_vm15 = vweird.f32 %v16962_v60  ;;  %9895 = vpow2.f32 %v8854_v12 }
 0x451   : > { %v6903_v49 = vsel %vm6900_vm13, %v6902_v33, %v6898_v13  ;;  %v9888_v58 = vpop.eup %9887  ;;  %5664 = vmatmul.f32.gmra.mxu2 %v5035_v52  ;;  %5873 = vmatmul.f32.gmra.mxu3 %v5035_v52  ;;  %v5038_v48 = vmul.f32 %v16922_v4, %v16880_v56  ;;  %vm17002_vm0 = vcmp.eq.f32.partialorder %v6914_v46, 8.507059e+37  ;;  %v6917_v55 = vor.u32 1.1754944e-38, %v6916_v47  ;;  %v4220_v46 = vpop.f32.mrf.mxu1 }
 0x452   : > { %8432 = vst [vmem:[%s16097_s15 + $0xd8] sm:$0xff] %v6903_v49  ;;  %v6906_v51 = vmul.f32 %v9888_v58, %v16962_v60  ;;  %9897 = vpow2.f32 %v8914_v35  ;;  %v4218_v31 = vadd.f32 %v4217_v50, %v4009_v20  ;;  %vm6925_vm2 = vweird.f32 %v16974_v57 }
 0x453   : > { %v6929_v62 = vand.u32 2147483647, %v16974_v57  ;;  %v6931_v1 = vand.u32 2147483648, %v16974_v57  ;;  %v5039_v25 = vsub.f32 1.0, %v5038_v48  ;;  %v5046_v45 = vand.u32 2147483647, %v16880_v56  ;;  %v9890_v43 = vpop.eup %9889 }
 0x454   : > { %v6907_v39 = vsub.f32 1.0, %v6906_v51  ;;  %v8855_v61 = vmul.f32 -1.442695, %v4218_v31  ;;  %v5048_v40 = vand.u32 2147483648, %v16880_v56  ;;  %v5621_v16 = vadd.f32 %v5620_v6, %v15896_v28  ;;  %v17012_v54 = vpop.eup %9891 }
 0x455   : > { %vm6911_vm11 = vweird.f32 %v9888_v58  ;;  %v6921_v38 = vmul.f32 %v9890_v43, %v16974_v57  ;;  %v5040_v44 = vmul.f32 %v16922_v4, %v5039_v25  ;;  %vm5042_vm3 = vweird.f32 %v16880_v56  ;;  %v9894_v9 = vpop.eup %9893  ;;  %v5623_v25 = vpop.f32.mrf.mxu2 }
 0x456   : > { %v6908_v26 = vmul.f32 %v9888_v58, %v6907_v39  ;;  %vm6926_vm8 = vweird.f32 %v9890_v43  ;;  %vm5043_vm4 = vweird.f32 %v16922_v4  ;;  %v8915_v18 = vmul.f32 -1.442695, %v5621_v16  ;;  %v9896_v2 = vpop.eup %9895  ;;  %vm6912_vm9 = vmor %vm6910_vm15, %vm6911_vm11 }
 0x457   : > { %v6922_v36 = vsub.f32 1.0, %v6921_v38  ;;  %v17018_v3 = vadd.f32 1.0, %v9894_v9  ;;  %9899 = vpow2.f32 %v8855_v61  ;;  %v5041_v22 = vadd.f32 %v16922_v4, %v5040_v44  ;;  %vm5044_vm1 = vmor %vm5042_vm3, %vm5043_vm4 }
 0x458   : > { %v9898_v37 = vpop.eup %9897  ;;  %v6909_v53 = vadd.f32 %v9888_v58, %v6908_v26  ;;  %vm5047_vm6 = vcmp.eq.f32.partialorder %v5046_v45, 8.507059e+37  ;;  %v5049_v41 = vor.u32 1.1754944e-38, %v5048_v40  ;;  %9901 = vpow2.f32 %v8915_v18  ;;  %vm17044_vm7 = vmor %vm6925_vm2, %vm6926_vm8  ;;  %v5832_v45 = vpop.f32.mrf.mxu3 }
 0x459   : > { %v6923_v42 = vmul.f32 %v9890_v43, %v6922_v36  ;;  %9903 = vrcp.f32 %v17018_v3  ;;  %v5830_v23 = vadd.f32 %v5829_v0, %v15909_v7  ;;  %v4012_v27 = vadd.f32 %v16613_v32, %v4011_v59  ;;  %v4014_v40 = vpop.f32.mrf.mxu0 }
 0x45a   : > { %v6913_v29 = vsel %vm6912_vm9, %v9888_v58, %v6909_v53  ;;  %v17031_v19 = vadd.f32 1.0, %v9898_v37  ;;  %v5045_v60 = vsel %vm5044_vm1, %v16922_v4, %v5041_v22  ;;  %v5053_v33 = vmul.f32 %v17012_v54, %v16907_v5 }
 0x45b   : > { %v6918_v12 = vsel %vm17002_vm0, %v6917_v55, %v6913_v29  ;;  %v6924_v34 = vadd.f32 %v9890_v43, %v6923_v42  ;;  %v17038_v17 = vadd.f32 1.0, %v9896_v2  ;;  %v5050_v56 = vsel %vm5047_vm6, %v5049_v41, %v5045_v60  ;;  %v17098_v42 = vld [vmem:[#allocation10] ss:$0 sm:$0xff] }
 0x45c   : > { %8433 = vst [vmem:[%s16097_s15 + $0xe0] sm:$0xff] %v6918_v12  ;;  %v6932_v8 = vor.u32 1.1754944e-38, %v6931_v1  ;;  %v6944_v4 = vand.u32 2147483647, %v17018_v3  ;;  %v6946_v10 = vand.u32 2147483648, %v17018_v3  ;;  %9905 = vrcp.f32 %v17031_v19  ;;  %5667 = vmatmul.f32.gmra.mxu2 %v5050_v56  ;;  %5876 = vmatmul.f32.gmra.mxu3 %v5050_v56 }
 0x45d   : > { %v9900_v14 = vpop.eup %9899  ;;  %9907 = vrcp.f32 %v16885_v11  ;;  %v6928_v57 = vsel %vm17044_vm7, %v9890_v43, %v6924_v34  ;;  %vm6930_vm5 = vcmp.eq.f32.partialorder %v6929_v62, 8.507059e+37  ;;  %v8916_v63 = vmul.f32 -1.442695, %v5830_v23 }
 0x45e   : > { %v9902_v47 = vpop.eup %9901  ;;  %9909 = vrcp.f32 %v16996_v21  ;;  %v6933_v35 = vsel %vm6930_vm5, %v6932_v8, %v6928_v57  ;;  %v4221_v13 = vadd.f32 %v4220_v46, %v4012_v27  ;;  %v5054_v49 = vsub.f32 1.0, %v5053_v33  ;;  %v4223_v57 = vpop.f32.mrf.mxu1 }
 0x45f   : > { %v9904_v52 = vpop.eup %9903  ;;  %8434 = vst [vmem:[%s16097_s15 + $0xe8] sm:$0xff] %v6933_v35  ;;  %9911 = vrcp.f32 %v17038_v17  ;;  %vm6940_vm12 = vweird.f32 %v17018_v3  ;;  %v17058_v20 = vadd.f32 1.0, %v9902_v47  ;;  %vm17061_vm10 = vcmp.eq.f32.partialorder %v6944_v4, 8.507059e+37 }
 0x460   : > { %v6936_v58 = vmul.f32 %v9904_v52, %v17018_v3  ;;  %v6947_v48 = vor.u32 1.1754944e-38, %v6946_v10  ;;  %9913 = vpow2.f32 %v8916_v63  ;;  %v8856_v6 = vmul.f32 -1.442695, %v4221_v13 }
 0x461   : > { %vm6955_vm13 = vweird.f32 %v17031_v19  ;;  %v6959_v51 = vand.u32 2147483647, %v17031_v19  ;;  %v6961_v15 = vand.u32 2147483648, %v17031_v19  ;;  %v17068_v55 = vadd.f32 1.0, %v9900_v14 }
 0x462   : > { %9915 = vrcp.f32 %v17058_v20  ;;  %v9906_v31 = vpop.eup %9905  ;;  %v6937_v62 = vsub.f32 1.0, %v6936_v58  ;;  %v5055_v1 = vmul.f32 %v17012_v54, %v5054_v49  ;;  %vm5057_vm14 = vweird.f32 %v16907_v5 }
 0x463   : > { %vm5058_vm15 = vweird.f32 %v17012_v54  ;;  %v17074_v43 = vpop.eup %9907  ;;  %vm6941_vm0 = vweird.f32 %v9904_v52  ;;  %v6951_v39 = vmul.f32 %v9906_v31, %v17031_v19  ;;  %v6974_v61 = vand.u32 2147483647, %v17058_v20 }
 0x464   : > { %9917 = vpow2.f32 %v8856_v6  ;;  %v17078_v16 = vpop.eup %9909  ;;  %v6938_v38 = vmul.f32 %v9904_v52, %v6937_v62  ;;  %v5056_v44 = vadd.f32 %v17012_v54, %v5055_v1  ;;  %v5061_v9 = vand.u32 2147483647, %v16907_v5  ;;  %vm17089_vm11 = vmor %vm5057_vm14, %vm5058_vm15  ;;  %v20465_v62 = vld [vmem:[#allocation67_spill] sm:$0xff] }
 0x465   : > { %v5063_v26 = vand.u32 2147483648, %v16907_v5  ;;  %v17083_v18 = vpop.eup %9911  ;;  %v6952_v0 = vsub.f32 1.0, %v6951_v39  ;;  %vm6956_vm2 = vweird.f32 %v9906_v31  ;;  %v5624_v2 = vadd.f32 %v5623_v25, %v15896_v28  ;;  %vm6942_vm3 = vmor %vm6940_vm12, %vm6941_vm0 }
 0x466   : > { %v5833_v36 = vadd.f32 %v5832_v45, %v15909_v7  ;;  %v9914_v22 = vpop.eup %9913  ;;  %v6939_v37 = vadd.f32 %v9904_v52, %v6938_v38  ;;  %v5060_v53 = vsel %vm17089_vm11, %v17012_v54, %v5056_v44  ;;  %v4015_v23 = vadd.f32 %v17098_v42, %v4014_v40  ;;  %vm6957_vm9 = vmor %vm6955_vm13, %vm6956_vm2 }
 0x467   : > { %v5064_v41 = vor.u32 1.1754944e-38, %v5063_v26  ;;  %v6953_v27 = vmul.f32 %v9906_v31, %v6952_v0  ;;  %v17104_v29 = vadd.f32 1.0, %v9914_v22  ;;  %vm5062_vm8 = vcmp.eq.f32.partialorder %v5061_v9, 8.507059e+37 }
 0x468   : > { %v9916_v5 = vpop.eup %9915  ;;  %v8917_v60 = vmul.f32 -1.442695, %v5624_v2  ;;  %v6943_v33 = vsel %vm6942_vm3, %v9904_v52, %v6939_v37  ;;  %v6976_v54 = vand.u32 2147483648, %v17058_v20  ;;  %vm6960_vm4 = vcmp.eq.f32.partialorder %v6959_v51, 8.507059e+37 }
 0x469   : > { %v6966_v12 = vmul.f32 %v9916_v5, %v17058_v20  ;;  %v5065_v34 = vsel %vm5062_vm8, %v5064_v41, %v5060_v53  ;;  %v6948_v32 = vsel %vm17061_vm10, %v6947_v48, %v6943_v33  ;;  %v6954_v8 = vadd.f32 %v9906_v31, %v6953_v27 }
 0x46a   : > { %v9918_v56 = vpop.eup %9917  ;;  %9919 = vrcp.f32 %v17104_v29  ;;  %5670 = vmatmul.f32.gmra.mxu2 %v5065_v34  ;;  %5879 = vmatmul.f32.gmra.mxu3 %v5065_v34  ;;  %8435 = vst [vmem:[%s16097_s15 + $0xf0] sm:$0xff] %v6948_v32  ;;  %v6962_v3 = vor.u32 1.1754944e-38, %v6961_v15  ;;  %vm17115_vm6 = vcmp.eq.f32.partialorder %v6974_v61, 8.507059e+37  ;;  %v8918_v14 = vmul.f32 -1.442695, %v5833_v36 }
 0x46b   : > { %v6967_v4 = vsub.f32 1.0, %v6966_v12  ;;  %v6958_v63 = vsel %vm6957_vm9, %v9906_v31, %v6954_v8  ;;  %9921 = vpow2.f32 %v8917_v60  ;;  %v4224_v46 = vadd.f32 %v4223_v57, %v4015_v23  ;;  %v5626_v60 = vpop.f32.mrf.mxu2  ;;  %v4017_v8 = vpop.f32.mrf.mxu0 }
 0x46c   : > { %v5068_v47 = vmul.f32 %v17078_v16, %v16996_v21  ;;  %v6963_v35 = vsel %vm6960_vm4, %v6962_v3, %v6958_v63  ;;  %vm6971_vm1 = vweird.f32 %v9916_v5  ;;  %v6977_v49 = vor.u32 1.1754944e-38, %v6976_v54 }
 0x46d   : > { %v6968_v13 = vmul.f32 %v9916_v5, %v6967_v4  ;;  %8436 = vst [vmem:[%s16097_s15 + $0xf8] sm:$0xff] %v6963_v35  ;;  %vm6970_vm7 = vweird.f32 %v17058_v20  ;;  %v6989_v19 = vand.u32 2147483647, %v17104_v29  ;;  %v8857_v52 = vmul.f32 -1.442695, %v4224_v46  ;;  %v20464_v20 = vld [vmem:[#allocation48_spill] sm:$0xff] }
 0x46e   : > { %v5069_v58 = vsub.f32 1.0, %v5068_v47  ;;  %v6991_v48 = vand.u32 2147483648, %v17104_v29  ;;  %v17125_v6 = vadd.f32 1.0, %v9918_v56  ;;  %9923 = vpow2.f32 %v8918_v14  ;;  %vm6972_vm5 = vmor %vm6970_vm7, %vm6971_vm1  ;;  %v5835_v56 = vpop.f32.mrf.mxu3 }
 0x46f   : > { %v6969_v50 = vadd.f32 %v9916_v5, %v6968_v13  ;;  %vm5073_vm12 = vweird.f32 %v17078_v16  ;;  %v5078_v31 = vand.u32 2147483648, %v16996_v21  ;;  %v3563_v1 = vmul.f32 %v20465_v62, %v20464_v20 }
 0x470   : > { %v9920_v51 = vpop.eup %9919  ;;  %v5070_v15 = vmul.f32 %v17078_v16, %v5069_v58  ;;  %vm5072_vm10 = vweird.f32 %v16996_v21  ;;  %v5076_v39 = vand.u32 2147483647, %v16996_v21  ;;  %9925 = vpow2.f32 %v8857_v52  ;;  %v4226_v58 = vpop.f32.mrf.mxu1 }
 0x471   : > { %v6973_v25 = vsel %vm6972_vm5, %v9916_v5, %v6969_v50  ;;  %v6981_v45 = vmul.f32 %v9920_v51, %v17104_v29  ;;  %v9922_v61 = vpop.eup %9921  ;;  %v3564_v44 = vsub.f32 1.0, %v3563_v1  ;;  %vm5074_vm13 = vmor %vm5072_vm10, %vm5073_vm12  ;;  %vm3567_vm14 = vweird.f32 %v20464_v20 }
 0x472   : > { %v6978_v40 = vsel %vm17115_vm6, %v6977_v49, %v6973_v25  ;;  %v5071_v38 = vadd.f32 %v17078_v16, %v5070_v15  ;;  %v17139_v26 = vadd.f32 1.0, %v9922_v61  ;;  %vm3568_vm15 = vweird.f32 %v20465_v62 }
 0x473   : > { %8437 = vst [vmem:[%s16097_s15 + $0x100] sm:$0xff] %v6978_v40  ;;  %v6982_v9 = vsub.f32 1.0, %v6981_v45  ;;  %vm6986_vm0 = vweird.f32 %v9920_v51  ;;  %v5079_v0 = vor.u32 1.1754944e-38, %v5078_v31  ;;  %v3565_v59 = vmul.f32 %v20465_v62, %v3564_v44  ;;  %vm17152_vm11 = vmor %vm3567_vm14, %vm3568_vm15 }
 0x474   : > { %v5075_v21 = vsel %vm5074_vm13, %v17078_v16, %v5071_v38  ;;  %v9924_v2 = vpop.eup %9923  ;;  %9927 = vrcp.f32 %v17139_v26  ;;  %vm5077_vm2 = vcmp.eq.f32.partialorder %v5076_v39, 8.507059e+37  ;;  %v3571_v22 = vand.u32 2147483647, %v20464_v20 }
 0x475   : > { %v6983_v36 = vmul.f32 %v9920_v51, %v6982_v9  ;;  %v17149_v37 = vadd.f32 1.0, %v9924_v2  ;;  %v5080_v53 = vsel %vm5077_vm2, %v5079_v0, %v5075_v21  ;;  %v3566_v41 = vadd.f32 %v20465_v62, %v3565_v59  ;;  %v20472_v21 = vld [vmem:[#allocation47_spill] sm:$0xff]  ;;  %v20473_v0 = vld [vmem:[#allocation49_spill] sm:$0xff] }
 0x476   : > { %v3573_v16 = vand.u32 2147483648, %v20464_v20  ;;  %9929 = vrcp.f32 %v17068_v55  ;;  %vm6985_vm3 = vweird.f32 %v17104_v29  ;;  %vm17159_vm8 = vcmp.eq.f32.partialorder %v6989_v19, 8.507059e+37  ;;  %5673 = vmatmul.f32.gmra.mxu2 %v5080_v53  ;;  %5882 = vmatmul.f32.gmra.mxu3 %v5080_v53  ;;  %v9926_v33 = vpop.eup %9925 }
 0x477   : > { %v6984_v5 = vadd.f32 %v9920_v51, %v6983_v36  ;;  %vm6987_vm4 = vmor %vm6985_vm3, %vm6986_vm0  ;;  %v6992_v12 = vor.u32 1.1754944e-38, %v6991_v48  ;;  %v7004_v54 = vand.u32 2147483647, %v17139_v26  ;;  %v7006_v34 = vand.u32 2147483648, %v17139_v26 }
 0x478   : > { %9931 = vrcp.f32 %v17149_v37  ;;  %v3570_v32 = vsel %vm17152_vm11, %v20465_v62, %v3566_v41  ;;  %vm3572_vm9 = vcmp.eq.f32.partialorder %v3571_v22, 8.507059e+37  ;;  %vm7000_vm6 = vweird.f32 %v17139_v26 }
 0x479   : > { %v6988_v29 = vsel %vm6987_vm4, %v9920_v51, %v6984_v5  ;;  %9933 = vrcp.f32 %v17125_v6  ;;  %v3574_v4 = vor.u32 1.1754944e-38, %v3573_v16  ;;  %v5627_v10 = vadd.f32 %v5626_v60, %v15896_v28 }
 0x47a   : > { %v6993_v3 = vsel %vm17159_vm8, %v6992_v12, %v6988_v29  ;;  %v9928_v14 = vpop.eup %9927  ;;  %v17176_v57 = vadd.f32 1.0, %v9926_v33  ;;  %v5836_v63 = vadd.f32 %v5835_v56, %v15909_v7  ;;  %v4018_v46 = vadd.f32 %v17098_v42, %v4017_v8  ;;  %v20477_v8 = vld [vmem:[#allocation53_spill] sm:$0xff] }
 0x47b   : > { %8438 = vst [vmem:[%s16097_s15 + $0x108] sm:$0xff] %v6993_v3  ;;  %v5083_v47 = vmul.f32 %v17083_v18, %v17038_v17  ;;  %v6996_v35 = vmul.f32 %v9928_v14, %v17139_v26  ;;  %vm17183_vm1 = vcmp.eq.f32.partialorder %v7004_v54, 8.507059e+37  ;;  %v7007_v49 = vor.u32 1.1754944e-38, %v7006_v34 }
 0x47c   : > { %v3575_v19 = vsel %vm3572_vm9, %v3574_v4, %v3570_v32  ;;  %v8919_v52 = vmul.f32 -1.442695, %v5627_v10  ;;  %v17187_v50 = vpop.eup %9929  ;;  %vm7015_vm7 = vweird.f32 %v17149_v37  ;;  %v7019_v48 = vand.u32 2147483647, %v17149_v37  ;;  %v20476_v32 = vld [vmem:[#allocation76_spill] sm:$0xff] }
 0x47d   : > { %4270 = vmatmul.f32.gmra.mxu1 %v3575_v19  ;;  %v8920_v51 = vmul.f32 -1.442695, %v5836_v63  ;;  %v4227_v15 = vadd.f32 %v4226_v58, %v4018_v46  ;;  %v5084_v31 = vsub.f32 1.0, %v5083_v47  ;;  %v6997_v62 = vsub.f32 1.0, %v6996_v35  ;;  %v5629_v35 = vpop.f32.mrf.mxu2 }
 0x47e   : > { %v9932_v20 = vpop.eup %9931  ;;  %vm7001_vm5 = vweird.f32 %v9928_v14  ;;  %v7021_v1 = vand.u32 2147483648, %v17149_v37  ;;  %9935 = vpow2.f32 %v8919_v52  ;;  %v5091_v61 = vand.u32 2147483647, %v17038_v17 }
 0x47f   : > { %v17192_v25 = vpop.eup %9933  ;;  %v7011_v45 = vmul.f32 %v9932_v20, %v17149_v37  ;;  %9937 = vpow2.f32 %v8920_v51  ;;  %v8858_v39 = vmul.f32 -1.442695, %v4227_v15  ;;  %v6998_v40 = vmul.f32 %v9928_v14, %v6997_v62  ;;  %vm17206_vm13 = vmor %vm7000_vm6, %vm7001_vm5  ;;  %v5838_v15 = vpop.f32.mrf.mxu3 }
 0x480   : > { %v5085_v38 = vmul.f32 %v17083_v18, %v5084_v31  ;;  %vm5088_vm12 = vweird.f32 %v17083_v18  ;;  %v5093_v44 = vand.u32 2147483648, %v17038_v17  ;;  %9939 = vrcp.f32 %v17176_v57 }
 0x481   : > { %v7012_v9 = vsub.f32 1.0, %v7011_v45  ;;  %vm5087_vm10 = vweird.f32 %v17038_v17  ;;  %v3578_v59 = vmul.f32 %v20473_v0, %v20472_v21  ;;  %v6999_v2 = vadd.f32 %v9928_v14, %v6998_v40  ;;  %v4020_v45 = vpop.f32.mrf.mxu0 }
 0x482   : > { %vm7016_vm14 = vweird.f32 %v9932_v20  ;;  %9941 = vpow2.f32 %v8858_v39  ;;  %v5086_v22 = vadd.f32 %v17083_v18, %v5085_v38  ;;  %vm5089_vm15 = vmor %vm5087_vm10, %vm5088_vm12  ;;  %vm5092_vm0 = vcmp.eq.f32.partialorder %v5091_v61, 8.507059e+37 }
 0x483   : > { %v7013_v53 = vmul.f32 %v9932_v20, %v7012_v9  ;;  %v5094_v17 = vor.u32 1.1754944e-38, %v5093_v44  ;;  %v3579_v41 = vsub.f32 1.0, %v3578_v59  ;;  %v7003_v16 = vsel %vm17206_vm13, %v9928_v14, %v6999_v2  ;;  %vm7017_vm2 = vmor %vm7015_vm7, %vm7016_vm14 }
 0x484   : > { %v9936_v23 = vpop.eup %9935  ;;  %v5090_v26 = vsel %vm5089_vm15, %v17083_v18, %v5086_v22  ;;  %v3586_v5 = vand.u32 2147483647, %v20472_v21  ;;  %v3588_v27 = vand.u32 2147483648, %v20472_v21  ;;  %v7008_v33 = vsel %vm17183_vm1, %v7007_v49, %v7003_v16  ;;  %v4229_v16 = vpop.f32.mrf.mxu1 }
 0x485   : > { %v9938_v60 = vpop.eup %9937  ;;  %v7014_v12 = vadd.f32 %v9932_v20, %v7013_v53  ;;  %v17218_v54 = vadd.f32 1.0, %v9936_v23  ;;  %v5095_v34 = vsel %vm5092_vm0, %v5094_v17, %v5090_v26  ;;  %8439 = vst [vmem:[%s16097_s15 + $0x110] sm:$0xff] %v7008_v33  ;;  %v7022_v56 = vor.u32 1.1754944e-38, %v7021_v1 }
 0x486   : > { %v17224_v18 = vadd.f32 1.0, %v9938_v60  ;;  %5676 = vmatmul.f32.gmra.mxu2 %v5095_v34  ;;  %5885 = vmatmul.f32.gmra.mxu3 %v5095_v34  ;;  %v3580_v29 = vmul.f32 %v20473_v0, %v3579_v41  ;;  %v3593_v3 = vmul.f32 %v20477_v8, %v20476_v32  ;;  %v17229_v4 = vpop.eup %9939  ;;  %vm7020_vm11 = vcmp.eq.f32.partialorder %v7019_v48, 8.507059e+37 }
 0x487   : > { %v7018_v10 = vsel %vm7017_vm2, %v9932_v20, %v7014_v12  ;;  %9943 = vrcp.f32 %v17218_v54  ;;  %vm3582_vm3 = vweird.f32 %v20472_v21  ;;  %vm3583_vm8 = vweird.f32 %v20473_v0 }
 0x488   : > { %v9942_v14 = vpop.eup %9941  ;;  %v7023_v37 = vsel %vm7020_vm11, %v7022_v56, %v7018_v10  ;;  %9945 = vrcp.f32 %v17224_v18  ;;  %v7036_v63 = vand.u32 2147483648, %v17218_v54  ;;  %vm17237_vm4 = vcmp.eq.f32.partialorder %v3586_v5, 8.507059e+37  ;;  %vm3584_vm1 = vmor %vm3582_vm3, %vm3583_vm8 }
 0x489   : > { %8440 = vst [vmem:[%s16097_s15 + $0x118] sm:$0xff] %v7023_v37  ;;  %v3589_v47 = vor.u32 1.1754944e-38, %v3588_v27  ;;  %vm3597_vm9 = vweird.f32 %v20476_v32  ;;  %v7034_v13 = vand.u32 2147483647, %v17218_v54  ;;  %v3581_v49 = vadd.f32 %v20473_v0, %v3580_v29  ;;  %v20486_v37 = vld [vmem:[#allocation28_spill] sm:$0xff] }
 0x48a   : > { %v3594_v19 = vsub.f32 1.0, %v3593_v3  ;;  %vm3598_vm6 = vweird.f32 %v20477_v8  ;;  %v7049_v52 = vand.u32 2147483647, %v17224_v18  ;;  %v7051_v58 = vand.u32 2147483648, %v17224_v18 }
 0x48b   : > { %v17247_v48 = vadd.f32 1.0, %v9942_v14  ;;  %v3601_v51 = vand.u32 2147483647, %v20476_v32  ;;  %vm7030_vm7 = vweird.f32 %v17218_v54  ;;  %v3585_v31 = vsel %vm3584_vm1, %v20473_v0, %v3581_v49  ;;  %vm17264_vm12 = vmor %vm3597_vm9, %vm3598_vm6 }
 0x48c   : > { %v3595_v20 = vmul.f32 %v20477_v8, %v3594_v19  ;;  %v3603_v62 = vand.u32 2147483648, %v20476_v32  ;;  %v5630_v1 = vadd.f32 %v5629_v35, %v15896_v28  ;;  %v7037_v61 = vor.u32 1.1754944e-38, %v7036_v63  ;;  %v20487_v63 = vld [vmem:[#allocation51_spill] sm:$0xff] }
 0x48d   : > { %v9944_v39 = vpop.eup %9943  ;;  %vm7045_vm5 = vweird.f32 %v17224_v18  ;;  %v3590_v40 = vsel %vm17237_vm4, %v3589_v47, %v3585_v31  ;;  %v5839_v44 = vadd.f32 %v5838_v15, %v15909_v7  ;;  %v4021_v9 = vadd.f32 %v17098_v42, %v4020_v45 }
 0x48e   : > { %v9946_v21 = vpop.eup %9945  ;;  %v7026_v0 = vmul.f32 %v9944_v39, %v17218_v54  ;;  %vm17271_vm10 = vcmp.eq.f32.partialorder %v7034_v13, 8.507059e+37  ;;  %4064 = vmatmul.f32.gmra.mxu0 %v3590_v40  ;;  %v3596_v2 = vadd.f32 %v20477_v8, %v3595_v20  ;;  %vm3602_vm13 = vcmp.eq.f32.partialorder %v3601_v51, 8.507059e+37 }
 0x48f   : > { %v3604_v36 = vor.u32 1.1754944e-38, %v3603_v62  ;;  %v7041_v22 = vmul.f32 %v9946_v21, %v17224_v18  ;;  %vm17277_vm14 = vcmp.eq.f32.partialorder %v7049_v52, 8.507059e+37  ;;  %v7052_v17 = vor.u32 1.1754944e-38, %v7051_v58 }
 0x490   : > { %v8921_v41 = vmul.f32 -1.442695, %v5630_v1  ;;  %v8922_v23 = vmul.f32 -1.442695, %v5839_v44  ;;  %v7027_v26 = vsub.f32 1.0, %v7026_v0  ;;  %v3600_v5 = vsel %vm17264_vm12, %v20477_v8, %v3596_v2 }
 0x491   : > { %v4230_v27 = vadd.f32 %v4229_v16, %v4021_v9  ;;  %v5098_v60 = vmul.f32 %v17187_v50, %v17068_v55  ;;  %vm7031_vm15 = vweird.f32 %v9944_v39  ;;  %v7042_v33 = vsub.f32 1.0, %v7041_v22  ;;  %v20493_v22 = vld [vmem:[#allocation20_spill] sm:$0xff] }
 0x492   : > { %v3605_v12 = vsel %vm3602_vm13, %v3604_v36, %v3600_v5  ;;  %9947 = vpow2.f32 %v8921_v41  ;;  %v7028_v34 = vmul.f32 %v9944_v39, %v7027_v26  ;;  %vm7046_vm0 = vweird.f32 %v9946_v21  ;;  %vm7032_vm11 = vmor %vm7030_vm7, %vm7031_vm15  ;;  %v20492_v36 = vld [vmem:[#allocation50_spill] sm:$0xff] }
 0x493   : > { %4273 = vmatmul.f32.gmra.mxu1 %v3605_v12  ;;  %9949 = vpow2.f32 %v8922_v23  ;;  %v8859_v56 = vmul.f32 -1.442695, %v4230_v27  ;;  %v5099_v29 = vsub.f32 1.0, %v5098_v60  ;;  %v7043_v32 = vmul.f32 %v9946_v21, %v7042_v33  ;;  %vm7047_vm4 = vmor %vm7045_vm5, %vm7046_vm0  ;;  %v5841_v23 = vpop.f32.mrf.mxu3  ;;  %v4023_v33 = vpop.f32.mrf.mxu0 }
 0x494   : > { %v5106_v3 = vand.u32 2147483647, %v17068_v55  ;;  %v5108_v10 = vand.u32 2147483648, %v17068_v55  ;;  %v7029_v8 = vadd.f32 %v9944_v39, %v7028_v34  ;;  %vm5103_vm2 = vweird.f32 %v17187_v50 }
 0x495   : > { %v5100_v14 = vmul.f32 %v17187_v50, %v5099_v29  ;;  %v3608_v46 = vmul.f32 %v20487_v63, %v20486_v37  ;;  %v7044_v47 = vadd.f32 %v9946_v21, %v7043_v32  ;;  %9951 = vpow2.f32 %v8859_v56 }
 0x496   : > { %vm5102_vm3 = vweird.f32 %v17068_v55  ;;  %vm17296_vm8 = vcmp.eq.f32.partialorder %v5106_v3, 8.507059e+37  ;;  %v7033_v13 = vsel %vm7032_vm11, %v9944_v39, %v7029_v8  ;;  %v5109_v19 = vor.u32 1.1754944e-38, %v5108_v10 }
 0x497   : > { %v5101_v49 = vadd.f32 %v17187_v50, %v5100_v14  ;;  %v3609_v52 = vsub.f32 1.0, %v3608_v46  ;;  %v7038_v58 = vsel %vm17271_vm10, %v7037_v61, %v7033_v13  ;;  %v7048_v51 = vsel %vm7047_vm4, %v9946_v21, %v7044_v47  ;;  %vm5104_vm9 = vmor %vm5102_vm3, %vm5103_vm2  ;;  %v5632_v21 = vpop.f32.mrf.mxu2 }
 0x498   : > { %v9948_v54 = vpop.eup %9947  ;;  %v3616_v55 = vand.u32 2147483647, %v20486_v37  ;;  %v3618_v15 = vand.u32 2147483648, %v20486_v37  ;;  %8441 = vst [vmem:[%s16097_s15 + $0x120] sm:$0xff] %v7038_v58  ;;  %v7053_v18 = vsel %vm17277_vm14, %v7052_v17, %v7048_v51  ;;  %9953 = vrcp.f32 %v17247_v48 }
 0x499   : > { %v9950_v31 = vpop.eup %9949  ;;  %v17312_v20 = vadd.f32 1.0, %v9948_v54  ;;  %v5105_v62 = vsel %vm5104_vm9, %v17187_v50, %v5101_v49  ;;  %v3610_v1 = vmul.f32 %v20487_v63, %v3609_v52  ;;  %8442 = vst [vmem:[%s16097_s15 + $0x128] sm:$0xff] %v7053_v18  ;;  %vm3613_vm6 = vweird.f32 %v20487_v63 }
 0x49a   : > { %v17318_v45 = vadd.f32 1.0, %v9950_v31  ;;  %v5110_v39 = vsel %vm17296_vm8, %v5109_v19, %v5105_v62  ;;  %vm3612_vm1 = vweird.f32 %v20486_v37  ;;  %vm17329_vm7 = vcmp.eq.f32.partialorder %v3616_v55, 8.507059e+37  ;;  %v4232_v19 = vpop.f32.mrf.mxu1 }
 0x49b   : > { %9955 = vrcp.f32 %v17312_v20  ;;  %v7066_v61 = vand.u32 2147483648, %v17312_v20  ;;  %5679 = vmatmul.f32.gmra.mxu2 %v5110_v39  ;;  %5888 = vmatmul.f32.gmra.mxu3 %v5110_v39  ;;  %v9952_v40 = vpop.eup %9951  ;;  %v7064_v50 = vand.u32 2147483647, %v17312_v20  ;;  %v3611_v38 = vadd.f32 %v20487_v63, %v3610_v1  ;;  %vm3614_vm5 = vmor %vm3612_vm1, %vm3613_vm6 }
 0x49c   : > { %9957 = vrcp.f32 %v17318_v45  ;;  %v3619_v9 = vor.u32 1.1754944e-38, %v3618_v15  ;;  %v7079_v59 = vand.u32 2147483647, %v17318_v45  ;;  %v7081_v2 = vand.u32 2147483648, %v17318_v45 }
 0x49d   : > { %v17333_v0 = vor.u32 1.1754944e-38, %v7066_v61  ;;  %v3623_v53 = vmul.f32 %v20493_v22, %v20492_v36  ;;  %vm7060_vm12 = vweird.f32 %v17312_v20  ;;  %v3615_v17 = vsel %vm3614_vm5, %v20487_v63, %v3611_v38 }
 0x49e   : > { %vm3627_vm10 = vweird.f32 %v20492_v36  ;;  %vm3628_vm13 = vweird.f32 %v20493_v22  ;;  %v3631_v41 = vand.u32 2147483647, %v20492_v36  ;;  %v17344_v16 = vpop.eup %9953  ;;  %vm7075_vm14 = vweird.f32 %v17318_v45 }
 0x49f   : > { %v3620_v26 = vsel %vm17329_vm7, %v3619_v9, %v3615_v17  ;;  %v3624_v5 = vsub.f32 1.0, %v3623_v53  ;;  %v3633_v27 = vand.u32 2147483648, %v20492_v36  ;;  %v5633_v60 = vadd.f32 %v5632_v21, %v15896_v28  ;;  %vm17376_vm3 = vmor %vm3627_vm10, %vm3628_vm13  ;;  %v20504_v9 = vld [vmem:[#allocation30_spill] sm:$0xff]  ;;  %v20505_v21 = vld [vmem:[#allocation31_spill] sm:$0xff] }
 0x4a0   : > { %v17351_v34 = vadd.f32 1.0, %v9952_v40  ;;  %4067 = vmatmul.f32.gmra.mxu0 %v3620_v26  ;;  %v5842_v56 = vadd.f32 %v5841_v23, %v15909_v7  ;;  %v4024_v29 = vadd.f32 %v17098_v42, %v4023_v33  ;;  %v5113_v32 = vmul.f32 %v17192_v25, %v17125_v6 }
 0x4a1   : > { %v9956_v12 = vpop.eup %9955  ;;  %vm17358_vm0 = vcmp.eq.f32.partialorder %v7064_v50, 8.507059e+37  ;;  %v3625_v14 = vmul.f32 %v20493_v22, %v3624_v5  ;;  %vm17363_vm2 = vcmp.eq.f32.partialorder %v3631_v41, 8.507059e+37  ;;  %vm17368_vm11 = vcmp.eq.f32.partialorder %v7079_v59, 8.507059e+37 }
 0x4a2   : > { %v9958_v3 = vpop.eup %9957  ;;  %v7056_v10 = vmul.f32 %v9956_v12, %v17312_v20  ;;  %vm7061_vm15 = vweird.f32 %v9956_v12  ;;  %v3634_v35 = vor.u32 1.1754944e-38, %v3633_v27  ;;  %v8923_v13 = vmul.f32 -1.442695, %v5633_v60 }
 0x4a3   : > { %v7071_v63 = vmul.f32 %v9958_v3, %v17318_v45  ;;  %v8924_v49 = vmul.f32 -1.442695, %v5842_v56  ;;  %v3626_v54 = vadd.f32 %v20493_v22, %v3625_v14  ;;  %v4233_v58 = vadd.f32 %v4232_v19, %v4024_v29  ;;  %vm17392_vm9 = vmor %vm7060_vm12, %vm7061_vm15  ;;  %v20508_v56 = vld [vmem:[#allocation55_spill] sm:$0xff]  ;;  %v20509_v29 = vld [vmem:[#allocation21_spill] sm:$0xff]  ;;  %v5844_v19 = vpop.f32.mrf.mxu3 }
 0x4a4   : > { %v7057_v52 = vsub.f32 1.0, %v7056_v10  ;;  %v5114_v51 = vsub.f32 1.0, %v5113_v32  ;;  %vm7076_vm8 = vweird.f32 %v9958_v3  ;;  %9959 = vpow2.f32 %v8923_v13 }
 0x4a5   : > { %v7072_v55 = vsub.f32 1.0, %v7071_v63  ;;  %vm5118_vm4 = vweird.f32 %v17192_v25  ;;  %v3630_v31 = vsel %vm17376_vm3, %v20493_v22, %v3626_v54  ;;  %9961 = vpow2.f32 %v8924_v49  ;;  %vm17402_vm6 = vmor %vm7075_vm14, %vm7076_vm8 }
 0x4a6   : > { %v7058_v15 = vmul.f32 %v9956_v12, %v7057_v52  ;;  %v8860_v18 = vmul.f32 -1.442695, %v4233_v58  ;;  %v3635_v1 = vsel %vm17363_vm2, %v3634_v35, %v3630_v31  ;;  %v5115_v39 = vmul.f32 %v17192_v25, %v5114_v51  ;;  %v5635_v35 = vpop.f32.mrf.mxu2 }
 0x4a7   : > { %v7073_v62 = vmul.f32 %v9958_v3, %v7072_v55  ;;  %v5121_v61 = vand.u32 2147483647, %v17125_v6  ;;  %v7082_v38 = vor.u32 1.1754944e-38, %v7081_v2  ;;  %4276 = vmatmul.f32.gmra.mxu1 %v3635_v1  ;;  %v5123_v44 = vand.u32 2147483648, %v17125_v6 }
 0x4a8   : > { %v7059_v40 = vadd.f32 %v9956_v12, %v7058_v15  ;;  %v3638_v59 = vmul.f32 %v20505_v21, %v20504_v9  ;;  %9963 = vpow2.f32 %v8860_v18  ;;  %v5116_v20 = vadd.f32 %v17192_v25, %v5115_v39  ;;  %v4026_v15 = vpop.f32.mrf.mxu0  ;;  %v20523_v18 = vld [vmem:[#allocation58_spill] sm:$0xff] }
 0x4a9   : > { %v7074_v36 = vadd.f32 %v9958_v3, %v7073_v62  ;;  %vm5117_vm1 = vweird.f32 %v17125_v6  ;;  %vm5122_vm5 = vcmp.eq.f32.partialorder %v5121_v61, 8.507059e+37  ;;  %v5124_v53 = vor.u32 1.1754944e-38, %v5123_v44 }
 0x4aa   : > { %v7063_v2 = vsel %vm17392_vm9, %v9956_v12, %v7059_v40  ;;  %vm5119_vm7 = vmor %vm5117_vm1, %vm5118_vm4  ;;  %v3639_v45 = vsub.f32 1.0, %v3638_v59  ;;  %v9960_v17 = vpop.eup %9959  ;;  %v3646_v26 = vand.u32 2147483647, %v20504_v9  ;;  %9965 = vrcp.f32 %v17351_v34 }
 0x4ab   : > { %v7068_v41 = vsel %vm17358_vm0, %v17333_v0, %v7063_v2  ;;  %v7078_v23 = vsel %vm17402_vm6, %v9958_v3, %v7074_v36  ;;  %v5120_v6 = vsel %vm5119_vm7, %v17192_v25, %v5116_v20  ;;  %v9962_v5 = vpop.eup %9961  ;;  %v17422_v60 = vadd.f32 1.0, %v9960_v17  ;;  %v4235_v20 = vpop.f32.mrf.mxu1 }
 0x4ac   : > { %8443 = vst [vmem:[%s16097_s15 + $0x130] sm:$0xff] %v7068_v41  ;;  %v7083_v27 = vsel %vm17368_vm11, %v7082_v38, %v7078_v23  ;;  %v5125_v33 = vsel %vm5122_vm5, %v5124_v53, %v5120_v6  ;;  %v3640_v12 = vmul.f32 %v20505_v21, %v3639_v45  ;;  %v17427_v0 = vadd.f32 1.0, %v9962_v5 }
 0x4ad   : > { %8444 = vst [vmem:[%s16097_s15 + $0x138] sm:$0xff] %v7083_v27  ;;  %5682 = vmatmul.f32.gmra.mxu2 %v5125_v33  ;;  %5891 = vmatmul.f32.gmra.mxu3 %v5125_v33  ;;  %v3648_v25 = vand.u32 2147483648, %v20504_v9  ;;  %v3653_v32 = vmul.f32 %v20509_v29, %v20508_v56  ;;  %9967 = vrcp.f32 %v17422_v60  ;;  %v7096_v3 = vand.u32 2147483648, %v17422_v60 }
 0x4ae   : > { %vm3643_vm12 = vweird.f32 %v20505_v21  ;;  %v9964_v10 = vpop.eup %9963  ;;  %9969 = vrcp.f32 %v17427_v0  ;;  %v7094_v8 = vand.u32 2147483647, %v17422_v60  ;;  %v3641_v14 = vadd.f32 %v20505_v21, %v3640_v12  ;;  %v5638_v59 = vpop.f32.mrf.mxu2 }
 0x4af   : > { %vm3642_vm10 = vweird.f32 %v20504_v9  ;;  %vm3647_vm13 = vcmp.eq.f32.partialorder %v3646_v26, 8.507059e+37  ;;  %v7109_v37 = vand.u32 2147483647, %v17427_v0  ;;  %v7111_v63 = vand.u32 2147483648, %v17427_v0 }
 0x4b0   : > { %vm3644_vm14 = vmor %vm3642_vm10, %vm3643_vm12  ;;  %v3649_v46 = vor.u32 1.1754944e-38, %v3648_v25  ;;  %v3654_v47 = vsub.f32 1.0, %v3653_v32  ;;  %vm7090_vm15 = vweird.f32 %v17422_v60  ;;  %v17442_v13 = vor.u32 1.1754944e-38, %v7096_v3  ;;  %v17447_v52 = vpop.eup %9965  ;;  %v20518_v3 = vld [vmem:[#allocation52_spill] sm:$0xff] }
 0x4b1   : > { %v3645_v49 = vsel %vm3644_vm14, %v20505_v21, %v3641_v14  ;;  %vm3657_vm0 = vweird.f32 %v20508_v56  ;;  %vm3658_vm2 = vweird.f32 %v20509_v29  ;;  %vm7105_vm11 = vweird.f32 %v17427_v0 }
 0x4b2   : > { %v3650_v54 = vsel %vm3647_vm13, %v3649_v46, %v3645_v49  ;;  %v3655_v58 = vmul.f32 %v20509_v29, %v3654_v47  ;;  %v3661_v51 = vand.u32 2147483647, %v20508_v56  ;;  %v3663_v55 = vand.u32 2147483648, %v20508_v56  ;;  %vm17453_vm3 = vmor %vm3657_vm0, %vm3658_vm2 }
 0x4b3   : > { %v9968_v31 = vpop.eup %9967  ;;  %4070 = vmatmul.f32.gmra.mxu0 %v3650_v54  ;;  %v5636_v62 = vadd.f32 %v5635_v35, %v15896_v28  ;;  %v5845_v1 = vadd.f32 %v5844_v19, %v15909_v7  ;;  %v4027_v39 = vadd.f32 %v17098_v42, %v4026_v15  ;;  %v5128_v61 = vmul.f32 %v17229_v4, %v17176_v57 }
 0x4b4   : > { %v9970_v40 = vpop.eup %9969  ;;  %v7086_v50 = vmul.f32 %v9968_v31, %v17422_v60  ;;  %vm17463_vm8 = vcmp.eq.f32.partialorder %v7094_v8, 8.507059e+37  ;;  %v17467_v44 = vadd.f32 1.0, %v9964_v10  ;;  %v3656_v9 = vadd.f32 %v20509_v29, %v3655_v58  ;;  %v20519_v10 = vld [vmem:[#allocation56_spill] sm:$0xff] }
 0x4b5   : > { %vm3662_vm4 = vcmp.eq.f32.partialorder %v3661_v51, 8.507059e+37  ;;  %vm7091_vm9 = vweird.f32 %v9968_v31  ;;  %v7101_v21 = vmul.f32 %v9970_v40, %v17427_v0  ;;  %vm17471_vm6 = vcmp.eq.f32.partialorder %v7109_v37, 8.507059e+37  ;;  %v4238_v37 = vpop.f32.mrf.mxu1 }
 0x4b6   : > { %v3664_v36 = vor.u32 1.1754944e-38, %v3663_v55  ;;  %v8925_v22 = vmul.f32 -1.442695, %v5636_v62  ;;  %v7087_v2 = vsub.f32 1.0, %v7086_v50  ;;  %v3660_v53 = vsel %vm17453_vm3, %v20509_v29, %v3656_v9  ;;  %vm17484_vm5 = vmor %vm7090_vm15, %vm7091_vm9 }
 0x4b7   : > { %v8926_v45 = vmul.f32 -1.442695, %v5845_v1  ;;  %v4236_v17 = vadd.f32 %v4235_v20, %v4027_v39  ;;  %v7102_v41 = vsub.f32 1.0, %v7101_v21  ;;  %v5129_v6 = vsub.f32 1.0, %v5128_v61  ;;  %v5847_v20 = vpop.f32.mrf.mxu3 }
 0x4b8   : > { %v3665_v23 = vsel %vm3662_vm4, %v3664_v36, %v3660_v53  ;;  %9971 = vpow2.f32 %v8925_v22  ;;  %v7088_v26 = vmul.f32 %v9968_v31, %v7087_v2  ;;  %vm7106_vm1 = vweird.f32 %v9970_v40 }
 0x4b9   : > { %4279 = vmatmul.f32.gmra.mxu1 %v3665_v23  ;;  %9973 = vpow2.f32 %v8926_v45  ;;  %v8861_v5 = vmul.f32 -1.442695, %v4236_v17  ;;  %v7103_v27 = vmul.f32 %v9970_v40, %v7102_v41  ;;  %v5130_v33 = vmul.f32 %v17229_v4, %v5129_v6  ;;  %vm17493_vm12 = vmor %vm7105_vm11, %vm7106_vm1  ;;  %v4029_v23 = vpop.f32.mrf.mxu0 }
 0x4ba   : > { %vm5133_vm7 = vweird.f32 %v17229_v4  ;;  %v5136_v12 = vand.u32 2147483647, %v17176_v57  ;;  %v7089_v25 = vadd.f32 %v9968_v31, %v7088_v26  ;;  %v7112_v29 = vor.u32 1.1754944e-38, %v7111_v63 }
 0x4bb   : > { %v5138_v32 = vand.u32 2147483648, %v17176_v57  ;;  %v3668_v8 = vmul.f32 %v20519_v10, %v20518_v3  ;;  %v7104_v14 = vadd.f32 %v9970_v40, %v7103_v27  ;;  %9975 = vpow2.f32 %v8861_v5 }
 0x4bc   : > { %v5131_v60 = vadd.f32 %v17229_v4, %v5130_v33  ;;  %vm5132_vm10 = vweird.f32 %v17176_v57  ;;  %v7093_v63 = vsel %vm17484_vm5, %v9968_v31, %v7089_v25  ;;  %vm5137_vm14 = vcmp.eq.f32.partialorder %v5136_v12, 8.507059e+37  ;;  %v20522_v31 = vld [vmem:[#allocation57_spill] sm:$0xff] }
 0x4bd   : > { %vm5134_vm13 = vmor %vm5132_vm10, %vm5133_vm7  ;;  %v5139_v46 = vor.u32 1.1754944e-38, %v5138_v32  ;;  %v3669_v47 = vsub.f32 1.0, %v3668_v8  ;;  %v7098_v0 = vsel %vm17463_vm8, %v17442_v13, %v7093_v63  ;;  %v7108_v49 = vsel %vm17493_vm12, %v9970_v40, %v7104_v14 }
 0x4be   : > { %v9972_v35 = vpop.eup %9971  ;;  %v5135_v19 = vsel %vm5134_vm13, %v17229_v4, %v5131_v60  ;;  %v3676_v57 = vand.u32 2147483647, %v20518_v3  ;;  %8445 = vst [vmem:[%s16097_s15 + $0x140] sm:$0xff] %v7098_v0  ;;  %v7113_v58 = vsel %vm17471_vm6, %v7112_v29, %v7108_v49  ;;  %9977 = vrcp.f32 %v17467_v44 }
 0x4bf   : > { %v9974_v54 = vpop.eup %9973  ;;  %v17511_v51 = vadd.f32 1.0, %v9972_v35  ;;  %v5140_v55 = vsel %vm5137_vm14, %v5139_v46, %v5135_v19  ;;  %v3670_v15 = vmul.f32 %v20519_v10, %v3669_v47  ;;  %8446 = vst [vmem:[%s16097_s15 + $0x148] sm:$0xff] %v7113_v58  ;;  %v3678_v4 = vand.u32 2147483648, %v20518_v3 }
 0x4c0   : > { %v17516_v13 = vadd.f32 1.0, %v9974_v54  ;;  %5685 = vmatmul.f32.gmra.mxu2 %v5140_v55  ;;  %5894 = vmatmul.f32.gmra.mxu3 %v5140_v55  ;;  %v3683_v62 = vmul.f32 %v20523_v18, %v20522_v31  ;;  %vm3673_vm15 = vweird.f32 %v20519_v10  ;;  %vm3672_vm0 = vweird.f32 %v20518_v3 }
 0x4c1   : > { %9979 = vrcp.f32 %v17511_v51  ;;  %v7126_v1 = vand.u32 2147483648, %v17511_v51  ;;  %v9976_v39 = vpop.eup %9975  ;;  %v7124_v61 = vand.u32 2147483647, %v17511_v51  ;;  %v3671_v40 = vadd.f32 %v20519_v10, %v3670_v15  ;;  %vm3674_vm11 = vmor %vm3672_vm0, %vm3673_vm15 }
 0x4c2   : > { %9981 = vrcp.f32 %v17516_v13  ;;  %vm3677_vm2 = vcmp.eq.f32.partialorder %v3676_v57, 8.507059e+37  ;;  %v7139_v50 = vand.u32 2147483647, %v17516_v13  ;;  %v7141_v38 = vand.u32 2147483648, %v17516_v13 }
 0x4c3   : > { %v3679_v9 = vor.u32 1.1754944e-38, %v3678_v4  ;;  %v3684_v21 = vsub.f32 1.0, %v3683_v62  ;;  %vm7120_vm3 = vweird.f32 %v17511_v51  ;;  %v17531_v36 = vor.u32 1.1754944e-38, %v7126_v1  ;;  %v20532_v62 = vld [vmem:[#allocation32_spill] sm:$0xff] }
 0x4c4   : > { %v3675_v22 = vsel %vm3674_vm11, %v20519_v10, %v3671_v40  ;;  %vm3687_vm8 = vweird.f32 %v20522_v31  ;;  %vm3688_vm4 = vweird.f32 %v20523_v18  ;;  %v17536_v2 = vpop.eup %9977  ;;  %vm7135_vm9 = vweird.f32 %v17516_v13  ;;  %v20533_v1 = vld [vmem:[#allocation80_spill] sm:$0xff] }
 0x4c5   : > { %v3680_v53 = vsel %vm3677_vm2, %v3679_v9, %v3675_v22  ;;  %v3685_v45 = vmul.f32 %v20523_v18, %v3684_v21  ;;  %v3691_v17 = vand.u32 2147483647, %v20522_v31  ;;  %v3693_v41 = vand.u32 2147483648, %v20522_v31  ;;  %vm17542_vm6 = vmor %vm3687_vm8, %vm3688_vm4 }
 0x4c6   : > { %4073 = vmatmul.f32.gmra.mxu0 %v3680_v53  ;;  %v5639_v5 = vadd.f32 %v5638_v59, %v15896_v28  ;;  %v5848_v27 = vadd.f32 %v5847_v20, %v15909_v7  ;;  %v4030_v33 = vadd.f32 %v17098_v42, %v4029_v23  ;;  %v5143_v12 = vmul.f32 %v17344_v16, %v17247_v48  ;;  %v20536_v23 = vld [vmem:[#allocation22_spill] sm:$0xff] }
 0x4c7   : > { %v9980_v6 = vpop.eup %9979  ;;  %vm17552_vm1 = vcmp.eq.f32.partialorder %v7124_v61, 8.507059e+37  ;;  %v17556_v32 = vadd.f32 1.0, %v9976_v39  ;;  %v3686_v3 = vadd.f32 %v20523_v18, %v3685_v45  ;;  %vm3692_vm7 = vcmp.eq.f32.partialorder %v3691_v17, 8.507059e+37 }
 0x4c8   : > { %v9982_v25 = vpop.eup %9981  ;;  %v7116_v56 = vmul.f32 %v9980_v6, %v17511_v51  ;;  %vm7121_vm5 = vweird.f32 %v9980_v6  ;;  %vm17560_vm12 = vcmp.eq.f32.partialorder %v7139_v50, 8.507059e+37  ;;  %v3694_v8 = vor.u32 1.1754944e-38, %v3693_v41 }
 0x4c9   : > { %v7131_v10 = vmul.f32 %v9982_v25, %v17516_v13  ;;  %v8927_v14 = vmul.f32 -1.442695, %v5639_v5  ;;  %v3690_v63 = vsel %vm17542_vm6, %v20523_v18, %v3686_v3  ;;  %v8928_v46 = vmul.f32 -1.442695, %v5848_v27  ;;  %vm17573_vm14 = vmor %vm7120_vm3, %vm7121_vm5 }
 0x4ca   : > { %v7117_v60 = vsub.f32 1.0, %v7116_v56  ;;  %v4239_v47 = vadd.f32 %v4238_v37, %v4030_v33  ;;  %v3695_v0 = vsel %vm3692_vm7, %v3694_v8, %v3690_v63  ;;  %v5144_v49 = vsub.f32 1.0, %v5143_v12 }
 0x4cb   : > { %v7132_v35 = vsub.f32 1.0, %v7131_v10  ;;  %9983 = vpow2.f32 %v8927_v14  ;;  %vm7136_vm10 = vweird.f32 %v9982_v25  ;;  %4282 = vmatmul.f32.gmra.mxu1 %v3695_v0  ;;  %vm5148_vm13 = vweird.f32 %v17344_v16  ;;  %v5641_v10 = vpop.f32.mrf.mxu2  ;;  %v5850_v14 = vpop.f32.mrf.mxu3 }
 0x4cc   : > { %v7118_v19 = vmul.f32 %v9980_v6, %v7117_v60  ;;  %9985 = vpow2.f32 %v8928_v46  ;;  %v8862_v57 = vmul.f32 -1.442695, %v4239_v47  ;;  %v5145_v58 = vmul.f32 %v17344_v16, %v5144_v49  ;;  %vm17582_vm15 = vmor %vm7135_vm9, %vm7136_vm10  ;;  %v20551_v49 = vld [vmem:[#allocation61_spill] sm:$0xff] }
 0x4cd   : > { %v7133_v54 = vmul.f32 %v9982_v25, %v7132_v35  ;;  %v5151_v55 = vand.u32 2147483647, %v17247_v48  ;;  %v7142_v31 = vor.u32 1.1754944e-38, %v7141_v38  ;;  %v5153_v18 = vand.u32 2147483648, %v17247_v48  ;;  %v4032_v35 = vpop.f32.mrf.mxu0 }
 0x4ce   : > { %v7119_v15 = vadd.f32 %v9980_v6, %v7118_v19  ;;  %v3698_v39 = vmul.f32 %v20533_v1, %v20532_v62  ;;  %9987 = vpow2.f32 %v8862_v57  ;;  %v5146_v51 = vadd.f32 %v17344_v16, %v5145_v58 }
 0x4cf   : > { %v7134_v61 = vadd.f32 %v9982_v25, %v7133_v54  ;;  %vm5147_vm0 = vweird.f32 %v17247_v48  ;;  %vm5152_vm11 = vcmp.eq.f32.partialorder %v5151_v55, 8.507059e+37  ;;  %v5154_v38 = vor.u32 1.1754944e-38, %v5153_v18  ;;  %v17637_v54 = vld [vmem:[#allocation10] ss:$0 sm:$0xff] }
 0x4d0   : > { %v7123_v50 = vsel %vm17573_vm14, %v9980_v6, %v7119_v15  ;;  %vm5149_vm2 = vmor %vm5147_vm0, %vm5148_vm13  ;;  %v3699_v9 = vsub.f32 1.0, %v3698_v39  ;;  %v3706_v48 = vand.u32 2147483647, %v20532_v62  ;;  %9989 = vrcp.f32 %v17556_v32  ;;  %v20537_v6 = vld [vmem:[#allocation59_spill] sm:$0xff] }
 0x4d1   : > { %v9984_v21 = vpop.eup %9983  ;;  %v7128_v13 = vsel %vm17552_vm1, %v17531_v36, %v7123_v50  ;;  %v7138_v59 = vsel %vm17582_vm15, %v9982_v25, %v7134_v61  ;;  %v5150_v22 = vsel %vm5149_vm2, %v17344_v16, %v5146_v51  ;;  %v3708_v16 = vand.u32 2147483648, %v20532_v62  ;;  %v4241_v51 = vpop.f32.mrf.mxu1 }
 0x4d2   : > { %v9986_v20 = vpop.eup %9985  ;;  %8447 = vst [vmem:[%s16097_s15 + $0x150] sm:$0xff] %v7128_v13  ;;  %v7143_v53 = vsel %vm17560_vm12, %v7142_v31, %v7138_v59  ;;  %v17600_v45 = vadd.f32 1.0, %v9984_v21  ;;  %v5155_v17 = vsel %vm5152_vm11, %v5154_v38, %v5150_v22  ;;  %v3700_v41 = vmul.f32 %v20533_v1, %v3699_v9 }
 0x4d3   : > { %8448 = vst [vmem:[%s16097_s15 + $0x158] sm:$0xff] %v7143_v53  ;;  %v17605_v36 = vadd.f32 1.0, %v9986_v20  ;;  %5688 = vmatmul.f32.gmra.mxu2 %v5155_v17  ;;  %5897 = vmatmul.f32.gmra.mxu3 %v5155_v17  ;;  %v3713_v26 = vmul.f32 %v20537_v6, %v20536_v23  ;;  %vm3703_vm3 = vweird.f32 %v20533_v1  ;;  %vm3702_vm8 = vweird.f32 %v20532_v62  ;;  %v5644_v39 = vpop.f32.mrf.mxu2 }
 0x4d4   : > { %9991 = vrcp.f32 %v17600_v45  ;;  %v7156_v5 = vand.u32 2147483648, %v17600_v45  ;;  %v9988_v27 = vpop.eup %9987  ;;  %v7154_v33 = vand.u32 2147483647, %v17600_v45  ;;  %v3701_v12 = vadd.f32 %v20533_v1, %v3700_v41  ;;  %vm3704_vm9 = vmor %vm3702_vm8, %vm3703_vm3 }
 0x4d5   : > { %9993 = vrcp.f32 %v17605_v36  ;;  %vm3707_vm4 = vcmp.eq.f32.partialorder %v3706_v48, 8.507059e+37  ;;  %v7169_v25 = vand.u32 2147483647, %v17605_v36  ;;  %v7171_v56 = vand.u32 2147483648, %v17605_v36 }
 0x4d6   : > { %v3709_v29 = vor.u32 1.1754944e-38, %v3708_v16  ;;  %v3714_v3 = vsub.f32 1.0, %v3713_v26  ;;  %vm7150_vm6 = vweird.f32 %v17600_v45  ;;  %v17620_v42 = vor.u32 1.1754944e-38, %v7156_v5  ;;  %v17625_v37 = vpop.eup %9989  ;;  %v20546_v5 = vld [vmem:[#allocation33_spill] sm:$0xff] }
 0x4d7   : > { %v3705_v8 = vsel %vm3704_vm9, %v20533_v1, %v3701_v12  ;;  %vm3717_vm1 = vweird.f32 %v20536_v23  ;;  %vm3718_vm7 = vweird.f32 %v20537_v6  ;;  %vm7165_vm5 = vweird.f32 %v17605_v36 }
 0x4d8   : > { %v3710_v60 = vsel %vm3707_vm4, %v3709_v29, %v3705_v8  ;;  %v3715_v63 = vmul.f32 %v20537_v6, %v3714_v3  ;;  %v3721_v46 = vand.u32 2147483647, %v20536_v23  ;;  %v3723_v47 = vand.u32 2147483648, %v20536_v23  ;;  %vm17631_vm12 = vmor %vm3717_vm1, %vm3718_vm7 }
 0x4d9   : > { %4076 = vmatmul.f32.gmra.mxu0 %v3710_v60  ;;  %v5642_v19 = vadd.f32 %v5641_v10, %v15896_v28  ;;  %v5851_v57 = vadd.f32 %v5850_v14, %v15909_v7  ;;  %v4033_v58 = vadd.f32 %v17637_v54, %v4032_v35  ;;  %v5158_v55 = vmul.f32 %v17447_v52, %v17351_v34 }
 0x4da   : > { %v9992_v0 = vpop.eup %9991  ;;  %vm17643_vm10 = vcmp.eq.f32.partialorder %v7154_v33, 8.507059e+37  ;;  %v17647_v18 = vadd.f32 1.0, %v9988_v27  ;;  %v3716_v62 = vadd.f32 %v20537_v6, %v3715_v63  ;;  %vm3722_vm13 = vcmp.eq.f32.partialorder %v3721_v46, 8.507059e+37  ;;  %v20547_v27 = vld [vmem:[#allocation35_spill] sm:$0xff] }
 0x4db   : > { %v9994_v15 = vpop.eup %9993  ;;  %v7146_v4 = vmul.f32 %v9992_v0, %v17600_v45  ;;  %vm7151_vm14 = vweird.f32 %v9992_v0  ;;  %vm17651_vm15 = vcmp.eq.f32.partialorder %v7169_v25, 8.507059e+37  ;;  %v3724_v61 = vor.u32 1.1754944e-38, %v3723_v47 }
 0x4dc   : > { %v7161_v1 = vmul.f32 %v9994_v15, %v17605_v36  ;;  %v8929_v40 = vmul.f32 -1.442695, %v5642_v19  ;;  %v3720_v38 = vsel %vm17631_vm12, %v20537_v6, %v3716_v62  ;;  %v8930_v9 = vmul.f32 -1.442695, %v5851_v57  ;;  %vm17664_vm11 = vmor %vm7150_vm6, %vm7151_vm14 }
 0x4dd   : > { %v7147_v50 = vsub.f32 1.0, %v7146_v4  ;;  %v4242_v21 = vadd.f32 %v4241_v51, %v4033_v58  ;;  %v3725_v59 = vsel %vm3722_vm13, %v3724_v61, %v3720_v38  ;;  %v5159_v22 = vsub.f32 1.0, %v5158_v55  ;;  %v5853_v51 = vpop.f32.mrf.mxu3 }
 0x4de   : > { %v7162_v13 = vsub.f32 1.0, %v7161_v1  ;;  %9995 = vpow2.f32 %v8929_v40  ;;  %vm7166_vm0 = vweird.f32 %v9994_v15  ;;  %4285 = vmatmul.f32.gmra.mxu1 %v3725_v59  ;;  %vm5163_vm2 = vweird.f32 %v17447_v52  ;;  %v4035_v59 = vpop.f32.mrf.mxu0 }
 0x4df   : > { %v7148_v48 = vmul.f32 %v9992_v0, %v7147_v50  ;;  %9997 = vpow2.f32 %v8930_v9  ;;  %v8863_v20 = vmul.f32 -1.442695, %v4242_v21  ;;  %v5160_v17 = vmul.f32 %v17447_v52, %v5159_v22  ;;  %vm17673_vm3 = vmor %vm7165_vm5, %vm7166_vm0 }
 0x4e0   : > { %v7163_v53 = vmul.f32 %v9994_v15, %v7162_v13  ;;  %v5166_v41 = vand.u32 2147483647, %v17351_v34  ;;  %v7172_v6 = vor.u32 1.1754944e-38, %v7171_v56  ;;  %v5168_v26 = vand.u32 2147483648, %v17351_v34 }
 0x4e1   : > { %v7149_v16 = vadd.f32 %v9992_v0, %v7148_v48  ;;  %v3728_v33 = vmul.f32 %v20547_v27, %v20546_v5  ;;  %9999 = vpow2.f32 %v8863_v20  ;;  %v5161_v45 = vadd.f32 %v17447_v52, %v5160_v17  ;;  %v20565_v48 = vld [vmem:[#allocation25_spill] sm:$0xff] }
 0x4e2   : > { %v7164_v12 = vadd.f32 %v9994_v15, %v7163_v53  ;;  %vm5162_vm8 = vweird.f32 %v17351_v34  ;;  %vm5167_vm9 = vcmp.eq.f32.partialorder %v5166_v41, 8.507059e+37  ;;  %v5169_v29 = vor.u32 1.1754944e-38, %v5168_v26 }
 0x4e3   : > { %v7153_v56 = vsel %vm17664_vm11, %v9992_v0, %v7149_v16  ;;  %vm5164_vm4 = vmor %vm5162_vm8, %vm5163_vm2  ;;  %v3729_v3 = vsub.f32 1.0, %v3728_v33  ;;  %v3736_v34 = vand.u32 2147483647, %v20546_v5  ;;  %10001 = vrcp.f32 %v17647_v18  ;;  %v20550_v0 = vld [vmem:[#allocation39_spill] sm:$0xff]  ;;  %v5647_v33 = vpop.f32.mrf.mxu2 }
 0x4e4   : > { %v9996_v10 = vpop.eup %9995  ;;  %v7158_v36 = vsel %vm17643_vm10, %v17620_v42, %v7153_v56  ;;  %v7168_v8 = vsel %vm17673_vm3, %v9994_v15, %v7164_v12  ;;  %v5165_v14 = vsel %vm5164_vm4, %v17447_v52, %v5161_v45  ;;  %v3738_v52 = vand.u32 2147483648, %v20546_v5  ;;  %v4244_v45 = vpop.f32.mrf.mxu1 }
 0x4e5   : > { %v9998_v60 = vpop.eup %9997  ;;  %8449 = vst [vmem:[%s16097_s15 + $0x160] sm:$0xff] %v7158_v36  ;;  %v7173_v63 = vsel %vm17651_vm15, %v7172_v6, %v7168_v8  ;;  %v17691_v46 = vadd.f32 1.0, %v9996_v10  ;;  %v5170_v47 = vsel %vm5167_vm9, %v5169_v29, %v5165_v14  ;;  %v3730_v35 = vmul.f32 %v20547_v27, %v3729_v3 }
 0x4e6   : > { %8450 = vst [vmem:[%s16097_s15 + $0x168] sm:$0xff] %v7173_v63  ;;  %v17696_v42 = vadd.f32 1.0, %v9998_v60  ;;  %5691 = vmatmul.f32.gmra.mxu2 %v5170_v47  ;;  %5900 = vmatmul.f32.gmra.mxu3 %v5170_v47  ;;  %v3743_v19 = vmul.f32 %v20551_v49, %v20550_v0  ;;  %vm3733_vm6 = vweird.f32 %v20547_v27  ;;  %vm3732_vm1 = vweird.f32 %v20546_v5 }
 0x4e7   : > { %10003 = vrcp.f32 %v17691_v46  ;;  %v7186_v57 = vand.u32 2147483648, %v17691_v46  ;;  %v10000_v58 = vpop.eup %9999  ;;  %v7184_v55 = vand.u32 2147483647, %v17691_v46  ;;  %v3731_v15 = vadd.f32 %v20547_v27, %v3730_v35  ;;  %vm3734_vm5 = vmor %vm3732_vm1, %vm3733_vm6 }
 0x4e8   : > { %10005 = vrcp.f32 %v17696_v42  ;;  %vm3737_vm7 = vcmp.eq.f32.partialorder %v3736_v34, 8.507059e+37  ;;  %v7199_v4 = vand.u32 2147483647, %v17696_v42  ;;  %v7201_v31 = vand.u32 2147483648, %v17696_v42 }
 0x4e9   : > { %v3739_v62 = vor.u32 1.1754944e-38, %v3738_v52  ;;  %v3744_v1 = vsub.f32 1.0, %v3743_v19  ;;  %vm7180_vm12 = vweird.f32 %v17691_v46  ;;  %v17711_v61 = vor.u32 1.1754944e-38, %v7186_v57  ;;  %v17716_v50 = vpop.eup %10001  ;;  %v20560_v57 = vld [vmem:[#allocation62_spill] sm:$0xff] }
 0x4ea   : > { %v3735_v40 = vsel %vm3734_vm5, %v20547_v27, %v3731_v15  ;;  %vm3747_vm10 = vweird.f32 %v20550_v0  ;;  %vm3748_vm13 = vweird.f32 %v20551_v49  ;;  %vm7195_vm14 = vweird.f32 %v17696_v42 }
 0x4eb   : > { %v3740_v38 = vsel %vm3737_vm7, %v3739_v62, %v3735_v40  ;;  %v3745_v9 = vmul.f32 %v20551_v49, %v3744_v1  ;;  %v3751_v21 = vand.u32 2147483647, %v20550_v0  ;;  %v3753_v13 = vand.u32 2147483648, %v20550_v0  ;;  %vm17722_vm15 = vmor %vm3747_vm10, %vm3748_vm13 }
 0x4ec   : > { %4079 = vmatmul.f32.gmra.mxu0 %v3740_v38  ;;  %v5645_v20 = vadd.f32 %v5644_v39, %v15896_v28  ;;  %v5854_v53 = vadd.f32 %v5853_v51, %v15909_v7  ;;  %v4036_v17 = vadd.f32 %v17637_v54, %v4035_v59  ;;  %v5173_v41 = vmul.f32 %v17536_v2, %v17467_v44 }
 0x4ed   : > { %v10004_v22 = vpop.eup %10003  ;;  %vm17732_vm0 = vcmp.eq.f32.partialorder %v7184_v55, 8.507059e+37  ;;  %v17736_v26 = vadd.f32 1.0, %v10000_v58  ;;  %v3746_v5 = vadd.f32 %v20551_v49, %v3745_v9  ;;  %vm3752_vm2 = vcmp.eq.f32.partialorder %v3751_v21, 8.507059e+37  ;;  %v20561_v58 = vld [vmem:[#allocation38_spill] sm:$0xff] }
 0x4ee   : > { %v10006_v16 = vpop.eup %10005  ;;  %v7176_v23 = vmul.f32 %v10004_v22, %v17691_v46  ;;  %vm7181_vm11 = vweird.f32 %v10004_v22  ;;  %vm17740_vm3 = vcmp.eq.f32.partialorder %v7199_v4, 8.507059e+37  ;;  %v3754_v12 = vor.u32 1.1754944e-38, %v3753_v13 }
 0x4ef   : > { %v7191_v27 = vmul.f32 %v10006_v16, %v17696_v42  ;;  %v8931_v25 = vmul.f32 -1.442695, %v5645_v20  ;;  %v3750_v29 = vsel %vm17722_vm15, %v20551_v49, %v3746_v5  ;;  %v8932_v3 = vmul.f32 -1.442695, %v5854_v53  ;;  %vm17753_vm9 = vmor %vm7180_vm12, %vm7181_vm11 }
 0x4f0   : > { %v7177_v56 = vsub.f32 1.0, %v7176_v23  ;;  %v4245_v10 = vadd.f32 %v4244_v45, %v4036_v17  ;;  %v3755_v8 = vsel %vm3752_vm2, %v3754_v12, %v3750_v29  ;;  %v5174_v14 = vsub.f32 1.0, %v5173_v41  ;;  %v5856_v45 = vpop.f32.mrf.mxu3 }
 0x4f1   : > { %v7192_v36 = vsub.f32 1.0, %v7191_v27  ;;  %10007 = vpow2.f32 %v8931_v25  ;;  %vm7196_vm8 = vweird.f32 %v10006_v16  ;;  %4288 = vmatmul.f32.gmra.mxu1 %v3755_v8  ;;  %vm5178_vm4 = vweird.f32 %v17536_v2  ;;  %v4038_v8 = vpop.f32.mrf.mxu0 }
 0x4f2   : > { %v7178_v34 = vmul.f32 %v10004_v22, %v7177_v56  ;;  %10009 = vpow2.f32 %v8932_v3  ;;  %v8864_v60 = vmul.f32 -1.442695, %v4245_v10  ;;  %v5175_v47 = vmul.f32 %v17536_v2, %v5174_v14  ;;  %vm17762_vm6 = vmor %vm7195_vm14, %vm7196_vm8 }
 0x4f3   : > { %v7193_v63 = vmul.f32 %v10006_v16, %v7192_v36  ;;  %v5181_v35 = vand.u32 2147483647, %v17467_v44  ;;  %v7202_v49 = vor.u32 1.1754944e-38, %v7201_v31  ;;  %v5183_v19 = vand.u32 2147483648, %v17467_v44 }
 0x4f4   : > { %v7179_v52 = vadd.f32 %v10004_v22, %v7178_v34  ;;  %v3758_v55 = vmul.f32 %v20561_v58, %v20560_v57  ;;  %10011 = vpow2.f32 %v8864_v60  ;;  %v5176_v46 = vadd.f32 %v17536_v2, %v5175_v47 }
 0x4f5   : > { %v7194_v15 = vadd.f32 %v10006_v16, %v7193_v63  ;;  %vm5177_vm1 = vweird.f32 %v17467_v44  ;;  %vm5182_vm5 = vcmp.eq.f32.partialorder %v5181_v35, 8.507059e+37  ;;  %v5184_v62 = vor.u32 1.1754944e-38, %v5183_v19 }
 0x4f6   : > { %v7183_v31 = vsel %vm17753_vm9, %v10004_v22, %v7179_v52  ;;  %vm5179_vm7 = vmor %vm5177_vm1, %vm5178_vm4  ;;  %v3759_v1 = vsub.f32 1.0, %v3758_v55  ;;  %v3766_v44 = vand.u32 2147483647, %v20560_v57  ;;  %10013 = vrcp.f32 %v17736_v26  ;;  %v20564_v22 = vld [vmem:[#allocation41_spill] sm:$0xff] }
 0x4f7   : > { %v10008_v39 = vpop.eup %10007  ;;  %v7188_v42 = vsel %vm17732_vm0, %v17711_v61, %v7183_v31  ;;  %v7198_v40 = vsel %vm17762_vm6, %v10006_v16, %v7194_v15  ;;  %v5180_v51 = vsel %vm5179_vm7, %v17536_v2, %v5176_v46  ;;  %v3768_v2 = vand.u32 2147483648, %v20560_v57  ;;  %v4247_v46 = vpop.f32.mrf.mxu1 }
 0x4f8   : > { %v10010_v38 = vpop.eup %10009  ;;  %8451 = vst [vmem:[%s16097_s15 + $0x170] sm:$0xff] %v7188_v42  ;;  %v7203_v9 = vsel %vm17740_vm3, %v7202_v49, %v7198_v40  ;;  %v17780_v21 = vadd.f32 1.0, %v10008_v39  ;;  %v5185_v13 = vsel %vm5182_vm5, %v5184_v62, %v5180_v51  ;;  %v3760_v59 = vmul.f32 %v20561_v58, %v3759_v1  ;;  %v5650_v49 = vpop.f32.mrf.mxu2 }
 0x4f9   : > { %8452 = vst [vmem:[%s16097_s15 + $0x178] sm:$0xff] %v7203_v9  ;;  %v17785_v61 = vadd.f32 1.0, %v10010_v38  ;;  %5694 = vmatmul.f32.gmra.mxu2 %v5185_v13  ;;  %5903 = vmatmul.f32.gmra.mxu3 %v5185_v13  ;;  %v3773_v20 = vmul.f32 %v20565_v48, %v20564_v22  ;;  %vm3763_vm12 = vweird.f32 %v20561_v58  ;;  %vm3762_vm10 = vweird.f32 %v20560_v57  ;;  %v5859_v55 = vpop.f32.mrf.mxu3 }
 0x4fa   : > { %10015 = vrcp.f32 %v17780_v21  ;;  %v7216_v53 = vand.u32 2147483648, %v17780_v21  ;;  %v10012_v17 = vpop.eup %10011  ;;  %v7214_v41 = vand.u32 2147483647, %v17780_v21  ;;  %v3761_v16 = vadd.f32 %v20561_v58, %v3760_v59  ;;  %vm3764_vm14 = vmor %vm3762_vm10, %vm3763_vm12 }
 0x4fb   : > { %10017 = vrcp.f32 %v17785_v61  ;;  %vm3767_vm13 = vcmp.eq.f32.partialorder %v3766_v44, 8.507059e+37  ;;  %v7229_v23 = vand.u32 2147483647, %v17785_v61  ;;  %v7231_v6 = vand.u32 2147483648, %v17785_v61 }
 0x4fc   : > { %v3769_v5 = vor.u32 1.1754944e-38, %v3768_v2  ;;  %v3774_v27 = vsub.f32 1.0, %v3773_v20  ;;  %vm7210_vm15 = vweird.f32 %v17780_v21  ;;  %v17800_v12 = vor.u32 1.1754944e-38, %v7216_v53  ;;  %v17805_v56 = vpop.eup %10013  ;;  %v20574_v20 = vld [vmem:[#allocation26_spill] sm:$0xff]  ;;  %v20575_v53 = vld [vmem:[#allocation65_spill] sm:$0xff] }
 0x4fd   : > { %v3765_v25 = vsel %vm3764_vm14, %v20561_v58, %v3761_v16  ;;  %vm3777_vm0 = vweird.f32 %v20564_v22  ;;  %vm3778_vm2 = vweird.f32 %v20565_v48  ;;  %vm7225_vm11 = vweird.f32 %v17785_v61 }
 0x4fe   : > { %v3770_v29 = vsel %vm3767_vm13, %v3769_v5, %v3765_v25  ;;  %v3775_v3 = vmul.f32 %v20565_v48, %v3774_v27  ;;  %v3781_v10 = vand.u32 2147483647, %v20564_v22  ;;  %v3783_v36 = vand.u32 2147483648, %v20564_v22  ;;  %vm17811_vm3 = vmor %vm3777_vm0, %vm3778_vm2 }
 0x4ff   : > { %4082 = vmatmul.f32.gmra.mxu0 %v3770_v29  ;;  %v5648_v60 = vadd.f32 %v5647_v33, %v15896_v28  ;;  %v5857_v63 = vadd.f32 %v5856_v45, %v15909_v7  ;;  %v4039_v47 = vadd.f32 %v17637_v54, %v4038_v8  ;;  %v5188_v35 = vmul.f32 %v17625_v37, %v17556_v32 }
 0x500   : > { %v10016_v14 = vpop.eup %10015  ;;  %vm17821_vm8 = vcmp.eq.f32.partialorder %v7214_v41, 8.507059e+37  ;;  %v17825_v19 = vadd.f32 1.0, %v10012_v17  ;;  %v3776_v57 = vadd.f32 %v20565_v48, %v3775_v3  ;;  %vm3782_vm4 = vcmp.eq.f32.partialorder %v3781_v10, 8.507059e+37 }
 0x501   : > { %v10018_v52 = vpop.eup %10017  ;;  %v7206_v0 = vmul.f32 %v10016_v14, %v17780_v21  ;;  %vm7211_vm9 = vweird.f32 %v10016_v14  ;;  %vm17829_vm6 = vcmp.eq.f32.partialorder %v7229_v23, 8.507059e+37  ;;  %v3784_v15 = vor.u32 1.1754944e-38, %v3783_v36 }
 0x502   : > { %v7221_v58 = vmul.f32 %v10018_v52, %v17785_v61  ;;  %v8933_v4 = vmul.f32 -1.442695, %v5648_v60  ;;  %v3780_v62 = vsel %vm17811_vm3, %v20565_v48, %v3776_v57  ;;  %v8934_v1 = vmul.f32 -1.442695, %v5857_v63  ;;  %vm17842_vm5 = vmor %vm7210_vm15, %vm7211_vm9 }
 0x503   : > { %v7207_v31 = vsub.f32 1.0, %v7206_v0  ;;  %v4248_v39 = vadd.f32 %v4247_v46, %v4039_v47  ;;  %v3785_v40 = vsel %vm3782_vm4, %v3784_v15, %v3780_v62  ;;  %v5189_v51 = vsub.f32 1.0, %v5188_v35 }
 0x504   : > { %v7222_v42 = vsub.f32 1.0, %v7221_v58  ;;  %10019 = vpow2.f32 %v8933_v4  ;;  %vm7226_vm1 = vweird.f32 %v10018_v52  ;;  %v7232_v38 = vor.u32 1.1754944e-38, %v7231_v6  ;;  %4291 = vmatmul.f32.gmra.mxu1 %v3785_v40 }
 0x505   : > { %v7208_v44 = vmul.f32 %v10016_v14, %v7207_v31  ;;  %10021 = vpow2.f32 %v8934_v1  ;;  %v5190_v13 = vmul.f32 %v17625_v37, %v5189_v51  ;;  %vm5193_vm7 = vweird.f32 %v17625_v37  ;;  %vm17852_vm12 = vmor %vm7225_vm11, %vm7226_vm1  ;;  %v4041_v1 = vpop.f32.mrf.mxu0 }
 0x506   : > { %v7223_v9 = vmul.f32 %v10018_v52, %v7222_v42  ;;  %v5196_v59 = vand.u32 2147483647, %v17556_v32  ;;  %10023 = vrcp.f32 %v17825_v19  ;;  %v5198_v48 = vand.u32 2147483648, %v17556_v32  ;;  %v5653_v42 = vpop.f32.mrf.mxu2 }
 0x507   : > { %v7209_v2 = vadd.f32 %v10016_v14, %v7208_v44  ;;  %v3788_v17 = vmul.f32 %v20575_v53, %v20574_v20  ;;  %v8865_v21 = vmul.f32 -1.442695, %v4248_v39  ;;  %v5191_v23 = vadd.f32 %v17625_v37, %v5190_v13 }
 0x508   : > { %v7224_v41 = vadd.f32 %v10018_v52, %v7223_v9  ;;  %vm5192_vm10 = vweird.f32 %v17556_v32  ;;  %vm5197_vm14 = vcmp.eq.f32.partialorder %v5196_v59, 8.507059e+37  ;;  %v5199_v5 = vor.u32 1.1754944e-38, %v5198_v48 }
 0x509   : > { %v7213_v6 = vsel %vm17842_vm5, %v10016_v14, %v7209_v2  ;;  %vm5194_vm13 = vmor %vm5192_vm10, %vm5193_vm7  ;;  %v3789_v27 = vsub.f32 1.0, %v3788_v17  ;;  %v3796_v32 = vand.u32 2147483647, %v20574_v20  ;;  %10025 = vpow2.f32 %v8865_v21 }
 0x50a   : > { %v10020_v33 = vpop.eup %10019  ;;  %v7218_v61 = vsel %vm17821_vm8, %v17800_v12, %v7213_v6  ;;  %v7228_v25 = vsel %vm17852_vm12, %v10018_v52, %v7224_v41  ;;  %v5195_v45 = vsel %vm5194_vm13, %v17625_v37, %v5191_v23  ;;  %v3798_v37 = vand.u32 2147483648, %v20574_v20 }
 0x50b   : > { %v10022_v29 = vpop.eup %10021  ;;  %8453 = vst [vmem:[%s16097_s15 + $0x180] sm:$0xff] %v7218_v61  ;;  %v7233_v3 = vsel %vm17829_vm6, %v7232_v38, %v7228_v25  ;;  %v17870_v10 = vadd.f32 1.0, %v10020_v33  ;;  %v5200_v36 = vsel %vm5197_vm14, %v5199_v5, %v5195_v45  ;;  %v3790_v8 = vmul.f32 %v20575_v53, %v3789_v27 }
 0x50c   : > { %8454 = vst [vmem:[%s16097_s15 + $0x188] sm:$0xff] %v7233_v3  ;;  %v17874_v14 = vadd.f32 1.0, %v10022_v29  ;;  %5697 = vmatmul.f32.gmra.mxu2 %v5200_v36  ;;  %5906 = vmatmul.f32.gmra.mxu3 %v5200_v36  ;;  %v3803_v12 = vmul.f32 %v16782_v24, %v15926_v30  ;;  %v17879_v34 = vpop.eup %10023  ;;  %vm3793_vm15 = vweird.f32 %v20575_v53  ;;  %vm3792_vm0 = vweird.f32 %v20574_v20  ;;  %v20586_v36 = vld [vmem:[#allocation68_spill] sm:$0xff] }
 0x50d   : > { %10027 = vrcp.f32 %v17870_v10  ;;  %v7244_v60 = vand.u32 2147483647, %v17870_v10  ;;  %v3791_v63 = vadd.f32 %v20575_v53, %v3790_v8  ;;  %vm3797_vm2 = vcmp.eq.f32.partialorder %v3796_v32, 8.507059e+37  ;;  %vm3794_vm11 = vmor %vm3792_vm0, %vm3793_vm15  ;;  %v20587_v8 = vld [vmem:[#allocation44_spill] sm:$0xff] }
 0x50e   : > { %10029 = vrcp.f32 %v17874_v14  ;;  %v7246_v47 = vand.u32 2147483648, %v17870_v10  ;;  %v7259_v35 = vand.u32 2147483647, %v17874_v14  ;;  %v3799_v52 = vor.u32 1.1754944e-38, %v3798_v37 }
 0x50f   : > { %v3804_v0 = vsub.f32 1.0, %v3803_v12  ;;  %vm7240_vm3 = vweird.f32 %v17870_v10  ;;  %v7261_v57 = vand.u32 2147483648, %v17874_v14  ;;  %v3795_v58 = vsel %vm3794_vm11, %v20575_v53, %v3791_v63  ;;  %v17894_v15 = vpop.eup %10025  ;;  %v4250_v53 = vpop.f32.mrf.mxu1 }
 0x510   : > { %vm3807_vm8 = vweird.f32 %v15926_v30  ;;  %vm3808_vm4 = vweird.f32 %v16782_v24  ;;  %vm7255_vm9 = vweird.f32 %v17874_v14  ;;  %v3800_v4 = vsel %vm3797_vm2, %v3799_v52, %v3795_v58 }
 0x511   : > { %v3805_v46 = vmul.f32 %v16782_v24, %v3804_v0  ;;  %v3811_v31 = vand.u32 2147483647, %v15926_v30  ;;  %v3813_v62 = vand.u32 2147483648, %v15926_v30  ;;  %4085 = vmatmul.f32.gmra.mxu0 %v3800_v4  ;;  %vm17900_vm6 = vmor %vm3807_vm8, %vm3808_vm4  ;;  %v5651_v40 = vadd.f32 %v5650_v49, %v15896_v28 }
 0x512   : > { %v5860_v51 = vadd.f32 %v5859_v55, %v15909_v7  ;;  %v4042_v44 = vadd.f32 %v17637_v54, %v4041_v1  ;;  %v5203_v38 = vmul.f32 %v17716_v50, %v17647_v18  ;;  %vm17910_vm1 = vcmp.eq.f32.partialorder %v7244_v60, 8.507059e+37 }
 0x513   : > { %v10028_v39 = vpop.eup %10027  ;;  %v7247_v59 = vor.u32 1.1754944e-38, %v7246_v47  ;;  %v3806_v2 = vadd.f32 %v16782_v24, %v3805_v46  ;;  %vm3812_vm7 = vcmp.eq.f32.partialorder %v3811_v31, 8.507059e+37  ;;  %v3814_v48 = vor.u32 1.1754944e-38, %v3813_v62 }
 0x514   : > { %v10030_v9 = vpop.eup %10029  ;;  %v7236_v13 = vmul.f32 %v10028_v39, %v17870_v10  ;;  %vm7241_vm5 = vweird.f32 %v10028_v39  ;;  %v8935_v20 = vmul.f32 -1.442695, %v5651_v40  ;;  %v8936_v16 = vmul.f32 -1.442695, %v5860_v51 }
 0x515   : > { %v7251_v22 = vmul.f32 %v10030_v9, %v17874_v14  ;;  %v3810_v41 = vsel %vm17900_vm6, %v16782_v24, %v3806_v2  ;;  %v4251_v21 = vadd.f32 %v4250_v53, %v4042_v44  ;;  %v5204_v5 = vsub.f32 1.0, %v5203_v38  ;;  %vm17929_vm14 = vmor %vm7240_vm3, %vm7241_vm5 }
 0x516   : > { %v7237_v17 = vsub.f32 1.0, %v7236_v13  ;;  %v3815_v6 = vsel %vm3812_vm7, %v3814_v48, %v3810_v41  ;;  %10031 = vpow2.f32 %v8935_v20  ;;  %vm7256_vm12 = vweird.f32 %v10030_v9 }
 0x517   : > { %v7252_v23 = vsub.f32 1.0, %v7251_v22  ;;  %vm17919_vm10 = vcmp.eq.f32.partialorder %v7259_v35, 8.507059e+37  ;;  %4294 = vmatmul.f32.gmra.mxu1 %v3815_v6  ;;  %10033 = vpow2.f32 %v8936_v16  ;;  %v5205_v25 = vmul.f32 %v17716_v50, %v5204_v5  ;;  %vm17938_vm15 = vmor %vm7255_vm9, %vm7256_vm12  ;;  %v5862_v22 = vpop.f32.mrf.mxu3  ;;  %v4044_v16 = vpop.f32.mrf.mxu0 }
 0x518   : > { %v7238_v27 = vmul.f32 %v10028_v39, %v7237_v17  ;;  %vm5208_vm13 = vweird.f32 %v17716_v50  ;;  %v5211_v24 = vand.u32 2147483647, %v17647_v18  ;;  %v7262_v29 = vor.u32 1.1754944e-38, %v7261_v57 }
 0x519   : > { %v7253_v61 = vmul.f32 %v10030_v9, %v7252_v23  ;;  %v5213_v3 = vand.u32 2147483648, %v17647_v18  ;;  %v3818_v37 = vmul.f32 %v20587_v8, %v20586_v36  ;;  %v8866_v63 = vmul.f32 -1.442695, %v4251_v21 }
 0x51a   : > { %v7239_v45 = vadd.f32 %v10028_v39, %v7238_v27  ;;  %v5206_v10 = vadd.f32 %v17716_v50, %v5205_v25  ;;  %vm5207_vm0 = vweird.f32 %v17647_v18  ;;  %vm5212_vm11 = vcmp.eq.f32.partialorder %v5211_v24, 8.507059e+37 }
 0x51b   : > { %v7254_v12 = vadd.f32 %v10030_v9, %v7253_v61  ;;  %vm5209_vm2 = vmor %vm5207_vm0, %vm5208_vm13  ;;  %v5214_v35 = vor.u32 1.1754944e-38, %v5213_v3  ;;  %v3819_v52 = vsub.f32 1.0, %v3818_v37  ;;  %v3826_v58 = vand.u32 2147483647, %v20586_v36 }
 0x51c   : > { %v7243_v47 = vsel %vm17929_vm14, %v10028_v39, %v7239_v45  ;;  %v10032_v0 = vpop.eup %10031  ;;  %v5210_v57 = vsel %vm5209_vm2, %v17716_v50, %v5206_v10  ;;  %10035 = vpow2.f32 %v8866_v63  ;;  %v3828_v50 = vand.u32 2147483648, %v20586_v36 }
 0x51d   : > { %v7248_v14 = vsel %vm17910_vm1, %v7247_v59, %v7243_v47  ;;  %v7258_v49 = vsel %vm17938_vm15, %v10030_v9, %v7254_v12  ;;  %v10034_v18 = vpop.eup %10033  ;;  %v17955_v4 = vadd.f32 1.0, %v10032_v0  ;;  %v5215_v46 = vsel %vm5212_vm11, %v5214_v35, %v5210_v57  ;;  %v5656_v35 = vpop.f32.mrf.mxu2 }
 0x51e   : > { %8455 = vst [vmem:[%s16097_s15 + $0x190] sm:$0xff] %v7248_v14  ;;  %v7263_v55 = vsel %vm17919_vm10, %v7262_v29, %v7258_v49  ;;  %v3820_v31 = vmul.f32 %v20587_v8, %v3819_v52  ;;  %v17959_v62 = vadd.f32 1.0, %v10034_v18  ;;  %5700 = vmatmul.f32.gmra.mxu2 %v5215_v46  ;;  %5909 = vmatmul.f32.gmra.mxu3 %v5215_v46  ;;  %vm3823_vm3 = vweird.f32 %v20587_v8 }
 0x51f   : > { %8456 = vst [vmem:[%s16097_s15 + $0x198] sm:$0xff] %v7263_v55  ;;  %v3833_v1 = vmul.f32 %v17074_v43, %v16885_v11  ;;  %10037 = vrcp.f32 %v17955_v4  ;;  %v7276_v39 = vand.u32 2147483648, %v17955_v4  ;;  %v7274_v51 = vand.u32 2147483647, %v17955_v4  ;;  %v5865_v57 = vpop.f32.mrf.mxu3 }
 0x520   : > { %10039 = vrcp.f32 %v17959_v62  ;;  %v7291_v40 = vand.u32 2147483648, %v17959_v62  ;;  %v3821_v44 = vadd.f32 %v20587_v8, %v3820_v31  ;;  %vm3822_vm8 = vweird.f32 %v20586_v36  ;;  %v4253_v36 = vpop.f32.mrf.mxu1  ;;  %v4047_v31 = vpop.f32.mrf.mxu0 }
 0x521   : > { %vm3827_vm4 = vcmp.eq.f32.partialorder %v3826_v58, 8.507059e+37  ;;  %v17972_v38 = vor.u32 1.1754944e-38, %v7276_v39  ;;  %v7289_v9 = vand.u32 2147483647, %v17959_v62  ;;  %vm3824_vm9 = vmor %vm3822_vm8, %vm3823_vm3  ;;  %v3829_v13 = vor.u32 1.1754944e-38, %v3828_v50 }
 0x522   : > { %v3834_v30 = vsub.f32 1.0, %v3833_v1  ;;  %vm7270_vm6 = vweird.f32 %v17955_v4  ;;  %v17976_v59 = vor.u32 1.1754944e-38, %v7291_v40  ;;  %v3825_v2 = vsel %vm3824_vm9, %v20587_v8, %v3821_v44  ;;  %v17981_v48 = vpop.eup %10035 }
 0x523   : > { %vm3837_vm1 = vweird.f32 %v16885_v11  ;;  %vm3838_vm7 = vweird.f32 %v17074_v43  ;;  %vm7285_vm5 = vweird.f32 %v17959_v62  ;;  %v3830_v20 = vsel %vm3827_vm4, %v3829_v13, %v3825_v2 }
 0x524   : > { %v3835_v53 = vmul.f32 %v17074_v43, %v3834_v30  ;;  %v3841_v17 = vand.u32 2147483647, %v16885_v11  ;;  %v3843_v41 = vand.u32 2147483648, %v16885_v11  ;;  %4088 = vmatmul.f32.gmra.mxu0 %v3830_v20  ;;  %vm17987_vm12 = vmor %vm3837_vm1, %vm3838_vm7  ;;  %v5654_v6 = vadd.f32 %v5653_v42, %v15896_v28 }
 0x525   : > { %v10038_v21 = vpop.eup %10037  ;;  %v5863_v5 = vadd.f32 %v5862_v22, %v15909_v7  ;;  %v4045_v27 = vadd.f32 %v17637_v54, %v4044_v16  ;;  %v5218_v33 = vmul.f32 %v17805_v56, %v17736_v26  ;;  %vm17997_vm13 = vcmp.eq.f32.partialorder %v7274_v51, 8.507059e+37 }
 0x526   : > { %v10040_v61 = vpop.eup %10039  ;;  %v7266_v25 = vmul.f32 %v10038_v21, %v17955_v4  ;;  %vm7271_vm10 = vweird.f32 %v10038_v21  ;;  %v3836_v24 = vadd.f32 %v17074_v43, %v3835_v53  ;;  %vm3842_vm14 = vcmp.eq.f32.partialorder %v3841_v17, 8.507059e+37 }
 0x527   : > { %v7281_v45 = vmul.f32 %v10040_v61, %v17959_v62  ;;  %vm7286_vm15 = vweird.f32 %v10040_v61  ;;  %vm18003_vm0 = vcmp.eq.f32.partialorder %v7289_v9, 8.507059e+37  ;;  %v3844_v29 = vor.u32 1.1754944e-38, %v3843_v41  ;;  %vm18017_vm3 = vmor %vm7270_vm6, %vm7271_vm10 }
 0x528   : > { %v8937_v3 = vmul.f32 -1.442695, %v5654_v6  ;;  %v7267_v8 = vsub.f32 1.0, %v7266_v25  ;;  %v3840_v37 = vsel %vm17987_vm12, %v17074_v43, %v3836_v24  ;;  %v8938_v12 = vmul.f32 -1.442695, %v5863_v5  ;;  %vm18026_vm8 = vmor %vm7285_vm5, %vm7286_vm15 }
 0x529   : > { %v4254_v60 = vadd.f32 %v4253_v36, %v4045_v27  ;;  %v7282_v63 = vsub.f32 1.0, %v7281_v45  ;;  %v3845_v10 = vsel %vm3842_vm14, %v3844_v29, %v3840_v37  ;;  %v5219_v47 = vsub.f32 1.0, %v5218_v33 }
 0x52a   : > { %10041 = vpow2.f32 %v8937_v3  ;;  %v7268_v52 = vmul.f32 %v10038_v21, %v7267_v8  ;;  %4297 = vmatmul.f32.gmra.mxu1 %v3845_v10  ;;  %vm5222_vm2 = vweird.f32 %v17736_v26  ;;  %vm5223_vm11 = vweird.f32 %v17805_v56 }
 0x52b   : > { %10043 = vpow2.f32 %v8938_v12  ;;  %v8867_v0 = vmul.f32 -1.442695, %v4254_v60  ;;  %v7283_v14 = vmul.f32 %v10040_v61, %v7282_v63  ;;  %v5220_v49 = vmul.f32 %v17805_v56, %v5219_v47  ;;  %vm5224_vm9 = vmor %vm5222_vm2, %vm5223_vm11 }
 0x52c   : > { %v5226_v43 = vand.u32 2147483647, %v17736_v26  ;;  %v7269_v58 = vadd.f32 %v10038_v21, %v7268_v52  ;;  %v5228_v55 = vand.u32 2147483648, %v17736_v26  ;;  %v5657_v46 = vadd.f32 %v5656_v35, %v15896_v28 }
 0x52d   : > { %10045 = vpow2.f32 %v8867_v0  ;;  %v7284_v50 = vadd.f32 %v10040_v61, %v7283_v14  ;;  %v5221_v4 = vadd.f32 %v17805_v56, %v5220_v49  ;;  %v5866_v42 = vadd.f32 %v5865_v57, %v15909_v7  ;;  %v5868_v0 = vpop.f32.mrf.mxu3 }
 0x52e   : > { %vm18031_vm4 = vcmp.eq.f32.partialorder %v5226_v43, 8.507059e+37  ;;  %v7273_v40 = vsel %vm18017_vm3, %v10038_v21, %v7269_v58  ;;  %v5229_v62 = vor.u32 1.1754944e-38, %v5228_v55  ;;  %v8939_v51 = vmul.f32 -1.442695, %v5657_v46  ;;  %v4256_v21 = vpop.f32.mrf.mxu1 }
 0x52f   : > { %v4048_v44 = vadd.f32 %v17637_v54, %v4047_v31  ;;  %v7278_v13 = vsel %vm17997_vm13, %v17972_v38, %v7273_v40  ;;  %v7288_v30 = vsel %vm18026_vm8, %v10040_v61, %v7284_v50  ;;  %v5225_v2 = vsel %vm5224_vm9, %v17805_v56, %v5221_v4 }
 0x530   : > { %v10042_v9 = vpop.eup %10041  ;;  %v8940_v22 = vmul.f32 -1.442695, %v5866_v42  ;;  %8457 = vst [vmem:[%s16097_s15 + $0x1a0] sm:$0xff] %v7278_v13  ;;  %v7293_v26 = vsel %vm18003_vm0, %v17976_v59, %v7288_v30  ;;  %v5230_v54 = vsel %vm18031_vm4, %v5229_v62, %v5225_v2  ;;  %10047 = vpow2.f32 %v8939_v51 }
 0x531   : > { %v10044_v20 = vpop.eup %10043  ;;  %v18053_v53 = vadd.f32 1.0, %v10042_v9  ;;  %8458 = vst [vmem:[%s16097_s15 + $0x1a8] sm:$0xff] %v7293_v26  ;;  %5703 = vmatmul.f32.gmra.mxu2 %v5230_v54  ;;  %5912 = vmatmul.f32.gmra.mxu3 %v5230_v54  ;;  %v5233_v56 = vmul.f32 %v17879_v34, %v17825_v19  ;;  %v18063_v41 = vadd.f32 1.0, %v17894_v15  ;;  %v18067_v59 = vadd.f32 1.0, %v17981_v48  ;;  %v5659_v48 = vpop.f32.mrf.mxu2 }
 0x532   : > { %v18058_v38 = vadd.f32 1.0, %v10044_v20  ;;  %10049 = vpow2.f32 %v8940_v22  ;;  %v4257_v23 = vadd.f32 %v4256_v21, %v4048_v44  ;;  %v5241_v3 = vand.u32 2147483647, %v17825_v19  ;;  %v4050_v9 = vpop.f32.mrf.mxu0 }
 0x533   : > { %v10046_v17 = vpop.eup %10045  ;;  %10051 = vrcp.f32 %v18053_v53  ;;  %v7306_v16 = vand.u32 2147483648, %v18053_v53  ;;  %v7304_v6 = vand.u32 2147483647, %v18053_v53  ;;  %v5234_v5 = vsub.f32 1.0, %v5233_v56 }
 0x534   : > { %10053 = vrcp.f32 %v18058_v38  ;;  %v7319_v15 = vand.u32 2147483647, %v18058_v38  ;;  %v7321_v33 = vand.u32 2147483648, %v18058_v38  ;;  %v18075_v61 = vadd.f32 1.0, %v10046_v17 }
 0x535   : > { %10055 = vrcp.f32 %v18063_v41  ;;  %vm7300_vm6 = vweird.f32 %v18053_v53  ;;  %v7307_v11 = vor.u32 1.1754944e-38, %v7306_v16  ;;  %vm7315_vm1 = vweird.f32 %v18058_v38  ;;  %v18146_v16 = vld [vmem:[#allocation10] ss:$0 sm:$0xff] }
 0x536   : > { %v10048_v27 = vpop.eup %10047  ;;  %10057 = vrcp.f32 %v18067_v59  ;;  %v8868_v29 = vmul.f32 -1.442695, %v4257_v23  ;;  %v5243_v36 = vand.u32 2147483648, %v17825_v19  ;;  %vm18087_vm7 = vcmp.eq.f32.partialorder %v7304_v6, 8.507059e+37 }
 0x537   : > { %v18079_v24 = vadd.f32 1.0, %v10048_v27  ;;  %v5235_v60 = vmul.f32 %v17879_v34, %v5234_v5  ;;  %v5660_v63 = vadd.f32 %v5659_v48, %v15896_v28  ;;  %vm18095_vm5 = vcmp.eq.f32.partialorder %v7319_v15, 8.507059e+37 }
 0x538   : > { %v10050_v25 = vpop.eup %10049  ;;  %v7322_v35 = vor.u32 1.1754944e-38, %v7321_v33  ;;  %vm5237_vm12 = vweird.f32 %v17825_v19  ;;  %vm5238_vm10 = vweird.f32 %v17879_v34  ;;  %vm18105_vm13 = vcmp.eq.f32.partialorder %v5241_v3, 8.507059e+37 }
 0x539   : > { %v10052_v45 = vpop.eup %10051  ;;  %v18082_v32 = vadd.f32 1.0, %v10050_v25  ;;  %10059 = vrcp.f32 %v18079_v24  ;;  %v5244_v57 = vor.u32 1.1754944e-38, %v5243_v36  ;;  %v5236_v55 = vadd.f32 %v17879_v34, %v5235_v60  ;;  %vm18117_vm2 = vmor %vm5237_vm12, %vm5238_vm10  ;;  %v5662_v27 = vpop.f32.mrf.mxu2 }
 0x53a   : > { %v10054_v8 = vpop.eup %10053  ;;  %v7296_v37 = vmul.f32 %v10052_v45, %v18053_v53  ;;  %10061 = vrcp.f32 %v18075_v61  ;;  %vm7301_vm14 = vweird.f32 %v10052_v45  ;;  %v8941_v46 = vmul.f32 -1.442695, %v5660_v63  ;;  %v5871_v63 = vpop.f32.mrf.mxu3 }
 0x53b   : > { %v7311_v10 = vmul.f32 %v10054_v8, %v18058_v38  ;;  %10063 = vrcp.f32 %v18082_v32  ;;  %v18103_v14 = vpop.eup %10055  ;;  %vm7316_vm15 = vweird.f32 %v10054_v8  ;;  %vm7330_vm0 = vweird.f32 %v18079_v24  ;;  %vm7302_vm11 = vmor %vm7300_vm6, %vm7301_vm14  ;;  %v4053_v50 = vpop.f32.mrf.mxu0 }
 0x53c   : > { %v7297_v52 = vsub.f32 1.0, %v7296_v37  ;;  %10065 = vpow2.f32 %v8868_v29  ;;  %v18109_v58 = vpop.eup %10057  ;;  %v5869_v1 = vadd.f32 %v5868_v0, %v15909_v7  ;;  %v7334_v42 = vand.u32 2147483647, %v18079_v24  ;;  %vm7317_vm8 = vmor %vm7315_vm1, %vm7316_vm15 }
 0x53d   : > { %v7312_v49 = vsub.f32 1.0, %v7311_v10  ;;  %v5240_v40 = vsel %vm18117_vm2, %v17879_v34, %v5236_v55  ;;  %10067 = vpow2.f32 %v8941_v46  ;;  %v7336_v44 = vand.u32 2147483648, %v18079_v24 }
 0x53e   : > { %v7298_v18 = vmul.f32 %v10052_v45, %v7297_v52  ;;  %vm7345_vm3 = vweird.f32 %v18082_v32  ;;  %v7349_v34 = vand.u32 2147483647, %v18082_v32  ;;  %v5245_v2 = vsel %vm18105_vm13, %v5244_v57, %v5240_v40 }
 0x53f   : > { %v7313_v31 = vmul.f32 %v10054_v8, %v7312_v49  ;;  %v10060_v4 = vpop.eup %10059  ;;  %v8942_v22 = vmul.f32 -1.442695, %v5869_v1  ;;  %5706 = vmatmul.f32.gmra.mxu2 %v5245_v2  ;;  %5915 = vmatmul.f32.gmra.mxu3 %v5245_v2  ;;  %v7351_v17 = vand.u32 2147483648, %v18082_v32  ;;  %v4051_v21 = vadd.f32 %v18146_v16, %v4050_v9 }
 0x540   : > { %v7299_v39 = vadd.f32 %v10052_v45, %v7298_v18  ;;  %v18126_v62 = vpop.eup %10061  ;;  %v7326_v51 = vmul.f32 %v10060_v4, %v18079_v24  ;;  %vm7331_vm4 = vweird.f32 %v10060_v4  ;;  %v5248_v5 = vmul.f32 %v18103_v14, %v18063_v41 }
 0x541   : > { %v7314_v19 = vadd.f32 %v10054_v8, %v7313_v31  ;;  %v10064_v13 = vpop.eup %10063  ;;  %10069 = vpow2.f32 %v8942_v22  ;;  %vm18152_vm9 = vcmp.eq.f32.partialorder %v7334_v42, 8.507059e+37  ;;  %v7337_v48 = vor.u32 1.1754944e-38, %v7336_v44 }
 0x542   : > { %v7303_v30 = vsel %vm7302_vm11, %v10052_v45, %v7299_v39  ;;  %v10066_v20 = vpop.eup %10065  ;;  %v7327_v54 = vsub.f32 1.0, %v7326_v51  ;;  %v7341_v56 = vmul.f32 %v10064_v13, %v18082_v32  ;;  %vm7346_vm6 = vweird.f32 %v10064_v13 }
 0x543   : > { %v7308_v26 = vsel %vm18087_vm7, %v7307_v11, %v7303_v30  ;;  %v7318_v53 = vsel %vm7317_vm8, %v10054_v8, %v7314_v19  ;;  %v10068_v15 = vpop.eup %10067  ;;  %vm18156_vm1 = vcmp.eq.f32.partialorder %v7349_v34, 8.507059e+37  ;;  %v4259_v11 = vpop.f32.mrf.mxu1  ;;  %v5249_v36 = vsub.f32 1.0, %v5248_v5  ;;  %vm7332_vm7 = vmor %vm7330_vm0, %vm7331_vm4 }
 0x544   : > { %8459 = vst [vmem:[%s16097_s15 + $0x1b0] sm:$0xff] %v7308_v26  ;;  %v7323_v38 = vsel %vm18095_vm5, %v7322_v35, %v7318_v53  ;;  %v7328_v23 = vmul.f32 %v10060_v4, %v7327_v54  ;;  %v7342_v6 = vsub.f32 1.0, %v7341_v56  ;;  %v18160_v3 = vadd.f32 1.0, %v10068_v15  ;;  %vm7347_vm5 = vmor %vm7345_vm3, %vm7346_vm6  ;;  %v5665_v30 = vpop.f32.mrf.mxu2 }
 0x545   : > { %8460 = vst [vmem:[%s16097_s15 + $0x1b8] sm:$0xff] %v7323_v38  ;;  %v7352_v8 = vor.u32 1.1754944e-38, %v7351_v17  ;;  %v4260_v37 = vadd.f32 %v4259_v11, %v4051_v21  ;;  %v5256_v12 = vand.u32 2147483647, %v18063_v41  ;;  %v5663_v60 = vadd.f32 %v5662_v27, %v15896_v28 }
 0x546   : > { %v7329_v45 = vadd.f32 %v10060_v4, %v7328_v23  ;;  %v7343_v29 = vmul.f32 %v10064_v13, %v7342_v6  ;;  %10071 = vrcp.f32 %v18160_v3  ;;  %v5258_v35 = vand.u32 2147483648, %v18063_v41 }
 0x547   : > { %v10070_v52 = vpop.eup %10069  ;;  %v18173_v0 = vadd.f32 1.0, %v10066_v20  ;;  %v5250_v49 = vmul.f32 %v18103_v14, %v5249_v36  ;;  %vm5253_vm12 = vweird.f32 %v18103_v14  ;;  %v8943_v18 = vmul.f32 -1.442695, %v5663_v60  ;;  %v5874_v36 = vpop.f32.mrf.mxu3 }
 0x548   : > { %v7333_v10 = vsel %vm7332_vm7, %v10060_v4, %v7329_v45  ;;  %v7344_v47 = vadd.f32 %v10064_v13, %v7343_v29  ;;  %v18178_v57 = vadd.f32 1.0, %v10070_v52  ;;  %v5872_v55 = vadd.f32 %v5871_v63, %v15909_v7  ;;  %v4056_v52 = vpop.f32.mrf.mxu0 }
 0x549   : > { %v7338_v24 = vsel %vm18152_vm9, %v7337_v48, %v7333_v10  ;;  %v8869_v31 = vmul.f32 -1.442695, %v4260_v37  ;;  %v5251_v32 = vadd.f32 %v18103_v14, %v5250_v49  ;;  %vm5252_vm10 = vweird.f32 %v18063_v41 }
 0x54a   : > { %8461 = vst [vmem:[%s16097_s15 + $0x1c0] sm:$0xff] %v7338_v24  ;;  %v7348_v43 = vsel %vm7347_vm5, %v10064_v13, %v7344_v47  ;;  %v7364_v1 = vand.u32 2147483647, %v18160_v3  ;;  %10073 = vrcp.f32 %v18178_v57  ;;  %vm5254_vm13 = vmor %vm5252_vm10, %vm5253_vm12  ;;  %vm5257_vm14 = vcmp.eq.f32.partialorder %v5256_v12, 8.507059e+37 }
 0x54b   : > { %v7353_v46 = vsel %vm18156_vm1, %v7352_v8, %v7348_v43  ;;  %v5259_v4 = vor.u32 1.1754944e-38, %v5258_v35  ;;  %v7366_v39 = vand.u32 2147483648, %v18160_v3  ;;  %v5255_v42 = vsel %vm5254_vm13, %v18103_v14, %v5251_v32  ;;  %v4262_v9 = vpop.f32.mrf.mxu1 }
 0x54c   : > { %8462 = vst [vmem:[%s16097_s15 + $0x1c8] sm:$0xff] %v7353_v46  ;;  %10075 = vpow2.f32 %v8943_v18  ;;  %v8944_v40 = vmul.f32 -1.442695, %v5872_v55  ;;  %v10072_v19 = vpop.eup %10071  ;;  %v4054_v41 = vadd.f32 %v18146_v16, %v4053_v50  ;;  %v5263_v13 = vmul.f32 %v18109_v58, %v18067_v59 }
 0x54d   : > { %10077 = vrcp.f32 %v18173_v0  ;;  %v5260_v51 = vsel %vm5257_vm14, %v5259_v4, %v5255_v42  ;;  %v7356_v44 = vmul.f32 %v10072_v19, %v18160_v3  ;;  %vm7360_vm15 = vweird.f32 %v18160_v3 }
 0x54e   : > { %10079 = vpow2.f32 %v8869_v31  ;;  %5709 = vmatmul.f32.gmra.mxu2 %v5260_v51  ;;  %5918 = vmatmul.f32.gmra.mxu3 %v5260_v51  ;;  %vm18196_vm0 = vcmp.eq.f32.partialorder %v7364_v1, 8.507059e+37  ;;  %v4263_v34 = vadd.f32 %v4262_v9, %v4054_v41  ;;  %v7367_v22 = vor.u32 1.1754944e-38, %v7366_v39  ;;  %v5668_v51 = vpop.f32.mrf.mxu2 }
 0x54f   : > { %10081 = vpow2.f32 %v8944_v40  ;;  %v7357_v2 = vsub.f32 1.0, %v7356_v44  ;;  %v7379_v20 = vand.u32 2147483647, %v18178_v57  ;;  %v5264_v26 = vsub.f32 1.0, %v5263_v13 }
 0x550   : > { %v10074_v53 = vpop.eup %10073  ;;  %vm7361_vm2 = vweird.f32 %v10072_v19  ;;  %v5271_v54 = vand.u32 2147483647, %v18067_v59  ;;  %v5273_v56 = vand.u32 2147483648, %v18067_v59  ;;  %v5666_v38 = vadd.f32 %v5665_v30, %v15896_v28 }
 0x551   : > { %v7358_v21 = vmul.f32 %v10072_v19, %v7357_v2  ;;  %v7371_v23 = vmul.f32 %v10074_v53, %v18178_v57  ;;  %v5265_v6 = vmul.f32 %v18109_v58, %v5264_v26  ;;  %vm5268_vm11 = vweird.f32 %v18109_v58  ;;  %vm18216_vm8 = vmor %vm7360_vm15, %vm7361_vm2  ;;  %v5877_v2 = vpop.f32.mrf.mxu3 }
 0x552   : > { %v10076_v17 = vpop.eup %10075  ;;  %v7381_v27 = vand.u32 2147483648, %v18178_v57  ;;  %v8870_v33 = vmul.f32 -1.442695, %v4263_v34  ;;  %vm5267_vm3 = vweird.f32 %v18067_v59  ;;  %vm7376_vm4 = vweird.f32 %v10074_v53 }
 0x553   : > { %v18207_v5 = vpop.eup %10077  ;;  %v18210_v15 = vadd.f32 1.0, %v10076_v17  ;;  %v7359_v25 = vadd.f32 %v10072_v19, %v7358_v21  ;;  %v7372_v45 = vsub.f32 1.0, %v7371_v23  ;;  %v5266_v29 = vadd.f32 %v18109_v58, %v5265_v6  ;;  %vm5269_vm9 = vmor %vm5267_vm3, %vm5268_vm11  ;;  %v4265_v46 = vpop.f32.mrf.mxu1 }
 0x554   : > { %v10080_v48 = vpop.eup %10079  ;;  %vm5272_vm6 = vcmp.eq.f32.partialorder %v5271_v54, 8.507059e+37  ;;  %v5274_v59 = vor.u32 1.1754944e-38, %v5273_v56  ;;  %v8945_v37 = vmul.f32 -1.442695, %v5666_v38  ;;  %vm7375_vm1 = vweird.f32 %v18178_v57 }
 0x555   : > { %v10082_v8 = vpop.eup %10081  ;;  %10083 = vrcp.f32 %v18210_v15  ;;  %v7363_v3 = vsel %vm18216_vm8, %v10072_v19, %v7359_v25  ;;  %v7373_v12 = vmul.f32 %v10074_v53, %v7372_v45  ;;  %v5270_v63 = vsel %vm5269_vm9, %v18109_v58, %v5266_v29  ;;  %vm7377_vm7 = vmor %vm7375_vm1, %vm7376_vm4 }
 0x556   : > { %v18226_v60 = vadd.f32 1.0, %v10082_v8  ;;  %v7368_v10 = vsel %vm18196_vm0, %v7367_v22, %v7363_v3  ;;  %v18232_v47 = vadd.f32 1.0, %v10080_v48  ;;  %v5275_v35 = vsel %vm5272_vm6, %v5274_v59, %v5270_v63 }
 0x557   : > { %8463 = vst [vmem:[%s16097_s15 + $0x1d0] sm:$0xff] %v7368_v10  ;;  %v7374_v24 = vadd.f32 %v10074_v53, %v7373_v12  ;;  %v7394_v49 = vand.u32 2147483647, %v18210_v15  ;;  %v7396_v43 = vand.u32 2147483648, %v18210_v15  ;;  %5712 = vmatmul.f32.gmra.mxu2 %v5275_v35  ;;  %5921 = vmatmul.f32.gmra.mxu3 %v5275_v35  ;;  %v7382_v58 = vor.u32 1.1754944e-38, %v7381_v27 }
 0x558   : > { %10085 = vrcp.f32 %v18226_v60  ;;  %v5875_v57 = vadd.f32 %v5874_v36, %v15909_v7  ;;  %v4057_v18 = vadd.f32 %v18146_v16, %v4056_v52  ;;  %vm7380_vm5 = vcmp.eq.f32.partialorder %v7379_v20, 8.507059e+37  ;;  %v4059_v36 = vpop.f32.mrf.mxu0 }
 0x559   : > { %10087 = vpow2.f32 %v8945_v37  ;;  %v7378_v55 = vsel %vm7377_vm7, %v10074_v53, %v7374_v24  ;;  %v5278_v31 = vmul.f32 %v18126_v62, %v18075_v61  ;;  %vm7390_vm12 = vweird.f32 %v18210_v15 }
 0x55a   : > { %10089 = vpow2.f32 %v8870_v33  ;;  %v7383_v50 = vsel %vm7380_vm5, %v7382_v58, %v7378_v55  ;;  %v8946_v1 = vmul.f32 -1.442695, %v5875_v57  ;;  %v4266_v4 = vadd.f32 %v4265_v46, %v4057_v18 }
 0x55b   : > { %v10084_v32 = vpop.eup %10083  ;;  %8464 = vst [vmem:[%s16097_s15 + $0x1d8] sm:$0xff] %v7383_v50  ;;  %vm18246_vm10 = vcmp.eq.f32.partialorder %v7394_v49, 8.507059e+37  ;;  %v7397_v40 = vor.u32 1.1754944e-38, %v7396_v43  ;;  %v5279_v19 = vsub.f32 1.0, %v5278_v31  ;;  %v7409_v41 = vand.u32 2147483647, %v18226_v60  ;;  %v4268_v49 = vpop.f32.mrf.mxu1 }
 0x55c   : > { %v7386_v39 = vmul.f32 %v10084_v32, %v18210_v15  ;;  %v7411_v44 = vand.u32 2147483648, %v18226_v60  ;;  %10091 = vpow2.f32 %v8946_v1  ;;  %v8871_v9 = vmul.f32 -1.442695, %v4266_v4 }
 0x55d   : > { %vm7391_vm13 = vweird.f32 %v10084_v32  ;;  %v5280_v14 = vmul.f32 %v18126_v62, %v5279_v19  ;;  %v5288_v34 = vand.u32 2147483648, %v18075_v61  ;;  %vm5283_vm14 = vweird.f32 %v18126_v62 }
 0x55e   : > { %v10086_v13 = vpop.eup %10085  ;;  %v7387_v30 = vsub.f32 1.0, %v7386_v39  ;;  %v5286_v26 = vand.u32 2147483647, %v18075_v61  ;;  %v5669_v53 = vadd.f32 %v5668_v51, %v15896_v28  ;;  %vm5282_vm15 = vweird.f32 %v18075_v61  ;;  %vm7392_vm11 = vmor %vm7390_vm12, %vm7391_vm13  ;;  %v5671_v51 = vpop.f32.mrf.mxu2 }
 0x55f   : > { %v10088_v22 = vpop.eup %10087  ;;  %v7401_v20 = vmul.f32 %v10086_v13, %v18226_v60  ;;  %v5281_v17 = vadd.f32 %v18126_v62, %v5280_v14  ;;  %10093 = vpow2.f32 %v8871_v9  ;;  %v5878_v6 = vadd.f32 %v5877_v2, %v15909_v7  ;;  %vm5284_vm2 = vmor %vm5282_vm15, %vm5283_vm14 }
 0x560   : > { %v10090_v54 = vpop.eup %10089  ;;  %v7388_v56 = vmul.f32 %v10084_v32, %v7387_v30  ;;  %v18258_v38 = vadd.f32 1.0, %v10088_v22  ;;  %v8947_v23 = vmul.f32 -1.442695, %v5669_v53  ;;  %vm7406_vm0 = vweird.f32 %v10086_v13 }
 0x561   : > { %v7402_v21 = vsub.f32 1.0, %v7401_v20  ;;  %v5289_v33 = vor.u32 1.1754944e-38, %v5288_v34  ;;  %v5285_v25 = vsel %vm5284_vm2, %v18126_v62, %v5281_v17  ;;  %vm5287_vm3 = vcmp.eq.f32.partialorder %v5286_v26, 8.507059e+37 }
 0x562   : > { %v7389_v27 = vadd.f32 %v10084_v32, %v7388_v56  ;;  %10095 = vrcp.f32 %v18258_v38  ;;  %v10092_v48 = vpop.eup %10091  ;;  %vm7405_vm8 = vweird.f32 %v18226_v60  ;;  %v18275_v37 = vadd.f32 1.0, %v10090_v54 }
 0x563   : > { %v7403_v61 = vmul.f32 %v10086_v13, %v7402_v21  ;;  %10097 = vpow2.f32 %v8947_v23  ;;  %v18271_v45 = vadd.f32 1.0, %v10092_v48  ;;  %v5290_v29 = vsel %vm5287_vm3, %v5289_v33, %v5285_v25  ;;  %vm7407_vm4 = vmor %vm7405_vm8, %vm7406_vm0 }
 0x564   : > { %v7393_v11 = vsel %vm7392_vm11, %v10084_v32, %v7389_v27  ;;  %5715 = vmatmul.f32.gmra.mxu2 %v5290_v29  ;;  %5924 = vmatmul.f32.gmra.mxu3 %v5290_v29  ;;  %v8948_v15 = vmul.f32 -1.442695, %v5878_v6  ;;  %vm7410_vm9 = vcmp.eq.f32.partialorder %v7409_v41, 8.507059e+37  ;;  %v7412_v62 = vor.u32 1.1754944e-38, %v7411_v44  ;;  %v5880_v6 = vpop.f32.mrf.mxu3 }
 0x565   : > { %v7398_v8 = vsel %vm18246_vm10, %v7397_v40, %v7393_v11  ;;  %v7404_v59 = vadd.f32 %v10086_v13, %v7403_v61  ;;  %v7424_v3 = vand.u32 2147483647, %v18258_v38  ;;  %10099 = vrcp.f32 %v18271_v45  ;;  %v10094_v12 = vpop.eup %10093  ;;  %v4062_v11 = vpop.f32.mrf.mxu0 }
 0x566   : > { %8465 = vst [vmem:[%s16097_s15 + $0x1e0] sm:$0xff] %v7398_v8  ;;  %v7426_v63 = vand.u32 2147483648, %v18258_v38  ;;  %10101 = vpow2.f32 %v8948_v15  ;;  %v4060_v10 = vadd.f32 %v18146_v16, %v4059_v36  ;;  %v7441_v24 = vand.u32 2147483648, %v18271_v45 }
 0x567   : > { %v7408_v60 = vsel %vm7407_vm4, %v10086_v13, %v7404_v59  ;;  %10103 = vrcp.f32 %v18232_v47  ;;  %v5293_v43 = vmul.f32 %v18207_v5, %v18173_v0  ;;  %v7439_v18 = vand.u32 2147483647, %v18271_v45 }
 0x568   : > { %v10096_v35 = vpop.eup %10095  ;;  %v7413_v52 = vsel %vm7410_vm9, %v7412_v62, %v7408_v60  ;;  %10105 = vrcp.f32 %v18275_v37  ;;  %v4269_v55 = vadd.f32 %v4268_v49, %v4060_v10  ;;  %vm7420_vm6 = vweird.f32 %v18258_v38 }
 0x569   : > { %v10098_v58 = vpop.eup %10097  ;;  %8466 = vst [vmem:[%s16097_s15 + $0x1e8] sm:$0xff] %v7413_v52  ;;  %v7416_v57 = vmul.f32 %v10096_v35, %v18258_v38  ;;  %vm18292_vm1 = vcmp.eq.f32.partialorder %v7424_v3, 8.507059e+37  ;;  %v5294_v32 = vsub.f32 1.0, %v5293_v43  ;;  %v7427_v1 = vor.u32 1.1754944e-38, %v7426_v63 }
 0x56a   : > { %v18296_v31 = vadd.f32 1.0, %v10098_v58  ;;  %vm7435_vm7 = vweird.f32 %v18271_v45  ;;  %v8872_v4 = vmul.f32 -1.442695, %v4269_v55  ;;  %v7442_v42 = vor.u32 1.1754944e-38, %v7441_v24  ;;  %v5674_v58 = vpop.f32.mrf.mxu2 }
 0x56b   : > { %v7417_v50 = vsub.f32 1.0, %v7416_v57  ;;  %v18299_v39 = vpop.eup %10099  ;;  %v18301_v40 = vadd.f32 1.0, %v10094_v12  ;;  %v5301_v19 = vand.u32 2147483647, %v18173_v0  ;;  %vm7421_vm5 = vweird.f32 %v10096_v35 }
 0x56c   : > { %10107 = vrcp.f32 %v18296_v31  ;;  %v10102_v41 = vpop.eup %10101  ;;  %v7431_v9 = vmul.f32 %v18299_v39, %v18271_v45  ;;  %vm18307_vm12 = vcmp.eq.f32.partialorder %v7439_v18, 8.507059e+37  ;;  %vm5297_vm10 = vweird.f32 %v18173_v0  ;;  %vm7422_vm14 = vmor %vm7420_vm6, %vm7421_vm5 }
 0x56d   : > { %v7418_v44 = vmul.f32 %v10096_v35, %v7417_v50  ;;  %v18312_v30 = vpop.eup %10103  ;;  %v18314_v14 = vadd.f32 1.0, %v10102_v41  ;;  %v5295_v34 = vmul.f32 %v18207_v5, %v5294_v32  ;;  %vm5298_vm13 = vweird.f32 %v18207_v5 }
 0x56e   : > { %v5303_v2 = vand.u32 2147483648, %v18173_v0  ;;  %v18319_v22 = vpop.eup %10105  ;;  %v7432_v26 = vsub.f32 1.0, %v7431_v9  ;;  %v7454_v53 = vand.u32 2147483647, %v18296_v31  ;;  %10109 = vpow2.f32 %v8872_v4  ;;  %vm5299_vm11 = vmor %vm5297_vm10, %vm5298_vm13  ;;  %v4065_v9 = vpop.f32.mrf.mxu0 }
 0x56f   : > { %v7419_v20 = vadd.f32 %v10096_v35, %v7418_v44  ;;  %vm7436_vm15 = vweird.f32 %v18299_v39  ;;  %v7456_v54 = vand.u32 2147483648, %v18296_v31  ;;  %10111 = vrcp.f32 %v18314_v14 }
 0x570   : > { %vm18327_vm0 = vcmp.eq.f32.partialorder %v5301_v19, 8.507059e+37  ;;  %v7433_v21 = vmul.f32 %v18299_v39, %v7432_v26  ;;  %vm7450_vm2 = vweird.f32 %v18296_v31  ;;  %v5296_v23 = vadd.f32 %v18207_v5, %v5295_v34  ;;  %vm18356_vm8 = vmor %vm7435_vm7, %vm7436_vm15  ;;  %v5883_v19 = vpop.f32.mrf.mxu3 }
 0x571   : > { %v7423_v17 = vsel %vm7422_vm14, %v10096_v35, %v7419_v20  ;;  %v5672_v38 = vadd.f32 %v5671_v51, %v15896_v28  ;;  %v7471_v48 = vand.u32 2147483648, %v18314_v14  ;;  %v5304_v61 = vor.u32 1.1754944e-38, %v5303_v2  ;;  %v4271_v35 = vpop.f32.mrf.mxu1 }
 0x572   : > { %v10108_v27 = vpop.eup %10107  ;;  %v7428_v33 = vsel %vm18292_vm1, %v7427_v1, %v7423_v17  ;;  %v5881_v25 = vadd.f32 %v5880_v6, %v15909_v7  ;;  %v7434_v29 = vadd.f32 %v18299_v39, %v7433_v21  ;;  %vm18346_vm3 = vcmp.eq.f32.partialorder %v7454_v53, 8.507059e+37 }
 0x573   : > { %8467 = vst [vmem:[%s16097_s15 + $0x1f0] sm:$0xff] %v7428_v33  ;;  %v7446_v36 = vmul.f32 %v10108_v27, %v18296_v31  ;;  %v7469_v59 = vand.u32 2147483647, %v18314_v14  ;;  %v5300_v15 = vsel %vm5299_vm11, %v18207_v5, %v5296_v23  ;;  %v7457_v62 = vor.u32 1.1754944e-38, %v7456_v54 }
 0x574   : > { %v5305_v3 = vsel %vm18327_vm0, %v5304_v61, %v5300_v15  ;;  %v8949_v12 = vmul.f32 -1.442695, %v5672_v38  ;;  %v8950_v60 = vmul.f32 -1.442695, %v5881_v25  ;;  %v10110_v63 = vpop.eup %10109  ;;  %v7438_v5 = vsel %vm18356_vm8, %v18299_v39, %v7434_v29 }
 0x575   : > { %v7447_v10 = vsub.f32 1.0, %v7446_v36  ;;  %vm7465_vm4 = vweird.f32 %v18314_v14  ;;  %5718 = vmatmul.f32.gmra.mxu2 %v5305_v3  ;;  %5927 = vmatmul.f32.gmra.mxu3 %v5305_v3  ;;  %v4063_v45 = vadd.f32 %v18146_v16, %v4062_v11  ;;  %v5308_v52 = vmul.f32 %v18312_v30, %v18232_v47  ;;  %v10112_v24 = vpop.eup %10111 }
 0x576   : > { %v7443_v49 = vsel %vm18307_vm12, %v7442_v42, %v7438_v5  ;;  %vm7451_vm9 = vweird.f32 %v10108_v27  ;;  %v7472_v43 = vor.u32 1.1754944e-38, %v7471_v48  ;;  %vm5312_vm6 = vweird.f32 %v18232_v47 }
 0x577   : > { %8468 = vst [vmem:[%s16097_s15 + $0x1f8] sm:$0xff] %v7443_v49  ;;  %v7448_v57 = vmul.f32 %v10108_v27, %v7447_v10  ;;  %v7461_v18 = vmul.f32 %v10112_v24, %v18314_v14  ;;  %vm18374_vm1 = vcmp.eq.f32.partialorder %v7469_v59, 8.507059e+37  ;;  %10113 = vpow2.f32 %v8949_v12  ;;  %vm7452_vm5 = vmor %vm7450_vm2, %vm7451_vm9 }
 0x578   : > { %vm5313_vm7 = vweird.f32 %v18312_v30  ;;  %10115 = vpow2.f32 %v8950_v60  ;;  %v4272_v46 = vadd.f32 %v4271_v35, %v4063_v45  ;;  %v5309_v32 = vsub.f32 1.0, %v5308_v52 }
 0x579   : > { %v5316_v50 = vand.u32 2147483647, %v18232_v47  ;;  %v7449_v1 = vadd.f32 %v10108_v27, %v7448_v57  ;;  %v7462_v4 = vsub.f32 1.0, %v7461_v18  ;;  %v5318_v39 = vand.u32 2147483648, %v18232_v47  ;;  %vm5314_vm13 = vmor %vm5312_vm6, %vm5313_vm7  ;;  %v4274_v25 = vpop.f32.mrf.mxu1 }
 0x57a   : > { %v5675_v42 = vadd.f32 %v5674_v58, %v15896_v28  ;;  %vm7466_vm12 = vweird.f32 %v10112_v24  ;;  %v8873_v51 = vmul.f32 -1.442695, %v4272_v46  ;;  %v5310_v41 = vmul.f32 %v18312_v30, %v5309_v32  ;;  %v5677_v58 = vpop.f32.mrf.mxu2 }
 0x57b   : > { %v5884_v44 = vadd.f32 %v5883_v19, %v15909_v7  ;;  %v7453_v13 = vsel %vm7452_vm5, %v10108_v27, %v7449_v1  ;;  %v7463_v34 = vmul.f32 %v10112_v24, %v7462_v4  ;;  %vm18387_vm10 = vcmp.eq.f32.partialorder %v5316_v50, 8.507059e+37  ;;  %vm7467_vm14 = vmor %vm7465_vm4, %vm7466_vm12 }
 0x57c   : > { %v8951_v20 = vmul.f32 -1.442695, %v5675_v42  ;;  %v7458_v26 = vsel %vm18346_vm3, %v7457_v62, %v7453_v13  ;;  %10117 = vpow2.f32 %v8873_v51  ;;  %v5311_v31 = vadd.f32 %v18312_v30, %v5310_v41  ;;  %v5886_v42 = vpop.f32.mrf.mxu3 }
 0x57d   : > { %v8952_v53 = vmul.f32 -1.442695, %v5884_v44  ;;  %v10114_v54 = vpop.eup %10113  ;;  %8469 = vst [vmem:[%s16097_s15 + $0x200] sm:$0xff] %v7458_v26  ;;  %v7464_v56 = vadd.f32 %v10112_v24, %v7463_v34  ;;  %v5319_v17 = vor.u32 1.1754944e-38, %v5318_v39  ;;  %v4066_v21 = vadd.f32 %v18146_v16, %v4065_v9 }
 0x57e   : > { %10119 = vpow2.f32 %v8951_v20  ;;  %v10116_v23 = vpop.eup %10115  ;;  %v18403_v38 = vadd.f32 1.0, %v10114_v54  ;;  %v5315_v6 = vsel %vm5314_vm13, %v18312_v30, %v5311_v31  ;;  %v5323_v27 = vmul.f32 %v18319_v22, %v18275_v37  ;;  %v4068_v54 = vpop.f32.mrf.mxu0 }
 0x57f   : > { %10121 = vpow2.f32 %v8952_v53  ;;  %v7468_v47 = vsel %vm7467_vm14, %v10112_v24, %v7464_v56  ;;  %v18408_v33 = vadd.f32 1.0, %v10110_v63  ;;  %v18410_v48 = vadd.f32 1.0, %v10116_v23 }
 0x580   : > { %v5320_v61 = vsel %vm18387_vm10, %v5319_v17, %v5315_v6  ;;  %v7473_v14 = vsel %vm18374_vm1, %v7472_v43, %v7468_v47  ;;  %10123 = vrcp.f32 %v18403_v38  ;;  %v4275_v30 = vadd.f32 %v4274_v25, %v4066_v21 }
 0x581   : > { %5721 = vmatmul.f32.gmra.mxu2 %v5320_v61  ;;  %5930 = vmatmul.f32.gmra.mxu3 %v5320_v61  ;;  %8470 = vst [vmem:[%s16097_s15 + $0x208] sm:$0xff] %v7473_v14  ;;  %10125 = vrcp.f32 %v18410_v48  ;;  %v7486_v29 = vand.u32 2147483648, %v18403_v38  ;;  %v5324_v36 = vsub.f32 1.0, %v5323_v27  ;;  %v7484_v59 = vand.u32 2147483647, %v18403_v38 }
 0x582   : > { %v10118_v11 = vpop.eup %10117  ;;  %10127 = vrcp.f32 %v18301_v40  ;;  %v7499_v0 = vand.u32 2147483647, %v18410_v48  ;;  %v7501_v62 = vand.u32 2147483648, %v18410_v48  ;;  %v8874_v12 = vmul.f32 -1.442695, %v4275_v30 }
 0x583   : > { %10129 = vrcp.f32 %v18408_v33  ;;  %vm7480_vm15 = vweird.f32 %v18403_v38  ;;  %v5325_v63 = vmul.f32 %v18319_v22, %v5324_v36  ;;  %vm5327_vm0 = vweird.f32 %v18275_v37 }
 0x584   : > { %v10120_v8 = vpop.eup %10119  ;;  %v7487_v10 = vor.u32 1.1754944e-38, %v7486_v29  ;;  %vm7495_vm2 = vweird.f32 %v18410_v48  ;;  %v18435_v45 = vadd.f32 1.0, %v10118_v11  ;;  %vm18442_vm11 = vcmp.eq.f32.partialorder %v7484_v59, 8.507059e+37  ;;  %v4277_v59 = vpop.f32.mrf.mxu1 }
 0x585   : > { %v10122_v15 = vpop.eup %10121  ;;  %v18425_v3 = vadd.f32 1.0, %v10120_v8  ;;  %v5333_v43 = vand.u32 2147483648, %v18275_v37  ;;  %vm18453_vm3 = vcmp.eq.f32.partialorder %v7499_v0, 8.507059e+37  ;;  %v7502_v46 = vor.u32 1.1754944e-38, %v7501_v62  ;;  %v5680_v0 = vpop.f32.mrf.mxu2 }
 0x586   : > { %v18428_v60 = vadd.f32 1.0, %v10122_v15  ;;  %v18432_v5 = vpop.eup %10123  ;;  %vm5328_vm8 = vweird.f32 %v18319_v22  ;;  %v5326_v4 = vadd.f32 %v18319_v22, %v5325_v63  ;;  %v5331_v39 = vand.u32 2147483647, %v18275_v37  ;;  %v5889_v24 = vpop.f32.mrf.mxu3 }
 0x587   : > { %10131 = vrcp.f32 %v18425_v3  ;;  %v18438_v35 = vpop.eup %10125  ;;  %v7476_v52 = vmul.f32 %v18432_v5, %v18403_v38  ;;  %v7516_v49 = vand.u32 2147483648, %v18425_v3  ;;  %v7514_v1 = vand.u32 2147483647, %v18425_v3  ;;  %vm18475_vm1 = vmor %vm5327_vm0, %vm5328_vm8 }
 0x588   : > { %10133 = vrcp.f32 %v18428_v60  ;;  %v18449_v57 = vpop.eup %10127  ;;  %v7491_v18 = vmul.f32 %v18438_v35, %v18410_v48  ;;  %vm7481_vm4 = vweird.f32 %v18432_v5  ;;  %v7529_v51 = vand.u32 2147483647, %v18428_v60 }
 0x589   : > { %10135 = vpow2.f32 %v8874_v12  ;;  %v18458_v32 = vpop.eup %10129  ;;  %v7477_v50 = vsub.f32 1.0, %v7476_v52  ;;  %v5678_v41 = vadd.f32 %v5677_v58, %v15896_v28  ;;  %vm7496_vm9 = vweird.f32 %v18438_v35  ;;  %vm7482_vm10 = vmor %vm7480_vm15, %vm7481_vm4 }
 0x58a   : > { %v7492_v19 = vsub.f32 1.0, %v7491_v18  ;;  %vm7510_vm6 = vweird.f32 %v18425_v3  ;;  %v18469_v9 = vor.u32 1.1754944e-38, %v7516_v49  ;;  %v5334_v34 = vor.u32 1.1754944e-38, %v5333_v43  ;;  %vm7497_vm0 = vmor %vm7495_vm2, %vm7496_vm9 }
 0x58b   : > { %v7478_v44 = vmul.f32 %v18432_v5, %v7477_v50  ;;  %vm7525_vm7 = vweird.f32 %v18428_v60  ;;  %v5330_v26 = vsel %vm18475_vm1, %v18319_v22, %v5326_v4  ;;  %v8953_v31 = vmul.f32 -1.442695, %v5678_v41 }
 0x58c   : > { %v7493_v20 = vmul.f32 %v18438_v35, %v7492_v19  ;;  %v5887_v53 = vadd.f32 %v5886_v42, %v15909_v7  ;;  %vm18487_vm5 = vcmp.eq.f32.partialorder %v7514_v1, 8.507059e+37  ;;  %v7531_v23 = vand.u32 2147483648, %v18428_v60 }
 0x58d   : > { %v10132_v2 = vpop.eup %10131  ;;  %v7479_v37 = vadd.f32 %v18432_v5, %v7478_v44  ;;  %vm5332_vm12 = vcmp.eq.f32.partialorder %v5331_v39, 8.507059e+37  ;;  %vm18498_vm14 = vcmp.eq.f32.partialorder %v7529_v51, 8.507059e+37  ;;  %10137 = vpow2.f32 %v8953_v31  ;;  %v4071_v39 = vpop.f32.mrf.mxu0 }
 0x58e   : > { %v10134_v56 = vpop.eup %10133  ;;  %v7506_v17 = vmul.f32 %v10132_v2, %v18425_v3  ;;  %v7494_v22 = vadd.f32 %v18438_v35, %v7493_v20  ;;  %vm7511_vm13 = vweird.f32 %v10132_v2  ;;  %v5335_v61 = vsel %vm5332_vm12, %v5334_v34, %v5330_v26 }
 0x58f   : > { %v10136_v6 = vpop.eup %10135  ;;  %v7521_v27 = vmul.f32 %v10134_v56, %v18428_v60  ;;  %v7483_v25 = vsel %vm7482_vm10, %v18432_v5, %v7479_v37  ;;  %5724 = vmatmul.f32.gmra.mxu2 %v5335_v61  ;;  %5933 = vmatmul.f32.gmra.mxu3 %v5335_v61  ;;  %v8954_v14 = vmul.f32 -1.442695, %v5887_v53  ;;  %v4069_v36 = vadd.f32 %v18146_v16, %v4068_v54  ;;  %vm7512_vm2 = vmor %vm7510_vm6, %vm7511_vm13  ;;  %v5683_v53 = vpop.f32.mrf.mxu2 }
 0x590   : > { %v7507_v38 = vsub.f32 1.0, %v7506_v17  ;;  %v7488_v30 = vsel %vm18442_vm11, %v7487_v10, %v7483_v25  ;;  %v7498_v11 = vsel %vm7497_vm0, %v18438_v35, %v7494_v22  ;;  %v5338_v15 = vmul.f32 %v18449_v57, %v18301_v40 }
 0x591   : > { %v7522_v29 = vsub.f32 1.0, %v7521_v27  ;;  %8471 = vst [vmem:[%s16097_s15 + $0x210] sm:$0xff] %v7488_v30  ;;  %v7503_v8 = vsel %vm18453_vm3, %v7502_v46, %v7498_v11  ;;  %10139 = vpow2.f32 %v8954_v14  ;;  %vm7526_vm15 = vweird.f32 %v10134_v56 }
 0x592   : > { %v7508_v48 = vmul.f32 %v10132_v2, %v7507_v38  ;;  %8472 = vst [vmem:[%s16097_s15 + $0x218] sm:$0xff] %v7503_v8  ;;  %v7532_v12 = vor.u32 1.1754944e-38, %v7531_v23  ;;  %v4278_v63 = vadd.f32 %v4277_v59, %v4069_v36  ;;  %v5339_v10 = vsub.f32 1.0, %v5338_v15  ;;  %vm7527_vm11 = vmor %vm7525_vm7, %vm7526_vm15 }
 0x593   : > { %v7523_v62 = vmul.f32 %v10134_v56, %v7522_v29  ;;  %v5346_v35 = vand.u32 2147483647, %v18301_v40  ;;  %v5348_v52 = vand.u32 2147483648, %v18301_v40  ;;  %v5681_v58 = vadd.f32 %v5680_v0, %v15896_v28  ;;  %v10138_v55 = vpop.eup %10137  ;;  %v5892_v29 = vpop.f32.mrf.mxu3 }
 0x594   : > { %v7509_v5 = vadd.f32 %v10132_v2, %v7508_v48  ;;  %v8875_v43 = vmul.f32 -1.442695, %v4278_v63  ;;  %v5890_v18 = vadd.f32 %v5889_v24, %v15909_v7  ;;  %v5340_v50 = vmul.f32 %v18449_v57, %v5339_v10 }
 0x595   : > { %v7524_v49 = vadd.f32 %v10134_v56, %v7523_v62  ;;  %vm5342_vm3 = vweird.f32 %v18301_v40  ;;  %vm5343_vm8 = vweird.f32 %v18449_v57  ;;  %v18533_v4 = vadd.f32 1.0, %v10138_v55  ;;  %v4280_v40 = vpop.f32.mrf.mxu1 }
 0x596   : > { %v7513_v46 = vsel %vm7512_vm2, %v10132_v2, %v7509_v5  ;;  %10141 = vpow2.f32 %v8875_v43  ;;  %v5341_v19 = vadd.f32 %v18449_v57, %v5340_v50  ;;  %v8955_v51 = vmul.f32 -1.442695, %v5681_v58  ;;  %vm5344_vm4 = vmor %vm5342_vm3, %vm5343_vm8  ;;  %v4074_v50 = vpop.f32.mrf.mxu0 }
 0x597   : > { %v7518_v3 = vsel %vm18487_vm5, %v18469_v9, %v7513_v46  ;;  %v7528_v1 = vsel %vm7527_vm11, %v10134_v56, %v7524_v49  ;;  %v10140_v42 = vpop.eup %10139  ;;  %v8956_v41 = vmul.f32 -1.442695, %v5890_v18  ;;  %v18540_v44 = vadd.f32 1.0, %v10136_v6  ;;  %v5686_v61 = vpop.f32.mrf.mxu2 }
 0x598   : > { %8473 = vst [vmem:[%s16097_s15 + $0x220] sm:$0xff] %v7518_v3  ;;  %v7533_v60 = vsel %vm18498_vm14, %v7532_v12, %v7528_v1  ;;  %10143 = vrcp.f32 %v18533_v4  ;;  %vm5347_vm9 = vcmp.eq.f32.partialorder %v5346_v35, 8.507059e+37  ;;  %v5349_v9 = vor.u32 1.1754944e-38, %v5348_v52 }
 0x599   : > { %8474 = vst [vmem:[%s16097_s15 + $0x228] sm:$0xff] %v7533_v60  ;;  %v18547_v13 = vadd.f32 1.0, %v10140_v42  ;;  %v5345_v34 = vsel %vm5344_vm4, %v18449_v57, %v5341_v19  ;;  %10145 = vpow2.f32 %v8955_v51  ;;  %v4072_v2 = vadd.f32 %v18146_v16, %v4071_v39 }
 0x59a   : > { %v5350_v20 = vsel %vm5347_vm9, %v5349_v9, %v5345_v34  ;;  %10147 = vpow2.f32 %v8956_v41  ;;  %v7544_v26 = vand.u32 2147483647, %v18533_v4  ;;  %v7546_v31 = vand.u32 2147483648, %v18533_v4 }
 0x59b   : > { %10149 = vrcp.f32 %v18547_v13  ;;  %5727 = vmatmul.f32.gmra.mxu2 %v5350_v20  ;;  %5936 = vmatmul.f32.gmra.mxu3 %v5350_v20  ;;  %v4281_v56 = vadd.f32 %v4280_v40, %v4072_v2  ;;  %v5353_v57 = vmul.f32 %v18458_v32, %v18408_v33  ;;  %vm7540_vm6 = vweird.f32 %v18533_v4  ;;  %v18622_v2 = vld [vmem:[#allocation10] ss:$0 sm:$0xff] }
 0x59c   : > { %v10142_v54 = vpop.eup %10141  ;;  %10151 = vrcp.f32 %v18435_v45  ;;  %v7559_v16 = vand.u32 2147483647, %v18547_v13  ;;  %v7561_v21 = vand.u32 2147483648, %v18547_v13  ;;  %v5684_v22 = vadd.f32 %v5683_v53, %v15896_v28 }
 0x59d   : > { %10153 = vrcp.f32 %v18540_v44  ;;  %v18560_v37 = vadd.f32 1.0, %v10142_v54  ;;  %v8876_v23 = vmul.f32 -1.442695, %v4281_v56  ;;  %v5354_v6 = vsub.f32 1.0, %v5353_v57 }
 0x59e   : > { %v10144_v17 = vpop.eup %10143  ;;  %vm18565_vm1 = vcmp.eq.f32.partialorder %v7544_v26, 8.507059e+37  ;;  %v7547_v25 = vor.u32 1.1754944e-38, %v7546_v31  ;;  %vm5357_vm7 = vweird.f32 %v18408_v33  ;;  %vm5358_vm5 = vweird.f32 %v18458_v32 }
 0x59f   : > { %v10146_v27 = vpop.eup %10145  ;;  %v7536_v47 = vmul.f32 %v10144_v17, %v18533_v4  ;;  %vm7555_vm12 = vweird.f32 %v18547_v13  ;;  %10155 = vrcp.f32 %v18560_v37  ;;  %v5361_v30 = vand.u32 2147483647, %v18408_v33  ;;  %vm18603_vm15 = vmor %vm5357_vm7, %vm5358_vm5 }
 0x5a0   : > { %v10148_v38 = vpop.eup %10147  ;;  %v18573_v14 = vadd.f32 1.0, %v10146_v27  ;;  %v5363_v11 = vand.u32 2147483648, %v18408_v33  ;;  %10157 = vpow2.f32 %v8876_v23  ;;  %v5355_v59 = vmul.f32 %v18458_v32, %v5354_v6 }
 0x5a1   : > { %v10150_v36 = vpop.eup %10149  ;;  %v7537_v8 = vsub.f32 1.0, %v7536_v47  ;;  %v18577_v48 = vadd.f32 1.0, %v10148_v38  ;;  %vm18583_vm10 = vcmp.eq.f32.partialorder %v7559_v16, 8.507059e+37  ;;  %v7562_v12 = vor.u32 1.1754944e-38, %v7561_v21  ;;  %v4283_v21 = vpop.f32.mrf.mxu1 }
 0x5a2   : > { %v18580_v15 = vpop.eup %10151  ;;  %v7551_v0 = vmul.f32 %v10150_v36, %v18547_v13  ;;  %10159 = vrcp.f32 %v18573_v14  ;;  %v8957_v63 = vmul.f32 -1.442695, %v5684_v22  ;;  %vm7541_vm13 = vweird.f32 %v10144_v17 }
 0x5a3   : > { %v18588_v5 = vpop.eup %10153  ;;  %v7538_v10 = vmul.f32 %v10144_v17, %v7537_v8  ;;  %10161 = vrcp.f32 %v18577_v48  ;;  %v5893_v35 = vadd.f32 %v5892_v29, %v15909_v7  ;;  %vm7556_vm14 = vweird.f32 %v10150_v36  ;;  %vm7542_vm2 = vmor %vm7540_vm6, %vm7541_vm13 }
 0x5a4   : > { %v7552_v52 = vsub.f32 1.0, %v7551_v0  ;;  %vm18592_vm0 = vcmp.eq.f32.partialorder %v5361_v30, 8.507059e+37  ;;  %v5364_v49 = vor.u32 1.1754944e-38, %v5363_v11  ;;  %v7574_v58 = vand.u32 2147483647, %v18573_v14  ;;  %vm7557_vm8 = vmor %vm7555_vm12, %vm7556_vm14 }
 0x5a5   : > { %v7539_v43 = vadd.f32 %v10144_v17, %v7538_v10  ;;  %v7576_v18 = vand.u32 2147483648, %v18573_v14  ;;  %v5356_v55 = vadd.f32 %v18458_v32, %v5355_v59  ;;  %v18607_v3 = vpop.eup %10155  ;;  %vm7570_vm11 = vweird.f32 %v18573_v14 }
 0x5a6   : > { %v7553_v1 = vmul.f32 %v10150_v36, %v7552_v52  ;;  %v7589_v39 = vand.u32 2147483647, %v18577_v48  ;;  %10163 = vpow2.f32 %v8957_v63  ;;  %v10158_v42 = vpop.eup %10157  ;;  %vm7585_vm3 = vweird.f32 %v18577_v48 }
 0x5a7   : > { %v7543_v60 = vsel %vm7542_vm2, %v10144_v17, %v7539_v43  ;;  %v7591_v33 = vand.u32 2147483648, %v18577_v48  ;;  %v5360_v19 = vsel %vm18603_vm15, %v18458_v32, %v5356_v55  ;;  %v8958_v51 = vmul.f32 -1.442695, %v5893_v35  ;;  %v5895_v35 = vpop.f32.mrf.mxu3 }
 0x5a8   : > { %v10160_v4 = vpop.eup %10159  ;;  %v7548_v41 = vsel %vm18565_vm1, %v7547_v25, %v7543_v60  ;;  %v7554_v9 = vadd.f32 %v10150_v36, %v7553_v1  ;;  %v5365_v34 = vsel %vm18592_vm0, %v5364_v49, %v5360_v19  ;;  %v4075_v20 = vadd.f32 %v18622_v2, %v4074_v50 }
 0x5a9   : > { %v10162_v26 = vpop.eup %10161  ;;  %8475 = vst [vmem:[%s16097_s15 + $0x230] sm:$0xff] %v7548_v41  ;;  %v7566_v32 = vmul.f32 %v10160_v4, %v18573_v14  ;;  %vm18630_vm4 = vcmp.eq.f32.partialorder %v7574_v58, 8.507059e+37  ;;  %v7577_v40 = vor.u32 1.1754944e-38, %v7576_v18  ;;  %5730 = vmatmul.f32.gmra.mxu2 %v5365_v34  ;;  %5939 = vmatmul.f32.gmra.mxu3 %v5365_v34  ;;  %v5368_v53 = vmul.f32 %v18580_v15, %v18435_v45  ;;  %v4286_v19 = vpop.f32.mrf.mxu1 }
 0x5aa   : > { %v7558_v54 = vsel %vm7557_vm8, %v10150_v36, %v7554_v9  ;;  %v7581_v56 = vmul.f32 %v10162_v26, %v18577_v48  ;;  %v18637_v57 = vadd.f32 1.0, %v10158_v42  ;;  %10165 = vpow2.f32 %v8958_v51  ;;  %v4077_v42 = vpop.f32.mrf.mxu0 }
 0x5ab   : > { %v7563_v13 = vsel %vm18583_vm10, %v7562_v12, %v7558_v54  ;;  %v7567_v16 = vsub.f32 1.0, %v7566_v32  ;;  %vm18641_vm9 = vcmp.eq.f32.partialorder %v7589_v39, 8.507059e+37  ;;  %v5369_v23 = vsub.f32 1.0, %v5368_v53 }
 0x5ac   : > { %v10164_v6 = vpop.eup %10163  ;;  %8476 = vst [vmem:[%s16097_s15 + $0x238] sm:$0xff] %v7563_v13  ;;  %vm7571_vm6 = vweird.f32 %v10160_v4  ;;  %v7582_v22 = vsub.f32 1.0, %v7581_v56  ;;  %v7592_v27 = vor.u32 1.1754944e-38, %v7591_v33  ;;  %v4284_v47 = vadd.f32 %v4283_v21, %v4075_v20  ;;  %v5689_v20 = vpop.f32.mrf.mxu2 }
 0x5ad   : > { %v7568_v25 = vmul.f32 %v10160_v4, %v7567_v16  ;;  %vm7586_vm1 = vweird.f32 %v10162_v26  ;;  %v18646_v38 = vadd.f32 1.0, %v10164_v6  ;;  %v5370_v30 = vmul.f32 %v18580_v15, %v5369_v23  ;;  %vm18654_vm5 = vmor %vm7570_vm11, %vm7571_vm6 }
 0x5ae   : > { %v7583_v11 = vmul.f32 %v10162_v26, %v7582_v22  ;;  %10167 = vrcp.f32 %v18637_v57  ;;  %vm5373_vm7 = vweird.f32 %v18580_v15  ;;  %v5378_v29 = vand.u32 2147483648, %v18435_v45  ;;  %vm18663_vm10 = vmor %vm7585_vm3, %vm7586_vm1 }
 0x5af   : > { %v7569_v36 = vadd.f32 %v10160_v4, %v7568_v25  ;;  %10169 = vrcp.f32 %v18646_v38  ;;  %vm5372_vm12 = vweird.f32 %v18435_v45  ;;  %v5376_v59 = vand.u32 2147483647, %v18435_v45  ;;  %v5898_v21 = vpop.f32.mrf.mxu3 }
 0x5b0   : > { %v10166_v0 = vpop.eup %10165  ;;  %v7584_v62 = vadd.f32 %v10162_v26, %v7583_v11  ;;  %v8877_v14 = vmul.f32 -1.442695, %v4284_v47  ;;  %v5371_v63 = vadd.f32 %v18580_v15, %v5370_v30  ;;  %v5687_v10 = vadd.f32 %v5686_v61, %v15896_v28  ;;  %vm5374_vm13 = vmor %vm5372_vm12, %vm5373_vm7 }
 0x5b1   : > { %v7573_v52 = vsel %vm18654_vm5, %v10160_v4, %v7569_v36  ;;  %v7604_v45 = vand.u32 2147483647, %v18646_v38  ;;  %v7606_v24 = vand.u32 2147483648, %v18646_v38  ;;  %v18673_v49 = vadd.f32 1.0, %v10166_v0 }
 0x5b2   : > { %v7578_v48 = vsel %vm18630_vm4, %v7577_v40, %v7573_v52  ;;  %v7588_v43 = vsel %vm18663_vm10, %v10162_v26, %v7584_v62  ;;  %v5375_v58 = vsel %vm5374_vm13, %v18580_v15, %v5371_v63  ;;  %v5379_v18 = vor.u32 1.1754944e-38, %v5378_v29  ;;  %v4080_v8 = vpop.f32.mrf.mxu0 }
 0x5b3   : > { %8477 = vst [vmem:[%s16097_s15 + $0x240] sm:$0xff] %v7578_v48  ;;  %v7593_v55 = vsel %vm18641_vm9, %v7592_v27, %v7588_v43  ;;  %10171 = vrcp.f32 %v18673_v49  ;;  %vm5377_vm14 = vcmp.eq.f32.partialorder %v5376_v59, 8.507059e+37  ;;  %vm7600_vm0 = vweird.f32 %v18646_v38 }
 0x5b4   : > { %v18686_v46 = vpop.eup %10167  ;;  %8478 = vst [vmem:[%s16097_s15 + $0x248] sm:$0xff] %v7593_v55  ;;  %v5380_v50 = vsel %vm5377_vm14, %v5379_v18, %v5375_v58  ;;  %v8959_v1 = vmul.f32 -1.442695, %v5687_v10  ;;  %v5896_v39 = vadd.f32 %v5895_v35, %v15909_v7  ;;  %v7607_v15 = vor.u32 1.1754944e-38, %v7606_v24  ;;  %v5692_v41 = vpop.f32.mrf.mxu2 }
 0x5b5   : > { %v10170_v60 = vpop.eup %10169  ;;  %10173 = vpow2.f32 %v8877_v14  ;;  %5733 = vmatmul.f32.gmra.mxu2 %v5380_v50  ;;  %5942 = vmatmul.f32.gmra.mxu3 %v5380_v50  ;;  %v4078_v33 = vadd.f32 %v18622_v2, %v4077_v42  ;;  %v5383_v51 = vmul.f32 %v18588_v5, %v18540_v44  ;;  %vm18695_vm15 = vcmp.eq.f32.partialorder %v7604_v45, 8.507059e+37 }
 0x5b6   : > { %v7596_v4 = vmul.f32 %v10170_v60, %v18646_v38  ;;  %v7619_v9 = vand.u32 2147483647, %v18673_v49  ;;  %v7621_v34 = vand.u32 2147483648, %v18673_v49  ;;  %10175 = vpow2.f32 %v8959_v1 }
 0x5b7   : > { %v8960_v26 = vmul.f32 -1.442695, %v5896_v39  ;;  %v4287_v32 = vadd.f32 %v4286_v19, %v4078_v33  ;;  %v5384_v31 = vsub.f32 1.0, %v5383_v51  ;;  %vm5387_vm2 = vweird.f32 %v18540_v44 }
 0x5b8   : > { %v7597_v40 = vsub.f32 1.0, %v7596_v4  ;;  %vm7601_vm11 = vweird.f32 %v10170_v60  ;;  %v5391_v53 = vand.u32 2147483647, %v18540_v44  ;;  %v5393_v54 = vand.u32 2147483648, %v18540_v44 }
 0x5b9   : > { %v10172_v56 = vpop.eup %10171  ;;  %v8878_v13 = vmul.f32 -1.442695, %v4287_v32  ;;  %v5385_v16 = vmul.f32 %v18588_v5, %v5384_v31  ;;  %vm5388_vm3 = vweird.f32 %v18588_v5  ;;  %v5690_v17 = vadd.f32 %v5689_v20, %v15896_v28  ;;  %vm7602_vm6 = vmor %vm7600_vm0, %vm7601_vm11 }
 0x5ba   : > { %v7598_v23 = vmul.f32 %v10170_v60, %v7597_v40  ;;  %v7611_v6 = vmul.f32 %v10172_v56, %v18673_v49  ;;  %vm7616_vm8 = vweird.f32 %v10172_v56  ;;  %10177 = vpow2.f32 %v8960_v26  ;;  %vm5389_vm9 = vmor %vm5387_vm2, %vm5388_vm3 }
 0x5bb   : > { %v10174_v22 = vpop.eup %10173  ;;  %10179 = vpow2.f32 %v8878_v13  ;;  %v5386_v27 = vadd.f32 %v18588_v5, %v5385_v16  ;;  %vm18709_vm4 = vcmp.eq.f32.partialorder %v5391_v53, 8.507059e+37  ;;  %v5394_v61 = vor.u32 1.1754944e-38, %v5393_v54 }
 0x5bc   : > { %v10176_v25 = vpop.eup %10175  ;;  %v7599_v30 = vadd.f32 %v10170_v60, %v7598_v23  ;;  %v7612_v11 = vsub.f32 1.0, %v7611_v6  ;;  %v8961_v29 = vmul.f32 -1.442695, %v5690_v17  ;;  %v5899_v36 = vadd.f32 %v5898_v21, %v15909_v7 }
 0x5bd   : > { %v18721_v59 = vadd.f32 1.0, %v10176_v25  ;;  %v5390_v0 = vsel %vm5389_vm9, %v18588_v5, %v5386_v27  ;;  %v4081_v62 = vadd.f32 %v18622_v2, %v4080_v8  ;;  %v5398_v12 = vmul.f32 %v18607_v3, %v18560_v37  ;;  %v4289_v5 = vpop.f32.mrf.mxu1 }
 0x5be   : > { %v7603_v44 = vsel %vm7602_vm6, %v10170_v60, %v7599_v30  ;;  %v7613_v14 = vmul.f32 %v10172_v56, %v7612_v11  ;;  %v5395_v63 = vsel %vm18709_vm4, %v5394_v61, %v5390_v0  ;;  %10181 = vpow2.f32 %v8961_v29 }
 0x5bf   : > { %v7608_v38 = vsel %vm18695_vm15, %v7607_v15, %v7603_v44  ;;  %vm7615_vm1 = vweird.f32 %v18673_v49  ;;  %10183 = vrcp.f32 %v18721_v59  ;;  %5736 = vmatmul.f32.gmra.mxu2 %v5395_v63  ;;  %5945 = vmatmul.f32.gmra.mxu3 %v5395_v63  ;;  %v18734_v52 = vadd.f32 1.0, %v10174_v22  ;;  %v5901_v22 = vpop.f32.mrf.mxu3 }
 0x5c0   : > { %v10178_v10 = vpop.eup %10177  ;;  %8479 = vst [vmem:[%s16097_s15 + $0x250] sm:$0xff] %v7608_v38  ;;  %v7614_v35 = vadd.f32 %v10172_v56, %v7613_v14  ;;  %v8962_v45 = vmul.f32 -1.442695, %v5899_v36  ;;  %v4290_v24 = vadd.f32 %v4289_v5, %v4081_v62  ;;  %vm7617_vm7 = vmor %vm7615_vm1, %vm7616_vm8  ;;  %vm7620_vm5 = vcmp.eq.f32.partialorder %v7619_v9, 8.507059e+37 }
 0x5c1   : > { %v10180_v48 = vpop.eup %10179  ;;  %v7622_v43 = vor.u32 1.1754944e-38, %v7621_v34  ;;  %v18737_v58 = vadd.f32 1.0, %v10178_v10  ;;  %v5399_v49 = vsub.f32 1.0, %v5398_v12  ;;  %v7634_v55 = vand.u32 2147483647, %v18721_v59 }
 0x5c2   : > { %v7618_v18 = vsel %vm7617_vm7, %v10172_v56, %v7614_v35  ;;  %v18740_v50 = vadd.f32 1.0, %v10180_v48  ;;  %10185 = vpow2.f32 %v8962_v45  ;;  %v7636_v39 = vand.u32 2147483648, %v18721_v59 }
 0x5c3   : > { %v7623_v1 = vsel %vm7620_vm5, %v7622_v43, %v7618_v18  ;;  %10187 = vrcp.f32 %v18737_v58  ;;  %v8879_v60 = vmul.f32 -1.442695, %v4290_v24  ;;  %v5400_v15 = vmul.f32 %v18607_v3, %v5399_v49 }
 0x5c4   : > { %v10182_v42 = vpop.eup %10181  ;;  %8480 = vst [vmem:[%s16097_s15 + $0x258] sm:$0xff] %v7623_v1  ;;  %10189 = vrcp.f32 %v18734_v52  ;;  %vm7630_vm12 = vweird.f32 %v18721_v59  ;;  %vm18752_vm10 = vcmp.eq.f32.partialorder %v7634_v55, 8.507059e+37  ;;  %vm5402_vm13 = vweird.f32 %v18560_v37  ;;  %v5695_v55 = vpop.f32.mrf.mxu2 }
 0x5c5   : > { %v10184_v33 = vpop.eup %10183  ;;  %10191 = vrcp.f32 %v18740_v50  ;;  %v18749_v19 = vadd.f32 1.0, %v10182_v42  ;;  %v7637_v9 = vor.u32 1.1754944e-38, %v7636_v39  ;;  %v7649_v34 = vand.u32 2147483647, %v18737_v58 }
 0x5c6   : > { %v7626_v51 = vmul.f32 %v10184_v33, %v18721_v59  ;;  %10193 = vpow2.f32 %v8879_v60  ;;  %v7651_v20 = vand.u32 2147483648, %v18737_v58  ;;  %v5401_v31 = vadd.f32 %v18607_v3, %v5400_v15 }
 0x5c7   : > { %10195 = vrcp.f32 %v18749_v19  ;;  %vm5403_vm14 = vweird.f32 %v18607_v3  ;;  %v5406_v40 = vand.u32 2147483647, %v18560_v37  ;;  %v7666_v54 = vand.u32 2147483648, %v18749_v19  ;;  %v5904_v60 = vpop.f32.mrf.mxu3 }
 0x5c8   : > { %v10186_v26 = vpop.eup %10185  ;;  %v7627_v32 = vsub.f32 1.0, %v7626_v51  ;;  %v5408_v13 = vand.u32 2147483648, %v18560_v37  ;;  %v5693_v16 = vadd.f32 %v5692_v41, %v15896_v28  ;;  %vm7631_vm0 = vweird.f32 %v10184_v33  ;;  %vm18784_vm11 = vmor %vm5402_vm13, %vm5403_vm14 }
 0x5c9   : > { %v10188_v53 = vpop.eup %10187  ;;  %v18764_v56 = vadd.f32 1.0, %v10186_v26  ;;  %v7664_v6 = vand.u32 2147483647, %v18749_v19  ;;  %vm7645_vm15 = vweird.f32 %v18737_v58  ;;  %vm18775_vm2 = vcmp.eq.f32.partialorder %v7649_v34, 8.507059e+37  ;;  %vm7632_vm8 = vmor %vm7630_vm12, %vm7631_vm0 }
 0x5ca   : > { %v18768_v17 = vpop.eup %10189  ;;  %v7628_v21 = vmul.f32 %v10184_v33, %v7627_v32  ;;  %v7641_v23 = vmul.f32 %v10188_v53, %v18737_v58  ;;  %v7652_v61 = vor.u32 1.1754944e-38, %v7651_v20  ;;  %vm7660_vm3 = vweird.f32 %v18749_v19 }
 0x5cb   : > { %v18772_v27 = vpop.eup %10191  ;;  %10197 = vrcp.f32 %v18764_v56  ;;  %v5405_v36 = vsel %vm18784_vm11, %v18607_v3, %v5401_v31  ;;  %v8963_v8 = vmul.f32 -1.442695, %v5693_v16  ;;  %v7667_v37 = vor.u32 1.1754944e-38, %v7666_v54  ;;  %v4083_v3 = vpop.f32.mrf.mxu0 }
 0x5cc   : > { %v10194_v30 = vpop.eup %10193  ;;  %v7629_v11 = vadd.f32 %v10184_v33, %v7628_v21  ;;  %v7642_v29 = vsub.f32 1.0, %v7641_v23  ;;  %vm5407_vm4 = vcmp.eq.f32.partialorder %v5406_v40, 8.507059e+37  ;;  %v5409_v62 = vor.u32 1.1754944e-38, %v5408_v13 }
 0x5cd   : > { %v10196_v0 = vpop.eup %10195  ;;  %v5902_v12 = vadd.f32 %v5901_v22, %v15909_v7  ;;  %vm7646_vm9 = vweird.f32 %v10188_v53  ;;  %vm18797_vm6 = vcmp.eq.f32.partialorder %v7664_v6, 8.507059e+37  ;;  %v18803_v5 = vadd.f32 1.0, %v10194_v30 }
 0x5ce   : > { %v7633_v44 = vsel %vm7632_vm8, %v10184_v33, %v7629_v11  ;;  %v7643_v14 = vmul.f32 %v10188_v53, %v7642_v29  ;;  %v7656_v63 = vmul.f32 %v10196_v0, %v18749_v19  ;;  %v5410_v10 = vsel %vm5407_vm4, %v5409_v62, %v5405_v36  ;;  %vm7647_vm7 = vmor %vm7645_vm15, %vm7646_vm9  ;;  %v4292_v33 = vpop.f32.mrf.mxu1 }
 0x5cf   : > { %v7638_v59 = vsel %vm18752_vm10, %v7637_v9, %v7633_v44  ;;  %v8964_v35 = vmul.f32 -1.442695, %v5902_v12  ;;  %vm7675_vm1 = vweird.f32 %v18764_v56  ;;  %5739 = vmatmul.f32.gmra.mxu2 %v5410_v10  ;;  %5948 = vmatmul.f32.gmra.mxu3 %v5410_v10  ;;  %10199 = vpow2.f32 %v8963_v8 }
 0x5d0   : > { %8481 = vst [vmem:[%s16097_s15 + $0x260] sm:$0xff] %v7638_v59  ;;  %v7644_v45 = vadd.f32 %v10188_v53, %v7643_v14  ;;  %v7657_v24 = vsub.f32 1.0, %v7656_v63  ;;  %v7679_v43 = vand.u32 2147483647, %v18764_v56  ;;  %v4084_v49 = vadd.f32 %v18622_v2, %v4083_v3 }
 0x5d1   : > { %v10198_v48 = vpop.eup %10197  ;;  %10201 = vpow2.f32 %v8964_v35  ;;  %v5413_v18 = vmul.f32 %v18686_v46, %v18637_v57  ;;  %vm7661_vm5 = vweird.f32 %v10196_v0  ;;  %v7681_v15 = vand.u32 2147483648, %v18764_v56  ;;  %v5698_v35 = vpop.f32.mrf.mxu2 }
 0x5d2   : > { %v7648_v1 = vsel %vm7647_vm7, %v10188_v53, %v7644_v45  ;;  %v7658_v39 = vmul.f32 %v10196_v0, %v7657_v24  ;;  %v7671_v42 = vmul.f32 %v10198_v48, %v18764_v56  ;;  %10203 = vrcp.f32 %v18803_v5  ;;  %vm7662_vm10 = vmor %vm7660_vm3, %vm7661_vm5 }
 0x5d3   : > { %v7653_v58 = vsel %vm18775_vm2, %v7652_v61, %v7648_v1  ;;  %v5414_v51 = vsub.f32 1.0, %v5413_v18  ;;  %vm5418_vm12 = vweird.f32 %v18686_v46  ;;  %v5696_v9 = vadd.f32 %v5695_v55, %v15896_v28  ;;  %v4086_v30 = vpop.f32.mrf.mxu0 }
 0x5d4   : > { %8482 = vst [vmem:[%s16097_s15 + $0x268] sm:$0xff] %v7653_v58  ;;  %v7659_v4 = vadd.f32 %v10196_v0, %v7658_v39  ;;  %v7672_v41 = vsub.f32 1.0, %v7671_v42  ;;  %vm7676_vm13 = vweird.f32 %v10198_v48  ;;  %v4293_v34 = vadd.f32 %v4292_v33, %v4084_v49 }
 0x5d5   : > { %v5415_v20 = vmul.f32 %v18686_v46, %v5414_v51  ;;  %v5905_v26 = vadd.f32 %v5904_v60, %v15909_v7  ;;  %v10200_v32 = vpop.eup %10199  ;;  %v5421_v53 = vand.u32 2147483647, %v18637_v57  ;;  %v8965_v54 = vmul.f32 -1.442695, %v5696_v9  ;;  %vm7677_vm14 = vmor %vm7675_vm1, %vm7676_vm13 }
 0x5d6   : > { %v7663_v31 = vsel %vm7662_vm10, %v10196_v0, %v7659_v4  ;;  %v7673_v40 = vmul.f32 %v10198_v48, %v7672_v41  ;;  %v18829_v21 = vadd.f32 1.0, %v10200_v32  ;;  %v5423_v23 = vand.u32 2147483648, %v18637_v57  ;;  %v4295_v14 = vpop.f32.mrf.mxu1 }
 0x5d7   : > { %v10202_v13 = vpop.eup %10201  ;;  %v7668_v16 = vsel %vm18797_vm6, %v7667_v37, %v7663_v31  ;;  %v5416_v19 = vadd.f32 %v18686_v46, %v5415_v20  ;;  %10205 = vpow2.f32 %v8965_v54  ;;  %v8966_v47 = vmul.f32 -1.442695, %v5905_v26  ;;  %v5907_v26 = vpop.f32.mrf.mxu3 }
 0x5d8   : > { %8483 = vst [vmem:[%s16097_s15 + $0x270] sm:$0xff] %v7668_v16  ;;  %v7674_v6 = vadd.f32 %v10198_v48, %v7673_v40  ;;  %v18834_v22 = vadd.f32 1.0, %v10202_v13  ;;  %v18836_v61 = vpop.eup %10203  ;;  %vm7680_vm0 = vcmp.eq.f32.partialorder %v7679_v43, 8.507059e+37  ;;  %v7682_v25 = vor.u32 1.1754944e-38, %v7681_v15 }
 0x5d9   : > { %10207 = vrcp.f32 %v18829_v21  ;;  %v8880_v29 = vmul.f32 -1.442695, %v4293_v34  ;;  %vm5417_vm15 = vweird.f32 %v18637_v57  ;;  %v7694_v8 = vand.u32 2147483647, %v18829_v21 }
 0x5da   : > { %v7678_v11 = vsel %vm7677_vm14, %v10198_v48, %v7674_v6  ;;  %10209 = vrcp.f32 %v18834_v22  ;;  %vm5419_vm2 = vmor %vm5417_vm15, %vm5418_vm12  ;;  %vm5422_vm11 = vcmp.eq.f32.partialorder %v5421_v53, 8.507059e+37  ;;  %v5424_v56 = vor.u32 1.1754944e-38, %v5423_v23 }
 0x5db   : > { %v7683_v36 = vsel %vm7680_vm0, %v7682_v25, %v7678_v11  ;;  %v7696_v0 = vand.u32 2147483648, %v18829_v21  ;;  %v5420_v37 = vsel %vm5419_vm2, %v18686_v46, %v5416_v19  ;;  %10211 = vpow2.f32 %v8966_v47 }
 0x5dc   : > { %8484 = vst [vmem:[%s16097_s15 + $0x278] sm:$0xff] %v7683_v36  ;;  %v4087_v62 = vadd.f32 %v18622_v2, %v4086_v30  ;;  %v7709_v12 = vand.u32 2147483647, %v18834_v22  ;;  %v7711_v57 = vand.u32 2147483648, %v18834_v22  ;;  %v5425_v44 = vsel %vm5422_vm11, %v5424_v56, %v5420_v37 }
 0x5dd   : > { %v5428_v63 = vmul.f32 %v18768_v17, %v18734_v52  ;;  %v10206_v38 = vpop.eup %10205  ;;  %10213 = vpow2.f32 %v8880_v29  ;;  %5742 = vmatmul.f32.gmra.mxu2 %v5425_v44  ;;  %5951 = vmatmul.f32.gmra.mxu3 %v5425_v44  ;;  %vm7690_vm3 = vweird.f32 %v18829_v21  ;;  %vm7705_vm8 = vweird.f32 %v18834_v22  ;;  %v4089_v29 = vpop.f32.mrf.mxu0 }
 0x5de   : > { %v4296_v3 = vadd.f32 %v4295_v14, %v4087_v62  ;;  %v18857_v46 = vadd.f32 1.0, %v10206_v38  ;;  %vm18860_vm4 = vcmp.eq.f32.partialorder %v7694_v8, 8.507059e+37  ;;  %v7697_v43 = vor.u32 1.1754944e-38, %v7696_v0 }
 0x5df   : > { %v10208_v59 = vpop.eup %10207  ;;  %v5429_v10 = vsub.f32 1.0, %v5428_v63  ;;  %vm18865_vm9 = vcmp.eq.f32.partialorder %v7709_v12, 8.507059e+37  ;;  %v7712_v1 = vor.u32 1.1754944e-38, %v7711_v57  ;;  %vm5433_vm6 = vweird.f32 %v18768_v17 }
 0x5e0   : > { %v10210_v45 = vpop.eup %10209  ;;  %v7686_v24 = vmul.f32 %v10208_v59, %v18829_v21  ;;  %v8881_v49 = vmul.f32 -1.442695, %v4296_v3  ;;  %10215 = vrcp.f32 %v18857_v46  ;;  %v5436_v60 = vand.u32 2147483647, %v18734_v52  ;;  %v4298_v3 = vpop.f32.mrf.mxu1 }
 0x5e1   : > { %v7701_v18 = vmul.f32 %v10210_v45, %v18834_v22  ;;  %v10212_v39 = vpop.eup %10211  ;;  %v5438_v58 = vand.u32 2147483648, %v18734_v52  ;;  %v5699_v15 = vadd.f32 %v5698_v35, %v15896_v28  ;;  %v7726_v51 = vand.u32 2147483648, %v18857_v46 }
 0x5e2   : > { %v7687_v42 = vsub.f32 1.0, %v7686_v24  ;;  %v18875_v4 = vadd.f32 1.0, %v10212_v39  ;;  %v5430_v41 = vmul.f32 %v18768_v17, %v5429_v10  ;;  %vm7691_vm1 = vweird.f32 %v10208_v59 }
 0x5e3   : > { %v7702_v33 = vsub.f32 1.0, %v7701_v18  ;;  %v18878_v9 = vpop.eup %10213  ;;  %v7724_v20 = vand.u32 2147483647, %v18857_v46  ;;  %10217 = vpow2.f32 %v8881_v49  ;;  %vm7706_vm7 = vweird.f32 %v10210_v45  ;;  %vm7692_vm14 = vmor %vm7690_vm3, %vm7691_vm1 }
 0x5e4   : > { %v7688_v34 = vmul.f32 %v10208_v59, %v7687_v42  ;;  %10219 = vrcp.f32 %v18875_v4  ;;  %vm5432_vm5 = vweird.f32 %v18734_v52  ;;  %vm7720_vm12 = vweird.f32 %v18857_v46  ;;  %vm7707_vm0 = vmor %vm7705_vm8, %vm7706_vm7 }
 0x5e5   : > { %v7703_v32 = vmul.f32 %v10210_v45, %v7702_v33  ;;  %v5431_v40 = vadd.f32 %v18768_v17, %v5430_v41  ;;  %vm18887_vm10 = vmor %vm5432_vm5, %vm5433_vm6  ;;  %vm18891_vm13 = vcmp.eq.f32.partialorder %v5436_v60, 8.507059e+37  ;;  %v8967_v13 = vmul.f32 -1.442695, %v5699_v15 }
 0x5e6   : > { %v7689_v31 = vadd.f32 %v10208_v59, %v7688_v34  ;;  %v10216_v16 = vpop.eup %10215  ;;  %v7727_v19 = vor.u32 1.1754944e-38, %v7726_v51  ;;  %v5908_v23 = vadd.f32 %v5907_v26, %v15909_v7  ;;  %v5443_v6 = vmul.f32 %v18772_v27, %v18740_v50 }
 0x5e7   : > { %v7704_v52 = vadd.f32 %v10210_v45, %v7703_v32  ;;  %v7716_v25 = vmul.f32 %v10216_v16, %v18857_v46  ;;  %vm18905_vm15 = vcmp.eq.f32.partialorder %v7724_v20, 8.507059e+37  ;;  %v7739_v21 = vand.u32 2147483647, %v18875_v4 }
 0x5e8   : > { %v7693_v47 = vsel %vm7692_vm14, %v10208_v59, %v7689_v31  ;;  %v5439_v11 = vor.u32 1.1754944e-38, %v5438_v58  ;;  %v7741_v56 = vand.u32 2147483648, %v18875_v4  ;;  %v5435_v22 = vsel %vm18887_vm10, %v18768_v17, %v5431_v40  ;;  %v5701_v59 = vpop.f32.mrf.mxu2 }
 0x5e9   : > { %v7698_v36 = vsel %vm18860_vm4, %v7697_v43, %v7693_v47  ;;  %v7708_v8 = vsel %vm7707_vm0, %v10210_v45, %v7704_v52  ;;  %v18916_v0 = vpop.eup %10217  ;;  %v7717_v62 = vsub.f32 1.0, %v7716_v25  ;;  %vm7735_vm2 = vweird.f32 %v18875_v4  ;;  %v5910_v43 = vpop.f32.mrf.mxu3 }
 0x5ea   : > { %8485 = vst [vmem:[%s16097_s15 + $0x280] sm:$0xff] %v7698_v36  ;;  %v7713_v37 = vsel %vm18865_vm9, %v7712_v1, %v7708_v8  ;;  %v5440_v12 = vsel %vm18891_vm13, %v5439_v11, %v5435_v22  ;;  %10221 = vpow2.f32 %v8967_v13  ;;  %v10220_v57 = vpop.eup %10219  ;;  %vm7721_vm11 = vweird.f32 %v10216_v16 }
 0x5eb   : > { %8486 = vst [vmem:[%s16097_s15 + $0x288] sm:$0xff] %v7713_v37  ;;  %5745 = vmatmul.f32.gmra.mxu2 %v5440_v12  ;;  %5954 = vmatmul.f32.gmra.mxu3 %v5440_v12  ;;  %v8968_v44 = vmul.f32 -1.442695, %v5908_v23  ;;  %v4090_v17 = vadd.f32 %v18622_v2, %v4089_v29  ;;  %v5444_v14 = vsub.f32 1.0, %v5443_v6  ;;  %v7718_v63 = vmul.f32 %v10216_v16, %v7717_v62  ;;  %vm7722_vm9 = vmor %vm7720_vm12, %vm7721_vm11 }
 0x5ec   : > { %v7731_v38 = vmul.f32 %v10220_v57, %v18875_v4  ;;  %vm7736_vm3 = vweird.f32 %v10220_v57  ;;  %vm5447_vm8 = vweird.f32 %v18740_v50  ;;  %vm5448_vm4 = vweird.f32 %v18772_v27 }
 0x5ed   : > { %10223 = vpow2.f32 %v8968_v44  ;;  %v4299_v10 = vadd.f32 %v4298_v3, %v4090_v17  ;;  %v5445_v35 = vmul.f32 %v18772_v27, %v5444_v14  ;;  %v7719_v45 = vadd.f32 %v10216_v16, %v7718_v63  ;;  %vm5449_vm6 = vmor %vm5447_vm8, %vm5448_vm4 }
 0x5ee   : > { %v7732_v24 = vsub.f32 1.0, %v7731_v38  ;;  %v5451_v48 = vand.u32 2147483647, %v18740_v50  ;;  %v5453_v2 = vand.u32 2147483648, %v18740_v50  ;;  %v5702_v55 = vadd.f32 %v5701_v59, %v15896_v28  ;;  %vm7737_vm7 = vmor %vm7735_vm2, %vm7736_vm3 }
 0x5ef   : > { %v8882_v49 = vmul.f32 -1.442695, %v4299_v10  ;;  %v5446_v18 = vadd.f32 %v18772_v27, %v5445_v35  ;;  %v5911_v1 = vadd.f32 %v5910_v43, %v15909_v7  ;;  %v7723_v42 = vsel %vm7722_vm9, %v10216_v16, %v7719_v45 }
 0x5f0   : > { %v10222_v39 = vpop.eup %10221  ;;  %v7733_v60 = vmul.f32 %v10220_v57, %v7732_v24  ;;  %vm5452_vm1 = vcmp.eq.f32.partialorder %v5451_v48, 8.507059e+37  ;;  %v5454_v58 = vor.u32 1.1754944e-38, %v5453_v2  ;;  %v7728_v46 = vsel %vm18905_vm15, %v7727_v19, %v7723_v42  ;;  %v5704_v52 = vpop.f32.mrf.mxu2 }
 0x5f1   : > { %v18942_v15 = vadd.f32 1.0, %v10222_v39  ;;  %10225 = vpow2.f32 %v8882_v49  ;;  %v5450_v33 = vsel %vm5449_vm6, %v18772_v27, %v5446_v18  ;;  %8487 = vst [vmem:[%s16097_s15 + $0x290] sm:$0xff] %v7728_v46  ;;  %v8969_v34 = vmul.f32 -1.442695, %v5702_v55 }
 0x5f2   : > { %v7734_v51 = vadd.f32 %v10220_v57, %v7733_v60  ;;  %v5455_v41 = vsel %vm5452_vm1, %v5454_v58, %v5450_v33  ;;  %v8970_v20 = vmul.f32 -1.442695, %v5911_v1  ;;  %v18947_v50 = vadd.f32 1.0, %v18878_v9 }
 0x5f3   : > { %v10224_v26 = vpop.eup %10223  ;;  %vm7740_vm5 = vcmp.eq.f32.partialorder %v7739_v21, 8.507059e+37  ;;  %v7742_v32 = vor.u32 1.1754944e-38, %v7741_v56  ;;  %10227 = vrcp.f32 %v18942_v15  ;;  %5748 = vmatmul.f32.gmra.mxu2 %v5455_v41  ;;  %5957 = vmatmul.f32.gmra.mxu3 %v5455_v41  ;;  %v5458_v40 = vmul.f32 %v18836_v61, %v18803_v5 }
 0x5f4   : > { %v7738_v27 = vsel %vm7737_vm7, %v10220_v57, %v7734_v51  ;;  %v18953_v31 = vadd.f32 1.0, %v10224_v26  ;;  %10229 = vpow2.f32 %v8969_v34  ;;  %v18958_v9 = vadd.f32 1.0, %v18916_v0  ;;  %v5913_v57 = vpop.f32.mrf.mxu3 }
 0x5f5   : > { %v7743_v53 = vsel %vm7740_vm5, %v7742_v32, %v7738_v27  ;;  %10231 = vpow2.f32 %v8970_v20  ;;  %v7754_v4 = vand.u32 2147483647, %v18942_v15  ;;  %v7756_v54 = vand.u32 2147483648, %v18942_v15 }
 0x5f6   : > { %8488 = vst [vmem:[%s16097_s15 + $0x298] sm:$0xff] %v7743_v53  ;;  %10233 = vrcp.f32 %v18953_v31  ;;  %v5459_v16 = vsub.f32 1.0, %v5458_v40  ;;  %vm7750_vm12 = vweird.f32 %v18942_v15  ;;  %v7769_v23 = vand.u32 2147483647, %v18953_v31 }
 0x5f7   : > { %v10226_v13 = vpop.eup %10225  ;;  %10235 = vrcp.f32 %v18947_v50  ;;  %vm18970_vm10 = vcmp.eq.f32.partialorder %v7754_v4, 8.507059e+37  ;;  %v7757_v21 = vor.u32 1.1754944e-38, %v7756_v54  ;;  %v5705_v11 = vadd.f32 %v5704_v52, %v15896_v28 }
 0x5f8   : > { %10237 = vrcp.f32 %v18958_v9  ;;  %v5460_v6 = vmul.f32 %v18836_v61, %v5459_v16  ;;  %vm7765_vm13 = vweird.f32 %v18953_v31  ;;  %v7771_v36 = vand.u32 2147483648, %v18953_v31  ;;  %v5707_v34 = vpop.f32.mrf.mxu2 }
 0x5f9   : > { %v10228_v19 = vpop.eup %10227  ;;  %vm5463_vm14 = vweird.f32 %v18836_v61  ;;  %v5468_v56 = vand.u32 2147483648, %v18803_v5  ;;  %v5466_v12 = vand.u32 2147483647, %v18803_v5  ;;  %vm18986_vm0 = vcmp.eq.f32.partialorder %v7769_v23, 8.507059e+37 }
 0x5fa   : > { %v10230_v47 = vpop.eup %10229  ;;  %v7746_v25 = vmul.f32 %v10228_v19, %v18942_v15  ;;  %v5461_v62 = vadd.f32 %v18836_v61, %v5460_v6  ;;  %vm5462_vm15 = vweird.f32 %v18803_v5  ;;  %vm7751_vm2 = vweird.f32 %v10228_v19 }
 0x5fb   : > { %v10232_v29 = vpop.eup %10231  ;;  %v18977_v8 = vadd.f32 1.0, %v10230_v47  ;;  %v8971_v38 = vmul.f32 -1.442695, %v5705_v11  ;;  %v7772_v10 = vor.u32 1.1754944e-38, %v7771_v36  ;;  %v18997_v35 = vadd.f32 1.0, %v10226_v13  ;;  %vm5464_vm11 = vmor %vm5462_vm15, %vm5463_vm14 }
 0x5fc   : > { %v10234_v22 = vpop.eup %10233  ;;  %v7747_v0 = vsub.f32 1.0, %v7746_v25  ;;  %v18981_v37 = vadd.f32 1.0, %v10232_v29  ;;  %v5469_v45 = vor.u32 1.1754944e-38, %v5468_v56  ;;  %v5465_v48 = vsel %vm5464_vm11, %v18836_v61, %v5461_v62  ;;  %vm7752_vm8 = vmor %vm7750_vm12, %vm7751_vm2  ;;  %v5916_v40 = vpop.f32.mrf.mxu3 }
 0x5fd   : > { %v7761_v44 = vmul.f32 %v10234_v22, %v18953_v31  ;;  %10239 = vrcp.f32 %v18977_v8  ;;  %v18992_v14 = vpop.eup %10235  ;;  %v7784_v5 = vand.u32 2147483647, %v18977_v8  ;;  %vm5467_vm3 = vcmp.eq.f32.partialorder %v5466_v12, 8.507059e+37 }
 0x5fe   : > { %v7748_v63 = vmul.f32 %v10228_v19, %v7747_v0  ;;  %10241 = vrcp.f32 %v18981_v37  ;;  %v18995_v3 = vpop.eup %10237  ;;  %vm7766_vm4 = vweird.f32 %v10234_v22  ;;  %v7786_v43 = vand.u32 2147483648, %v18977_v8 }
 0x5ff   : > { %v7762_v59 = vsub.f32 1.0, %v7761_v44  ;;  %v5470_v49 = vsel %vm5467_vm3, %v5469_v45, %v5465_v48  ;;  %vm7780_vm9 = vweird.f32 %v18977_v8  ;;  %10243 = vpow2.f32 %v8971_v38  ;;  %vm7767_vm1 = vmor %vm7765_vm13, %vm7766_vm4 }
 0x600   : > { %v7749_v24 = vadd.f32 %v10228_v19, %v7748_v63  ;;  %5751 = vmatmul.f32.gmra.mxu2 %v5470_v49  ;;  %5960 = vmatmul.f32.gmra.mxu3 %v5470_v49  ;;  %v5914_v55 = vadd.f32 %v5913_v57, %v15909_v7  ;;  %v5473_v61 = vmul.f32 %v18992_v14, %v18947_v50  ;;  %vm7795_vm6 = vweird.f32 %v18981_v37  ;;  %v5710_v38 = vpop.f32.mrf.mxu2 }
 0x601   : > { %v7763_v2 = vmul.f32 %v10234_v22, %v7762_v59  ;;  %v7799_v60 = vand.u32 2147483647, %v18981_v37  ;;  %v7801_v58 = vand.u32 2147483648, %v18981_v37  ;;  %vm19020_vm7 = vcmp.eq.f32.partialorder %v7784_v5, 8.507059e+37 }
 0x602   : > { %v7753_v18 = vsel %vm7752_vm8, %v10228_v19, %v7749_v24  ;;  %v8972_v51 = vmul.f32 -1.442695, %v5914_v55  ;;  %v5474_v41 = vsub.f32 1.0, %v5473_v61  ;;  %vm5477_vm5 = vweird.f32 %v18947_v50 }
 0x603   : > { %v10240_v1 = vpop.eup %10239  ;;  %v7758_v39 = vsel %vm18970_vm10, %v7757_v21, %v7753_v18  ;;  %v7764_v42 = vadd.f32 %v10234_v22, %v7763_v2  ;;  %vm5478_vm10 = vweird.f32 %v18992_v14  ;;  %v5481_v4 = vand.u32 2147483647, %v18947_v50 }
 0x604   : > { %v10242_v46 = vpop.eup %10241  ;;  %8489 = vst [vmem:[%s16097_s15 + $0x2a0] sm:$0xff] %v7758_v39  ;;  %v7776_v15 = vmul.f32 %v10240_v1, %v18977_v8  ;;  %vm7781_vm12 = vweird.f32 %v10240_v1  ;;  %10245 = vpow2.f32 %v8972_v51  ;;  %v5475_v31 = vmul.f32 %v18992_v14, %v5474_v41  ;;  %vm19042_vm14 = vmor %vm5477_vm5, %vm5478_vm10 }
 0x605   : > { %v7768_v20 = vsel %vm7767_vm1, %v10234_v22, %v7764_v42  ;;  %v7791_v26 = vmul.f32 %v10242_v46, %v18981_v37  ;;  %v5483_v54 = vand.u32 2147483648, %v18947_v50  ;;  %v5708_v13 = vadd.f32 %v5707_v34, %v15896_v28  ;;  %v10244_v16 = vpop.eup %10243 }
 0x606   : > { %v7773_v32 = vsel %vm18986_vm0, %v7772_v10, %v7768_v20  ;;  %v7777_v27 = vsub.f32 1.0, %v7776_v15  ;;  %vm7796_vm13 = vweird.f32 %v10242_v46  ;;  %v5476_v19 = vadd.f32 %v18992_v14, %v5475_v31  ;;  %vm7782_vm0 = vmor %vm7780_vm9, %vm7781_vm12 }
 0x607   : > { %8490 = vst [vmem:[%s16097_s15 + $0x2a8] sm:$0xff] %v7773_v32  ;;  %v7792_v53 = vsub.f32 1.0, %v7791_v26  ;;  %v5917_v23 = vadd.f32 %v5916_v40, %v15909_v7  ;;  %v19036_v47 = vadd.f32 1.0, %v10244_v16  ;;  %v5484_v30 = vor.u32 1.1754944e-38, %v5483_v54  ;;  %vm7797_vm2 = vmor %vm7795_vm6, %vm7796_vm13 }
 0x608   : > { %v7778_v52 = vmul.f32 %v10240_v1, %v7777_v27  ;;  %v8973_v21 = vmul.f32 -1.442695, %v5708_v13  ;;  %v5480_v29 = vsel %vm19042_vm14, %v18992_v14, %v5476_v19  ;;  %v5488_v56 = vmul.f32 %v18995_v3, %v18958_v9  ;;  %v5713_v54 = vpop.f32.mrf.mxu2 }
 0x609   : > { %v7793_v6 = vmul.f32 %v10242_v46, %v7792_v53  ;;  %v8974_v36 = vmul.f32 -1.442695, %v5917_v23  ;;  %v7787_v50 = vor.u32 1.1754944e-38, %v7786_v43  ;;  %10247 = vrcp.f32 %v19036_v47  ;;  %v5919_v43 = vpop.f32.mrf.mxu3 }
 0x60a   : > { %v7779_v11 = vadd.f32 %v10240_v1, %v7778_v52  ;;  %vm5482_vm15 = vcmp.eq.f32.partialorder %v5481_v4, 8.507059e+37  ;;  %v10246_v0 = vpop.eup %10245  ;;  %v7802_v12 = vor.u32 1.1754944e-38, %v7801_v58  ;;  %10249 = vpow2.f32 %v8973_v21 }
 0x60b   : > { %v7794_v22 = vadd.f32 %v10242_v46, %v7793_v6  ;;  %v5485_v57 = vsel %vm5482_vm15, %v5484_v30, %v5480_v29  ;;  %vm7800_vm11 = vcmp.eq.f32.partialorder %v7799_v60, 8.507059e+37  ;;  %v19060_v17 = vadd.f32 1.0, %v10246_v0 }
 0x60c   : > { %v7783_v62 = vsel %vm7782_vm0, %v10240_v1, %v7779_v11  ;;  %5754 = vmatmul.f32.gmra.mxu2 %v5485_v57  ;;  %5963 = vmatmul.f32.gmra.mxu3 %v5485_v57  ;;  %10251 = vpow2.f32 %v8974_v36  ;;  %v5489_v63 = vsub.f32 1.0, %v5488_v56  ;;  %vm5493_vm3 = vweird.f32 %v18995_v3 }
 0x60d   : > { %v7788_v8 = vsel %vm19020_vm7, %v7787_v50, %v7783_v62  ;;  %v7798_v44 = vsel %vm7797_vm2, %v10242_v46, %v7794_v22  ;;  %10253 = vrcp.f32 %v19060_v17  ;;  %v5498_v10 = vand.u32 2147483648, %v18958_v9 }
 0x60e   : > { %8491 = vst [vmem:[%s16097_s15 + $0x2b0] sm:$0xff] %v7788_v8  ;;  %v7803_v14 = vsel %vm7800_vm11, %v7802_v12, %v7798_v44  ;;  %10255 = vrcp.f32 %v18997_v35  ;;  %v5490_v37 = vmul.f32 %v18995_v3, %v5489_v63  ;;  %v5711_v45 = vadd.f32 %v5710_v38, %v15896_v28 }
 0x60f   : > { %8492 = vst [vmem:[%s16097_s15 + $0x2b8] sm:$0xff] %v7803_v14  ;;  %v10248_v59 = vpop.eup %10247  ;;  %vm5492_vm8 = vweird.f32 %v18958_v9  ;;  %v5496_v2 = vand.u32 2147483647, %v18958_v9  ;;  %vm7810_vm4 = vweird.f32 %v19036_v47  ;;  %v7814_v39 = vand.u32 2147483647, %v19036_v47 }
 0x610   : > { %v10250_v24 = vpop.eup %10249  ;;  %v7806_v5 = vmul.f32 %v10248_v59, %v19036_v47  ;;  %v5491_v48 = vadd.f32 %v18995_v3, %v5490_v37  ;;  %vm19077_vm9 = vmor %vm5492_vm8, %vm5493_vm3  ;;  %v8975_v55 = vmul.f32 -1.442695, %v5711_v45  ;;  %v7816_v42 = vand.u32 2147483648, %v19036_v47 }
 0x611   : > { %v19075_v49 = vadd.f32 1.0, %v10250_v24  ;;  %vm7811_vm6 = vweird.f32 %v10248_v59  ;;  %v5499_v58 = vor.u32 1.1754944e-38, %v5498_v10  ;;  %v5920_v46 = vadd.f32 %v5919_v43, %v15909_v7  ;;  %v5922_v63 = vpop.f32.mrf.mxu3 }
 0x612   : > { %v10252_v61 = vpop.eup %10251  ;;  %v7807_v1 = vsub.f32 1.0, %v7806_v5  ;;  %v5495_v9 = vsel %vm19077_vm9, %v18995_v3, %v5491_v48  ;;  %vm5497_vm1 = vcmp.eq.f32.partialorder %v5496_v2, 8.507059e+37  ;;  %v7829_v34 = vand.u32 2147483647, %v19060_v17  ;;  %vm7812_vm5 = vmor %vm7810_vm4, %vm7811_vm6 }
 0x613   : > { %v10254_v60 = vpop.eup %10253  ;;  %10257 = vrcp.f32 %v19075_v49  ;;  %v19091_v41 = vadd.f32 1.0, %v10252_v61  ;;  %v7831_v20 = vand.u32 2147483648, %v19060_v17  ;;  %v5500_v3 = vsel %vm5497_vm1, %v5499_v58, %v5495_v9 }
 0x614   : > { %v19088_v15 = vpop.eup %10255  ;;  %v7808_v33 = vmul.f32 %v10248_v59, %v7807_v1  ;;  %v7821_v51 = vmul.f32 %v10254_v60, %v19060_v17  ;;  %10259 = vpow2.f32 %v8975_v55  ;;  %vm19095_vm7 = vcmp.eq.f32.partialorder %v7814_v39, 8.507059e+37  ;;  %5757 = vmatmul.f32.gmra.mxu2 %v5500_v3  ;;  %5966 = vmatmul.f32.gmra.mxu3 %v5500_v3  ;;  %v5716_v55 = vpop.f32.mrf.mxu2 }
 0x615   : > { %10261 = vrcp.f32 %v19091_v41  ;;  %v7817_v31 = vor.u32 1.1754944e-38, %v7816_v42  ;;  %v7846_v40 = vand.u32 2147483648, %v19075_v49  ;;  %v8976_v53 = vmul.f32 -1.442695, %v5920_v46 }
 0x616   : > { %v7809_v26 = vadd.f32 %v10248_v59, %v7808_v33  ;;  %v7822_v27 = vsub.f32 1.0, %v7821_v51  ;;  %v5503_v4 = vmul.f32 %v19088_v15, %v18997_v35  ;;  %vm7825_vm12 = vweird.f32 %v19060_v17 }
 0x617   : > { %vm7826_vm10 = vweird.f32 %v10254_v60  ;;  %vm19109_vm13 = vcmp.eq.f32.partialorder %v7829_v34, 8.507059e+37  ;;  %v7832_v6 = vor.u32 1.1754944e-38, %v7831_v20  ;;  %10263 = vpow2.f32 %v8976_v53 }
 0x618   : > { %v7813_v13 = vsel %vm7812_vm5, %v10248_v59, %v7809_v26  ;;  %v7823_v16 = vmul.f32 %v10254_v60, %v7822_v27  ;;  %vm7840_vm14 = vweird.f32 %v19075_v49  ;;  %v5504_v30 = vsub.f32 1.0, %v5503_v4  ;;  %vm7827_vm0 = vmor %vm7825_vm12, %vm7826_vm10 }
 0x619   : > { %v10258_v52 = vpop.eup %10257  ;;  %v7818_v19 = vsel %vm19095_vm7, %v7817_v31, %v7813_v13  ;;  %v7844_v11 = vand.u32 2147483647, %v19075_v49  ;;  %v7847_v29 = vor.u32 1.1754944e-38, %v7846_v40  ;;  %v7859_v36 = vand.u32 2147483647, %v19091_v41  ;;  %v5925_v34 = vpop.f32.mrf.mxu3 }
 0x61a   : > { %8493 = vst [vmem:[%s16097_s15 + $0x2c0] sm:$0xff] %v7818_v19  ;;  %v7824_v47 = vadd.f32 %v10254_v60, %v7823_v16  ;;  %v7836_v25 = vmul.f32 %v10258_v52, %v19075_v49  ;;  %v10260_v21 = vpop.eup %10259  ;;  %v5714_v56 = vadd.f32 %v5713_v54, %v15896_v28  ;;  %v5505_v12 = vmul.f32 %v19088_v15, %v5504_v30 }
 0x61b   : > { %v10262_v50 = vpop.eup %10261  ;;  %v19119_v62 = vadd.f32 1.0, %v10260_v21  ;;  %vm5508_vm15 = vweird.f32 %v19088_v15  ;;  %v5513_v44 = vand.u32 2147483648, %v18997_v35  ;;  %vm7841_vm2 = vweird.f32 %v10258_v52 }
 0x61c   : > { %v7828_v22 = vsel %vm7827_vm0, %v10254_v60, %v7824_v47  ;;  %v7837_v0 = vsub.f32 1.0, %v7836_v25  ;;  %v7851_v8 = vmul.f32 %v10262_v50, %v19091_v41  ;;  %v5511_v14 = vand.u32 2147483647, %v18997_v35  ;;  %vm7842_vm4 = vmor %vm7840_vm14, %vm7841_vm2  ;;  %v5719_v53 = vpop.f32.mrf.mxu2 }
 0x61d   : > { %v7833_v57 = vsel %vm19109_vm13, %v7832_v6, %v7828_v22  ;;  %10265 = vrcp.f32 %v19119_v62  ;;  %v10264_v38 = vpop.eup %10263  ;;  %v7861_v59 = vand.u32 2147483648, %v19091_v41  ;;  %v5506_v10 = vadd.f32 %v19088_v15, %v5505_v12 }
 0x61e   : > { %8494 = vst [vmem:[%s16097_s15 + $0x2c8] sm:$0xff] %v7833_v57  ;;  %v7838_v17 = vmul.f32 %v10258_v52, %v7837_v0  ;;  %v7852_v37 = vsub.f32 1.0, %v7851_v8  ;;  %vm5507_vm11 = vweird.f32 %v18997_v35  ;;  %vm7856_vm3 = vweird.f32 %v10262_v50 }
 0x61f   : > { %v19133_v24 = vadd.f32 1.0, %v10264_v38  ;;  %vm19137_vm8 = vmor %vm5507_vm11, %vm5508_vm15  ;;  %v8977_v48 = vmul.f32 -1.442695, %v5714_v56  ;;  %v5514_v43 = vor.u32 1.1754944e-38, %v5513_v44  ;;  %v5923_v18 = vadd.f32 %v5922_v63, %v15909_v7 }
 0x620   : > { %v7839_v45 = vadd.f32 %v10258_v52, %v7838_v17  ;;  %v7853_v2 = vmul.f32 %v10262_v50, %v7852_v37  ;;  %v5510_v35 = vsel %vm19137_vm8, %v19088_v15, %v5506_v10  ;;  %vm7845_vm9 = vcmp.eq.f32.partialorder %v7844_v11, 8.507059e+37 }
 0x621   : > { %10267 = vrcp.f32 %v19133_v24  ;;  %vm5512_vm6 = vcmp.eq.f32.partialorder %v5511_v14, 8.507059e+37  ;;  %vm7855_vm1 = vweird.f32 %v19091_v41  ;;  %v7862_v9 = vor.u32 1.1754944e-38, %v7861_v59 }
 0x622   : > { %v7843_v61 = vsel %vm7842_vm4, %v10258_v52, %v7839_v45  ;;  %v7854_v39 = vadd.f32 %v10262_v50, %v7853_v2  ;;  %v5515_v49 = vsel %vm5512_vm6, %v5514_v43, %v5510_v35  ;;  %vm7857_vm7 = vmor %vm7855_vm1, %vm7856_vm3  ;;  %10269 = vpow2.f32 %v8977_v48 }
 0x623   : > { %v7848_v1 = vsel %vm7845_vm9, %v7847_v29, %v7843_v61  ;;  %v10266_v42 = vpop.eup %10265  ;;  %5760 = vmatmul.f32.gmra.mxu2 %v5515_v49  ;;  %5969 = vmatmul.f32.gmra.mxu3 %v5515_v49  ;;  %v8978_v60 = vmul.f32 -1.442695, %v5923_v18  ;;  %v5717_v58 = vadd.f32 %v5716_v55, %v15896_v28  ;;  %vm7860_vm5 = vcmp.eq.f32.partialorder %v7859_v36, 8.507059e+37 }
 0x624   : > { %8495 = vst [vmem:[%s16097_s15 + $0x2d0] sm:$0xff] %v7848_v1  ;;  %v7858_v46 = vsel %vm7857_vm7, %v10262_v50, %v7854_v39  ;;  %v7866_v15 = vmul.f32 %v10266_v42, %v19119_v62  ;;  %v7874_v51 = vand.u32 2147483647, %v19119_v62  ;;  %v5926_v3 = vadd.f32 %v5925_v34, %v15909_v7  ;;  %v5928_v50 = vpop.f32.mrf.mxu3  ;;  %v5722_v63 = vpop.f32.mrf.mxu2 }
 0x625   : > { %v7863_v33 = vsel %vm7860_vm5, %v7862_v9, %v7858_v46  ;;  %10271 = vpow2.f32 %v8978_v60  ;;  %v8979_v41 = vmul.f32 -1.442695, %v5717_v58  ;;  %v7876_v32 = vand.u32 2147483648, %v19119_v62 }
 0x626   : > { %8496 = vst [vmem:[%s16097_s15 + $0x2d8] sm:$0xff] %v7863_v33  ;;  %v7867_v20 = vsub.f32 1.0, %v7866_v15  ;;  %vm7871_vm12 = vweird.f32 %v10266_v42  ;;  %v8980_v40 = vmul.f32 -1.442695, %v5926_v3  ;;  %vm7870_vm10 = vweird.f32 %v19119_v62 }
 0x627   : > { %v10268_v26 = vpop.eup %10267  ;;  %10273 = vpow2.f32 %v8979_v41  ;;  %vm19159_vm13 = vcmp.eq.f32.partialorder %v7874_v51, 8.507059e+37  ;;  %v5720_v13 = vadd.f32 %v5719_v53, %v15896_v28  ;;  %vm7872_vm14 = vmor %vm7870_vm10, %vm7871_vm12  ;;  %v7877_v6 = vor.u32 1.1754944e-38, %v7876_v32 }
 0x628   : > { %v7868_v27 = vmul.f32 %v10266_v42, %v7867_v20  ;;  %v7881_v31 = vmul.f32 %v10268_v26, %v19133_v24  ;;  %v10270_v4 = vpop.eup %10269  ;;  %10275 = vpow2.f32 %v8980_v40  ;;  %v7889_v47 = vand.u32 2147483647, %v19133_v24 }
 0x629   : > { %v19164_v19 = vadd.f32 1.0, %v10270_v4  ;;  %v7891_v25 = vand.u32 2147483648, %v19133_v24  ;;  %v8981_v30 = vmul.f32 -1.442695, %v5720_v13  ;;  %vm7886_vm0 = vweird.f32 %v10268_v26 }
 0x62a   : > { %v7869_v16 = vadd.f32 %v10266_v42, %v7868_v27  ;;  %v7882_v52 = vsub.f32 1.0, %v7881_v31  ;;  %vm7885_vm15 = vweird.f32 %v19133_v24  ;;  %v5929_v62 = vadd.f32 %v5928_v50, %v15909_v7 }
 0x62b   : > { %v10272_v23 = vpop.eup %10271  ;;  %10277 = vrcp.f32 %v19164_v19  ;;  %vm7887_vm2 = vmor %vm7885_vm15, %vm7886_vm0  ;;  %v7892_v12 = vor.u32 1.1754944e-38, %v7891_v25  ;;  %v7904_v57 = vand.u32 2147483647, %v19164_v19  ;;  %v7906_v8 = vand.u32 2147483648, %v19164_v19 }
 0x62c   : > { %v7873_v21 = vsel %vm7872_vm14, %v10266_v42, %v7869_v16  ;;  %v7883_v11 = vmul.f32 %v10268_v26, %v7882_v52  ;;  %v19172_v56 = vadd.f32 1.0, %v10272_v23  ;;  %10279 = vpow2.f32 %v8981_v30  ;;  %v5931_v9 = vpop.f32.mrf.mxu3  ;;  %v5725_v54 = vpop.f32.mrf.mxu2 }
 0x62d   : > { %v10274_v29 = vpop.eup %10273  ;;  %v7878_v36 = vsel %vm19159_vm13, %v7877_v6, %v7873_v21  ;;  %vm7890_vm11 = vcmp.eq.f32.partialorder %v7889_v47, 8.507059e+37  ;;  %v8982_v10 = vmul.f32 -1.442695, %v5929_v62  ;;  %vm7900_vm3 = vweird.f32 %v19164_v19 }
 0x62e   : > { %8497 = vst [vmem:[%s16097_s15 + $0x2e0] sm:$0xff] %v7878_v36  ;;  %v7884_v22 = vadd.f32 %v10268_v26, %v7883_v11  ;;  %v19175_v0 = vadd.f32 1.0, %v10274_v29  ;;  %10281 = vrcp.f32 %v19172_v56  ;;  %v10276_v44 = vpop.eup %10275  ;;  %v7919_v37 = vand.u32 2147483647, %v19172_v56 }
 0x62f   : > { %v19184_v59 = vadd.f32 1.0, %v10276_v44  ;;  %vm19188_vm8 = vcmp.eq.f32.partialorder %v7904_v57, 8.507059e+37  ;;  %v7907_v5 = vor.u32 1.1754944e-38, %v7906_v8  ;;  %v7921_v2 = vand.u32 2147483648, %v19172_v56 }
 0x630   : > { %v7888_v17 = vsel %vm7887_vm2, %v10268_v26, %v7884_v22  ;;  %10283 = vrcp.f32 %v19175_v0  ;;  %v7934_v35 = vand.u32 2147483647, %v19175_v0  ;;  %v7936_v43 = vand.u32 2147483648, %v19175_v0 }
 0x631   : > { %v7893_v14 = vsel %vm7890_vm11, %v7892_v12, %v7888_v17  ;;  %v10278_v38 = vpop.eup %10277  ;;  %10285 = vrcp.f32 %v19184_v59  ;;  %v5723_v1 = vadd.f32 %v5722_v63, %v15896_v28  ;;  %vm7915_vm4 = vweird.f32 %v19172_v56 }
 0x632   : > { %8498 = vst [vmem:[%s16097_s15 + $0x2e8] sm:$0xff] %v7893_v14  ;;  %v7896_v45 = vmul.f32 %v10278_v38, %v19164_v19  ;;  %v10280_v48 = vpop.eup %10279  ;;  %10287 = vpow2.f32 %v8982_v10  ;;  %vm19201_vm9 = vcmp.eq.f32.partialorder %v7919_v37, 8.507059e+37  ;;  %vm7930_vm6 = vweird.f32 %v19175_v0 }
 0x633   : > { %v19196_v61 = vadd.f32 1.0, %v10280_v48  ;;  %vm7901_vm1 = vweird.f32 %v10278_v38  ;;  %v7922_v15 = vor.u32 1.1754944e-38, %v7921_v2  ;;  %vm19208_vm7 = vcmp.eq.f32.partialorder %v7934_v35, 8.507059e+37 }
 0x634   : > { %v10282_v18 = vpop.eup %10281  ;;  %v7897_v55 = vsub.f32 1.0, %v7896_v45  ;;  %v7937_v51 = vor.u32 1.1754944e-38, %v7936_v43  ;;  %v8983_v20 = vmul.f32 -1.442695, %v5723_v1  ;;  %v5932_v3 = vadd.f32 %v5931_v9, %v15909_v7  ;;  %vm7902_vm5 = vmor %vm7900_vm3, %vm7901_vm1  ;;  %v5934_v29 = vpop.f32.mrf.mxu3 }
 0x635   : > { %v7911_v49 = vmul.f32 %v10282_v18, %v19172_v56  ;;  %10289 = vrcp.f32 %v19196_v61  ;;  %vm7916_vm12 = vweird.f32 %v10282_v18  ;;  %vm7945_vm10 = vweird.f32 %v19184_v59  ;;  %v5728_v24 = vpop.f32.mrf.mxu2 }
 0x636   : > { %v10284_v39 = vpop.eup %10283  ;;  %v7898_v60 = vmul.f32 %v10278_v38, %v7897_v55  ;;  %v7949_v27 = vand.u32 2147483647, %v19184_v59  ;;  %10291 = vpow2.f32 %v8983_v20  ;;  %vm7917_vm14 = vmor %vm7915_vm4, %vm7916_vm12  ;;  %v8984_v47 = vmul.f32 -1.442695, %v5932_v3 }
 0x637   : > { %v7926_v58 = vmul.f32 %v10284_v39, %v19175_v0  ;;  %v7912_v46 = vsub.f32 1.0, %v7911_v49  ;;  %v10286_v26 = vpop.eup %10285  ;;  %vm7931_vm13 = vweird.f32 %v10284_v39  ;;  %v5726_v25 = vadd.f32 %v5725_v54, %v15896_v28 }
 0x638   : > { %v7899_v41 = vadd.f32 %v10278_v38, %v7898_v60  ;;  %v10288_v31 = vpop.eup %10287  ;;  %v7941_v4 = vmul.f32 %v10286_v26, %v19184_v59  ;;  %vm7932_vm0 = vmor %vm7930_vm6, %vm7931_vm13  ;;  %v7951_v21 = vand.u32 2147483648, %v19184_v59  ;;  %vm7946_vm15 = vweird.f32 %v10286_v26 }
 0x639   : > { %v7927_v34 = vsub.f32 1.0, %v7926_v58  ;;  %v7913_v32 = vmul.f32 %v10282_v18, %v7912_v46  ;;  %v19220_v52 = vadd.f32 1.0, %v10288_v31  ;;  %vm19238_vm2 = vcmp.eq.f32.partialorder %v7949_v27, 8.507059e+37  ;;  %vm7947_vm11 = vmor %vm7945_vm10, %vm7946_vm15 }
 0x63a   : > { %v7903_v40 = vsel %vm7902_vm5, %v10278_v38, %v7899_v41  ;;  %v7942_v6 = vsub.f32 1.0, %v7941_v4  ;;  %v7966_v12 = vand.u32 2147483648, %v19196_v61  ;;  %v8985_v8 = vmul.f32 -1.442695, %v5726_v25 }
 0x63b   : > { %v7928_v53 = vmul.f32 %v10284_v39, %v7927_v34  ;;  %v7908_v13 = vsel %vm19188_vm8, %v7907_v5, %v7903_v40  ;;  %v7914_v16 = vadd.f32 %v10282_v18, %v7913_v32  ;;  %v10290_v19 = vpop.eup %10289  ;;  %10293 = vrcp.f32 %v19220_v52 }
 0x63c   : > { %8499 = vst [vmem:[%s16097_s15 + $0x2f0] sm:$0xff] %v7908_v13  ;;  %v7956_v11 = vmul.f32 %v10290_v19, %v19196_v61  ;;  %v7943_v50 = vmul.f32 %v10286_v26, %v7942_v6  ;;  %10295 = vpow2.f32 %v8984_v47  ;;  %v5935_v44 = vadd.f32 %v5934_v29, %v15909_v7  ;;  %v10292_v17 = vpop.eup %10291  ;;  %v5937_v55 = vpop.f32.mrf.mxu3 }
 0x63d   : > { %v7929_v23 = vadd.f32 %v10284_v39, %v7928_v53  ;;  %v7918_v30 = vsel %vm7917_vm14, %v10282_v18, %v7914_v16  ;;  %v7952_v14 = vor.u32 1.1754944e-38, %v7951_v21  ;;  %vm7961_vm3 = vweird.f32 %v10290_v19  ;;  %v5731_v13 = vpop.f32.mrf.mxu2 }
 0x63e   : > { %v7923_v36 = vsel %vm19201_vm9, %v7922_v15, %v7918_v30  ;;  %v7957_v62 = vsub.f32 1.0, %v7956_v11  ;;  %v7944_v57 = vadd.f32 %v10286_v26, %v7943_v50  ;;  %v7964_v38 = vand.u32 2147483647, %v19196_v61 }
 0x63f   : > { %v7933_v56 = vsel %vm7932_vm0, %v10284_v39, %v7929_v23  ;;  %8500 = vst [vmem:[%s16097_s15 + $0x2f8] sm:$0xff] %v7923_v36  ;;  %v19248_v10 = vadd.f32 1.0, %v10292_v17  ;;  %10297 = vpow2.f32 %v8985_v8  ;;  %v8986_v45 = vmul.f32 -1.442695, %v5935_v44 }
 0x640   : > { %v7938_v22 = vsel %vm19208_vm7, %v7937_v51, %v7933_v56  ;;  %v7958_v63 = vmul.f32 %v10290_v19, %v7957_v62  ;;  %v7948_v37 = vsel %vm7947_vm11, %v10286_v26, %v7944_v57  ;;  %vm7960_vm8 = vweird.f32 %v19196_v61 }
 0x641   : > { %8501 = vst [vmem:[%s16097_s15 + $0x300] sm:$0xff] %v7938_v22  ;;  %v10294_v5 = vpop.eup %10293  ;;  %v7953_v48 = vsel %vm19238_vm2, %v7952_v14, %v7948_v37  ;;  %v5729_v59 = vadd.f32 %v5728_v24, %v15896_v28  ;;  %vm7962_vm4 = vmor %vm7960_vm8, %vm7961_vm3  ;;  %v7967_v35 = vor.u32 1.1754944e-38, %v7966_v12  ;;  %10299 = vrcp.f32 %v19248_v10 }
 0x642   : > { %v7959_v2 = vadd.f32 %v10290_v19, %v7958_v63  ;;  %8502 = vst [vmem:[%s16097_s15 + $0x308] sm:$0xff] %v7953_v48  ;;  %v7971_v43 = vmul.f32 %v10294_v5, %v19220_v52  ;;  %vm7965_vm9 = vcmp.eq.f32.partialorder %v7964_v38, 8.507059e+37  ;;  %10301 = vpow2.f32 %v8986_v45  ;;  %v10296_v1 = vpop.eup %10295 }
 0x643   : > { %v8987_v42 = vmul.f32 -1.442695, %v5729_v59  ;;  %v5938_v61 = vadd.f32 %v5937_v55, %v15909_v7  ;;  %v7979_v9 = vand.u32 2147483647, %v19220_v52  ;;  %v7981_v60 = vand.u32 2147483648, %v19220_v52 }
 0x644   : > { %v7963_v18 = vsel %vm7962_vm4, %v10290_v19, %v7959_v2  ;;  %v7972_v49 = vsub.f32 1.0, %v7971_v43  ;;  %v19261_v58 = vadd.f32 1.0, %v10296_v1  ;;  %vm7976_vm6 = vweird.f32 %v10294_v5  ;;  %v5940_v8 = vpop.f32.mrf.mxu3 }
 0x645   : > { %v7968_v39 = vsel %vm7965_vm9, %v7967_v35, %v7963_v18  ;;  %v10298_v46 = vpop.eup %10297  ;;  %10303 = vpow2.f32 %v8987_v42  ;;  %v8988_v33 = vmul.f32 -1.442695, %v5938_v61  ;;  %vm7975_vm1 = vweird.f32 %v19220_v52  ;;  %v5734_v18 = vpop.f32.mrf.mxu2 }
 0x646   : > { %8503 = vst [vmem:[%s16097_s15 + $0x310] sm:$0xff] %v7968_v39  ;;  %v7973_v15 = vmul.f32 %v10294_v5, %v7972_v49  ;;  %10305 = vrcp.f32 %v19261_v58  ;;  %v7994_v34 = vand.u32 2147483647, %v19248_v10  ;;  %v19266_v20 = vadd.f32 1.0, %v10298_v46  ;;  %vm7977_vm7 = vmor %vm7975_vm1, %vm7976_vm6 }
 0x647   : > { %v10300_v51 = vpop.eup %10299  ;;  %10307 = vpow2.f32 %v8988_v33  ;;  %v7982_v26 = vor.u32 1.1754944e-38, %v7981_v60  ;;  %v7996_v27 = vand.u32 2147483648, %v19248_v10  ;;  %vm7980_vm5 = vcmp.eq.f32.partialorder %v7979_v9, 8.507059e+37 }
 0x648   : > { %v7974_v41 = vadd.f32 %v10294_v5, %v7973_v15  ;;  %v10302_v3 = vpop.eup %10301  ;;  %v7986_v32 = vmul.f32 %v10300_v51, %v19248_v10  ;;  %v8009_v40 = vand.u32 2147483647, %v19261_v58  ;;  %10309 = vrcp.f32 %v19266_v20 }
 0x649   : > { %v19272_v54 = vadd.f32 1.0, %v10302_v3  ;;  %vm7990_vm12 = vweird.f32 %v19248_v10  ;;  %vm19276_vm10 = vcmp.eq.f32.partialorder %v7994_v34, 8.507059e+37  ;;  %v8011_v19 = vand.u32 2147483648, %v19261_v58 }
 0x64a   : > { %v7978_v31 = vsel %vm7977_vm7, %v10294_v5, %v7974_v41  ;;  %v7987_v4 = vsub.f32 1.0, %v7986_v32  ;;  %vm7991_vm13 = vweird.f32 %v10300_v51  ;;  %v7997_v47 = vor.u32 1.1754944e-38, %v7996_v27 }
 0x64b   : > { %v7983_v53 = vsel %vm7980_vm5, %v7982_v26, %v7978_v31  ;;  %v10304_v16 = vpop.eup %10303  ;;  %10311 = vrcp.f32 %v19272_v54  ;;  %vm8005_vm14 = vweird.f32 %v19261_v58  ;;  %vm19284_vm0 = vcmp.eq.f32.partialorder %v8009_v40, 8.507059e+37  ;;  %vm7992_vm15 = vmor %vm7990_vm12, %vm7991_vm13 }
 0x64c   : > { %8504 = vst [vmem:[%s16097_s15 + $0x318] sm:$0xff] %v7983_v53  ;;  %v10306_v23 = vpop.eup %10305  ;;  %v7988_v6 = vmul.f32 %v10300_v51, %v7987_v4  ;;  %v5732_v11 = vadd.f32 %v5731_v13, %v15896_v28  ;;  %v8024_v36 = vand.u32 2147483647, %v19266_v20  ;;  %v19290_v56 = vadd.f32 1.0, %v10304_v16  ;;  %v5943_v33 = vpop.f32.mrf.mxu3 }
 0x64d   : > { %v10308_v25 = vpop.eup %10307  ;;  %v8001_v30 = vmul.f32 %v10306_v23, %v19261_v58  ;;  %v8012_v62 = vor.u32 1.1754944e-38, %v8011_v19  ;;  %v8026_v12 = vand.u32 2147483648, %v19266_v20  ;;  %v8039_v57 = vand.u32 2147483647, %v19272_v54 }
 0x64e   : > { %v7989_v29 = vadd.f32 %v10300_v51, %v7988_v6  ;;  %v19292_v50 = vadd.f32 1.0, %v10308_v25  ;;  %v10310_v22 = vpop.eup %10309  ;;  %v8041_v14 = vand.u32 2147483648, %v19272_v54  ;;  %10313 = vrcp.f32 %v19290_v56 }
 0x64f   : > { %v8002_v0 = vsub.f32 1.0, %v8001_v30  ;;  %v8016_v17 = vmul.f32 %v10310_v22, %v19266_v20  ;;  %vm8006_vm2 = vweird.f32 %v10306_v23  ;;  %v8989_v37 = vmul.f32 -1.442695, %v5732_v11 }
 0x650   : > { %v7993_v44 = vsel %vm7992_vm15, %v10300_v51, %v7989_v29  ;;  %vm8020_vm11 = vweird.f32 %v19266_v20  ;;  %vm19305_vm3 = vcmp.eq.f32.partialorder %v8024_v36, 8.507059e+37  ;;  %10315 = vrcp.f32 %v19292_v50  ;;  %vm8007_vm4 = vmor %vm8005_vm14, %vm8006_vm2 }
 0x651   : > { %v7998_v63 = vsel %vm19276_vm10, %v7997_v47, %v7993_v44  ;;  %v8003_v38 = vmul.f32 %v10306_v23, %v8002_v0  ;;  %v10312_v10 = vpop.eup %10311  ;;  %v8017_v45 = vsub.f32 1.0, %v8016_v17  ;;  %v8027_v48 = vor.u32 1.1754944e-38, %v8026_v12 }
 0x652   : > { %8505 = vst [vmem:[%s16097_s15 + $0x320] sm:$0xff] %v7998_v63  ;;  %v8031_v2 = vmul.f32 %v10312_v10, %v19272_v54  ;;  %vm8035_vm8 = vweird.f32 %v19272_v54  ;;  %vm8021_vm9 = vweird.f32 %v10310_v22  ;;  %vm19314_vm6 = vcmp.eq.f32.partialorder %v8039_v57, 8.507059e+37  ;;  %v5737_v54 = vpop.f32.mrf.mxu2 }
 0x653   : > { %v8004_v5 = vadd.f32 %v10306_v23, %v8003_v38  ;;  %v8018_v59 = vmul.f32 %v10310_v22, %v8017_v45  ;;  %v8042_v43 = vor.u32 1.1754944e-38, %v8041_v14  ;;  %vm8050_vm1 = vweird.f32 %v19290_v56  ;;  %vm8022_vm7 = vmor %vm8020_vm11, %vm8021_vm9 }
 0x654   : > { %v8032_v1 = vsub.f32 1.0, %v8031_v2  ;;  %10317 = vpow2.f32 %v8989_v37  ;;  %v5941_v39 = vadd.f32 %v5940_v8, %v15909_v7  ;;  %v10314_v49 = vpop.eup %10313  ;;  %v8054_v9 = vand.u32 2147483647, %v19290_v56 }
 0x655   : > { %v8008_v55 = vsel %vm8007_vm4, %v10306_v23, %v8004_v5  ;;  %v8019_v61 = vadd.f32 %v10310_v22, %v8018_v59  ;;  %v8056_v60 = vand.u32 2147483648, %v19290_v56  ;;  %vm8036_vm5 = vweird.f32 %v10312_v10 }
 0x656   : > { %v8013_v42 = vsel %vm19284_vm0, %v8012_v62, %v8008_v55  ;;  %v8033_v58 = vmul.f32 %v10312_v10, %v8032_v1  ;;  %v8046_v46 = vmul.f32 %v10314_v49, %v19290_v56  ;;  %v8990_v15 = vmul.f32 -1.442695, %v5941_v39  ;;  %v10316_v51 = vpop.eup %10315  ;;  %vm8037_vm12 = vmor %vm8035_vm8, %vm8036_vm5 }
 0x657   : > { %8506 = vst [vmem:[%s16097_s15 + $0x328] sm:$0xff] %v8013_v42  ;;  %v8023_v41 = vsel %vm8022_vm7, %v10310_v22, %v8019_v61  ;;  %v8069_v34 = vand.u32 2147483647, %v19292_v50  ;;  %v5735_v3 = vadd.f32 %v5734_v18, %v15896_v28  ;;  %v5944_v26 = vadd.f32 %v5943_v33, %v15909_v7  ;;  %v5946_v22 = vpop.f32.mrf.mxu3 }
 0x658   : > { %v8028_v32 = vsel %vm19305_vm3, %v8027_v48, %v8023_v41  ;;  %v8034_v20 = vadd.f32 %v10312_v10, %v8033_v58  ;;  %v8047_v27 = vsub.f32 1.0, %v8046_v46  ;;  %v8061_v31 = vmul.f32 %v10316_v51, %v19292_v50 }
 0x659   : > { %8507 = vst [vmem:[%s16097_s15 + $0x330] sm:$0xff] %v8028_v32  ;;  %v8071_v40 = vand.u32 2147483648, %v19292_v50  ;;  %10319 = vpow2.f32 %v8990_v15  ;;  %v8991_v53 = vmul.f32 -1.442695, %v5735_v3  ;;  %v8992_v4 = vmul.f32 -1.442695, %v5944_v26 }
 0x65a   : > { %v10318_v13 = vpop.eup %10317  ;;  %v8038_v16 = vsel %vm8037_vm12, %v10312_v10, %v8034_v20  ;;  %v8048_v52 = vmul.f32 %v10314_v49, %v8047_v27  ;;  %vm8051_vm10 = vweird.f32 %v10314_v49  ;;  %v8062_v19 = vsub.f32 1.0, %v8061_v31  ;;  %v5740_v5 = vpop.f32.mrf.mxu2 }
 0x65b   : > { %v8043_v23 = vsel %vm19314_vm6, %v8042_v43, %v8038_v16  ;;  %vm8066_vm13 = vweird.f32 %v10316_v51  ;;  %v19341_v6 = vadd.f32 1.0, %v10318_v13  ;;  %10321 = vpow2.f32 %v8991_v53  ;;  %vm8052_vm14 = vmor %vm8050_vm1, %vm8051_vm10 }
 0x65c   : > { %8508 = vst [vmem:[%s16097_s15 + $0x338] sm:$0xff] %v8043_v23  ;;  %v8049_v47 = vadd.f32 %v10314_v49, %v8048_v52  ;;  %v8063_v25 = vmul.f32 %v10316_v51, %v8062_v19  ;;  %10323 = vpow2.f32 %v8992_v4  ;;  %v5738_v30 = vadd.f32 %v5737_v54, %v15896_v28 }
 0x65d   : > { %v8057_v21 = vor.u32 1.1754944e-38, %v8056_v60  ;;  %vm8065_vm0 = vweird.f32 %v19292_v50  ;;  %10325 = vrcp.f32 %v19341_v6  ;;  %vm8055_vm15 = vcmp.eq.f32.partialorder %v8054_v9, 8.507059e+37 }
 0x65e   : > { %v8053_v11 = vsel %vm8052_vm14, %v10314_v49, %v8049_v47  ;;  %v8064_v29 = vadd.f32 %v10316_v51, %v8063_v25  ;;  %v8993_v36 = vmul.f32 -1.442695, %v5738_v30  ;;  %vm8067_vm2 = vmor %vm8065_vm0, %vm8066_vm13  ;;  %v8072_v12 = vor.u32 1.1754944e-38, %v8071_v40 }
 0x65f   : > { %v10320_v0 = vpop.eup %10319  ;;  %v8058_v62 = vsel %vm8055_vm15, %v8057_v21, %v8053_v11  ;;  %v5947_v57 = vadd.f32 %v5946_v22, %v15909_v7  ;;  %vm8070_vm11 = vcmp.eq.f32.partialorder %v8069_v34, 8.507059e+37  ;;  %v8084_v63 = vand.u32 2147483647, %v19341_v6 }
 0x660   : > { %8509 = vst [vmem:[%s16097_s15 + $0x340] sm:$0xff] %v8058_v62  ;;  %v8068_v56 = vsel %vm8067_vm2, %v10316_v51, %v8064_v29  ;;  %v19352_v8 = vadd.f32 1.0, %v10320_v0  ;;  %10327 = vpow2.f32 %v8993_v36  ;;  %v8086_v37 = vand.u32 2147483648, %v19341_v6  ;;  %v5949_v51 = vpop.f32.mrf.mxu3 }
 0x661   : > { %v10322_v50 = vpop.eup %10321  ;;  %v8073_v44 = vsel %vm8070_vm11, %v8072_v12, %v8068_v56  ;;  %v8994_v17 = vmul.f32 -1.442695, %v5947_v57  ;;  %vm8080_vm3 = vweird.f32 %v19341_v6  ;;  %vm19368_vm4 = vcmp.eq.f32.partialorder %v8084_v63, 8.507059e+37 }
 0x662   : > { %v10324_v14 = vpop.eup %10323  ;;  %8510 = vst [vmem:[%s16097_s15 + $0x348] sm:$0xff] %v8073_v44  ;;  %10329 = vrcp.f32 %v19352_v8  ;;  %v19358_v10 = vadd.f32 1.0, %v10322_v50  ;;  %v8099_v48 = vand.u32 2147483647, %v19352_v8  ;;  %v8101_v35 = vand.u32 2147483648, %v19352_v8 }
 0x663   : > { %v10326_v38 = vpop.eup %10325  ;;  %v19360_v45 = vadd.f32 1.0, %v10324_v14  ;;  %10331 = vpow2.f32 %v8994_v17  ;;  %v8087_v18 = vor.u32 1.1754944e-38, %v8086_v37  ;;  %v5741_v61 = vadd.f32 %v5740_v5, %v15896_v28 }
 0x664   : > { %v8076_v24 = vmul.f32 %v10326_v38, %v19341_v6  ;;  %10333 = vrcp.f32 %v19358_v10  ;;  %vm8081_vm8 = vweird.f32 %v10326_v38  ;;  %v8114_v49 = vand.u32 2147483647, %v19358_v10  ;;  %v5743_v6 = vpop.f32.mrf.mxu2 }
 0x665   : > { %10335 = vrcp.f32 %v19360_v45  ;;  %v8116_v42 = vand.u32 2147483648, %v19358_v10  ;;  %vm8095_vm9 = vweird.f32 %v19352_v8  ;;  %vm19379_vm6 = vcmp.eq.f32.partialorder %v8099_v48, 8.507059e+37  ;;  %vm8082_vm7 = vmor %vm8080_vm3, %vm8081_vm8 }
 0x666   : > { %v10328_v2 = vpop.eup %10327  ;;  %v8077_v59 = vsub.f32 1.0, %v8076_v24  ;;  %v8102_v15 = vor.u32 1.1754944e-38, %v8101_v35  ;;  %vm8110_vm1 = vweird.f32 %v19358_v10  ;;  %v8129_v33 = vand.u32 2147483647, %v19360_v45 }
 0x667   : > { %v19372_v55 = vadd.f32 1.0, %v10328_v2  ;;  %vm8125_vm5 = vweird.f32 %v19360_v45  ;;  %v8131_v3 = vand.u32 2147483648, %v19360_v45  ;;  %vm19394_vm12 = vcmp.eq.f32.partialorder %v8114_v49, 8.507059e+37 }
 0x668   : > { %v10330_v1 = vpop.eup %10329  ;;  %v8078_v39 = vmul.f32 %v10326_v38, %v8077_v59  ;;  %v8117_v40 = vor.u32 1.1754944e-38, %v8116_v42  ;;  %v8995_v53 = vmul.f32 -1.442695, %v5741_v61  ;;  %vm19402_vm13 = vcmp.eq.f32.partialorder %v8129_v33, 8.507059e+37  ;;  %v5952_v56 = vpop.f32.mrf.mxu3 }
 0x669   : > { %v10332_v9 = vpop.eup %10331  ;;  %v8091_v60 = vmul.f32 %v10330_v1, %v19352_v8  ;;  %10337 = vrcp.f32 %v19372_v55  ;;  %vm8096_vm10 = vweird.f32 %v10330_v1  ;;  %v5950_v23 = vadd.f32 %v5949_v51, %v15909_v7 }
 0x66a   : > { %v8079_v46 = vadd.f32 %v10326_v38, %v8078_v39  ;;  %v10334_v41 = vpop.eup %10333  ;;  %v19391_v26 = vadd.f32 1.0, %v10332_v9  ;;  %v8132_v30 = vor.u32 1.1754944e-38, %v8131_v3  ;;  %vm8140_vm14 = vweird.f32 %v19372_v55  ;;  %vm8097_vm0 = vmor %vm8095_vm9, %vm8096_vm10 }
 0x66b   : > { %v8092_v34 = vsub.f32 1.0, %v8091_v60  ;;  %v10336_v32 = vpop.eup %10335  ;;  %v8106_v27 = vmul.f32 %v10334_v41, %v19358_v10  ;;  %vm8111_vm15 = vweird.f32 %v10334_v41  ;;  %v8144_v22 = vand.u32 2147483647, %v19372_v55 }
 0x66c   : > { %v8083_v20 = vsel %vm8082_vm7, %v10326_v38, %v8079_v46  ;;  %v8121_v16 = vmul.f32 %v10336_v32, %v19360_v45  ;;  %10339 = vrcp.f32 %v19391_v26  ;;  %vm8126_vm2 = vweird.f32 %v10336_v32  ;;  %vm8112_vm11 = vmor %vm8110_vm1, %vm8111_vm15 }
 0x66d   : > { %v8088_v4 = vsel %vm19368_vm4, %v8087_v18, %v8083_v20  ;;  %v8093_v13 = vmul.f32 %v10330_v1, %v8092_v34  ;;  %v8107_v52 = vsub.f32 1.0, %v8106_v27  ;;  %10341 = vpow2.f32 %v8995_v53  ;;  %vm8127_vm3 = vmor %vm8125_vm5, %vm8126_vm2 }
 0x66e   : > { %8511 = vst [vmem:[%s16097_s15 + $0x350] sm:$0xff] %v8088_v4  ;;  %v8122_v25 = vsub.f32 1.0, %v8121_v16  ;;  %v8996_v57 = vmul.f32 -1.442695, %v5950_v23  ;;  %v8146_v50 = vand.u32 2147483648, %v19372_v55  ;;  %v5744_v44 = vadd.f32 %v5743_v6, %v15896_v28  ;;  %v5746_v43 = vpop.f32.mrf.mxu2 }
 0x66f   : > { %v10338_v54 = vpop.eup %10337  ;;  %v8094_v47 = vadd.f32 %v10330_v1, %v8093_v13  ;;  %v8108_v21 = vmul.f32 %v10334_v41, %v8107_v52  ;;  %v5953_v17 = vadd.f32 %v5952_v56, %v15909_v7  ;;  %vm19426_vm4 = vcmp.eq.f32.partialorder %v8144_v22, 8.507059e+37 }
 0x670   : > { %v8136_v11 = vmul.f32 %v10338_v54, %v19372_v55  ;;  %v8123_v36 = vmul.f32 %v10336_v32, %v8122_v25  ;;  %vm8141_vm8 = vweird.f32 %v10338_v54  ;;  %10343 = vpow2.f32 %v8996_v57 }
 0x671   : > { %v8098_v29 = vsel %vm8097_vm0, %v10330_v1, %v8094_v47  ;;  %v8109_v62 = vadd.f32 %v10334_v41, %v8108_v21  ;;  %v8997_v59 = vmul.f32 -1.442695, %v5744_v44  ;;  %v8998_v35 = vmul.f32 -1.442695, %v5953_v17  ;;  %vm8142_vm9 = vmor %vm8140_vm14, %vm8141_vm8 }
 0x672   : > { %v8103_v0 = vsel %vm19379_vm6, %v8102_v15, %v8098_v29  ;;  %v8137_v12 = vsub.f32 1.0, %v8136_v11  ;;  %v8124_v8 = vadd.f32 %v10336_v32, %v8123_v36  ;;  %v10340_v14 = vpop.eup %10339  ;;  %v8147_v18 = vor.u32 1.1754944e-38, %v8146_v50  ;;  %v5955_v15 = vpop.f32.mrf.mxu3 }
 0x673   : > { %8512 = vst [vmem:[%s16097_s15 + $0x358] sm:$0xff] %v8103_v0  ;;  %v8113_v63 = vsel %vm8112_vm11, %v10334_v41, %v8109_v62  ;;  %v8151_v5 = vmul.f32 %v10340_v14, %v19391_v26  ;;  %v10342_v48 = vpop.eup %10341  ;;  %v5747_v49 = vadd.f32 %v5746_v43, %v15896_v28  ;;  %v8159_v61 = vand.u32 2147483647, %v19391_v26 }
 0x674   : > { %v8138_v38 = vmul.f32 %v10338_v54, %v8137_v12  ;;  %v8118_v37 = vsel %vm19394_vm12, %v8117_v40, %v8113_v63  ;;  %v8128_v10 = vsel %vm8127_vm3, %v10336_v32, %v8124_v8  ;;  %v19437_v39 = vadd.f32 1.0, %v10342_v48 }
 0x675   : > { %8513 = vst [vmem:[%s16097_s15 + $0x360] sm:$0xff] %v8118_v37  ;;  %v8133_v45 = vsel %vm19402_vm13, %v8132_v30, %v8128_v10  ;;  %v8152_v1 = vsub.f32 1.0, %v8151_v5  ;;  %v8161_v9 = vand.u32 2147483648, %v19391_v26  ;;  %10345 = vpow2.f32 %v8997_v59 }
 0x676   : > { %v8139_v2 = vadd.f32 %v10338_v54, %v8138_v38  ;;  %8514 = vst [vmem:[%s16097_s15 + $0x368] sm:$0xff] %v8133_v45  ;;  %vm8156_vm6 = vweird.f32 %v10340_v14  ;;  %10347 = vrcp.f32 %v19437_v39  ;;  %v10344_v55 = vpop.eup %10343  ;;  %v8999_v46 = vmul.f32 -1.442695, %v5747_v49  ;;  %v5749_v13 = vpop.f32.mrf.mxu2 }
 0x677   : > { %v8153_v58 = vmul.f32 %v10340_v14, %v8152_v1  ;;  %10349 = vpow2.f32 %v8998_v35  ;;  %vm8155_vm1 = vweird.f32 %v19391_v26  ;;  %v19447_v51 = vadd.f32 1.0, %v10344_v55 }
 0x678   : > { %v8143_v42 = vsel %vm8142_vm9, %v10338_v54, %v8139_v2  ;;  %v5956_v41 = vadd.f32 %v5955_v15, %v15909_v7  ;;  %vm8157_vm7 = vmor %vm8155_vm1, %vm8156_vm6  ;;  %v8162_v34 = vor.u32 1.1754944e-38, %v8161_v9  ;;  %10351 = vpow2.f32 %v8999_v46 }
 0x679   : > { %v8148_v60 = vsel %vm19426_vm4, %v8147_v18, %v8143_v42  ;;  %v8154_v33 = vadd.f32 %v10340_v14, %v8153_v58  ;;  %vm8160_vm5 = vcmp.eq.f32.partialorder %v8159_v61, 8.507059e+37  ;;  %10353 = vrcp.f32 %v19447_v51 }
 0x67a   : > { %8515 = vst [vmem:[%s16097_s15 + $0x370] sm:$0xff] %v8148_v60  ;;  %v8174_v27 = vand.u32 2147483647, %v19437_v39  ;;  %v9000_v31 = vmul.f32 -1.442695, %v5956_v41  ;;  %vm8170_vm12 = vweird.f32 %v19437_v39  ;;  %v8176_v16 = vand.u32 2147483648, %v19437_v39  ;;  %v5958_v50 = vpop.f32.mrf.mxu3 }
 0x67b   : > { %v8158_v3 = vsel %vm8157_vm7, %v10340_v14, %v8154_v33  ;;  %v10346_v32 = vpop.eup %10345  ;;  %v8189_v52 = vand.u32 2147483647, %v19447_v51  ;;  %v8191_v54 = vand.u32 2147483648, %v19447_v51  ;;  %v5750_v11 = vadd.f32 %v5749_v13, %v15896_v28 }
 0x67c   : > { %v8163_v20 = vsel %vm8160_vm5, %v8162_v34, %v8158_v3  ;;  %v10348_v40 = vpop.eup %10347  ;;  %v19453_v53 = vadd.f32 1.0, %v10346_v32  ;;  %10355 = vpow2.f32 %v9000_v31  ;;  %vm19460_vm10 = vcmp.eq.f32.partialorder %v8174_v27, 8.507059e+37 }
 0x67d   : > { %8516 = vst [vmem:[%s16097_s15 + $0x378] sm:$0xff] %v8163_v20  ;;  %v10350_v26 = vpop.eup %10349  ;;  %v8166_v4 = vmul.f32 %v10348_v40, %v19437_v39  ;;  %vm8171_vm13 = vweird.f32 %v10348_v40  ;;  %v8177_v0 = vor.u32 1.1754944e-38, %v8176_v16  ;;  %vm8185_vm14 = vweird.f32 %v19447_v51 }
 0x67e   : > { %10357 = vrcp.f32 %v19453_v53  ;;  %v10352_v19 = vpop.eup %10351  ;;  %v19465_v47 = vadd.f32 1.0, %v10350_v26  ;;  %v8206_v30 = vand.u32 2147483648, %v19453_v53  ;;  %v8204_v22 = vand.u32 2147483647, %v19453_v53  ;;  %vm8172_vm2 = vmor %vm8170_vm12, %vm8171_vm13 }
 0x67f   : > { %v8167_v23 = vsub.f32 1.0, %v8166_v4  ;;  %v10354_v25 = vpop.eup %10353  ;;  %v19468_v21 = vadd.f32 1.0, %v10352_v19  ;;  %vm19475_vm0 = vcmp.eq.f32.partialorder %v8189_v52, 8.507059e+37  ;;  %v8192_v8 = vor.u32 1.1754944e-38, %v8191_v54 }
 0x680   : > { %v8181_v36 = vmul.f32 %v10354_v25, %v19447_v51  ;;  %10359 = vrcp.f32 %v19465_v47  ;;  %vm8200_vm15 = vweird.f32 %v19453_v53  ;;  %v8207_v17 = vor.u32 1.1754944e-38, %v8206_v30 }
 0x681   : > { %v8168_v29 = vmul.f32 %v10348_v40, %v8167_v23  ;;  %10361 = vrcp.f32 %v19468_v21  ;;  %v8219_v14 = vand.u32 2147483647, %v19465_v47  ;;  %v9001_v38 = vmul.f32 -1.442695, %v5750_v11 }
 0x682   : > { %v10356_v12 = vpop.eup %10355  ;;  %v8182_v56 = vsub.f32 1.0, %v8181_v36  ;;  %vm8186_vm11 = vweird.f32 %v10354_v25  ;;  %vm19488_vm3 = vcmp.eq.f32.partialorder %v8204_v22, 8.507059e+37  ;;  %v8221_v45 = vand.u32 2147483648, %v19465_v47 }
 0x683   : > { %v8169_v57 = vadd.f32 %v10348_v40, %v8168_v29  ;;  %v19485_v63 = vadd.f32 1.0, %v10356_v12  ;;  %v8234_v2 = vand.u32 2147483647, %v19468_v21  ;;  %vm8215_vm8 = vweird.f32 %v19465_v47  ;;  %vm8187_vm9 = vmor %vm8185_vm14, %vm8186_vm11  ;;  %v5752_v15 = vpop.f32.mrf.mxu2  ;;  %v5961_v4 = vpop.f32.mrf.mxu3 }
 0x684   : > { %v10358_v44 = vpop.eup %10357  ;;  %v8183_v10 = vmul.f32 %v10354_v25, %v8182_v56  ;;  %vm8230_vm4 = vweird.f32 %v19468_v21  ;;  %vm19503_vm6 = vcmp.eq.f32.partialorder %v8219_v14, 8.507059e+37  ;;  %v8236_v49 = vand.u32 2147483648, %v19468_v21 }
 0x685   : > { %v8173_v37 = vsel %vm8172_vm2, %v10348_v40, %v8169_v57  ;;  %v8196_v24 = vmul.f32 %v10358_v44, %v19453_v53  ;;  %10363 = vrcp.f32 %v19485_v63  ;;  %vm8201_vm1 = vweird.f32 %v10358_v44 }
 0x686   : > { %v8178_v48 = vsel %vm19460_vm10, %v8177_v0, %v8173_v37  ;;  %v10360_v59 = vpop.eup %10359  ;;  %v8184_v35 = vadd.f32 %v10354_v25, %v8183_v10  ;;  %10365 = vpow2.f32 %v9001_v38  ;;  %v8222_v55 = vor.u32 1.1754944e-38, %v8221_v45  ;;  %vm8202_vm5 = vmor %vm8200_vm15, %vm8201_vm1 }
 0x687   : > { %8517 = vst [vmem:[%s16097_s15 + $0x380] sm:$0xff] %v8178_v48  ;;  %v8197_v43 = vsub.f32 1.0, %v8196_v24  ;;  %v10362_v18 = vpop.eup %10361  ;;  %v8211_v1 = vmul.f32 %v10360_v59, %v19465_v47  ;;  %vm19511_vm7 = vcmp.eq.f32.partialorder %v8234_v2, 8.507059e+37  ;;  %v5959_v41 = vadd.f32 %v5958_v50, %v15909_v7 }
 0x688   : > { %v8188_v42 = vsel %vm8187_vm9, %v10354_v25, %v8184_v35  ;;  %v8226_v9 = vmul.f32 %v10362_v18, %v19468_v21  ;;  %v5753_v34 = vadd.f32 %v5752_v15, %v15896_v28  ;;  %vm8216_vm12 = vweird.f32 %v10360_v59 }
 0x689   : > { %v8198_v61 = vmul.f32 %v10358_v44, %v8197_v43  ;;  %v8193_v60 = vsel %vm19475_vm0, %v8192_v8, %v8188_v42  ;;  %v8212_v58 = vsub.f32 1.0, %v8211_v1  ;;  %v8237_v20 = vor.u32 1.1754944e-38, %v8236_v49  ;;  %vm8217_vm13 = vmor %vm8215_vm8, %vm8216_vm12 }
 0x68a   : > { %8518 = vst [vmem:[%s16097_s15 + $0x388] sm:$0xff] %v8193_v60  ;;  %v8227_v51 = vsub.f32 1.0, %v8226_v9  ;;  %v8249_v27 = vand.u32 2147483647, %v19485_v63  ;;  %vm8231_vm10 = vweird.f32 %v10362_v18  ;;  %v9002_v19 = vmul.f32 -1.442695, %v5959_v41 }
 0x68b   : > { %v8199_v33 = vadd.f32 %v10358_v44, %v8198_v61  ;;  %v10364_v3 = vpop.eup %10363  ;;  %v8213_v32 = vmul.f32 %v10360_v59, %v8212_v58  ;;  %v9003_v53 = vmul.f32 -1.442695, %v5753_v34  ;;  %v5962_v25 = vadd.f32 %v5961_v4, %v15909_v7  ;;  %vm8232_vm14 = vmor %vm8230_vm4, %vm8231_vm10 }
 0x68c   : > { %v8228_v40 = vmul.f32 %v10362_v18, %v8227_v51  ;;  %v8241_v26 = vmul.f32 %v10364_v3, %v19485_v63  ;;  %v10366_v13 = vpop.eup %10365  ;;  %vm8246_vm0 = vweird.f32 %v10364_v3  ;;  %v8251_v11 = vand.u32 2147483648, %v19485_v63 }
 0x68d   : > { %v8203_v31 = vsel %vm8202_vm5, %v10358_v44, %v8199_v33  ;;  %v8214_v52 = vadd.f32 %v10360_v59, %v8213_v32  ;;  %v19527_v54 = vadd.f32 1.0, %v10366_v13  ;;  %10367 = vpow2.f32 %v9002_v19 }
 0x68e   : > { %v8208_v16 = vsel %vm19488_vm3, %v8207_v17, %v8203_v31  ;;  %v8229_v23 = vadd.f32 %v10362_v18, %v8228_v40  ;;  %v8242_v6 = vsub.f32 1.0, %v8241_v26  ;;  %vm8245_vm15 = vweird.f32 %v19485_v63 }
 0x68f   : > { %8519 = vst [vmem:[%s16097_s15 + $0x390] sm:$0xff] %v8208_v16  ;;  %v8218_v30 = vsel %vm8217_vm13, %v10360_v59, %v8214_v52  ;;  %10369 = vrcp.f32 %v19527_v54  ;;  %v5755_v0 = vpop.f32.mrf.mxu2  ;;  %v9004_v62 = vmul.f32 -1.442695, %v5962_v25  ;;  %vm8247_vm2 = vmor %vm8245_vm15, %vm8246_vm0  ;;  %v8252_v57 = vor.u32 1.1754944e-38, %v8251_v11  ;;  %v5964_v50 = vpop.f32.mrf.mxu3 }
 0x690   : > { %v8223_v47 = vsel %vm19503_vm6, %v8222_v55, %v8218_v30  ;;  %v8233_v29 = vsel %vm8232_vm14, %v10362_v18, %v8229_v23  ;;  %v8243_v36 = vmul.f32 %v10364_v3, %v8242_v6  ;;  %10371 = vpow2.f32 %v9003_v53 }
 0x691   : > { %8520 = vst [vmem:[%s16097_s15 + $0x398] sm:$0xff] %v8223_v47  ;;  %v8238_v22 = vsel %vm19511_vm7, %v8237_v20, %v8233_v29  ;;  %v5756_v12 = vadd.f32 %v5755_v0, %v15896_v28  ;;  %vm8250_vm11 = vcmp.eq.f32.partialorder %v8249_v27, 8.507059e+37  ;;  %10373 = vpow2.f32 %v9004_v62 }
 0x692   : > { %8521 = vst [vmem:[%s16097_s15 + $0x3a0] sm:$0xff] %v8238_v22  ;;  %v8244_v21 = vadd.f32 %v10364_v3, %v8243_v36  ;;  %v5965_v14 = vadd.f32 %v5964_v50, %v15909_v7  ;;  %v8266_v59 = vand.u32 2147483648, %v19527_v54  ;;  %v8264_v18 = vand.u32 2147483647, %v19527_v54 }
 0x693   : > { %v9005_v8 = vmul.f32 -1.442695, %v5756_v12  ;;  %v10368_v44 = vpop.eup %10367  ;;  %vm8260_vm8 = vweird.f32 %v19527_v54 }
 0x694   : > { %v8248_v56 = vsel %vm8247_vm2, %v10364_v3, %v8244_v21  ;;  %v19546_v38 = vadd.f32 1.0, %v10368_v44  ;;  %v9006_v10 = vmul.f32 -1.442695, %v5965_v14  ;;  %v8267_v58 = vor.u32 1.1754944e-38, %v8266_v59 }
 0x695   : > { %v8253_v17 = vsel %vm8250_vm11, %v8252_v57, %v8248_v56  ;;  %v10370_v63 = vpop.eup %10369  ;;  %10375 = vpow2.f32 %v9005_v8  ;;  %vm8265_vm9 = vcmp.eq.f32.partialorder %v8264_v18, 8.507059e+37 }
 0x696   : > { %8522 = vst [vmem:[%s16097_s15 + $0x3a8] sm:$0xff] %v8253_v17  ;;  %v8256_v37 = vmul.f32 %v10370_v63, %v19527_v54  ;;  %v10372_v24 = vpop.eup %10371  ;;  %10377 = vrcp.f32 %v19546_v38  ;;  %vm8261_vm3 = vweird.f32 %v10370_v63  ;;  %v8279_v39 = vand.u32 2147483647, %v19546_v38 }
 0x697   : > { %v19550_v48 = vadd.f32 1.0, %v10372_v24  ;;  %10379 = vpow2.f32 %v9006_v10  ;;  %v5758_v45 = vpop.f32.mrf.mxu2  ;;  %v10374_v2 = vpop.eup %10373  ;;  %v8281_v61 = vand.u32 2147483648, %v19546_v38  ;;  %vm8262_vm4 = vmor %vm8260_vm8, %vm8261_vm3  ;;  %vm8275_vm6 = vweird.f32 %v19546_v38 }
 0x698   : > { %v8257_v5 = vsub.f32 1.0, %v8256_v37  ;;  %v5759_v35 = vadd.f32 %v5758_v45, %v15896_v28  ;;  %v19557_v49 = vadd.f32 1.0, %v10374_v2  ;;  %v5967_v15 = vpop.f32.mrf.mxu3  ;;  %vm19568_vm1 = vcmp.eq.f32.partialorder %v8279_v39, 8.507059e+37 }
 0x699   : > { %10381 = vrcp.f32 %v19550_v48  ;;  %v8294_v55 = vand.u32 2147483647, %v19550_v48  ;;  %v8296_v34 = vand.u32 2147483648, %v19550_v48  ;;  %v8282_v31 = vor.u32 1.1754944e-38, %v8281_v61 }
 0x69a   : > { %v8258_v43 = vmul.f32 %v10370_v63, %v8257_v5  ;;  %10383 = vrcp.f32 %v19557_v49  ;;  %v9007_v46 = vmul.f32 -1.442695, %v5759_v35  ;;  %vm8290_vm7 = vweird.f32 %v19550_v48 }
 0x69b   : > { %v10376_v1 = vpop.eup %10375  ;;  %v8309_v40 = vand.u32 2147483647, %v19557_v49  ;;  %vm19577_vm5 = vcmp.eq.f32.partialorder %v8294_v55, 8.507059e+37  ;;  %v8297_v52 = vor.u32 1.1754944e-38, %v8296_v34  ;;  %v5968_v19 = vadd.f32 %v5967_v15, %v15909_v7 }
 0x69c   : > { %v8259_v42 = vadd.f32 %v10370_v63, %v8258_v43  ;;  %v19561_v9 = vadd.f32 1.0, %v10376_v1  ;;  %v10378_v60 = vpop.eup %10377  ;;  %vm8305_vm10 = vweird.f32 %v19557_v49  ;;  %v8311_v54 = vand.u32 2147483648, %v19557_v49 }
 0x69d   : > { %v10380_v33 = vpop.eup %10379  ;;  %v8271_v41 = vmul.f32 %v10378_v60, %v19546_v38  ;;  %vm8276_vm12 = vweird.f32 %v10378_v60  ;;  %vm19588_vm13 = vcmp.eq.f32.partialorder %v8309_v40, 8.507059e+37  ;;  %v9008_v36 = vmul.f32 -1.442695, %v5968_v19 }
 0x69e   : > { %v8263_v51 = vsel %vm8262_vm4, %v10370_v63, %v8259_v42  ;;  %10385 = vrcp.f32 %v19561_v9  ;;  %v19581_v13 = vadd.f32 1.0, %v10380_v33  ;;  %vm8320_vm14 = vweird.f32 %v19561_v9  ;;  %vm8277_vm0 = vmor %vm8275_vm6, %vm8276_vm12 }
 0x69f   : > { %v8268_v3 = vsel %vm8265_vm9, %v8267_v58, %v8263_v51  ;;  %v10382_v20 = vpop.eup %10381  ;;  %v8272_v27 = vsub.f32 1.0, %v8271_v41  ;;  %10387 = vpow2.f32 %v9007_v46  ;;  %v8324_v12 = vand.u32 2147483647, %v19561_v9 }
 0x6a0   : > { %8523 = vst [vmem:[%s16097_s15 + $0x3b0] sm:$0xff] %v8268_v3  ;;  %v8286_v26 = vmul.f32 %v10382_v20, %v19550_v48  ;;  %v10384_v23 = vpop.eup %10383  ;;  %10389 = vrcp.f32 %v19581_v13  ;;  %vm8291_vm15 = vweird.f32 %v10382_v20  ;;  %v8326_v50 = vand.u32 2147483648, %v19561_v9 }
 0x6a1   : > { %v8273_v16 = vmul.f32 %v10378_v60, %v8272_v27  ;;  %v8301_v30 = vmul.f32 %v10384_v23, %v19557_v49  ;;  %10391 = vpow2.f32 %v9008_v36  ;;  %vm8292_vm2 = vmor %vm8290_vm7, %vm8291_vm15  ;;  %vm8306_vm11 = vweird.f32 %v10384_v23 }
 0x6a2   : > { %v8287_v6 = vsub.f32 1.0, %v8286_v26  ;;  %vm8307_vm8 = vmor %vm8305_vm10, %vm8306_vm11  ;;  %v8312_v48 = vor.u32 1.1754944e-38, %v8311_v54  ;;  %vm19613_vm4 = vcmp.eq.f32.partialorder %v8324_v12, 8.507059e+37  ;;  %v8327_v35 = vor.u32 1.1754944e-38, %v8326_v50 }
 0x6a3   : > { %v8274_v25 = vadd.f32 %v10378_v60, %v8273_v16  ;;  %v8302_v21 = vsub.f32 1.0, %v8301_v30  ;;  %v8339_v1 = vand.u32 2147483647, %v19581_v13  ;;  %v8341_v42 = vand.u32 2147483648, %v19581_v13 }
 0x6a4   : > { %v10386_v47 = vpop.eup %10385  ;;  %v8288_v29 = vmul.f32 %v10382_v20, %v8287_v6 }
 0x6a5   : > { %v8278_v0 = vsel %vm8277_vm0, %v10378_v60, %v8274_v25  ;;  %v8316_v62 = vmul.f32 %v10386_v47, %v19561_v9  ;;  %v10388_v57 = vpop.eup %10387  ;;  %vm8321_vm3 = vweird.f32 %v10386_v47  ;;  %v8342_v33 = vor.u32 1.1754944e-38, %v8341_v42 }
 0x6a6   : > { %v5761_v53 = vpop.f32.mrf.mxu2  ;;  %v8283_v56 = vsel %vm19568_vm1, %v8282_v31, %v8278_v0  ;;  %v8289_v8 = vadd.f32 %v10382_v20, %v8288_v29  ;;  %v5970_v44 = vpop.f32.mrf.mxu3  ;;  %v19604_v14 = vadd.f32 1.0, %v10388_v57  ;;  %vm8322_vm9 = vmor %vm8320_vm14, %vm8321_vm3  ;;  %vm8335_vm1 = vweird.f32 %v19581_v13 }
 0x6a7   : > { %v5762_v22 = vadd.f32 %v5761_v53, %v15896_v28  ;;  %8524 = vst [vmem:[%s16097_s15 + $0x3b8] sm:$0xff] %v8283_v56  ;;  %v8303_v28 = vmul.f32 %v10384_v23, %v8302_v21  ;;  %v8317_v17 = vsub.f32 1.0, %v8316_v62  ;;  %v10390_v63 = vpop.eup %10389  ;;  %v5971_v10 = vadd.f32 %v5970_v44, %v15909_v7 }
 0x6a8   : > { %v8293_v38 = vsel %vm8292_vm2, %v10382_v20, %v8289_v8  ;;  %v8331_v2 = vmul.f32 %v10390_v63, %v19581_v13  ;;  %10393 = vrcp.f32 %v19604_v14  ;;  %v10392_v39 = vpop.eup %10391  ;;  %vm8336_vm6 = vweird.f32 %v10390_v63 }
 0x6a9   : > { %v9009_v37 = vmul.f32 -1.442695, %v5762_v22  ;;  %v8298_v24 = vsel %vm19577_vm5, %v8297_v52, %v8293_v38  ;;  %v8304_v5 = vadd.f32 %v10384_v23, %v8303_v28  ;;  %v8318_v45 = vmul.f32 %v10386_v47, %v8317_v17  ;;  %vm8337_vm7 = vmor %vm8335_vm1, %vm8336_vm6 }
 0x6aa   : > { %8525 = vst [vmem:[%s16097_s15 + $0x3c0] sm:$0xff] %v8298_v24  ;;  %v8332_v18 = vsub.f32 1.0, %v8331_v2  ;;  %v9010_v61 = vmul.f32 -1.442695, %v5971_v10  ;;  %v6482_v55 = vadd.f32 1.0, %v10392_v39  ;;  %vm8340_vm5 = vcmp.eq.f32.partialorder %v8339_v1, 8.507059e+37 }
 0x6ab   : > { %v8308_v7 = vsel %vm8307_vm8, %v10384_v23, %v8304_v5  ;;  %v8319_v43 = vadd.f32 %v10386_v47, %v8318_v45  ;;  %10395 = vpow2.f32 %v9009_v37  ;;  %v8356_v31 = vand.u32 2147483648, %v19604_v14 }
 0x6ac   : > { %v8313_v49 = vsel %vm19588_vm13, %v8312_v48, %v8308_v7  ;;  %v8333_v58 = vmul.f32 %v10390_v63, %v8332_v18  ;;  %10397 = vpow2.f32 %v9010_v61  ;;  %v8354_v4 = vand.u32 2147483647, %v19604_v14 }
 0x6ad   : > { %8526 = vst [vmem:[%s16097_s15 + $0x3c8] sm:$0xff] %v8313_v49  ;;  %v8323_v60 = vsel %vm8322_vm9, %v10386_v47, %v8319_v43  ;;  %10399 = vrcp.f32 %v6482_v55  ;;  %vm8350_vm10 = vweird.f32 %v19604_v14  ;;  %v8357_v19 = vor.u32 1.1754944e-38, %v8356_v31 }
 0x6ae   : > { %v8328_v46 = vsel %vm19613_vm4, %v8327_v35, %v8323_v60  ;;  %v8334_v15 = vadd.f32 %v10390_v63, %v8333_v58  ;;  %v10394_v9 = vpop.eup %10393  ;;  %vm8355_vm14 = vcmp.eq.f32.partialorder %v8354_v4, 8.507059e+37  ;;  %v8371_v6 = vand.u32 2147483648, %v6482_v55 }
 0x6af   : > { %8527 = vst [vmem:[%s16097_s15 + $0x3d0] sm:$0xff] %v8328_v46  ;;  %v8346_v41 = vmul.f32 %v10394_v9, %v19604_v14  ;;  %vm8351_vm12 = vweird.f32 %v10394_v9  ;;  %v8369_v30 = vand.u32 2147483647, %v6482_v55  ;;  %vm8365_vm15 = vweird.f32 %v6482_v55 }
 0x6b0   : > { %v8338_v51 = vsel %vm8337_vm7, %v10390_v63, %v8334_v15  ;;  %vm8352_vm13 = vmor %vm8350_vm10, %vm8351_vm12  ;;  %v8372_v36 = vor.u32 1.1754944e-38, %v8371_v6 }
 0x6b1   : > { %v10396_v34 = vpop.eup %10395  ;;  %v8343_v3 = vsel %vm8340_vm5, %v8342_v33, %v8338_v51  ;;  %v8347_v32 = vsub.f32 1.0, %v8346_v41  ;;  %vm8370_vm11 = vcmp.eq.f32.partialorder %v8369_v30, 8.507059e+37 }
 0x6b2   : > { %8528 = vst [vmem:[%s16097_s15 + $0x3d8] sm:$0xff] %v8343_v3  ;;  %v6483_v20 = vadd.f32 1.0, %v10396_v34  ;;  %v10398_v27 = vpop.eup %10397 }
 0x6b3   : > { %v10400_v40 = vpop.eup %10399  ;;  %v8348_v26 = vmul.f32 %v10394_v9, %v8347_v32  ;;  %v6484_v16 = vadd.f32 1.0, %v10398_v27 }
 0x6b4   : > { %10401 = vrcp.f32 %v6483_v20  ;;  %v8361_v13 = vmul.f32 %v10400_v40, %v6482_v55  ;;  %vm8366_vm0 = vweird.f32 %v10400_v40  ;;  %v8386_v12 = vand.u32 2147483648, %v6483_v20 }
 0x6b5   : > { %v8349_v52 = vadd.f32 %v10394_v9, %v8348_v26  ;;  %10403 = vrcp.f32 %v6484_v16  ;;  %vm8367_vm2 = vmor %vm8365_vm15, %vm8366_vm0  ;;  %v8384_v8 = vand.u32 2147483647, %v6483_v20  ;;  %vm8380_vm8 = vweird.f32 %v6483_v20 }
 0x6b6   : > { %v8362_v53 = vsub.f32 1.0, %v8361_v13  ;;  %v8401_v28 = vand.u32 2147483648, %v6484_v16  ;;  %v8387_v17 = vor.u32 1.1754944e-38, %v8386_v12  ;;  %v8399_v63 = vand.u32 2147483647, %v6484_v16 }
 0x6b7   : > { %v8353_v23 = vsel %vm8352_vm13, %v10394_v9, %v8349_v52  ;;  %vm8385_vm6 = vcmp.eq.f32.partialorder %v8384_v8, 8.507059e+37  ;;  %vm8395_vm1 = vweird.f32 %v6484_v16 }
 0x6b8   : > { %v8358_v54 = vsel %vm8355_vm14, %v8357_v19, %v8353_v23  ;;  %v8363_v25 = vmul.f32 %v10400_v40, %v8362_v53  ;;  %v8402_v24 = vor.u32 1.1754944e-38, %v8401_v28  ;;  %vm8400_vm5 = vcmp.eq.f32.partialorder %v8399_v63, 8.507059e+37 }
 0x6b9   : > { %8529 = vst [vmem:[%s16097_s15 + $0x3e0] sm:$0xff] %v8358_v54 }
 0x6ba   : > { %v10402_v11 = vpop.eup %10401  ;;  %v8364_v47 = vadd.f32 %v10400_v40, %v8363_v25 }
 0x6bb   : > { %v8376_v29 = vmul.f32 %v10402_v11, %v6483_v20  ;;  %v10404_v22 = vpop.eup %10403  ;;  %vm8381_vm3 = vweird.f32 %v10402_v11 }
 0x6bc   : > { %v8368_v0 = vsel %vm8367_vm2, %v10400_v40, %v8364_v47  ;;  %v8391_v57 = vmul.f32 %v10404_v22, %v6484_v16  ;;  %vm8382_vm4 = vmor %vm8380_vm8, %vm8381_vm3  ;;  %vm8396_vm9 = vweird.f32 %v10404_v22 }
 0x6bd   : > { %v8377_v21 = vsub.f32 1.0, %v8376_v29  ;;  %v8373_v62 = vsel %vm8370_vm11, %v8372_v36, %v8368_v0  ;;  %vm8397_vm7 = vmor %vm8395_vm1, %vm8396_vm9 }
 0x6be   : > { %8530 = vst [vmem:[%s16097_s15 + $0x3e8] sm:$0xff] %v8373_v62  ;;  %v8392_v50 = vsub.f32 1.0, %v8391_v57 }
 0x6bf   : > { %v8378_v56 = vmul.f32 %v10402_v11, %v8377_v21 }
 0x6c0   : > { %v8393_v14 = vmul.f32 %v10404_v22, %v8392_v50 }
 0x6c1   : > { %v8379_v44 = vadd.f32 %v10402_v11, %v8378_v56 }
 0x6c2   : > { %v8394_v10 = vadd.f32 %v10404_v22, %v8393_v14 }
 0x6c3   : > { %v8383_v38 = vsel %vm8382_vm4, %v10402_v11, %v8379_v44 }
 0x6c4   : > { %v8388_v37 = vsel %vm8385_vm6, %v8387_v17, %v8383_v38  ;;  %v8398_v5 = vsel %vm8397_vm7, %v10404_v22, %v8394_v10 }
 0x6c5   : > { %8531 = vst [vmem:[%s16097_s15 + $0x3f0] sm:$0xff] %v8388_v37  ;;  %v8403_v45 = vsel %vm8400_vm5, %v8402_v24, %v8398_v5 }
 0x6c6   : > { %8532 = vst [vmem:[%s16097_s15 + $0x3f8] sm:$0xff] %v8403_v45 }
 0x6c7   : > { %10702 = shalt.err (!%p10699_p9)
}
 0x6c8   : > { %s10764_s16 = smov 256   ;;  %s10765_s15 = smov 16  }
 0x6c9   : > { %9043 = dma.vmem_to_hbm [thread:$0]  (%p10898_p13), %s8548_s8, 16384, %s8550_s20, %s8534_s21, %s10764_s16, %s10764_s16, %s10765_s15  }
 0x6ca PF: > { %s8564_s22 = sand.u32 1, %s10741_s24   ;;  %p20744_p10 = scmp.ge.s32.totalorder %s10753_s27, 2 }
 0x6cb   : > { %s8565_s10 = scalar_lea.sflag [#allocation4], %s8564_s22 }
 0x6cc   : > { %p9066_p11 = pnand %p20744_p10, %p10903_p4 }
 0x6ce   : > { %p9067_p0 = pneg %p9066_p11 }
 0x6d0   : > { %10736 = dma.done.wait (%p9067_p0), %s8565_s10, 16384  }
 0x6d1   : > { %10738 = vsyncadd (%p9067_p0), %s8565_s10, 4294950912  ;;  %p23_p2 = scmp.ge.s32.totalorder %s10878_s28, 4   ;;  %s20745_s24 = smov %s10745_s25 }
 0x6d2   : > { %s20746_s25 = smov %s10749_s26  ;;  %s20747_s26 = smov %s10890_s12 }
 0x6d3   : > { %s20748_s27 = smov %s10878_s28  ;;  %25 = sbr.rel (!%p23_p2) target bundleno = 10 (0xa), region = 113 }
 0x6d8   :  { %8571 = vsyncpa [#allocation3], 1 }
 0x6d9   :  { %8573 = vsyncpa [#allocation3 + $0x1], 1 }
 0x6da   :  { %8574 = vsyncpa [#allocation6], 1 }
 0x6db   :  { %8575 = vsyncpa [#allocation9], 1 }
 0x6dc   :  { %8576 = vsyncpa [#allocation12], 1 }
 0x6dd   :  { %8577 = vsyncpa [#allocation4], 1 }
 0x6de   :  { %8579 = vsyncpa [#allocation4 + $0x1], 1 }

</bundles_post_ra>
